<compile_context>
chip_gen: v7x
topology: tpu7x:2x2x1
jax: 0.10.0
libtpu: 0.0.40
codegen_flags: <defaults>
</compile_context>

<pallas_src>
from typing import List, NamedTuple, Optional

import jax
import jax.numpy as jnp
from jax.experimental import pallas as pl
from jax.experimental.pallas import tpu as pltpu

# -------------------- configuration (small, deterministic) --------------------
ENCODING_SIZE = 32      # embedding_size used throughout the model
LSTM_SIZE     = 32
LSTM_LAYERS   = 2       # kernel below is specialized for 2 layers
VOCAB_TOKENS  = 16
VOCAB_IDS     = 16
VOCAB_NUMS    = 16
VOCAB_EMB     = 16      # vocab_embedding_size of the LstmEncoders
MAX_LENGTH    = (1, 4, 4)   # InputProcessor.MAX_LENGTH  (tokens, ids, nums)

assert LSTM_LAYERS == 2, "fused kernel below is specialized for 2 LSTM layers"
assert MAX_LENGTH[1] == MAX_LENGTH[2] and VOCAB_IDS == VOCAB_NUMS

_VMEM = pl.BlockSpec(memory_space=pltpu.MemorySpace.VMEM)
_TRANS_B = (((1,), (1,)), ((), ()))     # a @ b.T contraction dims


# ------------------------------ in-kernel helpers ------------------------------

def _mm(a, b):
    return jnp.dot(a, b, preferred_element_type=jnp.float32)


def _mm_t(a, b):        # a @ b.T (MXU-supported transposed-rhs contraction)
    return jax.lax.dot_general(a, b, _TRANS_B, preferred_element_type=jnp.float32)


def _lstm_cell(gates, c, H):
    # PyTorch gate order: i, f, g, o ; bias already folded into `gates`.
    i_g = jax.nn.sigmoid(gates[:, 0 * H:1 * H])
    f_g = jax.nn.sigmoid(gates[:, 1 * H:2 * H])
    g_g = jnp.tanh(gates[:, 2 * H:3 * H])
    o_g = jax.nn.sigmoid(gates[:, 3 * H:4 * H])
    c_new = f_g * c + i_g * g_g
    return o_g * jnp.tanh(c_new), c_new


def _softmax_last(logits):
    m = jnp.max(logits, axis=-1, keepdims=True)
    e = jnp.exp(logits - m)
    return e * pl.reciprocal(jnp.sum(e, axis=-1, keepdims=True), approx=True)


def _argmax_onehot(vals):
    """First-occurrence argmax over the last axis (float arithmetic only).

    Returns (idx as f32 (n,1), one-hot (n,V) f32)."""
    n, V = vals.shape
    iota_f = jax.lax.broadcasted_iota(jnp.int32, (n, V), 1).astype(jnp.float32)
    mx = jnp.max(vals, axis=-1, keepdims=True)
    hit = vals >= mx
    first = V - jnp.max(jnp.where(hit, V - iota_f, 0.0), axis=-1, keepdims=True)
    onehot = (iota_f == first).astype(jnp.float32)
    return first, onehot


# ------------------------------ the fused kernel --------------------------------

def _model_kernel(
    # data
    sel_ref, tokens_ref, ids_ref, nums_ref, h0_ref, c0_ref,
    # token embedding table
    tok_emb_ref,
    # stacked LstmEncoder params (index 0 = ids, 1 = nums)
    enc_emb_ref, enc_wih0_ref, enc_whh0_ref, enc_b0_ref,
    enc_wih1_ref, enc_whh1_ref, enc_b1_ref, enc_fcw_ref, enc_fcb_ref,
    # stacked LstmDecoder params (index 0 = ids, 1 = nums)
    dec_inw_ref, dec_inb_ref, dec_wih0_ref, dec_whh0_ref, dec_b0_ref,
    dec_wih1_ref, dec_whh1_ref, dec_b1_ref, dec_outw_ref, dec_outb_ref,
    # main LSTM + output_fc
    m_wih0_ref, m_whh0_ref, m_b0_ref, m_wih1_ref, m_whh1_ref, m_b1_ref,
    m_fcw_ref, m_fcb_ref,
    # outputs
    tok_logits_ref, ids_logits_ref, nums_logits_ref,
    probs_ref, logits_ref, hn_ref, cn_ref,
    # scratch
    xin_scr, out_scr,
):
    f32 = jnp.float32
    H = LSTM_SIZE

    # ---------------- token encoder: embedding lookup via one-hot matmul -------
    tok_emb = tok_emb_ref[...]                                    # (V_tok, E)
    n_tok = tokens_ref.shape[0]
    V_tok = tok_emb.shape[0]
    tok_iota = jax.lax.broadcasted_iota(jnp.int32, (n_tok, V_tok), 1)
    tok_oh = (tokens_ref[...] == tok_iota).astype(f32)
    emb_tok = _mm(tok_oh, tok_emb)                                # (n_tok, E)

    # ---------------- LstmEncoder over a list of per-step one-hot inputs --------
    def run_encoder(g, onehots):
        emb = enc_emb_ref[g]                                      # (V, VE)
        emb_wih0 = _mm(emb, enc_wih0_ref[g])                      # (V, 4H) fused lookup+proj
        whh0, b0 = enc_whh0_ref[g], enc_b0_ref[g]
        wih1, whh1, b1 = enc_wih1_ref[g], enc_whh1_ref[g], enc_b1_ref[g]
        n = onehots[0].shape[0]
        h0 = jnp.zeros((n, H), f32)    # encoder h0/c0 parameters are zero-init
        c0 = jnp.zeros((n, H), f32)
        h1 = jnp.zeros((n, H), f32)
        c1 = jnp.zeros((n, H), f32)
        for oh in onehots:                                        # static unroll, T <= 4
            g0 = _mm(oh, emb_wih0) + _mm(h0, whh0) + b0
            h0, c0 = _lstm_cell(g0, c0, H)
            g1 = _mm(h0, wih1) + _mm(h1, whh1) + b1
            h1, c1 = _lstm_cell(g1, c1, H)
        # cat((hn,cn),2).transpose(0,1).reshape(n,-1) == [h0 | c0 | h1 | c1]
        state = jnp.concatenate([h0, c0, h1, c1], axis=1)         # (n, 4H)
        return _mm(state, enc_fcw_ref[g]) + enc_fcb_ref[g]        # (n, E)

    def int_onehots(arr_i32, V):
        n, T = arr_i32.shape
        iota = jax.lax.broadcasted_iota(jnp.int32, (n, V), 1)
        return [(arr_i32[:, t:t + 1] == iota).astype(f32) for t in range(T)]

    ids_i = ids_ref[...]
    nums_i = nums_ref[...]
    emb_ids = run_encoder(0, int_onehots(ids_i, VOCAB_IDS))       # (n_ids, E)
    emb_nums = run_encoder(1, int_onehots(nums_i, VOCAB_NUMS))    # (n_nums, E)

    # ---------------- token EmbeddingsDecoder + argmax + cycle mask -------------
    tok_logits = _mm_t(emb_tok, tok_emb)                          # (n_tok, V_tok), no bias
    tok_logits_ref[...] = tok_logits
    tok_idx, tok_dec_oh = _argmax_onehot(tok_logits)
    tok_mask = (tok_idx != tokens_ref[...].astype(f32)).astype(f32)   # (n_tok, 1)

    # ---------------- LstmDecoder (autoregressive, argmax + mask in-kernel) -----
    def run_decoder(g, enc, inp_i32):
        n = enc.shape[0]
        V = dec_outb_ref.shape[-1]
        st = _mm(enc, dec_inw_ref[g]) + dec_inb_ref[g]            # (n, 4H)
        h0, c0 = st[:, 0 * H:1 * H], st[:, 1 * H:2 * H]           # layer0 (h, c)
        h1, c1 = st[:, 2 * H:3 * H], st[:, 3 * H:4 * H]           # layer1 (h, c)
        wih0, whh0, b0 = dec_wih0_ref[g], dec_whh0_ref[g], dec_b0_ref[g]
        wih1, whh1, b1 = dec_wih1_ref[g], dec_whh1_ref[g], dec_b1_ref[g]
        outw, outb = dec_outw_ref[g], dec_outb_ref[g]
        iota = jax.lax.broadcasted_iota(jnp.int32, (n, V), 1)
        x = (iota == 0).astype(f32)                               # x[:, 0] = 1.0
        inp_f = inp_i32.astype(f32)
        length = inp_i32.shape[1]
        logits_steps, dec_onehots = [], []
        neq = jnp.zeros((n, 1), f32)
        for i in range(length):                                   # static unroll, <= 4
            g0 = _mm(x, wih0) + _mm(h0, whh0) + b0
            h0, c0 = _lstm_cell(g0, c0, H)
            g1 = _mm(h0, wih1) + _mm(h1, whh1) + b1
            h1, c1 = _lstm_cell(g1, c1, H)
            logits = _mm(h1, outw) + outb                         # (n, V)
            probs = _softmax_last(logits)
            idx, oh = _argmax_onehot(logits)                      # argmax(probs)==argmax(logits)
            logits_steps.append(logits)
            dec_onehots.append(oh)
            neq = jnp.maximum(neq, (idx != inp_f[:, i:i + 1]).astype(f32))
            x = probs                                             # soft feedback, as in reference
        return jnp.concatenate(logits_steps, axis=1), dec_onehots, neq

    ids_slab, ids_dec_oh, ids_mask = run_decoder(0, emb_ids, ids_i)
    nums_slab, nums_dec_oh, nums_mask = run_decoder(1, emb_nums, nums_i)
    ids_logits_ref[...] = ids_slab                                # lane-dense (n, length*V)
    nums_logits_ref[...] = nums_slab

    # ---------------- cycle: re-encode the decoded inputs, masked ---------------
    cyc_tok = _mm(tok_dec_oh, tok_emb) * tok_mask
    cyc_ids = run_encoder(0, ids_dec_oh) * ids_mask
    cyc_nums = run_encoder(1, nums_dec_oh) * nums_mask

    emb_in = jnp.concatenate([emb_tok, emb_ids, emb_nums], axis=0)           # (N, E)
    emb_all = jnp.concatenate([emb_in, cyc_tok, cyc_ids, cyc_nums], axis=0)  # (2N, E)

    # ---------------- sequence embeddings + main LSTM + similarity softmax ------
    xin_scr[...] = _mm(sel_ref[...], emb_in)                      # (seq*batch, E)
    seq_batch = sel_ref.shape[0]
    batch = h0_ref.shape[1]
    seq_len = seq_batch // batch
    m_wih0, m_whh0, m_b0 = m_wih0_ref[...], m_whh0_ref[...], m_b0_ref[...]
    m_wih1, m_whh1, m_b1 = m_wih1_ref[...], m_whh1_ref[...], m_b1_ref[...]
    h0m, c0m = h0_ref[0], c0_ref[0]
    h1m, c1m = h0_ref[1], c0_ref[1]
    for t in range(seq_len):                                      # static unroll, <= 6
        xt = xin_scr[pl.ds(t * batch, batch), :]                  # (batch, E)
        g0 = _mm(xt, m_wih0) + _mm(h0m, m_whh0) + m_b0
        h0m, c0m = _lstm_cell(g0, c0m, H)
        g1 = _mm(h0m, m_wih1) + _mm(h1m, m_whh1) + m_b1
        h1m, c1m = _lstm_cell(g1, c1m, H)
        out_scr[pl.ds(t * batch, batch), :] = h1m                 # slab write, no concat
    hn_ref[0] = h0m
    hn_ref[1] = h1m
    cn_ref[0] = c0m
    cn_ref[1] = c1m
    pred = _mm(out_scr[...], m_fcw_ref[...]) + m_fcb_ref[...]     # (seq*batch, E)
    logits = _mm_t(pred, emb_all)                                 # (seq*batch, 2N)
    logits_ref[...] = logits
    probs_ref[...] = _softmax_last(logits)


# ------------------------------ parameter packing --------------------------------

def prepare_kernel_params(params):
    """Hoisted ONCE at init: stack the ids/nums encoder+decoder weights and flatten
    everything into the kernel argument order (no per-forward repacking)."""
    def st_enc(f):
        return jnp.stack([f(params['enc_ids']), f(params['enc_nums'])], axis=0)

    def st_dec(f):
        return jnp.stack([f(params['dec_ids']), f(params['dec_nums'])], axis=0)

    enc = [
        st_enc(lambda p: p['embedding']),
        st_enc(lambda p: p['lstm'][0]['wihT']), st_enc(lambda p: p['lstm'][0]['whhT']),
        st_enc(lambda p: p['lstm'][0]['b']),
        st_enc(lambda p: p['lstm'][1]['wihT']), st_enc(lambda p: p['lstm'][1]['whhT']),
        st_enc(lambda p: p['lstm'][1]['b']),
        st_enc(lambda p: p['fc']['wT']), st_enc(lambda p: p['fc']['b']),
    ]
    dec = [
        st_dec(lambda p: p['in_fc']['wT']), st_dec(lambda p: p['in_fc']['b']),
        st_dec(lambda p: p['lstm'][0]['wihT']), st_dec(lambda p: p['lstm'][0]['whhT']),
        st_dec(lambda p: p['lstm'][0]['b']),
        st_dec(lambda p: p['lstm'][1]['wihT']), st_dec(lambda p: p['lstm'][1]['whhT']),
        st_dec(lambda p: p['lstm'][1]['b']),
        st_dec(lambda p: p['out_fc']['wT']), st_dec(lambda p: p['out_fc']['b']),
    ]
    main = [
        params['lstm'][0]['wihT'], params['lstm'][0]['whhT'], params['lstm'][0]['b'],
        params['lstm'][1]['wihT'], params['lstm'][1]['whhT'], params['lstm'][1]['b'],
        params['out_fc']['wT'], params['out_fc']['b'],
    ]
    return tuple([params['tok_emb']] + enc + dec + main)


# ------------------------------ model forward ------------------------------------

class ModelOutput(NamedTuple):
    decoded_input_logits: List[jnp.ndarray]
    decoded_predictions: Optional[jnp.ndarray]
    probabilities: jnp.ndarray
    logits: jnp.ndarray
    hn: jnp.ndarray
    cn: jnp.ndarray


@jax.jit
def model_forward(kparams, x, y, x_type, y_type, tokens, ids, nums, h0, c0):
    del y, y_type   # unused by the reference forward as well
    seq_len, batch = x.shape
    n_tok, n_ids, n_nums = tokens.shape[0], ids.shape[0], nums.shape[0]
    n_total = n_tok + n_ids + n_nums
    length = MAX_LENGTH[1]
    E, H = ENCODING_SIZE, LSTM_SIZE

    # Tiny XLA glue: one-hot row-selection matrix for the sequence-embedding
    # gather (single gather against the concatenated [tok|ids|nums] table).
    offsets = jnp.array([0, n_tok, n_tok + n_ids], dtype=jnp.int32)
    gidx = x.reshape(-1) + offsets[x_type.reshape(-1)]
    sel = jax.nn.one_hot(gidx, n_total, dtype=jnp.float32)        # (seq*batch, N)

    out_shapes = (
        jax.ShapeDtypeStruct((n_tok, VOCAB_TOKENS), jnp.float32),           # token logits
        jax.ShapeDtypeStruct((n_ids, length * VOCAB_IDS), jnp.float32),     # ids logits slab
        jax.ShapeDtypeStruct((n_nums, length * VOCAB_NUMS), jnp.float32),   # nums logits slab
        jax.ShapeDtypeStruct((seq_len * batch, 2 * n_total), jnp.float32),  # probabilities
        jax.ShapeDtypeStruct((seq_len * batch, 2 * n_total), jnp.float32),  # logits
        jax.ShapeDtypeStruct((LSTM_LAYERS, batch, H), jnp.float32),         # hn
        jax.ShapeDtypeStruct((LSTM_LAYERS, batch, H), jnp.float32),         # cn
    )
    n_inputs = 6 + len(kparams)
    tok_logits, ids_slab, nums_slab, probs_f, logits_f, hn, cn = pl.pallas_call(
        _model_kernel,
        out_shape=out_shapes,
        in_specs=[_VMEM] * n_inputs,
        out_specs=tuple([_VMEM] * len(out_shapes)),
        scratch_shapes=[pltpu.VMEM((seq_len * batch, E), jnp.float32),
                        pltpu.VMEM((seq_len * batch, H), jnp.float32)],
    )(sel, tokens, ids, nums, h0, c0, *kparams)

    decoded_input_logits = [
        tok_logits,
        ids_slab.reshape(n_ids, length, VOCAB_IDS),
        nums_slab.reshape(n_nums, length, VOCAB_NUMS),
    ]
    probabilities = probs_f.reshape(seq_len, batch, 2 * n_total)
    logits = logits_f.reshape(seq_len, batch, 2 * n_total)
    return ModelOutput(decoded_input_logits, None, probabilities, logits, hn, cn)


# ----------------------------- parameter init ------------------------------------

def _init_linear(key, in_dim, out_dim, scale=0.1):
    kw, kb = jax.random.split(key)
    w = scale * jax.random.normal(kw, (out_dim, in_dim), jnp.float32)
    b = scale * jax.random.normal(kb, (out_dim,), jnp.float32)
    return {'wT': w.T, 'b': b.reshape(1, -1)}


def _init_lstm(key, input_size, hidden, layers, scale=0.1):
    layer_params = []
    for l in range(layers):
        key, k1, k2, k3 = jax.random.split(key, 4)
        in_sz = input_size if l == 0 else hidden
        wih = scale * jax.random.normal(k1, (4 * hidden, in_sz), jnp.float32)
        whh = scale * jax.random.normal(k2, (4 * hidden, hidden), jnp.float32)
        b = scale * jax.random.normal(k3, (4 * hidden,), jnp.float32)  # b_ih + b_hh folded
        layer_params.append({'wihT': wih.T, 'whhT': whh.T, 'b': b.reshape(1, -1)})
    return layer_params


def _init_lstm_encoder(key, vocab):
    k0, k1, k2 = jax.random.split(key, 3)
    return {
        'embedding': 0.1 * jax.random.normal(k0, (vocab, VOCAB_EMB), jnp.float32),
        'lstm': _init_lstm(k1, VOCAB_EMB, LSTM_SIZE, LSTM_LAYERS),
        'fc': _init_linear(k2, 2 * LSTM_SIZE * LSTM_LAYERS, ENCODING_SIZE),
        # h0 / c0 parameters are zero-initialised in the reference module
    }


def _init_lstm_decoder(key, vocab):
    k0, k1, k2 = jax.random.split(key, 3)
    return {
        'in_fc': _init_linear(k0, ENCODING_SIZE, 2 * LSTM_SIZE * LSTM_LAYERS),
        'lstm': _init_lstm(k1, vocab, LSTM_SIZE, LSTM_LAYERS),
        'out_fc': _init_linear(k2, LSTM_SIZE, vocab),
    }


def init_params(key):
    ks = jax.random.split(key, 7)
    return {
        'tok_emb': 0.1 * jax.random.normal(ks[0], (VOCAB_TOKENS, ENCODING_SIZE), jnp.float32),
        'enc_ids': _init_lstm_encoder(ks[1], VOCAB_IDS),
        'enc_nums': _init_lstm_encoder(ks[2], VOCAB_NUMS),
        'dec_ids': _init_lstm_decoder(ks[3], VOCAB_IDS),
        'dec_nums': _init_lstm_decoder(ks[4], VOCAB_NUMS),
        'lstm': _init_lstm(ks[5], ENCODING_SIZE, LSTM_SIZE, LSTM_LAYERS),
        'out_fc': _init_linear(ks[6], LSTM_SIZE, ENCODING_SIZE),
    }


# ----------------------------------- main ----------------------------------------

if __name__ == "__main__":
    key = jax.random.PRNGKey(0)
    pkey, dkey = jax.random.split(key)
    params = init_params(pkey)
    kparams = prepare_kernel_params(params)   # hoisted weight packing (done once)

    SEQ_LEN, BATCH = 6, 2
    N_TOK, N_IDS, N_NUMS = 8, 8, 8

    ks = jax.random.split(dkey, 5)
    tokens = jax.random.randint(ks[0], (N_TOK, 1), 0, VOCAB_TOKENS, dtype=jnp.int32)
    ids    = jax.random.randint(ks[1], (N_IDS, MAX_LENGTH[1]), 0, VOCAB_IDS, dtype=jnp.int32)
    nums   = jax.random.randint(ks[2], (N_NUMS, MAX_LENGTH[2]), 0, VOCAB_NUMS, dtype=jnp.int32)
    x      = jax.random.randint(ks[3], (SEQ_LEN, BATCH), 0,
                                min(N_TOK, N_IDS, N_NUMS), dtype=jnp.int32)
    x_type = jax.random.randint(ks[4], (SEQ_LEN, BATCH), 0, 3, dtype=jnp.int32)
    y, y_type = x, x_type   # unused by the forward pass (as in the reference)
    h0 = jnp.zeros((LSTM_LAYERS, BATCH, LSTM_SIZE), jnp.float32)
    c0 = jnp.zeros((LSTM_LAYERS, BATCH, LSTM_SIZE), jnp.float32)

    out = model_forward(kparams, x, y, x_type, y_type, tokens, ids, nums, h0, c0)

    jax.block_until_ready((out.decoded_input_logits, out.probabilities,
                           out.logits, out.hn, out.cn))
    print("KERNEL_OK")
</pallas_src>

<mosaic_0001>
module attributes {stable_mosaic.version = 11 : i64} {
  func.func @_model_kernel(%arg0: memref<12x24xf32, #tpu.memory_space<vmem>>, %arg1: memref<8x1xi32, #tpu.memory_space<vmem>>, %arg2: memref<8x4xi32, #tpu.memory_space<vmem>>, %arg3: memref<8x4xi32, #tpu.memory_space<vmem>>, %arg4: memref<2x2x32xf32, #tpu.memory_space<vmem>>, %arg5: memref<2x2x32xf32, #tpu.memory_space<vmem>>, %arg6: memref<16x32xf32, #tpu.memory_space<vmem>>, %arg7: memref<2x16x16xf32, #tpu.memory_space<vmem>>, %arg8: memref<2x16x128xf32, #tpu.memory_space<vmem>>, %arg9: memref<2x32x128xf32, #tpu.memory_space<vmem>>, %arg10: memref<2x1x128xf32, #tpu.memory_space<vmem>>, %arg11: memref<2x32x128xf32, #tpu.memory_space<vmem>>, %arg12: memref<2x32x128xf32, #tpu.memory_space<vmem>>, %arg13: memref<2x1x128xf32, #tpu.memory_space<vmem>>, %arg14: memref<2x128x32xf32, #tpu.memory_space<vmem>>, %arg15: memref<2x1x32xf32, #tpu.memory_space<vmem>>, %arg16: memref<2x32x128xf32, #tpu.memory_space<vmem>>, %arg17: memref<2x1x128xf32, #tpu.memory_space<vmem>>, %arg18: memref<2x16x128xf32, #tpu.memory_space<vmem>>, %arg19: memref<2x32x128xf32, #tpu.memory_space<vmem>>, %arg20: memref<2x1x128xf32, #tpu.memory_space<vmem>>, %arg21: memref<2x32x128xf32, #tpu.memory_space<vmem>>, %arg22: memref<2x32x128xf32, #tpu.memory_space<vmem>>, %arg23: memref<2x1x128xf32, #tpu.memory_space<vmem>>, %arg24: memref<2x32x16xf32, #tpu.memory_space<vmem>>, %arg25: memref<2x1x16xf32, #tpu.memory_space<vmem>>, %arg26: memref<32x128xf32, #tpu.memory_space<vmem>>, %arg27: memref<32x128xf32, #tpu.memory_space<vmem>>, %arg28: memref<1x128xf32, #tpu.memory_space<vmem>>, %arg29: memref<32x128xf32, #tpu.memory_space<vmem>>, %arg30: memref<32x128xf32, #tpu.memory_space<vmem>>, %arg31: memref<1x128xf32, #tpu.memory_space<vmem>>, %arg32: memref<32x32xf32, #tpu.memory_space<vmem>>, %arg33: memref<1x32xf32, #tpu.memory_space<vmem>>, %arg34: memref<8x16xf32, #tpu.memory_space<vmem>>, %arg35: memref<8x64xf32, #tpu.memory_space<vmem>>, %arg36: memref<8x64xf32, #tpu.memory_space<vmem>>, %arg37: memref<12x48xf32, #tpu.memory_space<vmem>>, %arg38: memref<12x48xf32, #tpu.memory_space<vmem>>, %arg39: memref<2x2x32xf32, #tpu.memory_space<vmem>>, %arg40: memref<2x2x32xf32, #tpu.memory_space<vmem>>, %arg41: memref<12x32xf32, #tpu.memory_space<vmem>>, %arg42: memref<12x32xf32, #tpu.memory_space<vmem>>) attributes {dimension_semantics = [], scalar_prefetch = 0 : i64, scratch_operands = 2 : i64, tpu.core_type = #tpu.core_type<tc>} {
    %c0 = arith.constant 0 : index
    %c0_0 = arith.constant 0 : index
    %0 = vector.load %arg6[%c0, %c0_0] : memref<16x32xf32, #tpu.memory_space<vmem>>, vector<16x32xf32>
    %1 = tpu.iota {dimensions = array<i32: 1>} : vector<8x16xi32>
    %c0_1 = arith.constant 0 : index
    %c0_2 = arith.constant 0 : index
    %2 = vector.load %arg1[%c0_1, %c0_2] : memref<8x1xi32, #tpu.memory_space<vmem>>, vector<8x1xi32>
    %3 = vector.broadcast %2 : vector<8x1xi32> to vector<8x16xi32>
    %4 = arith.cmpi eq, %3, %1 : vector<8x16xi32>
    %5 = arith.extui %4 : vector<8x16xi1> to vector<8x16xi32>
    %6 = arith.sitofp %5 : vector<8x16xi32> to vector<8x16xf32>
    %cst = arith.constant dense<0.000000e+00> : vector<8x32xf32>
    %7 = tpu.matmul %6, %0, %cst {dimension_numbers = #tpu.dot_dimension_numbers<[1], [0], [0], [1], [0, 0, 1, 1], [], []>} : vector<8x16xf32>, vector<16x32xf32>, vector<8x32xf32> -> vector<8x32xf32>
    %c0_3 = arith.constant 0 : index
    %c0_4 = arith.constant 0 : index
    %8 = vector.load %arg2[%c0_3, %c0_4] : memref<8x4xi32, #tpu.memory_space<vmem>>, vector<8x4xi32>
    %c0_5 = arith.constant 0 : index
    %c0_6 = arith.constant 0 : index
    %9 = vector.load %arg3[%c0_5, %c0_6] : memref<8x4xi32, #tpu.memory_space<vmem>>, vector<8x4xi32>
    %10 = tpu.iota {dimensions = array<i32: 1>} : vector<8x16xi32>
    %11 = vector.extract_strided_slice %8 {offsets = [0, 0], sizes = [8, 1], strides = [1, 1]} : vector<8x4xi32> to vector<8x1xi32>
    %12 = vector.broadcast %11 : vector<8x1xi32> to vector<8x16xi32>
    %13 = arith.cmpi eq, %12, %10 : vector<8x16xi32>
    %14 = arith.extui %13 : vector<8x16xi1> to vector<8x16xi32>
    %15 = arith.sitofp %14 : vector<8x16xi32> to vector<8x16xf32>
    %16 = vector.extract_strided_slice %8 {offsets = [0, 1], sizes = [8, 1], strides = [1, 1]} : vector<8x4xi32> to vector<8x1xi32>
    %17 = vector.broadcast %16 : vector<8x1xi32> to vector<8x16xi32>
    %18 = arith.cmpi eq, %17, %10 : vector<8x16xi32>
    %19 = arith.extui %18 : vector<8x16xi1> to vector<8x16xi32>
    %20 = arith.sitofp %19 : vector<8x16xi32> to vector<8x16xf32>
    %21 = vector.extract_strided_slice %8 {offsets = [0, 2], sizes = [8, 1], strides = [1, 1]} : vector<8x4xi32> to vector<8x1xi32>
    %22 = vector.broadcast %21 : vector<8x1xi32> to vector<8x16xi32>
    %23 = arith.cmpi eq, %22, %10 : vector<8x16xi32>
    %24 = arith.extui %23 : vector<8x16xi1> to vector<8x16xi32>
    %25 = arith.sitofp %24 : vector<8x16xi32> to vector<8x16xf32>
    %26 = vector.extract_strided_slice %8 {offsets = [0, 3], sizes = [8, 1], strides = [1, 1]} : vector<8x4xi32> to vector<8x1xi32>
    %27 = vector.broadcast %26 : vector<8x1xi32> to vector<8x16xi32>
    %28 = arith.cmpi eq, %27, %10 : vector<8x16xi32>
    %29 = arith.extui %28 : vector<8x16xi1> to vector<8x16xi32>
    %30 = arith.sitofp %29 : vector<8x16xi32> to vector<8x16xf32>
    %c0_7 = arith.constant 0 : index
    %c0_8 = arith.constant 0 : index
    %c0_9 = arith.constant 0 : index
    %31 = vector.load %arg7[%c0_7, %c0_8, %c0_9] : memref<2x16x16xf32, #tpu.memory_space<vmem>>, vector<1x16x16xf32>
    %32 = vector.shape_cast %31 : vector<1x16x16xf32> to vector<16x16xf32>
    %c0_10 = arith.constant 0 : index
    %c0_11 = arith.constant 0 : index
    %c0_12 = arith.constant 0 : index
    %33 = vector.load %arg8[%c0_10, %c0_11, %c0_12] : memref<2x16x128xf32, #tpu.memory_space<vmem>>, vector<1x16x128xf32>
    %34 = vector.shape_cast %33 : vector<1x16x128xf32> to vector<16x128xf32>
    %cst_13 = arith.constant dense<0.000000e+00> : vector<16x128xf32>
    %35 = tpu.matmul %32, %34, %cst_13 {dimension_numbers = #tpu.dot_dimension_numbers<[1], [0], [0], [1], [0, 0, 1, 1], [], []>} : vector<16x16xf32>, vector<16x128xf32>, vector<16x128xf32> -> vector<16x128xf32>
    %c0_14 = arith.constant 0 : index
    %c0_15 = arith.constant 0 : index
    %c0_16 = arith.constant 0 : index
    %36 = vector.load %arg9[%c0_14, %c0_15, %c0_16] : memref<2x32x128xf32, #tpu.memory_space<vmem>>, vector<1x32x128xf32>
    %37 = vector.shape_cast %36 : vector<1x32x128xf32> to vector<32x128xf32>
    %c0_17 = arith.constant 0 : index
    %c0_18 = arith.constant 0 : index
    %c0_19 = arith.constant 0 : index
    %38 = vector.load %arg10[%c0_17, %c0_18, %c0_19] : memref<2x1x128xf32, #tpu.memory_space<vmem>>, vector<1x1x128xf32>
    %39 = vector.shape_cast %38 : vector<1x1x128xf32> to vector<1x128xf32>
    %c0_20 = arith.constant 0 : index
    %c0_21 = arith.constant 0 : index
    %c0_22 = arith.constant 0 : index
    %40 = vector.load %arg11[%c0_20, %c0_21, %c0_22] : memref<2x32x128xf32, #tpu.memory_space<vmem>>, vector<1x32x128xf32>
    %41 = vector.shape_cast %40 : vector<1x32x128xf32> to vector<32x128xf32>
    %c0_23 = arith.constant 0 : index
    %c0_24 = arith.constant 0 : index
    %c0_25 = arith.constant 0 : index
    %42 = vector.load %arg12[%c0_23, %c0_24, %c0_25] : memref<2x32x128xf32, #tpu.memory_space<vmem>>, vector<1x32x128xf32>
    %43 = vector.shape_cast %42 : vector<1x32x128xf32> to vector<32x128xf32>
    %c0_26 = arith.constant 0 : index
    %c0_27 = arith.constant 0 : index
    %c0_28 = arith.constant 0 : index
    %44 = vector.load %arg13[%c0_26, %c0_27, %c0_28] : memref<2x1x128xf32, #tpu.memory_space<vmem>>, vector<1x1x128xf32>
    %45 = vector.shape_cast %44 : vector<1x1x128xf32> to vector<1x128xf32>
    %cst_29 = arith.constant 0.000000e+00 : f32
    %46 = vector.broadcast %cst_29 : f32 to vector<8x32xf32>
    %cst_30 = arith.constant 0.000000e+00 : f32
    %47 = vector.broadcast %cst_30 : f32 to vector<8x32xf32>
    %cst_31 = arith.constant 0.000000e+00 : f32
    %48 = vector.broadcast %cst_31 : f32 to vector<8x32xf32>
    %cst_32 = arith.constant 0.000000e+00 : f32
    %49 = vector.broadcast %cst_32 : f32 to vector<8x32xf32>
    %cst_33 = arith.constant dense<0.000000e+00> : vector<8x128xf32>
    %50 = tpu.matmul %15, %35, %cst_33 {dimension_numbers = #tpu.dot_dimension_numbers<[1], [0], [0], [1], [0, 0, 1, 1], [], []>} : vector<8x16xf32>, vector<16x128xf32>, vector<8x128xf32> -> vector<8x128xf32>
    %cst_34 = arith.constant dense<0.000000e+00> : vector<8x128xf32>
    %51 = tpu.matmul %46, %37, %cst_34 {dimension_numbers = #tpu.dot_dimension_numbers<[1], [0], [0], [1], [0, 0, 1, 1], [], []>} : vector<8x32xf32>, vector<32x128xf32>, vector<8x128xf32> -> vector<8x128xf32>
    %52 = arith.addf %50, %51 : vector<8x128xf32>
    %53 = vector.broadcast %39 : vector<1x128xf32> to vector<8x128xf32>
    %54 = arith.addf %52, %53 : vector<8x128xf32>
    %55 = vector.extract_strided_slice %54 {offsets = [0, 0], sizes = [8, 32], strides = [1, 1]} : vector<8x128xf32> to vector<8x32xf32>
    %56 = arith.negf %55 : vector<8x32xf32>
    %57 = math.exp %56 : vector<8x32xf32>
    %cst_35 = arith.constant 1.000000e+00 : f32
    %58 = vector.broadcast %cst_35 : f32 to vector<8x32xf32>
    %59 = arith.addf %58, %57 : vector<8x32xf32>
    %60 = arith.divf %58, %59 : vector<8x32xf32>
    %61 = vector.extract_strided_slice %54 {offsets = [0, 32], sizes = [8, 32], strides = [1, 1]} : vector<8x128xf32> to vector<8x32xf32>
    %62 = arith.negf %61 : vector<8x32xf32>
    %63 = math.exp %62 : vector<8x32xf32>
    %cst_36 = arith.constant 1.000000e+00 : f32
    %64 = vector.broadcast %cst_36 : f32 to vector<8x32xf32>
    %65 = arith.addf %64, %63 : vector<8x32xf32>
    %66 = arith.divf %64, %65 : vector<8x32xf32>
    %67 = vector.extract_strided_slice %54 {offsets = [0, 64], sizes = [8, 32], strides = [1, 1]} : vector<8x128xf32> to vector<8x32xf32>
    %68 = math.tanh %67 : vector<8x32xf32>
    %69 = vector.extract_strided_slice %54 {offsets = [0, 96], sizes = [8, 32], strides = [1, 1]} : vector<8x128xf32> to vector<8x32xf32>
    %70 = arith.negf %69 : vector<8x32xf32>
    %71 = math.exp %70 : vector<8x32xf32>
    %cst_37 = arith.constant 1.000000e+00 : f32
    %72 = vector.broadcast %cst_37 : f32 to vector<8x32xf32>
    %73 = arith.addf %72, %71 : vector<8x32xf32>
    %74 = arith.divf %72, %73 : vector<8x32xf32>
    %75 = arith.mulf %66, %47 : vector<8x32xf32>
    %76 = arith.mulf %60, %68 : vector<8x32xf32>
    %77 = arith.addf %75, %76 : vector<8x32xf32>
    %78 = math.tanh %77 : vector<8x32xf32>
    %79 = arith.mulf %74, %78 : vector<8x32xf32>
    %cst_38 = arith.constant dense<0.000000e+00> : vector<8x128xf32>
    %80 = tpu.matmul %79, %41, %cst_38 {dimension_numbers = #tpu.dot_dimension_numbers<[1], [0], [0], [1], [0, 0, 1, 1], [], []>} : vector<8x32xf32>, vector<32x128xf32>, vector<8x128xf32> -> vector<8x128xf32>
    %cst_39 = arith.constant dense<0.000000e+00> : vector<8x128xf32>
    %81 = tpu.matmul %48, %43, %cst_39 {dimension_numbers = #tpu.dot_dimension_numbers<[1], [0], [0], [1], [0, 0, 1, 1], [], []>} : vector<8x32xf32>, vector<32x128xf32>, vector<8x128xf32> -> vector<8x128xf32>
    %82 = arith.addf %80, %81 : vector<8x128xf32>
    %83 = vector.broadcast %45 : vector<1x128xf32> to vector<8x128xf32>
    %84 = arith.addf %82, %83 : vector<8x128xf32>
    %85 = vector.extract_strided_slice %84 {offsets = [0, 0], sizes = [8, 32], strides = [1, 1]} : vector<8x128xf32> to vector<8x32xf32>
    %86 = arith.negf %85 : vector<8x32xf32>
    %87 = math.exp %86 : vector<8x32xf32>
    %cst_40 = arith.constant 1.000000e+00 : f32
    %88 = vector.broadcast %cst_40 : f32 to vector<8x32xf32>
    %89 = arith.addf %88, %87 : vector<8x32xf32>
    %90 = arith.divf %88, %89 : vector<8x32xf32>
    %91 = vector.extract_strided_slice %84 {offsets = [0, 32], sizes = [8, 32], strides = [1, 1]} : vector<8x128xf32> to vector<8x32xf32>
    %92 = arith.negf %91 : vector<8x32xf32>
    %93 = math.exp %92 : vector<8x32xf32>
    %cst_41 = arith.constant 1.000000e+00 : f32
    %94 = vector.broadcast %cst_41 : f32 to vector<8x32xf32>
    %95 = arith.addf %94, %93 : vector<8x32xf32>
    %96 = arith.divf %94, %95 : vector<8x32xf32>
    %97 = vector.extract_strided_slice %84 {offsets = [0, 64], sizes = [8, 32], strides = [1, 1]} : vector<8x128xf32> to vector<8x32xf32>
    %98 = math.tanh %97 : vector<8x32xf32>
    %99 = vector.extract_strided_slice %84 {offsets = [0, 96], sizes = [8, 32], strides = [1, 1]} : vector<8x128xf32> to vector<8x32xf32>
    %100 = arith.negf %99 : vector<8x32xf32>
    %101 = math.exp %100 : vector<8x32xf32>
    %cst_42 = arith.constant 1.000000e+00 : f32
    %102 = vector.broadcast %cst_42 : f32 to vector<8x32xf32>
    %103 = arith.addf %102, %101 : vector<8x32xf32>
    %104 = arith.divf %102, %103 : vector<8x32xf32>
    %105 = arith.mulf %96, %49 : vector<8x32xf32>
    %106 = arith.mulf %90, %98 : vector<8x32xf32>
    %107 = arith.addf %105, %106 : vector<8x32xf32>
    %108 = math.tanh %107 : vector<8x32xf32>
    %109 = arith.mulf %104, %108 : vector<8x32xf32>
    %cst_43 = arith.constant dense<0.000000e+00> : vector<8x128xf32>
    %110 = tpu.matmul %20, %35, %cst_43 {dimension_numbers = #tpu.dot_dimension_numbers<[1], [0], [0], [1], [0, 0, 1, 1], [], []>} : vector<8x16xf32>, vector<16x128xf32>, vector<8x128xf32> -> vector<8x128xf32>
    %cst_44 = arith.constant dense<0.000000e+00> : vector<8x128xf32>
    %111 = tpu.matmul %79, %37, %cst_44 {dimension_numbers = #tpu.dot_dimension_numbers<[1], [0], [0], [1], [0, 0, 1, 1], [], []>} : vector<8x32xf32>, vector<32x128xf32>, vector<8x128xf32> -> vector<8x128xf32>
    %112 = arith.addf %110, %111 : vector<8x128xf32>
    %113 = vector.broadcast %39 : vector<1x128xf32> to vector<8x128xf32>
    %114 = arith.addf %112, %113 : vector<8x128xf32>
    %115 = vector.extract_strided_slice %114 {offsets = [0, 0], sizes = [8, 32], strides = [1, 1]} : vector<8x128xf32> to vector<8x32xf32>
    %116 = arith.negf %115 : vector<8x32xf32>
    %117 = math.exp %116 : vector<8x32xf32>
    %cst_45 = arith.constant 1.000000e+00 : f32
    %118 = vector.broadcast %cst_45 : f32 to vector<8x32xf32>
    %119 = arith.addf %118, %117 : vector<8x32xf32>
    %120 = arith.divf %118, %119 : vector<8x32xf32>
    %121 = vector.extract_strided_slice %114 {offsets = [0, 32], sizes = [8, 32], strides = [1, 1]} : vector<8x128xf32> to vector<8x32xf32>
    %122 = arith.negf %121 : vector<8x32xf32>
    %123 = math.exp %122 : vector<8x32xf32>
    %cst_46 = arith.constant 1.000000e+00 : f32
    %124 = vector.broadcast %cst_46 : f32 to vector<8x32xf32>
    %125 = arith.addf %124, %123 : vector<8x32xf32>
    %126 = arith.divf %124, %125 : vector<8x32xf32>
    %127 = vector.extract_strided_slice %114 {offsets = [0, 64], sizes = [8, 32], strides = [1, 1]} : vector<8x128xf32> to vector<8x32xf32>
    %128 = math.tanh %127 : vector<8x32xf32>
    %129 = vector.extract_strided_slice %114 {offsets = [0, 96], sizes = [8, 32], strides = [1, 1]} : vector<8x128xf32> to vector<8x32xf32>
    %130 = arith.negf %129 : vector<8x32xf32>
    %131 = math.exp %130 : vector<8x32xf32>
    %cst_47 = arith.constant 1.000000e+00 : f32
    %132 = vector.broadcast %cst_47 : f32 to vector<8x32xf32>
    %133 = arith.addf %132, %131 : vector<8x32xf32>
    %134 = arith.divf %132, %133 : vector<8x32xf32>
    %135 = arith.mulf %126, %77 : vector<8x32xf32>
    %136 = arith.mulf %120, %128 : vector<8x32xf32>
    %137 = arith.addf %135, %136 : vector<8x32xf32>
    %138 = math.tanh %137 : vector<8x32xf32>
    %139 = arith.mulf %134, %138 : vector<8x32xf32>
    %cst_48 = arith.constant dense<0.000000e+00> : vector<8x128xf32>
    %140 = tpu.matmul %139, %41, %cst_48 {dimension_numbers = #tpu.dot_dimension_numbers<[1], [0], [0], [1], [0, 0, 1, 1], [], []>} : vector<8x32xf32>, vector<32x128xf32>, vector<8x128xf32> -> vector<8x128xf32>
    %cst_49 = arith.constant dense<0.000000e+00> : vector<8x128xf32>
    %141 = tpu.matmul %109, %43, %cst_49 {dimension_numbers = #tpu.dot_dimension_numbers<[1], [0], [0], [1], [0, 0, 1, 1], [], []>} : vector<8x32xf32>, vector<32x128xf32>, vector<8x128xf32> -> vector<8x128xf32>
    %142 = arith.addf %140, %141 : vector<8x128xf32>
    %143 = vector.broadcast %45 : vector<1x128xf32> to vector<8x128xf32>
    %144 = arith.addf %142, %143 : vector<8x128xf32>
    %145 = vector.extract_strided_slice %144 {offsets = [0, 0], sizes = [8, 32], strides = [1, 1]} : vector<8x128xf32> to vector<8x32xf32>
    %146 = arith.negf %145 : vector<8x32xf32>
    %147 = math.exp %146 : vector<8x32xf32>
    %cst_50 = arith.constant 1.000000e+00 : f32
    %148 = vector.broadcast %cst_50 : f32 to vector<8x32xf32>
    %149 = arith.addf %148, %147 : vector<8x32xf32>
    %150 = arith.divf %148, %149 : vector<8x32xf32>
    %151 = vector.extract_strided_slice %144 {offsets = [0, 32], sizes = [8, 32], strides = [1, 1]} : vector<8x128xf32> to vector<8x32xf32>
    %152 = arith.negf %151 : vector<8x32xf32>
    %153 = math.exp %152 : vector<8x32xf32>
    %cst_51 = arith.constant 1.000000e+00 : f32
    %154 = vector.broadcast %cst_51 : f32 to vector<8x32xf32>
    %155 = arith.addf %154, %153 : vector<8x32xf32>
    %156 = arith.divf %154, %155 : vector<8x32xf32>
    %157 = vector.extract_strided_slice %144 {offsets = [0, 64], sizes = [8, 32], strides = [1, 1]} : vector<8x128xf32> to vector<8x32xf32>
    %158 = math.tanh %157 : vector<8x32xf32>
    %159 = vector.extract_strided_slice %144 {offsets = [0, 96], sizes = [8, 32], strides = [1, 1]} : vector<8x128xf32> to vector<8x32xf32>
    %160 = arith.negf %159 : vector<8x32xf32>
    %161 = math.exp %160 : vector<8x32xf32>
    %cst_52 = arith.constant 1.000000e+00 : f32
    %162 = vector.broadcast %cst_52 : f32 to vector<8x32xf32>
    %163 = arith.addf %162, %161 : vector<8x32xf32>
    %164 = arith.divf %162, %163 : vector<8x32xf32>
    %165 = arith.mulf %156, %107 : vector<8x32xf32>
    %166 = arith.mulf %150, %158 : vector<8x32xf32>
    %167 = arith.addf %165, %166 : vector<8x32xf32>
    %168 = math.tanh %167 : vector<8x32xf32>
    %169 = arith.mulf %164, %168 : vector<8x32xf32>
    %cst_53 = arith.constant dense<0.000000e+00> : vector<8x128xf32>
    %170 = tpu.matmul %25, %35, %cst_53 {dimension_numbers = #tpu.dot_dimension_numbers<[1], [0], [0], [1], [0, 0, 1, 1], [], []>} : vector<8x16xf32>, vector<16x128xf32>, vector<8x128xf32> -> vector<8x128xf32>
    %cst_54 = arith.constant dense<0.000000e+00> : vector<8x128xf32>
    %171 = tpu.matmul %139, %37, %cst_54 {dimension_numbers = #tpu.dot_dimension_numbers<[1], [0], [0], [1], [0, 0, 1, 1], [], []>} : vector<8x32xf32>, vector<32x128xf32>, vector<8x128xf32> -> vector<8x128xf32>
    %172 = arith.addf %170, %171 : vector<8x128xf32>
    %173 = vector.broadcast %39 : vector<1x128xf32> to vector<8x128xf32>
    %174 = arith.addf %172, %173 : vector<8x128xf32>
    %175 = vector.extract_strided_slice %174 {offsets = [0, 0], sizes = [8, 32], strides = [1, 1]} : vector<8x128xf32> to vector<8x32xf32>
    %176 = arith.negf %175 : vector<8x32xf32>
    %177 = math.exp %176 : vector<8x32xf32>
    %cst_55 = arith.constant 1.000000e+00 : f32
    %178 = vector.broadcast %cst_55 : f32 to vector<8x32xf32>
    %179 = arith.addf %178, %177 : vector<8x32xf32>
    %180 = arith.divf %178, %179 : vector<8x32xf32>
    %181 = vector.extract_strided_slice %174 {offsets = [0, 32], sizes = [8, 32], strides = [1, 1]} : vector<8x128xf32> to vector<8x32xf32>
    %182 = arith.negf %181 : vector<8x32xf32>
    %183 = math.exp %182 : vector<8x32xf32>
    %cst_56 = arith.constant 1.000000e+00 : f32
    %184 = vector.broadcast %cst_56 : f32 to vector<8x32xf32>
    %185 = arith.addf %184, %183 : vector<8x32xf32>
    %186 = arith.divf %184, %185 : vector<8x32xf32>
    %187 = vector.extract_strided_slice %174 {offsets = [0, 64], sizes = [8, 32], strides = [1, 1]} : vector<8x128xf32> to vector<8x32xf32>
    %188 = math.tanh %187 : vector<8x32xf32>
    %189 = vector.extract_strided_slice %174 {offsets = [0, 96], sizes = [8, 32], strides = [1, 1]} : vector<8x128xf32> to vector<8x32xf32>
    %190 = arith.negf %189 : vector<8x32xf32>
    %191 = math.exp %190 : vector<8x32xf32>
    %cst_57 = arith.constant 1.000000e+00 : f32
    %192 = vector.broadcast %cst_57 : f32 to vector<8x32xf32>
    %193 = arith.addf %192, %191 : vector<8x32xf32>
    %194 = arith.divf %192, %193 : vector<8x32xf32>
    %195 = arith.mulf %186, %137 : vector<8x32xf32>
    %196 = arith.mulf %180, %188 : vector<8x32xf32>
    %197 = arith.addf %195, %196 : vector<8x32xf32>
    %198 = math.tanh %197 : vector<8x32xf32>
    %199 = arith.mulf %194, %198 : vector<8x32xf32>
    %cst_58 = arith.constant dense<0.000000e+00> : vector<8x128xf32>
    %200 = tpu.matmul %199, %41, %cst_58 {dimension_numbers = #tpu.dot_dimension_numbers<[1], [0], [0], [1], [0, 0, 1, 1], [], []>} : vector<8x32xf32>, vector<32x128xf32>, vector<8x128xf32> -> vector<8x128xf32>
    %cst_59 = arith.constant dense<0.000000e+00> : vector<8x128xf32>
    %201 = tpu.matmul %169, %43, %cst_59 {dimension_numbers = #tpu.dot_dimension_numbers<[1], [0], [0], [1], [0, 0, 1, 1], [], []>} : vector<8x32xf32>, vector<32x128xf32>, vector<8x128xf32> -> vector<8x128xf32>
    %202 = arith.addf %200, %201 : vector<8x128xf32>
    %203 = vector.broadcast %45 : vector<1x128xf32> to vector<8x128xf32>
    %204 = arith.addf %202, %203 : vector<8x128xf32>
    %205 = vector.extract_strided_slice %204 {offsets = [0, 0], sizes = [8, 32], strides = [1, 1]} : vector<8x128xf32> to vector<8x32xf32>
    %206 = arith.negf %205 : vector<8x32xf32>
    %207 = math.exp %206 : vector<8x32xf32>
    %cst_60 = arith.constant 1.000000e+00 : f32
    %208 = vector.broadcast %cst_60 : f32 to vector<8x32xf32>
    %209 = arith.addf %208, %207 : vector<8x32xf32>
    %210 = arith.divf %208, %209 : vector<8x32xf32>
    %211 = vector.extract_strided_slice %204 {offsets = [0, 32], sizes = [8, 32], strides = [1, 1]} : vector<8x128xf32> to vector<8x32xf32>
    %212 = arith.negf %211 : vector<8x32xf32>
    %213 = math.exp %212 : vector<8x32xf32>
    %cst_61 = arith.constant 1.000000e+00 : f32
    %214 = vector.broadcast %cst_61 : f32 to vector<8x32xf32>
    %215 = arith.addf %214, %213 : vector<8x32xf32>
    %216 = arith.divf %214, %215 : vector<8x32xf32>
    %217 = vector.extract_strided_slice %204 {offsets = [0, 64], sizes = [8, 32], strides = [1, 1]} : vector<8x128xf32> to vector<8x32xf32>
    %218 = math.tanh %217 : vector<8x32xf32>
    %219 = vector.extract_strided_slice %204 {offsets = [0, 96], sizes = [8, 32], strides = [1, 1]} : vector<8x128xf32> to vector<8x32xf32>
    %220 = arith.negf %219 : vector<8x32xf32>
    %221 = math.exp %220 : vector<8x32xf32>
    %cst_62 = arith.constant 1.000000e+00 : f32
    %222 = vector.broadcast %cst_62 : f32 to vector<8x32xf32>
    %223 = arith.addf %222, %221 : vector<8x32xf32>
    %224 = arith.divf %222, %223 : vector<8x32xf32>
    %225 = arith.mulf %216, %167 : vector<8x32xf32>
    %226 = arith.mulf %210, %218 : vector<8x32xf32>
    %227 = arith.addf %225, %226 : vector<8x32xf32>
    %228 = math.tanh %227 : vector<8x32xf32>
    %229 = arith.mulf %224, %228 : vector<8x32xf32>
    %cst_63 = arith.constant dense<0.000000e+00> : vector<8x128xf32>
    %230 = tpu.matmul %30, %35, %cst_63 {dimension_numbers = #tpu.dot_dimension_numbers<[1], [0], [0], [1], [0, 0, 1, 1], [], []>} : vector<8x16xf32>, vector<16x128xf32>, vector<8x128xf32> -> vector<8x128xf32>
    %cst_64 = arith.constant dense<0.000000e+00> : vector<8x128xf32>
    %231 = tpu.matmul %199, %37, %cst_64 {dimension_numbers = #tpu.dot_dimension_numbers<[1], [0], [0], [1], [0, 0, 1, 1], [], []>} : vector<8x32xf32>, vector<32x128xf32>, vector<8x128xf32> -> vector<8x128xf32>
    %232 = arith.addf %230, %231 : vector<8x128xf32>
    %233 = vector.broadcast %39 : vector<1x128xf32> to vector<8x128xf32>
    %234 = arith.addf %232, %233 : vector<8x128xf32>
    %235 = vector.extract_strided_slice %234 {offsets = [0, 0], sizes = [8, 32], strides = [1, 1]} : vector<8x128xf32> to vector<8x32xf32>
    %236 = arith.negf %235 : vector<8x32xf32>
    %237 = math.exp %236 : vector<8x32xf32>
    %cst_65 = arith.constant 1.000000e+00 : f32
    %238 = vector.broadcast %cst_65 : f32 to vector<8x32xf32>
    %239 = arith.addf %238, %237 : vector<8x32xf32>
    %240 = arith.divf %238, %239 : vector<8x32xf32>
    %241 = vector.extract_strided_slice %234 {offsets = [0, 32], sizes = [8, 32], strides = [1, 1]} : vector<8x128xf32> to vector<8x32xf32>
    %242 = arith.negf %241 : vector<8x32xf32>
    %243 = math.exp %242 : vector<8x32xf32>
    %cst_66 = arith.constant 1.000000e+00 : f32
    %244 = vector.broadcast %cst_66 : f32 to vector<8x32xf32>
    %245 = arith.addf %244, %243 : vector<8x32xf32>
    %246 = arith.divf %244, %245 : vector<8x32xf32>
    %247 = vector.extract_strided_slice %234 {offsets = [0, 64], sizes = [8, 32], strides = [1, 1]} : vector<8x128xf32> to vector<8x32xf32>
    %248 = math.tanh %247 : vector<8x32xf32>
    %249 = vector.extract_strided_slice %234 {offsets = [0, 96], sizes = [8, 32], strides = [1, 1]} : vector<8x128xf32> to vector<8x32xf32>
    %250 = arith.negf %249 : vector<8x32xf32>
    %251 = math.exp %250 : vector<8x32xf32>
    %cst_67 = arith.constant 1.000000e+00 : f32
    %252 = vector.broadcast %cst_67 : f32 to vector<8x32xf32>
    %253 = arith.addf %252, %251 : vector<8x32xf32>
    %254 = arith.divf %252, %253 : vector<8x32xf32>
    %255 = arith.mulf %246, %197 : vector<8x32xf32>
    %256 = arith.mulf %240, %248 : vector<8x32xf32>
    %257 = arith.addf %255, %256 : vector<8x32xf32>
    %258 = math.tanh %257 : vector<8x32xf32>
    %259 = arith.mulf %254, %258 : vector<8x32xf32>
    %cst_68 = arith.constant dense<0.000000e+00> : vector<8x128xf32>
    %260 = tpu.matmul %259, %41, %cst_68 {dimension_numbers = #tpu.dot_dimension_numbers<[1], [0], [0], [1], [0, 0, 1, 1], [], []>} : vector<8x32xf32>, vector<32x128xf32>, vector<8x128xf32> -> vector<8x128xf32>
    %cst_69 = arith.constant dense<0.000000e+00> : vector<8x128xf32>
    %261 = tpu.matmul %229, %43, %cst_69 {dimension_numbers = #tpu.dot_dimension_numbers<[1], [0], [0], [1], [0, 0, 1, 1], [], []>} : vector<8x32xf32>, vector<32x128xf32>, vector<8x128xf32> -> vector<8x128xf32>
    %262 = arith.addf %260, %261 : vector<8x128xf32>
    %263 = vector.broadcast %45 : vector<1x128xf32> to vector<8x128xf32>
    %264 = arith.addf %262, %263 : vector<8x128xf32>
    %265 = vector.extract_strided_slice %264 {offsets = [0, 0], sizes = [8, 32], strides = [1, 1]} : vector<8x128xf32> to vector<8x32xf32>
    %266 = arith.negf %265 : vector<8x32xf32>
    %267 = math.exp %266 : vector<8x32xf32>
    %cst_70 = arith.constant 1.000000e+00 : f32
    %268 = vector.broadcast %cst_70 : f32 to vector<8x32xf32>
    %269 = arith.addf %268, %267 : vector<8x32xf32>
    %270 = arith.divf %268, %269 : vector<8x32xf32>
    %271 = vector.extract_strided_slice %264 {offsets = [0, 32], sizes = [8, 32], strides = [1, 1]} : vector<8x128xf32> to vector<8x32xf32>
    %272 = arith.negf %271 : vector<8x32xf32>
    %273 = math.exp %272 : vector<8x32xf32>
    %cst_71 = arith.constant 1.000000e+00 : f32
    %274 = vector.broadcast %cst_71 : f32 to vector<8x32xf32>
    %275 = arith.addf %274, %273 : vector<8x32xf32>
    %276 = arith.divf %274, %275 : vector<8x32xf32>
    %277 = vector.extract_strided_slice %264 {offsets = [0, 64], sizes = [8, 32], strides = [1, 1]} : vector<8x128xf32> to vector<8x32xf32>
    %278 = math.tanh %277 : vector<8x32xf32>
    %279 = vector.extract_strided_slice %264 {offsets = [0, 96], sizes = [8, 32], strides = [1, 1]} : vector<8x128xf32> to vector<8x32xf32>
    %280 = arith.negf %279 : vector<8x32xf32>
    %281 = math.exp %280 : vector<8x32xf32>
    %cst_72 = arith.constant 1.000000e+00 : f32
    %282 = vector.broadcast %cst_72 : f32 to vector<8x32xf32>
    %283 = arith.addf %282, %281 : vector<8x32xf32>
    %284 = arith.divf %282, %283 : vector<8x32xf32>
    %285 = arith.mulf %276, %227 : vector<8x32xf32>
    %286 = arith.mulf %270, %278 : vector<8x32xf32>
    %287 = arith.addf %285, %286 : vector<8x32xf32>
    %288 = math.tanh %287 : vector<8x32xf32>
    %289 = arith.mulf %284, %288 : vector<8x32xf32>
    %290 = tpu.concatenate %259, %257, %289, %287 in 1 : vector<8x32xf32>, vector<8x32xf32>, vector<8x32xf32>, vector<8x32xf32> -> vector<8x128xf32>
    %c0_73 = arith.constant 0 : index
    %c0_74 = arith.constant 0 : index
    %c0_75 = arith.constant 0 : index
    %291 = vector.load %arg14[%c0_73, %c0_74, %c0_75] : memref<2x128x32xf32, #tpu.memory_space<vmem>>, vector<1x128x32xf32>
    %292 = vector.shape_cast %291 : vector<1x128x32xf32> to vector<128x32xf32>
    %cst_76 = arith.constant dense<0.000000e+00> : vector<8x32xf32>
    %293 = tpu.matmul %290, %292, %cst_76 {dimension_numbers = #tpu.dot_dimension_numbers<[1], [0], [0], [1], [0, 0, 1, 1], [], []>} : vector<8x128xf32>, vector<128x32xf32>, vector<8x32xf32> -> vector<8x32xf32>
    %c0_77 = arith.constant 0 : index
    %c0_78 = arith.constant 0 : index
    %c0_79 = arith.constant 0 : index
    %294 = vector.load %arg15[%c0_77, %c0_78, %c0_79] : memref<2x1x32xf32, #tpu.memory_space<vmem>>, vector<1x1x32xf32>
    %295 = vector.shape_cast %294 : vector<1x1x32xf32> to vector<1x32xf32>
    %296 = vector.broadcast %295 : vector<1x32xf32> to vector<8x32xf32>
    %297 = arith.addf %293, %296 : vector<8x32xf32>
    %298 = tpu.iota {dimensions = array<i32: 1>} : vector<8x16xi32>
    %299 = vector.extract_strided_slice %9 {offsets = [0, 0], sizes = [8, 1], strides = [1, 1]} : vector<8x4xi32> to vector<8x1xi32>
    %300 = vector.broadcast %299 : vector<8x1xi32> to vector<8x16xi32>
    %301 = arith.cmpi eq, %300, %298 : vector<8x16xi32>
    %302 = arith.extui %301 : vector<8x16xi1> to vector<8x16xi32>
    %303 = arith.sitofp %302 : vector<8x16xi32> to vector<8x16xf32>
    %304 = vector.extract_strided_slice %9 {offsets = [0, 1], sizes = [8, 1], strides = [1, 1]} : vector<8x4xi32> to vector<8x1xi32>
    %305 = vector.broadcast %304 : vector<8x1xi32> to vector<8x16xi32>
    %306 = arith.cmpi eq, %305, %298 : vector<8x16xi32>
    %307 = arith.extui %306 : vector<8x16xi1> to vector<8x16xi32>
    %308 = arith.sitofp %307 : vector<8x16xi32> to vector<8x16xf32>
    %309 = vector.extract_strided_slice %9 {offsets = [0, 2], sizes = [8, 1], strides = [1, 1]} : vector<8x4xi32> to vector<8x1xi32>
    %310 = vector.broadcast %309 : vector<8x1xi32> to vector<8x16xi32>
    %311 = arith.cmpi eq, %310, %298 : vector<8x16xi32>
    %312 = arith.extui %311 : vector<8x16xi1> to vector<8x16xi32>
    %313 = arith.sitofp %312 : vector<8x16xi32> to vector<8x16xf32>
    %314 = vector.extract_strided_slice %9 {offsets = [0, 3], sizes = [8, 1], strides = [1, 1]} : vector<8x4xi32> to vector<8x1xi32>
    %315 = vector.broadcast %314 : vector<8x1xi32> to vector<8x16xi32>
    %316 = arith.cmpi eq, %315, %298 : vector<8x16xi32>
    %317 = arith.extui %316 : vector<8x16xi1> to vector<8x16xi32>
    %318 = arith.sitofp %317 : vector<8x16xi32> to vector<8x16xf32>
    %c1 = arith.constant 1 : index
    %c0_80 = arith.constant 0 : index
    %c0_81 = arith.constant 0 : index
    %319 = vector.load %arg7[%c1, %c0_80, %c0_81] : memref<2x16x16xf32, #tpu.memory_space<vmem>>, vector<1x16x16xf32>
    %320 = vector.shape_cast %319 : vector<1x16x16xf32> to vector<16x16xf32>
    %c1_82 = arith.constant 1 : index
    %c0_83 = arith.constant 0 : index
    %c0_84 = arith.constant 0 : index
    %321 = vector.load %arg8[%c1_82, %c0_83, %c0_84] : memref<2x16x128xf32, #tpu.memory_space<vmem>>, vector<1x16x128xf32>
    %322 = vector.shape_cast %321 : vector<1x16x128xf32> to vector<16x128xf32>
    %cst_85 = arith.constant dense<0.000000e+00> : vector<16x128xf32>
    %323 = tpu.matmul %320, %322, %cst_85 {dimension_numbers = #tpu.dot_dimension_numbers<[1], [0], [0], [1], [0, 0, 1, 1], [], []>} : vector<16x16xf32>, vector<16x128xf32>, vector<16x128xf32> -> vector<16x128xf32>
    %c1_86 = arith.constant 1 : index
    %c0_87 = arith.constant 0 : index
    %c0_88 = arith.constant 0 : index
    %324 = vector.load %arg9[%c1_86, %c0_87, %c0_88] : memref<2x32x128xf32, #tpu.memory_space<vmem>>, vector<1x32x128xf32>
    %325 = vector.shape_cast %324 : vector<1x32x128xf32> to vector<32x128xf32>
    %c1_89 = arith.constant 1 : index
    %c0_90 = arith.constant 0 : index
    %c0_91 = arith.constant 0 : index
    %326 = vector.load %arg10[%c1_89, %c0_90, %c0_91] : memref<2x1x128xf32, #tpu.memory_space<vmem>>, vector<1x1x128xf32>
    %327 = vector.shape_cast %326 : vector<1x1x128xf32> to vector<1x128xf32>
    %c1_92 = arith.constant 1 : index
    %c0_93 = arith.constant 0 : index
    %c0_94 = arith.constant 0 : index
    %328 = vector.load %arg11[%c1_92, %c0_93, %c0_94] : memref<2x32x128xf32, #tpu.memory_space<vmem>>, vector<1x32x128xf32>
    %329 = vector.shape_cast %328 : vector<1x32x128xf32> to vector<32x128xf32>
    %c1_95 = arith.constant 1 : index
    %c0_96 = arith.constant 0 : index
    %c0_97 = arith.constant 0 : index
    %330 = vector.load %arg12[%c1_95, %c0_96, %c0_97] : memref<2x32x128xf32, #tpu.memory_space<vmem>>, vector<1x32x128xf32>
    %331 = vector.shape_cast %330 : vector<1x32x128xf32> to vector<32x128xf32>
    %c1_98 = arith.constant 1 : index
    %c0_99 = arith.constant 0 : index
    %c0_100 = arith.constant 0 : index
    %332 = vector.load %arg13[%c1_98, %c0_99, %c0_100] : memref<2x1x128xf32, #tpu.memory_space<vmem>>, vector<1x1x128xf32>
    %333 = vector.shape_cast %332 : vector<1x1x128xf32> to vector<1x128xf32>
    %cst_101 = arith.constant 0.000000e+00 : f32
    %334 = vector.broadcast %cst_101 : f32 to vector<8x32xf32>
    %cst_102 = arith.constant 0.000000e+00 : f32
    %335 = vector.broadcast %cst_102 : f32 to vector<8x32xf32>
    %cst_103 = arith.constant 0.000000e+00 : f32
    %336 = vector.broadcast %cst_103 : f32 to vector<8x32xf32>
    %cst_104 = arith.constant 0.000000e+00 : f32
    %337 = vector.broadcast %cst_104 : f32 to vector<8x32xf32>
    %cst_105 = arith.constant dense<0.000000e+00> : vector<8x128xf32>
    %338 = tpu.matmul %303, %323, %cst_105 {dimension_numbers = #tpu.dot_dimension_numbers<[1], [0], [0], [1], [0, 0, 1, 1], [], []>} : vector<8x16xf32>, vector<16x128xf32>, vector<8x128xf32> -> vector<8x128xf32>
    %cst_106 = arith.constant dense<0.000000e+00> : vector<8x128xf32>
    %339 = tpu.matmul %334, %325, %cst_106 {dimension_numbers = #tpu.dot_dimension_numbers<[1], [0], [0], [1], [0, 0, 1, 1], [], []>} : vector<8x32xf32>, vector<32x128xf32>, vector<8x128xf32> -> vector<8x128xf32>
    %340 = arith.addf %338, %339 : vector<8x128xf32>
    %341 = vector.broadcast %327 : vector<1x128xf32> to vector<8x128xf32>
    %342 = arith.addf %340, %341 : vector<8x128xf32>
    %343 = vector.extract_strided_slice %342 {offsets = [0, 0], sizes = [8, 32], strides = [1, 1]} : vector<8x128xf32> to vector<8x32xf32>
    %344 = arith.negf %343 : vector<8x32xf32>
    %345 = math.exp %344 : vector<8x32xf32>
    %cst_107 = arith.constant 1.000000e+00 : f32
    %346 = vector.broadcast %cst_107 : f32 to vector<8x32xf32>
    %347 = arith.addf %346, %345 : vector<8x32xf32>
    %348 = arith.divf %346, %347 : vector<8x32xf32>
    %349 = vector.extract_strided_slice %342 {offsets = [0, 32], sizes = [8, 32], strides = [1, 1]} : vector<8x128xf32> to vector<8x32xf32>
    %350 = arith.negf %349 : vector<8x32xf32>
    %351 = math.exp %350 : vector<8x32xf32>
    %cst_108 = arith.constant 1.000000e+00 : f32
    %352 = vector.broadcast %cst_108 : f32 to vector<8x32xf32>
    %353 = arith.addf %352, %351 : vector<8x32xf32>
    %354 = arith.divf %352, %353 : vector<8x32xf32>
    %355 = vector.extract_strided_slice %342 {offsets = [0, 64], sizes = [8, 32], strides = [1, 1]} : vector<8x128xf32> to vector<8x32xf32>
    %356 = math.tanh %355 : vector<8x32xf32>
    %357 = vector.extract_strided_slice %342 {offsets = [0, 96], sizes = [8, 32], strides = [1, 1]} : vector<8x128xf32> to vector<8x32xf32>
    %358 = arith.negf %357 : vector<8x32xf32>
    %359 = math.exp %358 : vector<8x32xf32>
    %cst_109 = arith.constant 1.000000e+00 : f32
    %360 = vector.broadcast %cst_109 : f32 to vector<8x32xf32>
    %361 = arith.addf %360, %359 : vector<8x32xf32>
    %362 = arith.divf %360, %361 : vector<8x32xf32>
    %363 = arith.mulf %354, %335 : vector<8x32xf32>
    %364 = arith.mulf %348, %356 : vector<8x32xf32>
    %365 = arith.addf %363, %364 : vector<8x32xf32>
    %366 = math.tanh %365 : vector<8x32xf32>
    %367 = arith.mulf %362, %366 : vector<8x32xf32>
    %cst_110 = arith.constant dense<0.000000e+00> : vector<8x128xf32>
    %368 = tpu.matmul %367, %329, %cst_110 {dimension_numbers = #tpu.dot_dimension_numbers<[1], [0], [0], [1], [0, 0, 1, 1], [], []>} : vector<8x32xf32>, vector<32x128xf32>, vector<8x128xf32> -> vector<8x128xf32>
    %cst_111 = arith.constant dense<0.000000e+00> : vector<8x128xf32>
    %369 = tpu.matmul %336, %331, %cst_111 {dimension_numbers = #tpu.dot_dimension_numbers<[1], [0], [0], [1], [0, 0, 1, 1], [], []>} : vector<8x32xf32>, vector<32x128xf32>, vector<8x128xf32> -> vector<8x128xf32>
    %370 = arith.addf %368, %369 : vector<8x128xf32>
    %371 = vector.broadcast %333 : vector<1x128xf32> to vector<8x128xf32>
    %372 = arith.addf %370, %371 : vector<8x128xf32>
    %373 = vector.extract_strided_slice %372 {offsets = [0, 0], sizes = [8, 32], strides = [1, 1]} : vector<8x128xf32> to vector<8x32xf32>
    %374 = arith.negf %373 : vector<8x32xf32>
    %375 = math.exp %374 : vector<8x32xf32>
    %cst_112 = arith.constant 1.000000e+00 : f32
    %376 = vector.broadcast %cst_112 : f32 to vector<8x32xf32>
    %377 = arith.addf %376, %375 : vector<8x32xf32>
    %378 = arith.divf %376, %377 : vector<8x32xf32>
    %379 = vector.extract_strided_slice %372 {offsets = [0, 32], sizes = [8, 32], strides = [1, 1]} : vector<8x128xf32> to vector<8x32xf32>
    %380 = arith.negf %379 : vector<8x32xf32>
    %381 = math.exp %380 : vector<8x32xf32>
    %cst_113 = arith.constant 1.000000e+00 : f32
    %382 = vector.broadcast %cst_113 : f32 to vector<8x32xf32>
    %383 = arith.addf %382, %381 : vector<8x32xf32>
    %384 = arith.divf %382, %383 : vector<8x32xf32>
    %385 = vector.extract_strided_slice %372 {offsets = [0, 64], sizes = [8, 32], strides = [1, 1]} : vector<8x128xf32> to vector<8x32xf32>
    %386 = math.tanh %385 : vector<8x32xf32>
    %387 = vector.extract_strided_slice %372 {offsets = [0, 96], sizes = [8, 32], strides = [1, 1]} : vector<8x128xf32> to vector<8x32xf32>
    %388 = arith.negf %387 : vector<8x32xf32>
    %389 = math.exp %388 : vector<8x32xf32>
    %cst_114 = arith.constant 1.000000e+00 : f32
    %390 = vector.broadcast %cst_114 : f32 to vector<8x32xf32>
    %391 = arith.addf %390, %389 : vector<8x32xf32>
    %392 = arith.divf %390, %391 : vector<8x32xf32>
    %393 = arith.mulf %384, %337 : vector<8x32xf32>
    %394 = arith.mulf %378, %386 : vector<8x32xf32>
    %395 = arith.addf %393, %394 : vector<8x32xf32>
    %396 = math.tanh %395 : vector<8x32xf32>
    %397 = arith.mulf %392, %396 : vector<8x32xf32>
    %cst_115 = arith.constant dense<0.000000e+00> : vector<8x128xf32>
    %398 = tpu.matmul %308, %323, %cst_115 {dimension_numbers = #tpu.dot_dimension_numbers<[1], [0], [0], [1], [0, 0, 1, 1], [], []>} : vector<8x16xf32>, vector<16x128xf32>, vector<8x128xf32> -> vector<8x128xf32>
    %cst_116 = arith.constant dense<0.000000e+00> : vector<8x128xf32>
    %399 = tpu.matmul %367, %325, %cst_116 {dimension_numbers = #tpu.dot_dimension_numbers<[1], [0], [0], [1], [0, 0, 1, 1], [], []>} : vector<8x32xf32>, vector<32x128xf32>, vector<8x128xf32> -> vector<8x128xf32>
    %400 = arith.addf %398, %399 : vector<8x128xf32>
    %401 = vector.broadcast %327 : vector<1x128xf32> to vector<8x128xf32>
    %402 = arith.addf %400, %401 : vector<8x128xf32>
    %403 = vector.extract_strided_slice %402 {offsets = [0, 0], sizes = [8, 32], strides = [1, 1]} : vector<8x128xf32> to vector<8x32xf32>
    %404 = arith.negf %403 : vector<8x32xf32>
    %405 = math.exp %404 : vector<8x32xf32>
    %cst_117 = arith.constant 1.000000e+00 : f32
    %406 = vector.broadcast %cst_117 : f32 to vector<8x32xf32>
    %407 = arith.addf %406, %405 : vector<8x32xf32>
    %408 = arith.divf %406, %407 : vector<8x32xf32>
    %409 = vector.extract_strided_slice %402 {offsets = [0, 32], sizes = [8, 32], strides = [1, 1]} : vector<8x128xf32> to vector<8x32xf32>
    %410 = arith.negf %409 : vector<8x32xf32>
    %411 = math.exp %410 : vector<8x32xf32>
    %cst_118 = arith.constant 1.000000e+00 : f32
    %412 = vector.broadcast %cst_118 : f32 to vector<8x32xf32>
    %413 = arith.addf %412, %411 : vector<8x32xf32>
    %414 = arith.divf %412, %413 : vector<8x32xf32>
    %415 = vector.extract_strided_slice %402 {offsets = [0, 64], sizes = [8, 32], strides = [1, 1]} : vector<8x128xf32> to vector<8x32xf32>
    %416 = math.tanh %415 : vector<8x32xf32>
    %417 = vector.extract_strided_slice %402 {offsets = [0, 96], sizes = [8, 32], strides = [1, 1]} : vector<8x128xf32> to vector<8x32xf32>
    %418 = arith.negf %417 : vector<8x32xf32>
    %419 = math.exp %418 : vector<8x32xf32>
    %cst_119 = arith.constant 1.000000e+00 : f32
    %420 = vector.broadcast %cst_119 : f32 to vector<8x32xf32>
    %421 = arith.addf %420, %419 : vector<8x32xf32>
    %422 = arith.divf %420, %421 : vector<8x32xf32>
    %423 = arith.mulf %414, %365 : vector<8x32xf32>
    %424 = arith.mulf %408, %416 : vector<8x32xf32>
    %425 = arith.addf %423, %424 : vector<8x32xf32>
    %426 = math.tanh %425 : vector<8x32xf32>
    %427 = arith.mulf %422, %426 : vector<8x32xf32>
    %cst_120 = arith.constant dense<0.000000e+00> : vector<8x128xf32>
    %428 = tpu.matmul %427, %329, %cst_120 {dimension_numbers = #tpu.dot_dimension_numbers<[1], [0], [0], [1], [0, 0, 1, 1], [], []>} : vector<8x32xf32>, vector<32x128xf32>, vector<8x128xf32> -> vector<8x128xf32>
    %cst_121 = arith.constant dense<0.000000e+00> : vector<8x128xf32>
    %429 = tpu.matmul %397, %331, %cst_121 {dimension_numbers = #tpu.dot_dimension_numbers<[1], [0], [0], [1], [0, 0, 1, 1], [], []>} : vector<8x32xf32>, vector<32x128xf32>, vector<8x128xf32> -> vector<8x128xf32>
    %430 = arith.addf %428, %429 : vector<8x128xf32>
    %431 = vector.broadcast %333 : vector<1x128xf32> to vector<8x128xf32>
    %432 = arith.addf %430, %431 : vector<8x128xf32>
    %433 = vector.extract_strided_slice %432 {offsets = [0, 0], sizes = [8, 32], strides = [1, 1]} : vector<8x128xf32> to vector<8x32xf32>
    %434 = arith.negf %433 : vector<8x32xf32>
    %435 = math.exp %434 : vector<8x32xf32>
    %cst_122 = arith.constant 1.000000e+00 : f32
    %436 = vector.broadcast %cst_122 : f32 to vector<8x32xf32>
    %437 = arith.addf %436, %435 : vector<8x32xf32>
    %438 = arith.divf %436, %437 : vector<8x32xf32>
    %439 = vector.extract_strided_slice %432 {offsets = [0, 32], sizes = [8, 32], strides = [1, 1]} : vector<8x128xf32> to vector<8x32xf32>
    %440 = arith.negf %439 : vector<8x32xf32>
    %441 = math.exp %440 : vector<8x32xf32>
    %cst_123 = arith.constant 1.000000e+00 : f32
    %442 = vector.broadcast %cst_123 : f32 to vector<8x32xf32>
    %443 = arith.addf %442, %441 : vector<8x32xf32>
    %444 = arith.divf %442, %443 : vector<8x32xf32>
    %445 = vector.extract_strided_slice %432 {offsets = [0, 64], sizes = [8, 32], strides = [1, 1]} : vector<8x128xf32> to vector<8x32xf32>
    %446 = math.tanh %445 : vector<8x32xf32>
    %447 = vector.extract_strided_slice %432 {offsets = [0, 96], sizes = [8, 32], strides = [1, 1]} : vector<8x128xf32> to vector<8x32xf32>
    %448 = arith.negf %447 : vector<8x32xf32>
    %449 = math.exp %448 : vector<8x32xf32>
    %cst_124 = arith.constant 1.000000e+00 : f32
    %450 = vector.broadcast %cst_124 : f32 to vector<8x32xf32>
    %451 = arith.addf %450, %449 : vector<8x32xf32>
    %452 = arith.divf %450, %451 : vector<8x32xf32>
    %453 = arith.mulf %444, %395 : vector<8x32xf32>
    %454 = arith.mulf %438, %446 : vector<8x32xf32>
    %455 = arith.addf %453, %454 : vector<8x32xf32>
    %456 = math.tanh %455 : vector<8x32xf32>
    %457 = arith.mulf %452, %456 : vector<8x32xf32>
    %cst_125 = arith.constant dense<0.000000e+00> : vector<8x128xf32>
    %458 = tpu.matmul %313, %323, %cst_125 {dimension_numbers = #tpu.dot_dimension_numbers<[1], [0], [0], [1], [0, 0, 1, 1], [], []>} : vector<8x16xf32>, vector<16x128xf32>, vector<8x128xf32> -> vector<8x128xf32>
    %cst_126 = arith.constant dense<0.000000e+00> : vector<8x128xf32>
    %459 = tpu.matmul %427, %325, %cst_126 {dimension_numbers = #tpu.dot_dimension_numbers<[1], [0], [0], [1], [0, 0, 1, 1], [], []>} : vector<8x32xf32>, vector<32x128xf32>, vector<8x128xf32> -> vector<8x128xf32>
    %460 = arith.addf %458, %459 : vector<8x128xf32>
    %461 = vector.broadcast %327 : vector<1x128xf32> to vector<8x128xf32>
    %462 = arith.addf %460, %461 : vector<8x128xf32>
    %463 = vector.extract_strided_slice %462 {offsets = [0, 0], sizes = [8, 32], strides = [1, 1]} : vector<8x128xf32> to vector<8x32xf32>
    %464 = arith.negf %463 : vector<8x32xf32>
    %465 = math.exp %464 : vector<8x32xf32>
    %cst_127 = arith.constant 1.000000e+00 : f32
    %466 = vector.broadcast %cst_127 : f32 to vector<8x32xf32>
    %467 = arith.addf %466, %465 : vector<8x32xf32>
    %468 = arith.divf %466, %467 : vector<8x32xf32>
    %469 = vector.extract_strided_slice %462 {offsets = [0, 32], sizes = [8, 32], strides = [1, 1]} : vector<8x128xf32> to vector<8x32xf32>
    %470 = arith.negf %469 : vector<8x32xf32>
    %471 = math.exp %470 : vector<8x32xf32>
    %cst_128 = arith.constant 1.000000e+00 : f32
    %472 = vector.broadcast %cst_128 : f32 to vector<8x32xf32>
    %473 = arith.addf %472, %471 : vector<8x32xf32>
    %474 = arith.divf %472, %473 : vector<8x32xf32>
    %475 = vector.extract_strided_slice %462 {offsets = [0, 64], sizes = [8, 32], strides = [1, 1]} : vector<8x128xf32> to vector<8x32xf32>
    %476 = math.tanh %475 : vector<8x32xf32>
    %477 = vector.extract_strided_slice %462 {offsets = [0, 96], sizes = [8, 32], strides = [1, 1]} : vector<8x128xf32> to vector<8x32xf32>
    %478 = arith.negf %477 : vector<8x32xf32>
    %479 = math.exp %478 : vector<8x32xf32>
    %cst_129 = arith.constant 1.000000e+00 : f32
    %480 = vector.broadcast %cst_129 : f32 to vector<8x32xf32>
    %481 = arith.addf %480, %479 : vector<8x32xf32>
    %482 = arith.divf %480, %481 : vector<8x32xf32>
    %483 = arith.mulf %474, %425 : vector<8x32xf32>
    %484 = arith.mulf %468, %476 : vector<8x32xf32>
    %485 = arith.addf %483, %484 : vector<8x32xf32>
    %486 = math.tanh %485 : vector<8x32xf32>
    %487 = arith.mulf %482, %486 : vector<8x32xf32>
    %cst_130 = arith.constant dense<0.000000e+00> : vector<8x128xf32>
    %488 = tpu.matmul %487, %329, %cst_130 {dimension_numbers = #tpu.dot_dimension_numbers<[1], [0], [0], [1], [0, 0, 1, 1], [], []>} : vector<8x32xf32>, vector<32x128xf32>, vector<8x128xf32> -> vector<8x128xf32>
    %cst_131 = arith.constant dense<0.000000e+00> : vector<8x128xf32>
    %489 = tpu.matmul %457, %331, %cst_131 {dimension_numbers = #tpu.dot_dimension_numbers<[1], [0], [0], [1], [0, 0, 1, 1], [], []>} : vector<8x32xf32>, vector<32x128xf32>, vector<8x128xf32> -> vector<8x128xf32>
    %490 = arith.addf %488, %489 : vector<8x128xf32>
    %491 = vector.broadcast %333 : vector<1x128xf32> to vector<8x128xf32>
    %492 = arith.addf %490, %491 : vector<8x128xf32>
    %493 = vector.extract_strided_slice %492 {offsets = [0, 0], sizes = [8, 32], strides = [1, 1]} : vector<8x128xf32> to vector<8x32xf32>
    %494 = arith.negf %493 : vector<8x32xf32>
    %495 = math.exp %494 : vector<8x32xf32>
    %cst_132 = arith.constant 1.000000e+00 : f32
    %496 = vector.broadcast %cst_132 : f32 to vector<8x32xf32>
    %497 = arith.addf %496, %495 : vector<8x32xf32>
    %498 = arith.divf %496, %497 : vector<8x32xf32>
    %499 = vector.extract_strided_slice %492 {offsets = [0, 32], sizes = [8, 32], strides = [1, 1]} : vector<8x128xf32> to vector<8x32xf32>
    %500 = arith.negf %499 : vector<8x32xf32>
    %501 = math.exp %500 : vector<8x32xf32>
    %cst_133 = arith.constant 1.000000e+00 : f32
    %502 = vector.broadcast %cst_133 : f32 to vector<8x32xf32>
    %503 = arith.addf %502, %501 : vector<8x32xf32>
    %504 = arith.divf %502, %503 : vector<8x32xf32>
    %505 = vector.extract_strided_slice %492 {offsets = [0, 64], sizes = [8, 32], strides = [1, 1]} : vector<8x128xf32> to vector<8x32xf32>
    %506 = math.tanh %505 : vector<8x32xf32>
    %507 = vector.extract_strided_slice %492 {offsets = [0, 96], sizes = [8, 32], strides = [1, 1]} : vector<8x128xf32> to vector<8x32xf32>
    %508 = arith.negf %507 : vector<8x32xf32>
    %509 = math.exp %508 : vector<8x32xf32>
    %cst_134 = arith.constant 1.000000e+00 : f32
    %510 = vector.broadcast %cst_134 : f32 to vector<8x32xf32>
    %511 = arith.addf %510, %509 : vector<8x32xf32>
    %512 = arith.divf %510, %511 : vector<8x32xf32>
    %513 = arith.mulf %504, %455 : vector<8x32xf32>
    %514 = arith.mulf %498, %506 : vector<8x32xf32>
    %515 = arith.addf %513, %514 : vector<8x32xf32>
    %516 = math.tanh %515 : vector<8x32xf32>
    %517 = arith.mulf %512, %516 : vector<8x32xf32>
    %cst_135 = arith.constant dense<0.000000e+00> : vector<8x128xf32>
    %518 = tpu.matmul %318, %323, %cst_135 {dimension_numbers = #tpu.dot_dimension_numbers<[1], [0], [0], [1], [0, 0, 1, 1], [], []>} : vector<8x16xf32>, vector<16x128xf32>, vector<8x128xf32> -> vector<8x128xf32>
    %cst_136 = arith.constant dense<0.000000e+00> : vector<8x128xf32>
    %519 = tpu.matmul %487, %325, %cst_136 {dimension_numbers = #tpu.dot_dimension_numbers<[1], [0], [0], [1], [0, 0, 1, 1], [], []>} : vector<8x32xf32>, vector<32x128xf32>, vector<8x128xf32> -> vector<8x128xf32>
    %520 = arith.addf %518, %519 : vector<8x128xf32>
    %521 = vector.broadcast %327 : vector<1x128xf32> to vector<8x128xf32>
    %522 = arith.addf %520, %521 : vector<8x128xf32>
    %523 = vector.extract_strided_slice %522 {offsets = [0, 0], sizes = [8, 32], strides = [1, 1]} : vector<8x128xf32> to vector<8x32xf32>
    %524 = arith.negf %523 : vector<8x32xf32>
    %525 = math.exp %524 : vector<8x32xf32>
    %cst_137 = arith.constant 1.000000e+00 : f32
    %526 = vector.broadcast %cst_137 : f32 to vector<8x32xf32>
    %527 = arith.addf %526, %525 : vector<8x32xf32>
    %528 = arith.divf %526, %527 : vector<8x32xf32>
    %529 = vector.extract_strided_slice %522 {offsets = [0, 32], sizes = [8, 32], strides = [1, 1]} : vector<8x128xf32> to vector<8x32xf32>
    %530 = arith.negf %529 : vector<8x32xf32>
    %531 = math.exp %530 : vector<8x32xf32>
    %cst_138 = arith.constant 1.000000e+00 : f32
    %532 = vector.broadcast %cst_138 : f32 to vector<8x32xf32>
    %533 = arith.addf %532, %531 : vector<8x32xf32>
    %534 = arith.divf %532, %533 : vector<8x32xf32>
    %535 = vector.extract_strided_slice %522 {offsets = [0, 64], sizes = [8, 32], strides = [1, 1]} : vector<8x128xf32> to vector<8x32xf32>
    %536 = math.tanh %535 : vector<8x32xf32>
    %537 = vector.extract_strided_slice %522 {offsets = [0, 96], sizes = [8, 32], strides = [1, 1]} : vector<8x128xf32> to vector<8x32xf32>
    %538 = arith.negf %537 : vector<8x32xf32>
    %539 = math.exp %538 : vector<8x32xf32>
    %cst_139 = arith.constant 1.000000e+00 : f32
    %540 = vector.broadcast %cst_139 : f32 to vector<8x32xf32>
    %541 = arith.addf %540, %539 : vector<8x32xf32>
    %542 = arith.divf %540, %541 : vector<8x32xf32>
    %543 = arith.mulf %534, %485 : vector<8x32xf32>
    %544 = arith.mulf %528, %536 : vector<8x32xf32>
    %545 = arith.addf %543, %544 : vector<8x32xf32>
    %546 = math.tanh %545 : vector<8x32xf32>
    %547 = arith.mulf %542, %546 : vector<8x32xf32>
    %cst_140 = arith.constant dense<0.000000e+00> : vector<8x128xf32>
    %548 = tpu.matmul %547, %329, %cst_140 {dimension_numbers = #tpu.dot_dimension_numbers<[1], [0], [0], [1], [0, 0, 1, 1], [], []>} : vector<8x32xf32>, vector<32x128xf32>, vector<8x128xf32> -> vector<8x128xf32>
    %cst_141 = arith.constant dense<0.000000e+00> : vector<8x128xf32>
    %549 = tpu.matmul %517, %331, %cst_141 {dimension_numbers = #tpu.dot_dimension_numbers<[1], [0], [0], [1], [0, 0, 1, 1], [], []>} : vector<8x32xf32>, vector<32x128xf32>, vector<8x128xf32> -> vector<8x128xf32>
    %550 = arith.addf %548, %549 : vector<8x128xf32>
    %551 = vector.broadcast %333 : vector<1x128xf32> to vector<8x128xf32>
    %552 = arith.addf %550, %551 : vector<8x128xf32>
    %553 = vector.extract_strided_slice %552 {offsets = [0, 0], sizes = [8, 32], strides = [1, 1]} : vector<8x128xf32> to vector<8x32xf32>
    %554 = arith.negf %553 : vector<8x32xf32>
    %555 = math.exp %554 : vector<8x32xf32>
    %cst_142 = arith.constant 1.000000e+00 : f32
    %556 = vector.broadcast %cst_142 : f32 to vector<8x32xf32>
    %557 = arith.addf %556, %555 : vector<8x32xf32>
    %558 = arith.divf %556, %557 : vector<8x32xf32>
    %559 = vector.extract_strided_slice %552 {offsets = [0, 32], sizes = [8, 32], strides = [1, 1]} : vector<8x128xf32> to vector<8x32xf32>
    %560 = arith.negf %559 : vector<8x32xf32>
    %561 = math.exp %560 : vector<8x32xf32>
    %cst_143 = arith.constant 1.000000e+00 : f32
    %562 = vector.broadcast %cst_143 : f32 to vector<8x32xf32>
    %563 = arith.addf %562, %561 : vector<8x32xf32>
    %564 = arith.divf %562, %563 : vector<8x32xf32>
    %565 = vector.extract_strided_slice %552 {offsets = [0, 64], sizes = [8, 32], strides = [1, 1]} : vector<8x128xf32> to vector<8x32xf32>
    %566 = math.tanh %565 : vector<8x32xf32>
    %567 = vector.extract_strided_slice %552 {offsets = [0, 96], sizes = [8, 32], strides = [1, 1]} : vector<8x128xf32> to vector<8x32xf32>
    %568 = arith.negf %567 : vector<8x32xf32>
    %569 = math.exp %568 : vector<8x32xf32>
    %cst_144 = arith.constant 1.000000e+00 : f32
    %570 = vector.broadcast %cst_144 : f32 to vector<8x32xf32>
    %571 = arith.addf %570, %569 : vector<8x32xf32>
    %572 = arith.divf %570, %571 : vector<8x32xf32>
    %573 = arith.mulf %564, %515 : vector<8x32xf32>
    %574 = arith.mulf %558, %566 : vector<8x32xf32>
    %575 = arith.addf %573, %574 : vector<8x32xf32>
    %576 = math.tanh %575 : vector<8x32xf32>
    %577 = arith.mulf %572, %576 : vector<8x32xf32>
    %578 = tpu.concatenate %547, %545, %577, %575 in 1 : vector<8x32xf32>, vector<8x32xf32>, vector<8x32xf32>, vector<8x32xf32> -> vector<8x128xf32>
    %c1_145 = arith.constant 1 : index
    %c0_146 = arith.constant 0 : index
    %c0_147 = arith.constant 0 : index
    %579 = vector.load %arg14[%c1_145, %c0_146, %c0_147] : memref<2x128x32xf32, #tpu.memory_space<vmem>>, vector<1x128x32xf32>
    %580 = vector.shape_cast %579 : vector<1x128x32xf32> to vector<128x32xf32>
    %cst_148 = arith.constant dense<0.000000e+00> : vector<8x32xf32>
    %581 = tpu.matmul %578, %580, %cst_148 {dimension_numbers = #tpu.dot_dimension_numbers<[1], [0], [0], [1], [0, 0, 1, 1], [], []>} : vector<8x128xf32>, vector<128x32xf32>, vector<8x32xf32> -> vector<8x32xf32>
    %c1_149 = arith.constant 1 : index
    %c0_150 = arith.constant 0 : index
    %c0_151 = arith.constant 0 : index
    %582 = vector.load %arg15[%c1_149, %c0_150, %c0_151] : memref<2x1x32xf32, #tpu.memory_space<vmem>>, vector<1x1x32xf32>
    %583 = vector.shape_cast %582 : vector<1x1x32xf32> to vector<1x32xf32>
    %584 = vector.broadcast %583 : vector<1x32xf32> to vector<8x32xf32>
    %585 = arith.addf %581, %584 : vector<8x32xf32>
    %cst_152 = arith.constant dense<0.000000e+00> : vector<8x16xf32>
    %586 = tpu.matmul %7, %0, %cst_152 {dimension_numbers = #tpu.dot_dimension_numbers<[1], [1], [0], [0], [0, 0, 1, 0], [], []>} : vector<8x32xf32>, vector<16x32xf32>, vector<8x16xf32> -> vector<8x16xf32>
    %c0_153 = arith.constant 0 : index
    %c0_154 = arith.constant 0 : index
    %587 = vector.load %arg34[%c0_153, %c0_154] : memref<8x16xf32, #tpu.memory_space<vmem>>, vector<8x16xf32>
    tpu.vector_store %arg34[%c0_153, %c0_154], %586 {strides = array<i32>} : memref<8x16xf32, #tpu.memory_space<vmem>>, vector<8x16xf32>,
    %588 = tpu.iota {dimensions = array<i32: 1>} : vector<8x16xi32>
    %589 = arith.sitofp %588 : vector<8x16xi32> to vector<8x16xf32>
    %cst_155 = arith.constant dense<0xFF800000> : vector<8xf32>
    %590 = vector.multi_reduction <maximumf>, %586, %cst_155 [1] : vector<8x16xf32> to vector<8xf32>
    %591 = vector.shape_cast %590 : vector<8xf32> to vector<8x1xf32>
    %592 = vector.broadcast %591 : vector<8x1xf32> to vector<8x16xf32>
    %593 = arith.cmpf oge, %586, %592 : vector<8x16xf32>
    %cst_156 = arith.constant 1.600000e+01 : f32
    %594 = vector.broadcast %cst_156 : f32 to vector<8x16xf32>
    %595 = arith.subf %594, %589 : vector<8x16xf32>
    %cst_157 = arith.constant 0.000000e+00 : f32
    %596 = vector.broadcast %cst_157 : f32 to vector<8x16xf32>
    %597 = arith.select %593, %595, %596 : vector<8x16xi1>, vector<8x16xf32>
    %cst_158 = arith.constant dense<0xFF800000> : vector<8xf32>
    %598 = vector.multi_reduction <maximumf>, %597, %cst_158 [1] : vector<8x16xf32> to vector<8xf32>
    %599 = vector.shape_cast %598 : vector<8xf32> to vector<8x1xf32>
    %cst_159 = arith.constant 1.600000e+01 : f32
    %600 = vector.broadcast %cst_159 : f32 to vector<8x1xf32>
    %601 = arith.subf %600, %599 : vector<8x1xf32>
    %602 = vector.broadcast %601 : vector<8x1xf32> to vector<8x16xf32>
    %603 = arith.cmpf oeq, %589, %602 : vector<8x16xf32>
    %604 = arith.extui %603 : vector<8x16xi1> to vector<8x16xi32>
    %605 = arith.sitofp %604 : vector<8x16xi32> to vector<8x16xf32>
    %c0_160 = arith.constant 0 : index
    %c0_161 = arith.constant 0 : index
    %606 = vector.load %arg1[%c0_160, %c0_161] : memref<8x1xi32, #tpu.memory_space<vmem>>, vector<8x1xi32>
    %607 = arith.sitofp %606 : vector<8x1xi32> to vector<8x1xf32>
    %608 = arith.cmpf one, %601, %607 : vector<8x1xf32>
    %609 = arith.extui %608 : vector<8x1xi1> to vector<8x1xi32>
    %610 = arith.sitofp %609 : vector<8x1xi32> to vector<8x1xf32>
    %c0_162 = arith.constant 0 : index
    %c0_163 = arith.constant 0 : index
    %c0_164 = arith.constant 0 : index
    %611 = vector.load %arg16[%c0_162, %c0_163, %c0_164] : memref<2x32x128xf32, #tpu.memory_space<vmem>>, vector<1x32x128xf32>
    %612 = vector.shape_cast %611 : vector<1x32x128xf32> to vector<32x128xf32>
    %cst_165 = arith.constant dense<0.000000e+00> : vector<8x128xf32>
    %613 = tpu.matmul %297, %612, %cst_165 {dimension_numbers = #tpu.dot_dimension_numbers<[1], [0], [0], [1], [0, 0, 1, 1], [], []>} : vector<8x32xf32>, vector<32x128xf32>, vector<8x128xf32> -> vector<8x128xf32>
    %c0_166 = arith.constant 0 : index
    %c0_167 = arith.constant 0 : index
    %c0_168 = arith.constant 0 : index
    %614 = vector.load %arg17[%c0_166, %c0_167, %c0_168] : memref<2x1x128xf32, #tpu.memory_space<vmem>>, vector<1x1x128xf32>
    %615 = vector.shape_cast %614 : vector<1x1x128xf32> to vector<1x128xf32>
    %616 = vector.broadcast %615 : vector<1x128xf32> to vector<8x128xf32>
    %617 = arith.addf %613, %616 : vector<8x128xf32>
    %618 = vector.extract_strided_slice %617 {offsets = [0, 0], sizes = [8, 32], strides = [1, 1]} : vector<8x128xf32> to vector<8x32xf32>
    %619 = vector.extract_strided_slice %617 {offsets = [0, 32], sizes = [8, 32], strides = [1, 1]} : vector<8x128xf32> to vector<8x32xf32>
    %620 = vector.extract_strided_slice %617 {offsets = [0, 64], sizes = [8, 32], strides = [1, 1]} : vector<8x128xf32> to vector<8x32xf32>
    %621 = vector.extract_strided_slice %617 {offsets = [0, 96], sizes = [8, 32], strides = [1, 1]} : vector<8x128xf32> to vector<8x32xf32>
    %c0_169 = arith.constant 0 : index
    %c0_170 = arith.constant 0 : index
    %c0_171 = arith.constant 0 : index
    %622 = vector.load %arg18[%c0_169, %c0_170, %c0_171] : memref<2x16x128xf32, #tpu.memory_space<vmem>>, vector<1x16x128xf32>
    %623 = vector.shape_cast %622 : vector<1x16x128xf32> to vector<16x128xf32>
    %c0_172 = arith.constant 0 : index
    %c0_173 = arith.constant 0 : index
    %c0_174 = arith.constant 0 : index
    %624 = vector.load %arg19[%c0_172, %c0_173, %c0_174] : memref<2x32x128xf32, #tpu.memory_space<vmem>>, vector<1x32x128xf32>
    %625 = vector.shape_cast %624 : vector<1x32x128xf32> to vector<32x128xf32>
    %c0_175 = arith.constant 0 : index
    %c0_176 = arith.constant 0 : index
    %c0_177 = arith.constant 0 : index
    %626 = vector.load %arg20[%c0_175, %c0_176, %c0_177] : memref<2x1x128xf32, #tpu.memory_space<vmem>>, vector<1x1x128xf32>
    %627 = vector.shape_cast %626 : vector<1x1x128xf32> to vector<1x128xf32>
    %c0_178 = arith.constant 0 : index
    %c0_179 = arith.constant 0 : index
    %c0_180 = arith.constant 0 : index
    %628 = vector.load %arg21[%c0_178, %c0_179, %c0_180] : memref<2x32x128xf32, #tpu.memory_space<vmem>>, vector<1x32x128xf32>
    %629 = vector.shape_cast %628 : vector<1x32x128xf32> to vector<32x128xf32>
    %c0_181 = arith.constant 0 : index
    %c0_182 = arith.constant 0 : index
    %c0_183 = arith.constant 0 : index
    %630 = vector.load %arg22[%c0_181, %c0_182, %c0_183] : memref<2x32x128xf32, #tpu.memory_space<vmem>>, vector<1x32x128xf32>
    %631 = vector.shape_cast %630 : vector<1x32x128xf32> to vector<32x128xf32>
    %c0_184 = arith.constant 0 : index
    %c0_185 = arith.constant 0 : index
    %c0_186 = arith.constant 0 : index
    %632 = vector.load %arg23[%c0_184, %c0_185, %c0_186] : memref<2x1x128xf32, #tpu.memory_space<vmem>>, vector<1x1x128xf32>
    %633 = vector.shape_cast %632 : vector<1x1x128xf32> to vector<1x128xf32>
    %c0_187 = arith.constant 0 : index
    %c0_188 = arith.constant 0 : index
    %c0_189 = arith.constant 0 : index
    %634 = vector.load %arg24[%c0_187, %c0_188, %c0_189] : memref<2x32x16xf32, #tpu.memory_space<vmem>>, vector<1x32x16xf32>
    %635 = vector.shape_cast %634 : vector<1x32x16xf32> to vector<32x16xf32>
    %c0_190 = arith.constant 0 : index
    %c0_191 = arith.constant 0 : index
    %c0_192 = arith.constant 0 : index
    %636 = vector.load %arg25[%c0_190, %c0_191, %c0_192] : memref<2x1x16xf32, #tpu.memory_space<vmem>>, vector<1x1x16xf32>
    %637 = vector.shape_cast %636 : vector<1x1x16xf32> to vector<1x16xf32>
    %638 = tpu.iota {dimensions = array<i32: 1>} : vector<8x16xi32>
    %c0_i32 = arith.constant 0 : i32
    %639 = vector.broadcast %c0_i32 : i32 to vector<8x16xi32>
    %640 = arith.cmpi eq, %638, %639 : vector<8x16xi32>
    %641 = arith.extui %640 : vector<8x16xi1> to vector<8x16xi32>
    %642 = arith.sitofp %641 : vector<8x16xi32> to vector<8x16xf32>
    %643 = arith.sitofp %8 : vector<8x4xi32> to vector<8x4xf32>
    %cst_193 = arith.constant 0.000000e+00 : f32
    %644 = vector.broadcast %cst_193 : f32 to vector<8x1xf32>
    %cst_194 = arith.constant dense<0.000000e+00> : vector<8x128xf32>
    %645 = tpu.matmul %642, %623, %cst_194 {dimension_numbers = #tpu.dot_dimension_numbers<[1], [0], [0], [1], [0, 0, 1, 1], [], []>} : vector<8x16xf32>, vector<16x128xf32>, vector<8x128xf32> -> vector<8x128xf32>
    %cst_195 = arith.constant dense<0.000000e+00> : vector<8x128xf32>
    %646 = tpu.matmul %618, %625, %cst_195 {dimension_numbers = #tpu.dot_dimension_numbers<[1], [0], [0], [1], [0, 0, 1, 1], [], []>} : vector<8x32xf32>, vector<32x128xf32>, vector<8x128xf32> -> vector<8x128xf32>
    %647 = arith.addf %645, %646 : vector<8x128xf32>
    %648 = vector.broadcast %627 : vector<1x128xf32> to vector<8x128xf32>
    %649 = arith.addf %647, %648 : vector<8x128xf32>
    %650 = vector.extract_strided_slice %649 {offsets = [0, 0], sizes = [8, 32], strides = [1, 1]} : vector<8x128xf32> to vector<8x32xf32>
    %651 = arith.negf %650 : vector<8x32xf32>
    %652 = math.exp %651 : vector<8x32xf32>
    %cst_196 = arith.constant 1.000000e+00 : f32
    %653 = vector.broadcast %cst_196 : f32 to vector<8x32xf32>
    %654 = arith.addf %653, %652 : vector<8x32xf32>
    %655 = arith.divf %653, %654 : vector<8x32xf32>
    %656 = vector.extract_strided_slice %649 {offsets = [0, 32], sizes = [8, 32], strides = [1, 1]} : vector<8x128xf32> to vector<8x32xf32>
    %657 = arith.negf %656 : vector<8x32xf32>
    %658 = math.exp %657 : vector<8x32xf32>
    %cst_197 = arith.constant 1.000000e+00 : f32
    %659 = vector.broadcast %cst_197 : f32 to vector<8x32xf32>
    %660 = arith.addf %659, %658 : vector<8x32xf32>
    %661 = arith.divf %659, %660 : vector<8x32xf32>
    %662 = vector.extract_strided_slice %649 {offsets = [0, 64], sizes = [8, 32], strides = [1, 1]} : vector<8x128xf32> to vector<8x32xf32>
    %663 = math.tanh %662 : vector<8x32xf32>
    %664 = vector.extract_strided_slice %649 {offsets = [0, 96], sizes = [8, 32], strides = [1, 1]} : vector<8x128xf32> to vector<8x32xf32>
    %665 = arith.negf %664 : vector<8x32xf32>
    %666 = math.exp %665 : vector<8x32xf32>
    %cst_198 = arith.constant 1.000000e+00 : f32
    %667 = vector.broadcast %cst_198 : f32 to vector<8x32xf32>
    %668 = arith.addf %667, %666 : vector<8x32xf32>
    %669 = arith.divf %667, %668 : vector<8x32xf32>
    %670 = arith.mulf %661, %619 : vector<8x32xf32>
    %671 = arith.mulf %655, %663 : vector<8x32xf32>
    %672 = arith.addf %670, %671 : vector<8x32xf32>
    %673 = math.tanh %672 : vector<8x32xf32>
    %674 = arith.mulf %669, %673 : vector<8x32xf32>
    %cst_199 = arith.constant dense<0.000000e+00> : vector<8x128xf32>
    %675 = tpu.matmul %674, %629, %cst_199 {dimension_numbers = #tpu.dot_dimension_numbers<[1], [0], [0], [1], [0, 0, 1, 1], [], []>} : vector<8x32xf32>, vector<32x128xf32>, vector<8x128xf32> -> vector<8x128xf32>
    %cst_200 = arith.constant dense<0.000000e+00> : vector<8x128xf32>
    %676 = tpu.matmul %620, %631, %cst_200 {dimension_numbers = #tpu.dot_dimension_numbers<[1], [0], [0], [1], [0, 0, 1, 1], [], []>} : vector<8x32xf32>, vector<32x128xf32>, vector<8x128xf32> -> vector<8x128xf32>
    %677 = arith.addf %675, %676 : vector<8x128xf32>
    %678 = vector.broadcast %633 : vector<1x128xf32> to vector<8x128xf32>
    %679 = arith.addf %677, %678 : vector<8x128xf32>
    %680 = vector.extract_strided_slice %679 {offsets = [0, 0], sizes = [8, 32], strides = [1, 1]} : vector<8x128xf32> to vector<8x32xf32>
    %681 = arith.negf %680 : vector<8x32xf32>
    %682 = math.exp %681 : vector<8x32xf32>
    %cst_201 = arith.constant 1.000000e+00 : f32
    %683 = vector.broadcast %cst_201 : f32 to vector<8x32xf32>
    %684 = arith.addf %683, %682 : vector<8x32xf32>
    %685 = arith.divf %683, %684 : vector<8x32xf32>
    %686 = vector.extract_strided_slice %679 {offsets = [0, 32], sizes = [8, 32], strides = [1, 1]} : vector<8x128xf32> to vector<8x32xf32>
    %687 = arith.negf %686 : vector<8x32xf32>
    %688 = math.exp %687 : vector<8x32xf32>
    %cst_202 = arith.constant 1.000000e+00 : f32
    %689 = vector.broadcast %cst_202 : f32 to vector<8x32xf32>
    %690 = arith.addf %689, %688 : vector<8x32xf32>
    %691 = arith.divf %689, %690 : vector<8x32xf32>
    %692 = vector.extract_strided_slice %679 {offsets = [0, 64], sizes = [8, 32], strides = [1, 1]} : vector<8x128xf32> to vector<8x32xf32>
    %693 = math.tanh %692 : vector<8x32xf32>
    %694 = vector.extract_strided_slice %679 {offsets = [0, 96], sizes = [8, 32], strides = [1, 1]} : vector<8x128xf32> to vector<8x32xf32>
    %695 = arith.negf %694 : vector<8x32xf32>
    %696 = math.exp %695 : vector<8x32xf32>
    %cst_203 = arith.constant 1.000000e+00 : f32
    %697 = vector.broadcast %cst_203 : f32 to vector<8x32xf32>
    %698 = arith.addf %697, %696 : vector<8x32xf32>
    %699 = arith.divf %697, %698 : vector<8x32xf32>
    %700 = arith.mulf %691, %621 : vector<8x32xf32>
    %701 = arith.mulf %685, %693 : vector<8x32xf32>
    %702 = arith.addf %700, %701 : vector<8x32xf32>
    %703 = math.tanh %702 : vector<8x32xf32>
    %704 = arith.mulf %699, %703 : vector<8x32xf32>
    %cst_204 = arith.constant dense<0.000000e+00> : vector<8x16xf32>
    %705 = tpu.matmul %704, %635, %cst_204 {dimension_numbers = #tpu.dot_dimension_numbers<[1], [0], [0], [1], [0, 0, 1, 1], [], []>} : vector<8x32xf32>, vector<32x16xf32>, vector<8x16xf32> -> vector<8x16xf32>
    %706 = vector.broadcast %637 : vector<1x16xf32> to vector<8x16xf32>
    %707 = arith.addf %705, %706 : vector<8x16xf32>
    %cst_205 = arith.constant dense<0xFF800000> : vector<8xf32>
    %708 = vector.multi_reduction <maximumf>, %707, %cst_205 [1] : vector<8x16xf32> to vector<8xf32>
    %709 = vector.shape_cast %708 : vector<8xf32> to vector<8x1xf32>
    %710 = vector.broadcast %709 : vector<8x1xf32> to vector<8x16xf32>
    %711 = arith.subf %707, %710 : vector<8x16xf32>
    %712 = math.exp %711 : vector<8x16xf32>
    %cst_206 = arith.constant dense<0.000000e+00> : vector<8xf32>
    %713 = vector.multi_reduction <add>, %712, %cst_206 [1] : vector<8x16xf32> to vector<8xf32>
    %714 = vector.shape_cast %713 : vector<8xf32> to vector<8x1xf32>
    %715 = tpu.reciprocal %714 {approx = true} : vector<8x1xf32> -> vector<8x1xf32>
    %716 = vector.broadcast %715 : vector<8x1xf32> to vector<8x16xf32>
    %717 = arith.mulf %712, %716 : vector<8x16xf32>
    %718 = tpu.iota {dimensions = array<i32: 1>} : vector<8x16xi32>
    %719 = arith.sitofp %718 : vector<8x16xi32> to vector<8x16xf32>
    %cst_207 = arith.constant dense<0xFF800000> : vector<8xf32>
    %720 = vector.multi_reduction <maximumf>, %707, %cst_207 [1] : vector<8x16xf32> to vector<8xf32>
    %721 = vector.shape_cast %720 : vector<8xf32> to vector<8x1xf32>
    %722 = vector.broadcast %721 : vector<8x1xf32> to vector<8x16xf32>
    %723 = arith.cmpf oge, %707, %722 : vector<8x16xf32>
    %cst_208 = arith.constant 1.600000e+01 : f32
    %724 = vector.broadcast %cst_208 : f32 to vector<8x16xf32>
    %725 = arith.subf %724, %719 : vector<8x16xf32>
    %cst_209 = arith.constant 0.000000e+00 : f32
    %726 = vector.broadcast %cst_209 : f32 to vector<8x16xf32>
    %727 = arith.select %723, %725, %726 : vector<8x16xi1>, vector<8x16xf32>
    %cst_210 = arith.constant dense<0xFF800000> : vector<8xf32>
    %728 = vector.multi_reduction <maximumf>, %727, %cst_210 [1] : vector<8x16xf32> to vector<8xf32>
    %729 = vector.shape_cast %728 : vector<8xf32> to vector<8x1xf32>
    %cst_211 = arith.constant 1.600000e+01 : f32
    %730 = vector.broadcast %cst_211 : f32 to vector<8x1xf32>
    %731 = arith.subf %730, %729 : vector<8x1xf32>
    %732 = vector.broadcast %731 : vector<8x1xf32> to vector<8x16xf32>
    %733 = arith.cmpf oeq, %719, %732 : vector<8x16xf32>
    %734 = arith.extui %733 : vector<8x16xi1> to vector<8x16xi32>
    %735 = arith.sitofp %734 : vector<8x16xi32> to vector<8x16xf32>
    %736 = vector.extract_strided_slice %643 {offsets = [0, 0], sizes = [8, 1], strides = [1, 1]} : vector<8x4xf32> to vector<8x1xf32>
    %737 = arith.cmpf one, %731, %736 : vector<8x1xf32>
    %738 = arith.extui %737 : vector<8x1xi1> to vector<8x1xi32>
    %739 = arith.sitofp %738 : vector<8x1xi32> to vector<8x1xf32>
    %740 = arith.maximumf %644, %739 : vector<8x1xf32>
    %cst_212 = arith.constant dense<0.000000e+00> : vector<8x128xf32>
    %741 = tpu.matmul %717, %623, %cst_212 {dimension_numbers = #tpu.dot_dimension_numbers<[1], [0], [0], [1], [0, 0, 1, 1], [], []>} : vector<8x16xf32>, vector<16x128xf32>, vector<8x128xf32> -> vector<8x128xf32>
    %cst_213 = arith.constant dense<0.000000e+00> : vector<8x128xf32>
    %742 = tpu.matmul %674, %625, %cst_213 {dimension_numbers = #tpu.dot_dimension_numbers<[1], [0], [0], [1], [0, 0, 1, 1], [], []>} : vector<8x32xf32>, vector<32x128xf32>, vector<8x128xf32> -> vector<8x128xf32>
    %743 = arith.addf %741, %742 : vector<8x128xf32>
    %744 = vector.broadcast %627 : vector<1x128xf32> to vector<8x128xf32>
    %745 = arith.addf %743, %744 : vector<8x128xf32>
    %746 = vector.extract_strided_slice %745 {offsets = [0, 0], sizes = [8, 32], strides = [1, 1]} : vector<8x128xf32> to vector<8x32xf32>
    %747 = arith.negf %746 : vector<8x32xf32>
    %748 = math.exp %747 : vector<8x32xf32>
    %cst_214 = arith.constant 1.000000e+00 : f32
    %749 = vector.broadcast %cst_214 : f32 to vector<8x32xf32>
    %750 = arith.addf %749, %748 : vector<8x32xf32>
    %751 = arith.divf %749, %750 : vector<8x32xf32>
    %752 = vector.extract_strided_slice %745 {offsets = [0, 32], sizes = [8, 32], strides = [1, 1]} : vector<8x128xf32> to vector<8x32xf32>
    %753 = arith.negf %752 : vector<8x32xf32>
    %754 = math.exp %753 : vector<8x32xf32>
    %cst_215 = arith.constant 1.000000e+00 : f32
    %755 = vector.broadcast %cst_215 : f32 to vector<8x32xf32>
    %756 = arith.addf %755, %754 : vector<8x32xf32>
    %757 = arith.divf %755, %756 : vector<8x32xf32>
    %758 = vector.extract_strided_slice %745 {offsets = [0, 64], sizes = [8, 32], strides = [1, 1]} : vector<8x128xf32> to vector<8x32xf32>
    %759 = math.tanh %758 : vector<8x32xf32>
    %760 = vector.extract_strided_slice %745 {offsets = [0, 96], sizes = [8, 32], strides = [1, 1]} : vector<8x128xf32> to vector<8x32xf32>
    %761 = arith.negf %760 : vector<8x32xf32>
    %762 = math.exp %761 : vector<8x32xf32>
    %cst_216 = arith.constant 1.000000e+00 : f32
    %763 = vector.broadcast %cst_216 : f32 to vector<8x32xf32>
    %764 = arith.addf %763, %762 : vector<8x32xf32>
    %765 = arith.divf %763, %764 : vector<8x32xf32>
    %766 = arith.mulf %757, %672 : vector<8x32xf32>
    %767 = arith.mulf %751, %759 : vector<8x32xf32>
    %768 = arith.addf %766, %767 : vector<8x32xf32>
    %769 = math.tanh %768 : vector<8x32xf32>
    %770 = arith.mulf %765, %769 : vector<8x32xf32>
    %cst_217 = arith.constant dense<0.000000e+00> : vector<8x128xf32>
    %771 = tpu.matmul %770, %629, %cst_217 {dimension_numbers = #tpu.dot_dimension_numbers<[1], [0], [0], [1], [0, 0, 1, 1], [], []>} : vector<8x32xf32>, vector<32x128xf32>, vector<8x128xf32> -> vector<8x128xf32>
    %cst_218 = arith.constant dense<0.000000e+00> : vector<8x128xf32>
    %772 = tpu.matmul %704, %631, %cst_218 {dimension_numbers = #tpu.dot_dimension_numbers<[1], [0], [0], [1], [0, 0, 1, 1], [], []>} : vector<8x32xf32>, vector<32x128xf32>, vector<8x128xf32> -> vector<8x128xf32>
    %773 = arith.addf %771, %772 : vector<8x128xf32>
    %774 = vector.broadcast %633 : vector<1x128xf32> to vector<8x128xf32>
    %775 = arith.addf %773, %774 : vector<8x128xf32>
    %776 = vector.extract_strided_slice %775 {offsets = [0, 0], sizes = [8, 32], strides = [1, 1]} : vector<8x128xf32> to vector<8x32xf32>
    %777 = arith.negf %776 : vector<8x32xf32>
    %778 = math.exp %777 : vector<8x32xf32>
    %cst_219 = arith.constant 1.000000e+00 : f32
    %779 = vector.broadcast %cst_219 : f32 to vector<8x32xf32>
    %780 = arith.addf %779, %778 : vector<8x32xf32>
    %781 = arith.divf %779, %780 : vector<8x32xf32>
    %782 = vector.extract_strided_slice %775 {offsets = [0, 32], sizes = [8, 32], strides = [1, 1]} : vector<8x128xf32> to vector<8x32xf32>
    %783 = arith.negf %782 : vector<8x32xf32>
    %784 = math.exp %783 : vector<8x32xf32>
    %cst_220 = arith.constant 1.000000e+00 : f32
    %785 = vector.broadcast %cst_220 : f32 to vector<8x32xf32>
    %786 = arith.addf %785, %784 : vector<8x32xf32>
    %787 = arith.divf %785, %786 : vector<8x32xf32>
    %788 = vector.extract_strided_slice %775 {offsets = [0, 64], sizes = [8, 32], strides = [1, 1]} : vector<8x128xf32> to vector<8x32xf32>
    %789 = math.tanh %788 : vector<8x32xf32>
    %790 = vector.extract_strided_slice %775 {offsets = [0, 96], sizes = [8, 32], strides = [1, 1]} : vector<8x128xf32> to vector<8x32xf32>
    %791 = arith.negf %790 : vector<8x32xf32>
    %792 = math.exp %791 : vector<8x32xf32>
    %cst_221 = arith.constant 1.000000e+00 : f32
    %793 = vector.broadcast %cst_221 : f32 to vector<8x32xf32>
    %794 = arith.addf %793, %792 : vector<8x32xf32>
    %795 = arith.divf %793, %794 : vector<8x32xf32>
    %796 = arith.mulf %787, %702 : vector<8x32xf32>
    %797 = arith.mulf %781, %789 : vector<8x32xf32>
    %798 = arith.addf %796, %797 : vector<8x32xf32>
    %799 = math.tanh %798 : vector<8x32xf32>
    %800 = arith.mulf %795, %799 : vector<8x32xf32>
    %cst_222 = arith.constant dense<0.000000e+00> : vector<8x16xf32>
    %801 = tpu.matmul %800, %635, %cst_222 {dimension_numbers = #tpu.dot_dimension_numbers<[1], [0], [0], [1], [0, 0, 1, 1], [], []>} : vector<8x32xf32>, vector<32x16xf32>, vector<8x16xf32> -> vector<8x16xf32>
    %802 = vector.broadcast %637 : vector<1x16xf32> to vector<8x16xf32>
    %803 = arith.addf %801, %802 : vector<8x16xf32>
    %cst_223 = arith.constant dense<0xFF800000> : vector<8xf32>
    %804 = vector.multi_reduction <maximumf>, %803, %cst_223 [1] : vector<8x16xf32> to vector<8xf32>
    %805 = vector.shape_cast %804 : vector<8xf32> to vector<8x1xf32>
    %806 = vector.broadcast %805 : vector<8x1xf32> to vector<8x16xf32>
    %807 = arith.subf %803, %806 : vector<8x16xf32>
    %808 = math.exp %807 : vector<8x16xf32>
    %cst_224 = arith.constant dense<0.000000e+00> : vector<8xf32>
    %809 = vector.multi_reduction <add>, %808, %cst_224 [1] : vector<8x16xf32> to vector<8xf32>
    %810 = vector.shape_cast %809 : vector<8xf32> to vector<8x1xf32>
    %811 = tpu.reciprocal %810 {approx = true} : vector<8x1xf32> -> vector<8x1xf32>
    %812 = vector.broadcast %811 : vector<8x1xf32> to vector<8x16xf32>
    %813 = arith.mulf %808, %812 : vector<8x16xf32>
    %814 = tpu.iota {dimensions = array<i32: 1>} : vector<8x16xi32>
    %815 = arith.sitofp %814 : vector<8x16xi32> to vector<8x16xf32>
    %cst_225 = arith.constant dense<0xFF800000> : vector<8xf32>
    %816 = vector.multi_reduction <maximumf>, %803, %cst_225 [1] : vector<8x16xf32> to vector<8xf32>
    %817 = vector.shape_cast %816 : vector<8xf32> to vector<8x1xf32>
    %818 = vector.broadcast %817 : vector<8x1xf32> to vector<8x16xf32>
    %819 = arith.cmpf oge, %803, %818 : vector<8x16xf32>
    %cst_226 = arith.constant 1.600000e+01 : f32
    %820 = vector.broadcast %cst_226 : f32 to vector<8x16xf32>
    %821 = arith.subf %820, %815 : vector<8x16xf32>
    %cst_227 = arith.constant 0.000000e+00 : f32
    %822 = vector.broadcast %cst_227 : f32 to vector<8x16xf32>
    %823 = arith.select %819, %821, %822 : vector<8x16xi1>, vector<8x16xf32>
    %cst_228 = arith.constant dense<0xFF800000> : vector<8xf32>
    %824 = vector.multi_reduction <maximumf>, %823, %cst_228 [1] : vector<8x16xf32> to vector<8xf32>
    %825 = vector.shape_cast %824 : vector<8xf32> to vector<8x1xf32>
    %cst_229 = arith.constant 1.600000e+01 : f32
    %826 = vector.broadcast %cst_229 : f32 to vector<8x1xf32>
    %827 = arith.subf %826, %825 : vector<8x1xf32>
    %828 = vector.broadcast %827 : vector<8x1xf32> to vector<8x16xf32>
    %829 = arith.cmpf oeq, %815, %828 : vector<8x16xf32>
    %830 = arith.extui %829 : vector<8x16xi1> to vector<8x16xi32>
    %831 = arith.sitofp %830 : vector<8x16xi32> to vector<8x16xf32>
    %832 = vector.extract_strided_slice %643 {offsets = [0, 1], sizes = [8, 1], strides = [1, 1]} : vector<8x4xf32> to vector<8x1xf32>
    %833 = arith.cmpf one, %827, %832 : vector<8x1xf32>
    %834 = arith.extui %833 : vector<8x1xi1> to vector<8x1xi32>
    %835 = arith.sitofp %834 : vector<8x1xi32> to vector<8x1xf32>
    %836 = arith.maximumf %740, %835 : vector<8x1xf32>
    %cst_230 = arith.constant dense<0.000000e+00> : vector<8x128xf32>
    %837 = tpu.matmul %813, %623, %cst_230 {dimension_numbers = #tpu.dot_dimension_numbers<[1], [0], [0], [1], [0, 0, 1, 1], [], []>} : vector<8x16xf32>, vector<16x128xf32>, vector<8x128xf32> -> vector<8x128xf32>
    %cst_231 = arith.constant dense<0.000000e+00> : vector<8x128xf32>
    %838 = tpu.matmul %770, %625, %cst_231 {dimension_numbers = #tpu.dot_dimension_numbers<[1], [0], [0], [1], [0, 0, 1, 1], [], []>} : vector<8x32xf32>, vector<32x128xf32>, vector<8x128xf32> -> vector<8x128xf32>
    %839 = arith.addf %837, %838 : vector<8x128xf32>
    %840 = vector.broadcast %627 : vector<1x128xf32> to vector<8x128xf32>
    %841 = arith.addf %839, %840 : vector<8x128xf32>
    %842 = vector.extract_strided_slice %841 {offsets = [0, 0], sizes = [8, 32], strides = [1, 1]} : vector<8x128xf32> to vector<8x32xf32>
    %843 = arith.negf %842 : vector<8x32xf32>
    %844 = math.exp %843 : vector<8x32xf32>
    %cst_232 = arith.constant 1.000000e+00 : f32
    %845 = vector.broadcast %cst_232 : f32 to vector<8x32xf32>
    %846 = arith.addf %845, %844 : vector<8x32xf32>
    %847 = arith.divf %845, %846 : vector<8x32xf32>
    %848 = vector.extract_strided_slice %841 {offsets = [0, 32], sizes = [8, 32], strides = [1, 1]} : vector<8x128xf32> to vector<8x32xf32>
    %849 = arith.negf %848 : vector<8x32xf32>
    %850 = math.exp %849 : vector<8x32xf32>
    %cst_233 = arith.constant 1.000000e+00 : f32
    %851 = vector.broadcast %cst_233 : f32 to vector<8x32xf32>
    %852 = arith.addf %851, %850 : vector<8x32xf32>
    %853 = arith.divf %851, %852 : vector<8x32xf32>
    %854 = vector.extract_strided_slice %841 {offsets = [0, 64], sizes = [8, 32], strides = [1, 1]} : vector<8x128xf32> to vector<8x32xf32>
    %855 = math.tanh %854 : vector<8x32xf32>
    %856 = vector.extract_strided_slice %841 {offsets = [0, 96], sizes = [8, 32], strides = [1, 1]} : vector<8x128xf32> to vector<8x32xf32>
    %857 = arith.negf %856 : vector<8x32xf32>
    %858 = math.exp %857 : vector<8x32xf32>
    %cst_234 = arith.constant 1.000000e+00 : f32
    %859 = vector.broadcast %cst_234 : f32 to vector<8x32xf32>
    %860 = arith.addf %859, %858 : vector<8x32xf32>
    %861 = arith.divf %859, %860 : vector<8x32xf32>
    %862 = arith.mulf %853, %768 : vector<8x32xf32>
    %863 = arith.mulf %847, %855 : vector<8x32xf32>
    %864 = arith.addf %862, %863 : vector<8x32xf32>
    %865 = math.tanh %864 : vector<8x32xf32>
    %866 = arith.mulf %861, %865 : vector<8x32xf32>
    %cst_235 = arith.constant dense<0.000000e+00> : vector<8x128xf32>
    %867 = tpu.matmul %866, %629, %cst_235 {dimension_numbers = #tpu.dot_dimension_numbers<[1], [0], [0], [1], [0, 0, 1, 1], [], []>} : vector<8x32xf32>, vector<32x128xf32>, vector<8x128xf32> -> vector<8x128xf32>
    %cst_236 = arith.constant dense<0.000000e+00> : vector<8x128xf32>
    %868 = tpu.matmul %800, %631, %cst_236 {dimension_numbers = #tpu.dot_dimension_numbers<[1], [0], [0], [1], [0, 0, 1, 1], [], []>} : vector<8x32xf32>, vector<32x128xf32>, vector<8x128xf32> -> vector<8x128xf32>
    %869 = arith.addf %867, %868 : vector<8x128xf32>
    %870 = vector.broadcast %633 : vector<1x128xf32> to vector<8x128xf32>
    %871 = arith.addf %869, %870 : vector<8x128xf32>
    %872 = vector.extract_strided_slice %871 {offsets = [0, 0], sizes = [8, 32], strides = [1, 1]} : vector<8x128xf32> to vector<8x32xf32>
    %873 = arith.negf %872 : vector<8x32xf32>
    %874 = math.exp %873 : vector<8x32xf32>
    %cst_237 = arith.constant 1.000000e+00 : f32
    %875 = vector.broadcast %cst_237 : f32 to vector<8x32xf32>
    %876 = arith.addf %875, %874 : vector<8x32xf32>
    %877 = arith.divf %875, %876 : vector<8x32xf32>
    %878 = vector.extract_strided_slice %871 {offsets = [0, 32], sizes = [8, 32], strides = [1, 1]} : vector<8x128xf32> to vector<8x32xf32>
    %879 = arith.negf %878 : vector<8x32xf32>
    %880 = math.exp %879 : vector<8x32xf32>
    %cst_238 = arith.constant 1.000000e+00 : f32
    %881 = vector.broadcast %cst_238 : f32 to vector<8x32xf32>
    %882 = arith.addf %881, %880 : vector<8x32xf32>
    %883 = arith.divf %881, %882 : vector<8x32xf32>
    %884 = vector.extract_strided_slice %871 {offsets = [0, 64], sizes = [8, 32], strides = [1, 1]} : vector<8x128xf32> to vector<8x32xf32>
    %885 = math.tanh %884 : vector<8x32xf32>
    %886 = vector.extract_strided_slice %871 {offsets = [0, 96], sizes = [8, 32], strides = [1, 1]} : vector<8x128xf32> to vector<8x32xf32>
    %887 = arith.negf %886 : vector<8x32xf32>
    %888 = math.exp %887 : vector<8x32xf32>
    %cst_239 = arith.constant 1.000000e+00 : f32
    %889 = vector.broadcast %cst_239 : f32 to vector<8x32xf32>
    %890 = arith.addf %889, %888 : vector<8x32xf32>
    %891 = arith.divf %889, %890 : vector<8x32xf32>
    %892 = arith.mulf %883, %798 : vector<8x32xf32>
    %893 = arith.mulf %877, %885 : vector<8x32xf32>
    %894 = arith.addf %892, %893 : vector<8x32xf32>
    %895 = math.tanh %894 : vector<8x32xf32>
    %896 = arith.mulf %891, %895 : vector<8x32xf32>
    %cst_240 = arith.constant dense<0.000000e+00> : vector<8x16xf32>
    %897 = tpu.matmul %896, %635, %cst_240 {dimension_numbers = #tpu.dot_dimension_numbers<[1], [0], [0], [1], [0, 0, 1, 1], [], []>} : vector<8x32xf32>, vector<32x16xf32>, vector<8x16xf32> -> vector<8x16xf32>
    %898 = vector.broadcast %637 : vector<1x16xf32> to vector<8x16xf32>
    %899 = arith.addf %897, %898 : vector<8x16xf32>
    %cst_241 = arith.constant dense<0xFF800000> : vector<8xf32>
    %900 = vector.multi_reduction <maximumf>, %899, %cst_241 [1] : vector<8x16xf32> to vector<8xf32>
    %901 = vector.shape_cast %900 : vector<8xf32> to vector<8x1xf32>
    %902 = vector.broadcast %901 : vector<8x1xf32> to vector<8x16xf32>
    %903 = arith.subf %899, %902 : vector<8x16xf32>
    %904 = math.exp %903 : vector<8x16xf32>
    %cst_242 = arith.constant dense<0.000000e+00> : vector<8xf32>
    %905 = vector.multi_reduction <add>, %904, %cst_242 [1] : vector<8x16xf32> to vector<8xf32>
    %906 = vector.shape_cast %905 : vector<8xf32> to vector<8x1xf32>
    %907 = tpu.reciprocal %906 {approx = true} : vector<8x1xf32> -> vector<8x1xf32>
    %908 = vector.broadcast %907 : vector<8x1xf32> to vector<8x16xf32>
    %909 = arith.mulf %904, %908 : vector<8x16xf32>
    %910 = tpu.iota {dimensions = array<i32: 1>} : vector<8x16xi32>
    %911 = arith.sitofp %910 : vector<8x16xi32> to vector<8x16xf32>
    %cst_243 = arith.constant dense<0xFF800000> : vector<8xf32>
    %912 = vector.multi_reduction <maximumf>, %899, %cst_243 [1] : vector<8x16xf32> to vector<8xf32>
    %913 = vector.shape_cast %912 : vector<8xf32> to vector<8x1xf32>
    %914 = vector.broadcast %913 : vector<8x1xf32> to vector<8x16xf32>
    %915 = arith.cmpf oge, %899, %914 : vector<8x16xf32>
    %cst_244 = arith.constant 1.600000e+01 : f32
    %916 = vector.broadcast %cst_244 : f32 to vector<8x16xf32>
    %917 = arith.subf %916, %911 : vector<8x16xf32>
    %cst_245 = arith.constant 0.000000e+00 : f32
    %918 = vector.broadcast %cst_245 : f32 to vector<8x16xf32>
    %919 = arith.select %915, %917, %918 : vector<8x16xi1>, vector<8x16xf32>
    %cst_246 = arith.constant dense<0xFF800000> : vector<8xf32>
    %920 = vector.multi_reduction <maximumf>, %919, %cst_246 [1] : vector<8x16xf32> to vector<8xf32>
    %921 = vector.shape_cast %920 : vector<8xf32> to vector<8x1xf32>
    %cst_247 = arith.constant 1.600000e+01 : f32
    %922 = vector.broadcast %cst_247 : f32 to vector<8x1xf32>
    %923 = arith.subf %922, %921 : vector<8x1xf32>
    %924 = vector.broadcast %923 : vector<8x1xf32> to vector<8x16xf32>
    %925 = arith.cmpf oeq, %911, %924 : vector<8x16xf32>
    %926 = arith.extui %925 : vector<8x16xi1> to vector<8x16xi32>
    %927 = arith.sitofp %926 : vector<8x16xi32> to vector<8x16xf32>
    %928 = vector.extract_strided_slice %643 {offsets = [0, 2], sizes = [8, 1], strides = [1, 1]} : vector<8x4xf32> to vector<8x1xf32>
    %929 = arith.cmpf one, %923, %928 : vector<8x1xf32>
    %930 = arith.extui %929 : vector<8x1xi1> to vector<8x1xi32>
    %931 = arith.sitofp %930 : vector<8x1xi32> to vector<8x1xf32>
    %932 = arith.maximumf %836, %931 : vector<8x1xf32>
    %cst_248 = arith.constant dense<0.000000e+00> : vector<8x128xf32>
    %933 = tpu.matmul %909, %623, %cst_248 {dimension_numbers = #tpu.dot_dimension_numbers<[1], [0], [0], [1], [0, 0, 1, 1], [], []>} : vector<8x16xf32>, vector<16x128xf32>, vector<8x128xf32> -> vector<8x128xf32>
    %cst_249 = arith.constant dense<0.000000e+00> : vector<8x128xf32>
    %934 = tpu.matmul %866, %625, %cst_249 {dimension_numbers = #tpu.dot_dimension_numbers<[1], [0], [0], [1], [0, 0, 1, 1], [], []>} : vector<8x32xf32>, vector<32x128xf32>, vector<8x128xf32> -> vector<8x128xf32>
    %935 = arith.addf %933, %934 : vector<8x128xf32>
    %936 = vector.broadcast %627 : vector<1x128xf32> to vector<8x128xf32>
    %937 = arith.addf %935, %936 : vector<8x128xf32>
    %938 = vector.extract_strided_slice %937 {offsets = [0, 0], sizes = [8, 32], strides = [1, 1]} : vector<8x128xf32> to vector<8x32xf32>
    %939 = arith.negf %938 : vector<8x32xf32>
    %940 = math.exp %939 : vector<8x32xf32>
    %cst_250 = arith.constant 1.000000e+00 : f32
    %941 = vector.broadcast %cst_250 : f32 to vector<8x32xf32>
    %942 = arith.addf %941, %940 : vector<8x32xf32>
    %943 = arith.divf %941, %942 : vector<8x32xf32>
    %944 = vector.extract_strided_slice %937 {offsets = [0, 32], sizes = [8, 32], strides = [1, 1]} : vector<8x128xf32> to vector<8x32xf32>
    %945 = arith.negf %944 : vector<8x32xf32>
    %946 = math.exp %945 : vector<8x32xf32>
    %cst_251 = arith.constant 1.000000e+00 : f32
    %947 = vector.broadcast %cst_251 : f32 to vector<8x32xf32>
    %948 = arith.addf %947, %946 : vector<8x32xf32>
    %949 = arith.divf %947, %948 : vector<8x32xf32>
    %950 = vector.extract_strided_slice %937 {offsets = [0, 64], sizes = [8, 32], strides = [1, 1]} : vector<8x128xf32> to vector<8x32xf32>
    %951 = math.tanh %950 : vector<8x32xf32>
    %952 = vector.extract_strided_slice %937 {offsets = [0, 96], sizes = [8, 32], strides = [1, 1]} : vector<8x128xf32> to vector<8x32xf32>
    %953 = arith.negf %952 : vector<8x32xf32>
    %954 = math.exp %953 : vector<8x32xf32>
    %cst_252 = arith.constant 1.000000e+00 : f32
    %955 = vector.broadcast %cst_252 : f32 to vector<8x32xf32>
    %956 = arith.addf %955, %954 : vector<8x32xf32>
    %957 = arith.divf %955, %956 : vector<8x32xf32>
    %958 = arith.mulf %949, %864 : vector<8x32xf32>
    %959 = arith.mulf %943, %951 : vector<8x32xf32>
    %960 = arith.addf %958, %959 : vector<8x32xf32>
    %961 = math.tanh %960 : vector<8x32xf32>
    %962 = arith.mulf %957, %961 : vector<8x32xf32>
    %cst_253 = arith.constant dense<0.000000e+00> : vector<8x128xf32>
    %963 = tpu.matmul %962, %629, %cst_253 {dimension_numbers = #tpu.dot_dimension_numbers<[1], [0], [0], [1], [0, 0, 1, 1], [], []>} : vector<8x32xf32>, vector<32x128xf32>, vector<8x128xf32> -> vector<8x128xf32>
    %cst_254 = arith.constant dense<0.000000e+00> : vector<8x128xf32>
    %964 = tpu.matmul %896, %631, %cst_254 {dimension_numbers = #tpu.dot_dimension_numbers<[1], [0], [0], [1], [0, 0, 1, 1], [], []>} : vector<8x32xf32>, vector<32x128xf32>, vector<8x128xf32> -> vector<8x128xf32>
    %965 = arith.addf %963, %964 : vector<8x128xf32>
    %966 = vector.broadcast %633 : vector<1x128xf32> to vector<8x128xf32>
    %967 = arith.addf %965, %966 : vector<8x128xf32>
    %968 = vector.extract_strided_slice %967 {offsets = [0, 0], sizes = [8, 32], strides = [1, 1]} : vector<8x128xf32> to vector<8x32xf32>
    %969 = arith.negf %968 : vector<8x32xf32>
    %970 = math.exp %969 : vector<8x32xf32>
    %cst_255 = arith.constant 1.000000e+00 : f32
    %971 = vector.broadcast %cst_255 : f32 to vector<8x32xf32>
    %972 = arith.addf %971, %970 : vector<8x32xf32>
    %973 = arith.divf %971, %972 : vector<8x32xf32>
    %974 = vector.extract_strided_slice %967 {offsets = [0, 32], sizes = [8, 32], strides = [1, 1]} : vector<8x128xf32> to vector<8x32xf32>
    %975 = arith.negf %974 : vector<8x32xf32>
    %976 = math.exp %975 : vector<8x32xf32>
    %cst_256 = arith.constant 1.000000e+00 : f32
    %977 = vector.broadcast %cst_256 : f32 to vector<8x32xf32>
    %978 = arith.addf %977, %976 : vector<8x32xf32>
    %979 = arith.divf %977, %978 : vector<8x32xf32>
    %980 = vector.extract_strided_slice %967 {offsets = [0, 64], sizes = [8, 32], strides = [1, 1]} : vector<8x128xf32> to vector<8x32xf32>
    %981 = math.tanh %980 : vector<8x32xf32>
    %982 = vector.extract_strided_slice %967 {offsets = [0, 96], sizes = [8, 32], strides = [1, 1]} : vector<8x128xf32> to vector<8x32xf32>
    %983 = arith.negf %982 : vector<8x32xf32>
    %984 = math.exp %983 : vector<8x32xf32>
    %cst_257 = arith.constant 1.000000e+00 : f32
    %985 = vector.broadcast %cst_257 : f32 to vector<8x32xf32>
    %986 = arith.addf %985, %984 : vector<8x32xf32>
    %987 = arith.divf %985, %986 : vector<8x32xf32>
    %988 = arith.mulf %979, %894 : vector<8x32xf32>
    %989 = arith.mulf %973, %981 : vector<8x32xf32>
    %990 = arith.addf %988, %989 : vector<8x32xf32>
    %991 = math.tanh %990 : vector<8x32xf32>
    %992 = arith.mulf %987, %991 : vector<8x32xf32>
    %cst_258 = arith.constant dense<0.000000e+00> : vector<8x16xf32>
    %993 = tpu.matmul %992, %635, %cst_258 {dimension_numbers = #tpu.dot_dimension_numbers<[1], [0], [0], [1], [0, 0, 1, 1], [], []>} : vector<8x32xf32>, vector<32x16xf32>, vector<8x16xf32> -> vector<8x16xf32>
    %994 = vector.broadcast %637 : vector<1x16xf32> to vector<8x16xf32>
    %995 = arith.addf %993, %994 : vector<8x16xf32>
    %996 = tpu.iota {dimensions = array<i32: 1>} : vector<8x16xi32>
    %997 = arith.sitofp %996 : vector<8x16xi32> to vector<8x16xf32>
    %cst_259 = arith.constant dense<0xFF800000> : vector<8xf32>
    %998 = vector.multi_reduction <maximumf>, %995, %cst_259 [1] : vector<8x16xf32> to vector<8xf32>
    %999 = vector.shape_cast %998 : vector<8xf32> to vector<8x1xf32>
    %1000 = vector.broadcast %999 : vector<8x1xf32> to vector<8x16xf32>
    %1001 = arith.cmpf oge, %995, %1000 : vector<8x16xf32>
    %cst_260 = arith.constant 1.600000e+01 : f32
    %1002 = vector.broadcast %cst_260 : f32 to vector<8x16xf32>
    %1003 = arith.subf %1002, %997 : vector<8x16xf32>
    %cst_261 = arith.constant 0.000000e+00 : f32
    %1004 = vector.broadcast %cst_261 : f32 to vector<8x16xf32>
    %1005 = arith.select %1001, %1003, %1004 : vector<8x16xi1>, vector<8x16xf32>
    %cst_262 = arith.constant dense<0xFF800000> : vector<8xf32>
    %1006 = vector.multi_reduction <maximumf>, %1005, %cst_262 [1] : vector<8x16xf32> to vector<8xf32>
    %1007 = vector.shape_cast %1006 : vector<8xf32> to vector<8x1xf32>
    %cst_263 = arith.constant 1.600000e+01 : f32
    %1008 = vector.broadcast %cst_263 : f32 to vector<8x1xf32>
    %1009 = arith.subf %1008, %1007 : vector<8x1xf32>
    %1010 = vector.broadcast %1009 : vector<8x1xf32> to vector<8x16xf32>
    %1011 = arith.cmpf oeq, %997, %1010 : vector<8x16xf32>
    %1012 = arith.extui %1011 : vector<8x16xi1> to vector<8x16xi32>
    %1013 = arith.sitofp %1012 : vector<8x16xi32> to vector<8x16xf32>
    %1014 = vector.extract_strided_slice %643 {offsets = [0, 3], sizes = [8, 1], strides = [1, 1]} : vector<8x4xf32> to vector<8x1xf32>
    %1015 = arith.cmpf one, %1009, %1014 : vector<8x1xf32>
    %1016 = arith.extui %1015 : vector<8x1xi1> to vector<8x1xi32>
    %1017 = arith.sitofp %1016 : vector<8x1xi32> to vector<8x1xf32>
    %1018 = arith.maximumf %932, %1017 : vector<8x1xf32>
    %1019 = tpu.concatenate %707, %803, %899, %995 in 1 : vector<8x16xf32>, vector<8x16xf32>, vector<8x16xf32>, vector<8x16xf32> -> vector<8x64xf32>
    %c1_264 = arith.constant 1 : index
    %c0_265 = arith.constant 0 : index
    %c0_266 = arith.constant 0 : index
    %1020 = vector.load %arg16[%c1_264, %c0_265, %c0_266] : memref<2x32x128xf32, #tpu.memory_space<vmem>>, vector<1x32x128xf32>
    %1021 = vector.shape_cast %1020 : vector<1x32x128xf32> to vector<32x128xf32>
    %cst_267 = arith.constant dense<0.000000e+00> : vector<8x128xf32>
    %1022 = tpu.matmul %585, %1021, %cst_267 {dimension_numbers = #tpu.dot_dimension_numbers<[1], [0], [0], [1], [0, 0, 1, 1], [], []>} : vector<8x32xf32>, vector<32x128xf32>, vector<8x128xf32> -> vector<8x128xf32>
    %c1_268 = arith.constant 1 : index
    %c0_269 = arith.constant 0 : index
    %c0_270 = arith.constant 0 : index
    %1023 = vector.load %arg17[%c1_268, %c0_269, %c0_270] : memref<2x1x128xf32, #tpu.memory_space<vmem>>, vector<1x1x128xf32>
    %1024 = vector.shape_cast %1023 : vector<1x1x128xf32> to vector<1x128xf32>
    %1025 = vector.broadcast %1024 : vector<1x128xf32> to vector<8x128xf32>
    %1026 = arith.addf %1022, %1025 : vector<8x128xf32>
    %1027 = vector.extract_strided_slice %1026 {offsets = [0, 0], sizes = [8, 32], strides = [1, 1]} : vector<8x128xf32> to vector<8x32xf32>
    %1028 = vector.extract_strided_slice %1026 {offsets = [0, 32], sizes = [8, 32], strides = [1, 1]} : vector<8x128xf32> to vector<8x32xf32>
    %1029 = vector.extract_strided_slice %1026 {offsets = [0, 64], sizes = [8, 32], strides = [1, 1]} : vector<8x128xf32> to vector<8x32xf32>
    %1030 = vector.extract_strided_slice %1026 {offsets = [0, 96], sizes = [8, 32], strides = [1, 1]} : vector<8x128xf32> to vector<8x32xf32>
    %c1_271 = arith.constant 1 : index
    %c0_272 = arith.constant 0 : index
    %c0_273 = arith.constant 0 : index
    %1031 = vector.load %arg18[%c1_271, %c0_272, %c0_273] : memref<2x16x128xf32, #tpu.memory_space<vmem>>, vector<1x16x128xf32>
    %1032 = vector.shape_cast %1031 : vector<1x16x128xf32> to vector<16x128xf32>
    %c1_274 = arith.constant 1 : index
    %c0_275 = arith.constant 0 : index
    %c0_276 = arith.constant 0 : index
    %1033 = vector.load %arg19[%c1_274, %c0_275, %c0_276] : memref<2x32x128xf32, #tpu.memory_space<vmem>>, vector<1x32x128xf32>
    %1034 = vector.shape_cast %1033 : vector<1x32x128xf32> to vector<32x128xf32>
    %c1_277 = arith.constant 1 : index
    %c0_278 = arith.constant 0 : index
    %c0_279 = arith.constant 0 : index
    %1035 = vector.load %arg20[%c1_277, %c0_278, %c0_279] : memref<2x1x128xf32, #tpu.memory_space<vmem>>, vector<1x1x128xf32>
    %1036 = vector.shape_cast %1035 : vector<1x1x128xf32> to vector<1x128xf32>
    %c1_280 = arith.constant 1 : index
    %c0_281 = arith.constant 0 : index
    %c0_282 = arith.constant 0 : index
    %1037 = vector.load %arg21[%c1_280, %c0_281, %c0_282] : memref<2x32x128xf32, #tpu.memory_space<vmem>>, vector<1x32x128xf32>
    %1038 = vector.shape_cast %1037 : vector<1x32x128xf32> to vector<32x128xf32>
    %c1_283 = arith.constant 1 : index
    %c0_284 = arith.constant 0 : index
    %c0_285 = arith.constant 0 : index
    %1039 = vector.load %arg22[%c1_283, %c0_284, %c0_285] : memref<2x32x128xf32, #tpu.memory_space<vmem>>, vector<1x32x128xf32>
    %1040 = vector.shape_cast %1039 : vector<1x32x128xf32> to vector<32x128xf32>
    %c1_286 = arith.constant 1 : index
    %c0_287 = arith.constant 0 : index
    %c0_288 = arith.constant 0 : index
    %1041 = vector.load %arg23[%c1_286, %c0_287, %c0_288] : memref<2x1x128xf32, #tpu.memory_space<vmem>>, vector<1x1x128xf32>
    %1042 = vector.shape_cast %1041 : vector<1x1x128xf32> to vector<1x128xf32>
    %c1_289 = arith.constant 1 : index
    %c0_290 = arith.constant 0 : index
    %c0_291 = arith.constant 0 : index
    %1043 = vector.load %arg24[%c1_289, %c0_290, %c0_291] : memref<2x32x16xf32, #tpu.memory_space<vmem>>, vector<1x32x16xf32>
    %1044 = vector.shape_cast %1043 : vector<1x32x16xf32> to vector<32x16xf32>
    %c1_292 = arith.constant 1 : index
    %c0_293 = arith.constant 0 : index
    %c0_294 = arith.constant 0 : index
    %1045 = vector.load %arg25[%c1_292, %c0_293, %c0_294] : memref<2x1x16xf32, #tpu.memory_space<vmem>>, vector<1x1x16xf32>
    %1046 = vector.shape_cast %1045 : vector<1x1x16xf32> to vector<1x16xf32>
    %1047 = tpu.iota {dimensions = array<i32: 1>} : vector<8x16xi32>
    %c0_i32_295 = arith.constant 0 : i32
    %1048 = vector.broadcast %c0_i32_295 : i32 to vector<8x16xi32>
    %1049 = arith.cmpi eq, %1047, %1048 : vector<8x16xi32>
    %1050 = arith.extui %1049 : vector<8x16xi1> to vector<8x16xi32>
    %1051 = arith.sitofp %1050 : vector<8x16xi32> to vector<8x16xf32>
    %1052 = arith.sitofp %9 : vector<8x4xi32> to vector<8x4xf32>
    %cst_296 = arith.constant 0.000000e+00 : f32
    %1053 = vector.broadcast %cst_296 : f32 to vector<8x1xf32>
    %cst_297 = arith.constant dense<0.000000e+00> : vector<8x128xf32>
    %1054 = tpu.matmul %1051, %1032, %cst_297 {dimension_numbers = #tpu.dot_dimension_numbers<[1], [0], [0], [1], [0, 0, 1, 1], [], []>} : vector<8x16xf32>, vector<16x128xf32>, vector<8x128xf32> -> vector<8x128xf32>
    %cst_298 = arith.constant dense<0.000000e+00> : vector<8x128xf32>
    %1055 = tpu.matmul %1027, %1034, %cst_298 {dimension_numbers = #tpu.dot_dimension_numbers<[1], [0], [0], [1], [0, 0, 1, 1], [], []>} : vector<8x32xf32>, vector<32x128xf32>, vector<8x128xf32> -> vector<8x128xf32>
    %1056 = arith.addf %1054, %1055 : vector<8x128xf32>
    %1057 = vector.broadcast %1036 : vector<1x128xf32> to vector<8x128xf32>
    %1058 = arith.addf %1056, %1057 : vector<8x128xf32>
    %1059 = vector.extract_strided_slice %1058 {offsets = [0, 0], sizes = [8, 32], strides = [1, 1]} : vector<8x128xf32> to vector<8x32xf32>
    %1060 = arith.negf %1059 : vector<8x32xf32>
    %1061 = math.exp %1060 : vector<8x32xf32>
    %cst_299 = arith.constant 1.000000e+00 : f32
    %1062 = vector.broadcast %cst_299 : f32 to vector<8x32xf32>
    %1063 = arith.addf %1062, %1061 : vector<8x32xf32>
    %1064 = arith.divf %1062, %1063 : vector<8x32xf32>
    %1065 = vector.extract_strided_slice %1058 {offsets = [0, 32], sizes = [8, 32], strides = [1, 1]} : vector<8x128xf32> to vector<8x32xf32>
    %1066 = arith.negf %1065 : vector<8x32xf32>
    %1067 = math.exp %1066 : vector<8x32xf32>
    %cst_300 = arith.constant 1.000000e+00 : f32
    %1068 = vector.broadcast %cst_300 : f32 to vector<8x32xf32>
    %1069 = arith.addf %1068, %1067 : vector<8x32xf32>
    %1070 = arith.divf %1068, %1069 : vector<8x32xf32>
    %1071 = vector.extract_strided_slice %1058 {offsets = [0, 64], sizes = [8, 32], strides = [1, 1]} : vector<8x128xf32> to vector<8x32xf32>
    %1072 = math.tanh %1071 : vector<8x32xf32>
    %1073 = vector.extract_strided_slice %1058 {offsets = [0, 96], sizes = [8, 32], strides = [1, 1]} : vector<8x128xf32> to vector<8x32xf32>
    %1074 = arith.negf %1073 : vector<8x32xf32>
    %1075 = math.exp %1074 : vector<8x32xf32>
    %cst_301 = arith.constant 1.000000e+00 : f32
    %1076 = vector.broadcast %cst_301 : f32 to vector<8x32xf32>
    %1077 = arith.addf %1076, %1075 : vector<8x32xf32>
    %1078 = arith.divf %1076, %1077 : vector<8x32xf32>
    %1079 = arith.mulf %1070, %1028 : vector<8x32xf32>
    %1080 = arith.mulf %1064, %1072 : vector<8x32xf32>
    %1081 = arith.addf %1079, %1080 : vector<8x32xf32>
    %1082 = math.tanh %1081 : vector<8x32xf32>
    %1083 = arith.mulf %1078, %1082 : vector<8x32xf32>
    %cst_302 = arith.constant dense<0.000000e+00> : vector<8x128xf32>
    %1084 = tpu.matmul %1083, %1038, %cst_302 {dimension_numbers = #tpu.dot_dimension_numbers<[1], [0], [0], [1], [0, 0, 1, 1], [], []>} : vector<8x32xf32>, vector<32x128xf32>, vector<8x128xf32> -> vector<8x128xf32>
    %cst_303 = arith.constant dense<0.000000e+00> : vector<8x128xf32>
    %1085 = tpu.matmul %1029, %1040, %cst_303 {dimension_numbers = #tpu.dot_dimension_numbers<[1], [0], [0], [1], [0, 0, 1, 1], [], []>} : vector<8x32xf32>, vector<32x128xf32>, vector<8x128xf32> -> vector<8x128xf32>
    %1086 = arith.addf %1084, %1085 : vector<8x128xf32>
    %1087 = vector.broadcast %1042 : vector<1x128xf32> to vector<8x128xf32>
    %1088 = arith.addf %1086, %1087 : vector<8x128xf32>
    %1089 = vector.extract_strided_slice %1088 {offsets = [0, 0], sizes = [8, 32], strides = [1, 1]} : vector<8x128xf32> to vector<8x32xf32>
    %1090 = arith.negf %1089 : vector<8x32xf32>
    %1091 = math.exp %1090 : vector<8x32xf32>
    %cst_304 = arith.constant 1.000000e+00 : f32
    %1092 = vector.broadcast %cst_304 : f32 to vector<8x32xf32>
    %1093 = arith.addf %1092, %1091 : vector<8x32xf32>
    %1094 = arith.divf %1092, %1093 : vector<8x32xf32>
    %1095 = vector.extract_strided_slice %1088 {offsets = [0, 32], sizes = [8, 32], strides = [1, 1]} : vector<8x128xf32> to vector<8x32xf32>
    %1096 = arith.negf %1095 : vector<8x32xf32>
    %1097 = math.exp %1096 : vector<8x32xf32>
    %cst_305 = arith.constant 1.000000e+00 : f32
    %1098 = vector.broadcast %cst_305 : f32 to vector<8x32xf32>
    %1099 = arith.addf %1098, %1097 : vector<8x32xf32>
    %1100 = arith.divf %1098, %1099 : vector<8x32xf32>
    %1101 = vector.extract_strided_slice %1088 {offsets = [0, 64], sizes = [8, 32], strides = [1, 1]} : vector<8x128xf32> to vector<8x32xf32>
    %1102 = math.tanh %1101 : vector<8x32xf32>
    %1103 = vector.extract_strided_slice %1088 {offsets = [0, 96], sizes = [8, 32], strides = [1, 1]} : vector<8x128xf32> to vector<8x32xf32>
    %1104 = arith.negf %1103 : vector<8x32xf32>
    %1105 = math.exp %1104 : vector<8x32xf32>
    %cst_306 = arith.constant 1.000000e+00 : f32
    %1106 = vector.broadcast %cst_306 : f32 to vector<8x32xf32>
    %1107 = arith.addf %1106, %1105 : vector<8x32xf32>
    %1108 = arith.divf %1106, %1107 : vector<8x32xf32>
    %1109 = arith.mulf %1100, %1030 : vector<8x32xf32>
    %1110 = arith.mulf %1094, %1102 : vector<8x32xf32>
    %1111 = arith.addf %1109, %1110 : vector<8x32xf32>
    %1112 = math.tanh %1111 : vector<8x32xf32>
    %1113 = arith.mulf %1108, %1112 : vector<8x32xf32>
    %cst_307 = arith.constant dense<0.000000e+00> : vector<8x16xf32>
    %1114 = tpu.matmul %1113, %1044, %cst_307 {dimension_numbers = #tpu.dot_dimension_numbers<[1], [0], [0], [1], [0, 0, 1, 1], [], []>} : vector<8x32xf32>, vector<32x16xf32>, vector<8x16xf32> -> vector<8x16xf32>
    %1115 = vector.broadcast %1046 : vector<1x16xf32> to vector<8x16xf32>
    %1116 = arith.addf %1114, %1115 : vector<8x16xf32>
    %cst_308 = arith.constant dense<0xFF800000> : vector<8xf32>
    %1117 = vector.multi_reduction <maximumf>, %1116, %cst_308 [1] : vector<8x16xf32> to vector<8xf32>
    %1118 = vector.shape_cast %1117 : vector<8xf32> to vector<8x1xf32>
    %1119 = vector.broadcast %1118 : vector<8x1xf32> to vector<8x16xf32>
    %1120 = arith.subf %1116, %1119 : vector<8x16xf32>
    %1121 = math.exp %1120 : vector<8x16xf32>
    %cst_309 = arith.constant dense<0.000000e+00> : vector<8xf32>
    %1122 = vector.multi_reduction <add>, %1121, %cst_309 [1] : vector<8x16xf32> to vector<8xf32>
    %1123 = vector.shape_cast %1122 : vector<8xf32> to vector<8x1xf32>
    %1124 = tpu.reciprocal %1123 {approx = true} : vector<8x1xf32> -> vector<8x1xf32>
    %1125 = vector.broadcast %1124 : vector<8x1xf32> to vector<8x16xf32>
    %1126 = arith.mulf %1121, %1125 : vector<8x16xf32>
    %1127 = tpu.iota {dimensions = array<i32: 1>} : vector<8x16xi32>
    %1128 = arith.sitofp %1127 : vector<8x16xi32> to vector<8x16xf32>
    %cst_310 = arith.constant dense<0xFF800000> : vector<8xf32>
    %1129 = vector.multi_reduction <maximumf>, %1116, %cst_310 [1] : vector<8x16xf32> to vector<8xf32>
    %1130 = vector.shape_cast %1129 : vector<8xf32> to vector<8x1xf32>
    %1131 = vector.broadcast %1130 : vector<8x1xf32> to vector<8x16xf32>
    %1132 = arith.cmpf oge, %1116, %1131 : vector<8x16xf32>
    %cst_311 = arith.constant 1.600000e+01 : f32
    %1133 = vector.broadcast %cst_311 : f32 to vector<8x16xf32>
    %1134 = arith.subf %1133, %1128 : vector<8x16xf32>
    %cst_312 = arith.constant 0.000000e+00 : f32
    %1135 = vector.broadcast %cst_312 : f32 to vector<8x16xf32>
    %1136 = arith.select %1132, %1134, %1135 : vector<8x16xi1>, vector<8x16xf32>
    %cst_313 = arith.constant dense<0xFF800000> : vector<8xf32>
    %1137 = vector.multi_reduction <maximumf>, %1136, %cst_313 [1] : vector<8x16xf32> to vector<8xf32>
    %1138 = vector.shape_cast %1137 : vector<8xf32> to vector<8x1xf32>
    %cst_314 = arith.constant 1.600000e+01 : f32
    %1139 = vector.broadcast %cst_314 : f32 to vector<8x1xf32>
    %1140 = arith.subf %1139, %1138 : vector<8x1xf32>
    %1141 = vector.broadcast %1140 : vector<8x1xf32> to vector<8x16xf32>
    %1142 = arith.cmpf oeq, %1128, %1141 : vector<8x16xf32>
    %1143 = arith.extui %1142 : vector<8x16xi1> to vector<8x16xi32>
    %1144 = arith.sitofp %1143 : vector<8x16xi32> to vector<8x16xf32>
    %1145 = vector.extract_strided_slice %1052 {offsets = [0, 0], sizes = [8, 1], strides = [1, 1]} : vector<8x4xf32> to vector<8x1xf32>
    %1146 = arith.cmpf one, %1140, %1145 : vector<8x1xf32>
    %1147 = arith.extui %1146 : vector<8x1xi1> to vector<8x1xi32>
    %1148 = arith.sitofp %1147 : vector<8x1xi32> to vector<8x1xf32>
    %1149 = arith.maximumf %1053, %1148 : vector<8x1xf32>
    %cst_315 = arith.constant dense<0.000000e+00> : vector<8x128xf32>
    %1150 = tpu.matmul %1126, %1032, %cst_315 {dimension_numbers = #tpu.dot_dimension_numbers<[1], [0], [0], [1], [0, 0, 1, 1], [], []>} : vector<8x16xf32>, vector<16x128xf32>, vector<8x128xf32> -> vector<8x128xf32>
    %cst_316 = arith.constant dense<0.000000e+00> : vector<8x128xf32>
    %1151 = tpu.matmul %1083, %1034, %cst_316 {dimension_numbers = #tpu.dot_dimension_numbers<[1], [0], [0], [1], [0, 0, 1, 1], [], []>} : vector<8x32xf32>, vector<32x128xf32>, vector<8x128xf32> -> vector<8x128xf32>
    %1152 = arith.addf %1150, %1151 : vector<8x128xf32>
    %1153 = vector.broadcast %1036 : vector<1x128xf32> to vector<8x128xf32>
    %1154 = arith.addf %1152, %1153 : vector<8x128xf32>
    %1155 = vector.extract_strided_slice %1154 {offsets = [0, 0], sizes = [8, 32], strides = [1, 1]} : vector<8x128xf32> to vector<8x32xf32>
    %1156 = arith.negf %1155 : vector<8x32xf32>
    %1157 = math.exp %1156 : vector<8x32xf32>
    %cst_317 = arith.constant 1.000000e+00 : f32
    %1158 = vector.broadcast %cst_317 : f32 to vector<8x32xf32>
    %1159 = arith.addf %1158, %1157 : vector<8x32xf32>
    %1160 = arith.divf %1158, %1159 : vector<8x32xf32>
    %1161 = vector.extract_strided_slice %1154 {offsets = [0, 32], sizes = [8, 32], strides = [1, 1]} : vector<8x128xf32> to vector<8x32xf32>
    %1162 = arith.negf %1161 : vector<8x32xf32>
    %1163 = math.exp %1162 : vector<8x32xf32>
    %cst_318 = arith.constant 1.000000e+00 : f32
    %1164 = vector.broadcast %cst_318 : f32 to vector<8x32xf32>
    %1165 = arith.addf %1164, %1163 : vector<8x32xf32>
    %1166 = arith.divf %1164, %1165 : vector<8x32xf32>
    %1167 = vector.extract_strided_slice %1154 {offsets = [0, 64], sizes = [8, 32], strides = [1, 1]} : vector<8x128xf32> to vector<8x32xf32>
    %1168 = math.tanh %1167 : vector<8x32xf32>
    %1169 = vector.extract_strided_slice %1154 {offsets = [0, 96], sizes = [8, 32], strides = [1, 1]} : vector<8x128xf32> to vector<8x32xf32>
    %1170 = arith.negf %1169 : vector<8x32xf32>
    %1171 = math.exp %1170 : vector<8x32xf32>
    %cst_319 = arith.constant 1.000000e+00 : f32
    %1172 = vector.broadcast %cst_319 : f32 to vector<8x32xf32>
    %1173 = arith.addf %1172, %1171 : vector<8x32xf32>
    %1174 = arith.divf %1172, %1173 : vector<8x32xf32>
    %1175 = arith.mulf %1166, %1081 : vector<8x32xf32>
    %1176 = arith.mulf %1160, %1168 : vector<8x32xf32>
    %1177 = arith.addf %1175, %1176 : vector<8x32xf32>
    %1178 = math.tanh %1177 : vector<8x32xf32>
    %1179 = arith.mulf %1174, %1178 : vector<8x32xf32>
    %cst_320 = arith.constant dense<0.000000e+00> : vector<8x128xf32>
    %1180 = tpu.matmul %1179, %1038, %cst_320 {dimension_numbers = #tpu.dot_dimension_numbers<[1], [0], [0], [1], [0, 0, 1, 1], [], []>} : vector<8x32xf32>, vector<32x128xf32>, vector<8x128xf32> -> vector<8x128xf32>
    %cst_321 = arith.constant dense<0.000000e+00> : vector<8x128xf32>
    %1181 = tpu.matmul %1113, %1040, %cst_321 {dimension_numbers = #tpu.dot_dimension_numbers<[1], [0], [0], [1], [0, 0, 1, 1], [], []>} : vector<8x32xf32>, vector<32x128xf32>, vector<8x128xf32> -> vector<8x128xf32>
    %1182 = arith.addf %1180, %1181 : vector<8x128xf32>
    %1183 = vector.broadcast %1042 : vector<1x128xf32> to vector<8x128xf32>
    %1184 = arith.addf %1182, %1183 : vector<8x128xf32>
    %1185 = vector.extract_strided_slice %1184 {offsets = [0, 0], sizes = [8, 32], strides = [1, 1]} : vector<8x128xf32> to vector<8x32xf32>
    %1186 = arith.negf %1185 : vector<8x32xf32>
    %1187 = math.exp %1186 : vector<8x32xf32>
    %cst_322 = arith.constant 1.000000e+00 : f32
    %1188 = vector.broadcast %cst_322 : f32 to vector<8x32xf32>
    %1189 = arith.addf %1188, %1187 : vector<8x32xf32>
    %1190 = arith.divf %1188, %1189 : vector<8x32xf32>
    %1191 = vector.extract_strided_slice %1184 {offsets = [0, 32], sizes = [8, 32], strides = [1, 1]} : vector<8x128xf32> to vector<8x32xf32>
    %1192 = arith.negf %1191 : vector<8x32xf32>
    %1193 = math.exp %1192 : vector<8x32xf32>
    %cst_323 = arith.constant 1.000000e+00 : f32
    %1194 = vector.broadcast %cst_323 : f32 to vector<8x32xf32>
    %1195 = arith.addf %1194, %1193 : vector<8x32xf32>
    %1196 = arith.divf %1194, %1195 : vector<8x32xf32>
    %1197 = vector.extract_strided_slice %1184 {offsets = [0, 64], sizes = [8, 32], strides = [1, 1]} : vector<8x128xf32> to vector<8x32xf32>
    %1198 = math.tanh %1197 : vector<8x32xf32>
    %1199 = vector.extract_strided_slice %1184 {offsets = [0, 96], sizes = [8, 32], strides = [1, 1]} : vector<8x128xf32> to vector<8x32xf32>
    %1200 = arith.negf %1199 : vector<8x32xf32>
    %1201 = math.exp %1200 : vector<8x32xf32>
    %cst_324 = arith.constant 1.000000e+00 : f32
    %1202 = vector.broadcast %cst_324 : f32 to vector<8x32xf32>
    %1203 = arith.addf %1202, %1201 : vector<8x32xf32>
    %1204 = arith.divf %1202, %1203 : vector<8x32xf32>
    %1205 = arith.mulf %1196, %1111 : vector<8x32xf32>
    %1206 = arith.mulf %1190, %1198 : vector<8x32xf32>
    %1207 = arith.addf %1205, %1206 : vector<8x32xf32>
    %1208 = math.tanh %1207 : vector<8x32xf32>
    %1209 = arith.mulf %1204, %1208 : vector<8x32xf32>
    %cst_325 = arith.constant dense<0.000000e+00> : vector<8x16xf32>
    %1210 = tpu.matmul %1209, %1044, %cst_325 {dimension_numbers = #tpu.dot_dimension_numbers<[1], [0], [0], [1], [0, 0, 1, 1], [], []>} : vector<8x32xf32>, vector<32x16xf32>, vector<8x16xf32> -> vector<8x16xf32>
    %1211 = vector.broadcast %1046 : vector<1x16xf32> to vector<8x16xf32>
    %1212 = arith.addf %1210, %1211 : vector<8x16xf32>
    %cst_326 = arith.constant dense<0xFF800000> : vector<8xf32>
    %1213 = vector.multi_reduction <maximumf>, %1212, %cst_326 [1] : vector<8x16xf32> to vector<8xf32>
    %1214 = vector.shape_cast %1213 : vector<8xf32> to vector<8x1xf32>
    %1215 = vector.broadcast %1214 : vector<8x1xf32> to vector<8x16xf32>
    %1216 = arith.subf %1212, %1215 : vector<8x16xf32>
    %1217 = math.exp %1216 : vector<8x16xf32>
    %cst_327 = arith.constant dense<0.000000e+00> : vector<8xf32>
    %1218 = vector.multi_reduction <add>, %1217, %cst_327 [1] : vector<8x16xf32> to vector<8xf32>
    %1219 = vector.shape_cast %1218 : vector<8xf32> to vector<8x1xf32>
    %1220 = tpu.reciprocal %1219 {approx = true} : vector<8x1xf32> -> vector<8x1xf32>
    %1221 = vector.broadcast %1220 : vector<8x1xf32> to vector<8x16xf32>
    %1222 = arith.mulf %1217, %1221 : vector<8x16xf32>
    %1223 = tpu.iota {dimensions = array<i32: 1>} : vector<8x16xi32>
    %1224 = arith.sitofp %1223 : vector<8x16xi32> to vector<8x16xf32>
    %cst_328 = arith.constant dense<0xFF800000> : vector<8xf32>
    %1225 = vector.multi_reduction <maximumf>, %1212, %cst_328 [1] : vector<8x16xf32> to vector<8xf32>
    %1226 = vector.shape_cast %1225 : vector<8xf32> to vector<8x1xf32>
    %1227 = vector.broadcast %1226 : vector<8x1xf32> to vector<8x16xf32>
    %1228 = arith.cmpf oge, %1212, %1227 : vector<8x16xf32>
    %cst_329 = arith.constant 1.600000e+01 : f32
    %1229 = vector.broadcast %cst_329 : f32 to vector<8x16xf32>
    %1230 = arith.subf %1229, %1224 : vector<8x16xf32>
    %cst_330 = arith.constant 0.000000e+00 : f32
    %1231 = vector.broadcast %cst_330 : f32 to vector<8x16xf32>
    %1232 = arith.select %1228, %1230, %1231 : vector<8x16xi1>, vector<8x16xf32>
    %cst_331 = arith.constant dense<0xFF800000> : vector<8xf32>
    %1233 = vector.multi_reduction <maximumf>, %1232, %cst_331 [1] : vector<8x16xf32> to vector<8xf32>
    %1234 = vector.shape_cast %1233 : vector<8xf32> to vector<8x1xf32>
    %cst_332 = arith.constant 1.600000e+01 : f32
    %1235 = vector.broadcast %cst_332 : f32 to vector<8x1xf32>
    %1236 = arith.subf %1235, %1234 : vector<8x1xf32>
    %1237 = vector.broadcast %1236 : vector<8x1xf32> to vector<8x16xf32>
    %1238 = arith.cmpf oeq, %1224, %1237 : vector<8x16xf32>
    %1239 = arith.extui %1238 : vector<8x16xi1> to vector<8x16xi32>
    %1240 = arith.sitofp %1239 : vector<8x16xi32> to vector<8x16xf32>
    %1241 = vector.extract_strided_slice %1052 {offsets = [0, 1], sizes = [8, 1], strides = [1, 1]} : vector<8x4xf32> to vector<8x1xf32>
    %1242 = arith.cmpf one, %1236, %1241 : vector<8x1xf32>
    %1243 = arith.extui %1242 : vector<8x1xi1> to vector<8x1xi32>
    %1244 = arith.sitofp %1243 : vector<8x1xi32> to vector<8x1xf32>
    %1245 = arith.maximumf %1149, %1244 : vector<8x1xf32>
    %cst_333 = arith.constant dense<0.000000e+00> : vector<8x128xf32>
    %1246 = tpu.matmul %1222, %1032, %cst_333 {dimension_numbers = #tpu.dot_dimension_numbers<[1], [0], [0], [1], [0, 0, 1, 1], [], []>} : vector<8x16xf32>, vector<16x128xf32>, vector<8x128xf32> -> vector<8x128xf32>
    %cst_334 = arith.constant dense<0.000000e+00> : vector<8x128xf32>
    %1247 = tpu.matmul %1179, %1034, %cst_334 {dimension_numbers = #tpu.dot_dimension_numbers<[1], [0], [0], [1], [0, 0, 1, 1], [], []>} : vector<8x32xf32>, vector<32x128xf32>, vector<8x128xf32> -> vector<8x128xf32>
    %1248 = arith.addf %1246, %1247 : vector<8x128xf32>
    %1249 = vector.broadcast %1036 : vector<1x128xf32> to vector<8x128xf32>
    %1250 = arith.addf %1248, %1249 : vector<8x128xf32>
    %1251 = vector.extract_strided_slice %1250 {offsets = [0, 0], sizes = [8, 32], strides = [1, 1]} : vector<8x128xf32> to vector<8x32xf32>
    %1252 = arith.negf %1251 : vector<8x32xf32>
    %1253 = math.exp %1252 : vector<8x32xf32>
    %cst_335 = arith.constant 1.000000e+00 : f32
    %1254 = vector.broadcast %cst_335 : f32 to vector<8x32xf32>
    %1255 = arith.addf %1254, %1253 : vector<8x32xf32>
    %1256 = arith.divf %1254, %1255 : vector<8x32xf32>
    %1257 = vector.extract_strided_slice %1250 {offsets = [0, 32], sizes = [8, 32], strides = [1, 1]} : vector<8x128xf32> to vector<8x32xf32>
    %1258 = arith.negf %1257 : vector<8x32xf32>
    %1259 = math.exp %1258 : vector<8x32xf32>
    %cst_336 = arith.constant 1.000000e+00 : f32
    %1260 = vector.broadcast %cst_336 : f32 to vector<8x32xf32>
    %1261 = arith.addf %1260, %1259 : vector<8x32xf32>
    %1262 = arith.divf %1260, %1261 : vector<8x32xf32>
    %1263 = vector.extract_strided_slice %1250 {offsets = [0, 64], sizes = [8, 32], strides = [1, 1]} : vector<8x128xf32> to vector<8x32xf32>
    %1264 = math.tanh %1263 : vector<8x32xf32>
    %1265 = vector.extract_strided_slice %1250 {offsets = [0, 96], sizes = [8, 32], strides = [1, 1]} : vector<8x128xf32> to vector<8x32xf32>
    %1266 = arith.negf %1265 : vector<8x32xf32>
    %1267 = math.exp %1266 : vector<8x32xf32>
    %cst_337 = arith.constant 1.000000e+00 : f32
    %1268 = vector.broadcast %cst_337 : f32 to vector<8x32xf32>
    %1269 = arith.addf %1268, %1267 : vector<8x32xf32>
    %1270 = arith.divf %1268, %1269 : vector<8x32xf32>
    %1271 = arith.mulf %1262, %1177 : vector<8x32xf32>
    %1272 = arith.mulf %1256, %1264 : vector<8x32xf32>
    %1273 = arith.addf %1271, %1272 : vector<8x32xf32>
    %1274 = math.tanh %1273 : vector<8x32xf32>
    %1275 = arith.mulf %1270, %1274 : vector<8x32xf32>
    %cst_338 = arith.constant dense<0.000000e+00> : vector<8x128xf32>
    %1276 = tpu.matmul %1275, %1038, %cst_338 {dimension_numbers = #tpu.dot_dimension_numbers<[1], [0], [0], [1], [0, 0, 1, 1], [], []>} : vector<8x32xf32>, vector<32x128xf32>, vector<8x128xf32> -> vector<8x128xf32>
    %cst_339 = arith.constant dense<0.000000e+00> : vector<8x128xf32>
    %1277 = tpu.matmul %1209, %1040, %cst_339 {dimension_numbers = #tpu.dot_dimension_numbers<[1], [0], [0], [1], [0, 0, 1, 1], [], []>} : vector<8x32xf32>, vector<32x128xf32>, vector<8x128xf32> -> vector<8x128xf32>
    %1278 = arith.addf %1276, %1277 : vector<8x128xf32>
    %1279 = vector.broadcast %1042 : vector<1x128xf32> to vector<8x128xf32>
    %1280 = arith.addf %1278, %1279 : vector<8x128xf32>
    %1281 = vector.extract_strided_slice %1280 {offsets = [0, 0], sizes = [8, 32], strides = [1, 1]} : vector<8x128xf32> to vector<8x32xf32>
    %1282 = arith.negf %1281 : vector<8x32xf32>
    %1283 = math.exp %1282 : vector<8x32xf32>
    %cst_340 = arith.constant 1.000000e+00 : f32
    %1284 = vector.broadcast %cst_340 : f32 to vector<8x32xf32>
    %1285 = arith.addf %1284, %1283 : vector<8x32xf32>
    %1286 = arith.divf %1284, %1285 : vector<8x32xf32>
    %1287 = vector.extract_strided_slice %1280 {offsets = [0, 32], sizes = [8, 32], strides = [1, 1]} : vector<8x128xf32> to vector<8x32xf32>
    %1288 = arith.negf %1287 : vector<8x32xf32>
    %1289 = math.exp %1288 : vector<8x32xf32>
    %cst_341 = arith.constant 1.000000e+00 : f32
    %1290 = vector.broadcast %cst_341 : f32 to vector<8x32xf32>
    %1291 = arith.addf %1290, %1289 : vector<8x32xf32>
    %1292 = arith.divf %1290, %1291 : vector<8x32xf32>
    %1293 = vector.extract_strided_slice %1280 {offsets = [0, 64], sizes = [8, 32], strides = [1, 1]} : vector<8x128xf32> to vector<8x32xf32>
    %1294 = math.tanh %1293 : vector<8x32xf32>
    %1295 = vector.extract_strided_slice %1280 {offsets = [0, 96], sizes = [8, 32], strides = [1, 1]} : vector<8x128xf32> to vector<8x32xf32>
    %1296 = arith.negf %1295 : vector<8x32xf32>
    %1297 = math.exp %1296 : vector<8x32xf32>
    %cst_342 = arith.constant 1.000000e+00 : f32
    %1298 = vector.broadcast %cst_342 : f32 to vector<8x32xf32>
    %1299 = arith.addf %1298, %1297 : vector<8x32xf32>
    %1300 = arith.divf %1298, %1299 : vector<8x32xf32>
    %1301 = arith.mulf %1292, %1207 : vector<8x32xf32>
    %1302 = arith.mulf %1286, %1294 : vector<8x32xf32>
    %1303 = arith.addf %1301, %1302 : vector<8x32xf32>
    %1304 = math.tanh %1303 : vector<8x32xf32>
    %1305 = arith.mulf %1300, %1304 : vector<8x32xf32>
    %cst_343 = arith.constant dense<0.000000e+00> : vector<8x16xf32>
    %1306 = tpu.matmul %1305, %1044, %cst_343 {dimension_numbers = #tpu.dot_dimension_numbers<[1], [0], [0], [1], [0, 0, 1, 1], [], []>} : vector<8x32xf32>, vector<32x16xf32>, vector<8x16xf32> -> vector<8x16xf32>
    %1307 = vector.broadcast %1046 : vector<1x16xf32> to vector<8x16xf32>
    %1308 = arith.addf %1306, %1307 : vector<8x16xf32>
    %cst_344 = arith.constant dense<0xFF800000> : vector<8xf32>
    %1309 = vector.multi_reduction <maximumf>, %1308, %cst_344 [1] : vector<8x16xf32> to vector<8xf32>
    %1310 = vector.shape_cast %1309 : vector<8xf32> to vector<8x1xf32>
    %1311 = vector.broadcast %1310 : vector<8x1xf32> to vector<8x16xf32>
    %1312 = arith.subf %1308, %1311 : vector<8x16xf32>
    %1313 = math.exp %1312 : vector<8x16xf32>
    %cst_345 = arith.constant dense<0.000000e+00> : vector<8xf32>
    %1314 = vector.multi_reduction <add>, %1313, %cst_345 [1] : vector<8x16xf32> to vector<8xf32>
    %1315 = vector.shape_cast %1314 : vector<8xf32> to vector<8x1xf32>
    %1316 = tpu.reciprocal %1315 {approx = true} : vector<8x1xf32> -> vector<8x1xf32>
    %1317 = vector.broadcast %1316 : vector<8x1xf32> to vector<8x16xf32>
    %1318 = arith.mulf %1313, %1317 : vector<8x16xf32>
    %1319 = tpu.iota {dimensions = array<i32: 1>} : vector<8x16xi32>
    %1320 = arith.sitofp %1319 : vector<8x16xi32> to vector<8x16xf32>
    %cst_346 = arith.constant dense<0xFF800000> : vector<8xf32>
    %1321 = vector.multi_reduction <maximumf>, %1308, %cst_346 [1] : vector<8x16xf32> to vector<8xf32>
    %1322 = vector.shape_cast %1321 : vector<8xf32> to vector<8x1xf32>
    %1323 = vector.broadcast %1322 : vector<8x1xf32> to vector<8x16xf32>
    %1324 = arith.cmpf oge, %1308, %1323 : vector<8x16xf32>
    %cst_347 = arith.constant 1.600000e+01 : f32
    %1325 = vector.broadcast %cst_347 : f32 to vector<8x16xf32>
    %1326 = arith.subf %1325, %1320 : vector<8x16xf32>
    %cst_348 = arith.constant 0.000000e+00 : f32
    %1327 = vector.broadcast %cst_348 : f32 to vector<8x16xf32>
    %1328 = arith.select %1324, %1326, %1327 : vector<8x16xi1>, vector<8x16xf32>
    %cst_349 = arith.constant dense<0xFF800000> : vector<8xf32>
    %1329 = vector.multi_reduction <maximumf>, %1328, %cst_349 [1] : vector<8x16xf32> to vector<8xf32>
    %1330 = vector.shape_cast %1329 : vector<8xf32> to vector<8x1xf32>
    %cst_350 = arith.constant 1.600000e+01 : f32
    %1331 = vector.broadcast %cst_350 : f32 to vector<8x1xf32>
    %1332 = arith.subf %1331, %1330 : vector<8x1xf32>
    %1333 = vector.broadcast %1332 : vector<8x1xf32> to vector<8x16xf32>
    %1334 = arith.cmpf oeq, %1320, %1333 : vector<8x16xf32>
    %1335 = arith.extui %1334 : vector<8x16xi1> to vector<8x16xi32>
    %1336 = arith.sitofp %1335 : vector<8x16xi32> to vector<8x16xf32>
    %1337 = vector.extract_strided_slice %1052 {offsets = [0, 2], sizes = [8, 1], strides = [1, 1]} : vector<8x4xf32> to vector<8x1xf32>
    %1338 = arith.cmpf one, %1332, %1337 : vector<8x1xf32>
    %1339 = arith.extui %1338 : vector<8x1xi1> to vector<8x1xi32>
    %1340 = arith.sitofp %1339 : vector<8x1xi32> to vector<8x1xf32>
    %1341 = arith.maximumf %1245, %1340 : vector<8x1xf32>
    %cst_351 = arith.constant dense<0.000000e+00> : vector<8x128xf32>
    %1342 = tpu.matmul %1318, %1032, %cst_351 {dimension_numbers = #tpu.dot_dimension_numbers<[1], [0], [0], [1], [0, 0, 1, 1], [], []>} : vector<8x16xf32>, vector<16x128xf32>, vector<8x128xf32> -> vector<8x128xf32>
    %cst_352 = arith.constant dense<0.000000e+00> : vector<8x128xf32>
    %1343 = tpu.matmul %1275, %1034, %cst_352 {dimension_numbers = #tpu.dot_dimension_numbers<[1], [0], [0], [1], [0, 0, 1, 1], [], []>} : vector<8x32xf32>, vector<32x128xf32>, vector<8x128xf32> -> vector<8x128xf32>
    %1344 = arith.addf %1342, %1343 : vector<8x128xf32>
    %1345 = vector.broadcast %1036 : vector<1x128xf32> to vector<8x128xf32>
    %1346 = arith.addf %1344, %1345 : vector<8x128xf32>
    %1347 = vector.extract_strided_slice %1346 {offsets = [0, 0], sizes = [8, 32], strides = [1, 1]} : vector<8x128xf32> to vector<8x32xf32>
    %1348 = arith.negf %1347 : vector<8x32xf32>
    %1349 = math.exp %1348 : vector<8x32xf32>
    %cst_353 = arith.constant 1.000000e+00 : f32
    %1350 = vector.broadcast %cst_353 : f32 to vector<8x32xf32>
    %1351 = arith.addf %1350, %1349 : vector<8x32xf32>
    %1352 = arith.divf %1350, %1351 : vector<8x32xf32>
    %1353 = vector.extract_strided_slice %1346 {offsets = [0, 32], sizes = [8, 32], strides = [1, 1]} : vector<8x128xf32> to vector<8x32xf32>
    %1354 = arith.negf %1353 : vector<8x32xf32>
    %1355 = math.exp %1354 : vector<8x32xf32>
    %cst_354 = arith.constant 1.000000e+00 : f32
    %1356 = vector.broadcast %cst_354 : f32 to vector<8x32xf32>
    %1357 = arith.addf %1356, %1355 : vector<8x32xf32>
    %1358 = arith.divf %1356, %1357 : vector<8x32xf32>
    %1359 = vector.extract_strided_slice %1346 {offsets = [0, 64], sizes = [8, 32], strides = [1, 1]} : vector<8x128xf32> to vector<8x32xf32>
    %1360 = math.tanh %1359 : vector<8x32xf32>
    %1361 = vector.extract_strided_slice %1346 {offsets = [0, 96], sizes = [8, 32], strides = [1, 1]} : vector<8x128xf32> to vector<8x32xf32>
    %1362 = arith.negf %1361 : vector<8x32xf32>
    %1363 = math.exp %1362 : vector<8x32xf32>
    %cst_355 = arith.constant 1.000000e+00 : f32
    %1364 = vector.broadcast %cst_355 : f32 to vector<8x32xf32>
    %1365 = arith.addf %1364, %1363 : vector<8x32xf32>
    %1366 = arith.divf %1364, %1365 : vector<8x32xf32>
    %1367 = arith.mulf %1358, %1273 : vector<8x32xf32>
    %1368 = arith.mulf %1352, %1360 : vector<8x32xf32>
    %1369 = arith.addf %1367, %1368 : vector<8x32xf32>
    %1370 = math.tanh %1369 : vector<8x32xf32>
    %1371 = arith.mulf %1366, %1370 : vector<8x32xf32>
    %cst_356 = arith.constant dense<0.000000e+00> : vector<8x128xf32>
    %1372 = tpu.matmul %1371, %1038, %cst_356 {dimension_numbers = #tpu.dot_dimension_numbers<[1], [0], [0], [1], [0, 0, 1, 1], [], []>} : vector<8x32xf32>, vector<32x128xf32>, vector<8x128xf32> -> vector<8x128xf32>
    %cst_357 = arith.constant dense<0.000000e+00> : vector<8x128xf32>
    %1373 = tpu.matmul %1305, %1040, %cst_357 {dimension_numbers = #tpu.dot_dimension_numbers<[1], [0], [0], [1], [0, 0, 1, 1], [], []>} : vector<8x32xf32>, vector<32x128xf32>, vector<8x128xf32> -> vector<8x128xf32>
    %1374 = arith.addf %1372, %1373 : vector<8x128xf32>
    %1375 = vector.broadcast %1042 : vector<1x128xf32> to vector<8x128xf32>
    %1376 = arith.addf %1374, %1375 : vector<8x128xf32>
    %1377 = vector.extract_strided_slice %1376 {offsets = [0, 0], sizes = [8, 32], strides = [1, 1]} : vector<8x128xf32> to vector<8x32xf32>
    %1378 = arith.negf %1377 : vector<8x32xf32>
    %1379 = math.exp %1378 : vector<8x32xf32>
    %cst_358 = arith.constant 1.000000e+00 : f32
    %1380 = vector.broadcast %cst_358 : f32 to vector<8x32xf32>
    %1381 = arith.addf %1380, %1379 : vector<8x32xf32>
    %1382 = arith.divf %1380, %1381 : vector<8x32xf32>
    %1383 = vector.extract_strided_slice %1376 {offsets = [0, 32], sizes = [8, 32], strides = [1, 1]} : vector<8x128xf32> to vector<8x32xf32>
    %1384 = arith.negf %1383 : vector<8x32xf32>
    %1385 = math.exp %1384 : vector<8x32xf32>
    %cst_359 = arith.constant 1.000000e+00 : f32
    %1386 = vector.broadcast %cst_359 : f32 to vector<8x32xf32>
    %1387 = arith.addf %1386, %1385 : vector<8x32xf32>
    %1388 = arith.divf %1386, %1387 : vector<8x32xf32>
    %1389 = vector.extract_strided_slice %1376 {offsets = [0, 64], sizes = [8, 32], strides = [1, 1]} : vector<8x128xf32> to vector<8x32xf32>
    %1390 = math.tanh %1389 : vector<8x32xf32>
    %1391 = vector.extract_strided_slice %1376 {offsets = [0, 96], sizes = [8, 32], strides = [1, 1]} : vector<8x128xf32> to vector<8x32xf32>
    %1392 = arith.negf %1391 : vector<8x32xf32>
    %1393 = math.exp %1392 : vector<8x32xf32>
    %cst_360 = arith.constant 1.000000e+00 : f32
    %1394 = vector.broadcast %cst_360 : f32 to vector<8x32xf32>
    %1395 = arith.addf %1394, %1393 : vector<8x32xf32>
    %1396 = arith.divf %1394, %1395 : vector<8x32xf32>
    %1397 = arith.mulf %1388, %1303 : vector<8x32xf32>
    %1398 = arith.mulf %1382, %1390 : vector<8x32xf32>
    %1399 = arith.addf %1397, %1398 : vector<8x32xf32>
    %1400 = math.tanh %1399 : vector<8x32xf32>
    %1401 = arith.mulf %1396, %1400 : vector<8x32xf32>
    %cst_361 = arith.constant dense<0.000000e+00> : vector<8x16xf32>
    %1402 = tpu.matmul %1401, %1044, %cst_361 {dimension_numbers = #tpu.dot_dimension_numbers<[1], [0], [0], [1], [0, 0, 1, 1], [], []>} : vector<8x32xf32>, vector<32x16xf32>, vector<8x16xf32> -> vector<8x16xf32>
    %1403 = vector.broadcast %1046 : vector<1x16xf32> to vector<8x16xf32>
    %1404 = arith.addf %1402, %1403 : vector<8x16xf32>
    %1405 = tpu.iota {dimensions = array<i32: 1>} : vector<8x16xi32>
    %1406 = arith.sitofp %1405 : vector<8x16xi32> to vector<8x16xf32>
    %cst_362 = arith.constant dense<0xFF800000> : vector<8xf32>
    %1407 = vector.multi_reduction <maximumf>, %1404, %cst_362 [1] : vector<8x16xf32> to vector<8xf32>
    %1408 = vector.shape_cast %1407 : vector<8xf32> to vector<8x1xf32>
    %1409 = vector.broadcast %1408 : vector<8x1xf32> to vector<8x16xf32>
    %1410 = arith.cmpf oge, %1404, %1409 : vector<8x16xf32>
    %cst_363 = arith.constant 1.600000e+01 : f32
    %1411 = vector.broadcast %cst_363 : f32 to vector<8x16xf32>
    %1412 = arith.subf %1411, %1406 : vector<8x16xf32>
    %cst_364 = arith.constant 0.000000e+00 : f32
    %1413 = vector.broadcast %cst_364 : f32 to vector<8x16xf32>
    %1414 = arith.select %1410, %1412, %1413 : vector<8x16xi1>, vector<8x16xf32>
    %cst_365 = arith.constant dense<0xFF800000> : vector<8xf32>
    %1415 = vector.multi_reduction <maximumf>, %1414, %cst_365 [1] : vector<8x16xf32> to vector<8xf32>
    %1416 = vector.shape_cast %1415 : vector<8xf32> to vector<8x1xf32>
    %cst_366 = arith.constant 1.600000e+01 : f32
    %1417 = vector.broadcast %cst_366 : f32 to vector<8x1xf32>
    %1418 = arith.subf %1417, %1416 : vector<8x1xf32>
    %1419 = vector.broadcast %1418 : vector<8x1xf32> to vector<8x16xf32>
    %1420 = arith.cmpf oeq, %1406, %1419 : vector<8x16xf32>
    %1421 = arith.extui %1420 : vector<8x16xi1> to vector<8x16xi32>
    %1422 = arith.sitofp %1421 : vector<8x16xi32> to vector<8x16xf32>
    %1423 = vector.extract_strided_slice %1052 {offsets = [0, 3], sizes = [8, 1], strides = [1, 1]} : vector<8x4xf32> to vector<8x1xf32>
    %1424 = arith.cmpf one, %1418, %1423 : vector<8x1xf32>
    %1425 = arith.extui %1424 : vector<8x1xi1> to vector<8x1xi32>
    %1426 = arith.sitofp %1425 : vector<8x1xi32> to vector<8x1xf32>
    %1427 = arith.maximumf %1341, %1426 : vector<8x1xf32>
    %1428 = tpu.concatenate %1116, %1212, %1308, %1404 in 1 : vector<8x16xf32>, vector<8x16xf32>, vector<8x16xf32>, vector<8x16xf32> -> vector<8x64xf32>
    %c0_367 = arith.constant 0 : index
    %c0_368 = arith.constant 0 : index
    %1429 = vector.load %arg35[%c0_367, %c0_368] : memref<8x64xf32, #tpu.memory_space<vmem>>, vector<8x64xf32>
    tpu.vector_store %arg35[%c0_367, %c0_368], %1019 {strides = array<i32>} : memref<8x64xf32, #tpu.memory_space<vmem>>, vector<8x64xf32>,
    %c0_369 = arith.constant 0 : index
    %c0_370 = arith.constant 0 : index
    %1430 = vector.load %arg36[%c0_369, %c0_370] : memref<8x64xf32, #tpu.memory_space<vmem>>, vector<8x64xf32>
    tpu.vector_store %arg36[%c0_369, %c0_370], %1428 {strides = array<i32>} : memref<8x64xf32, #tpu.memory_space<vmem>>, vector<8x64xf32>,
    %cst_371 = arith.constant dense<0.000000e+00> : vector<8x32xf32>
    %1431 = tpu.matmul %605, %0, %cst_371 {dimension_numbers = #tpu.dot_dimension_numbers<[1], [0], [0], [1], [0, 0, 1, 1], [], []>} : vector<8x16xf32>, vector<16x32xf32>, vector<8x32xf32> -> vector<8x32xf32>
    %1432 = vector.broadcast %610 : vector<8x1xf32> to vector<8x32xf32>
    %1433 = arith.mulf %1431, %1432 : vector<8x32xf32>
    %c0_372 = arith.constant 0 : index
    %c0_373 = arith.constant 0 : index
    %c0_374 = arith.constant 0 : index
    %1434 = vector.load %arg7[%c0_372, %c0_373, %c0_374] : memref<2x16x16xf32, #tpu.memory_space<vmem>>, vector<1x16x16xf32>
    %1435 = vector.shape_cast %1434 : vector<1x16x16xf32> to vector<16x16xf32>
    %c0_375 = arith.constant 0 : index
    %c0_376 = arith.constant 0 : index
    %c0_377 = arith.constant 0 : index
    %1436 = vector.load %arg8[%c0_375, %c0_376, %c0_377] : memref<2x16x128xf32, #tpu.memory_space<vmem>>, vector<1x16x128xf32>
    %1437 = vector.shape_cast %1436 : vector<1x16x128xf32> to vector<16x128xf32>
    %cst_378 = arith.constant dense<0.000000e+00> : vector<16x128xf32>
    %1438 = tpu.matmul %1435, %1437, %cst_378 {dimension_numbers = #tpu.dot_dimension_numbers<[1], [0], [0], [1], [0, 0, 1, 1], [], []>} : vector<16x16xf32>, vector<16x128xf32>, vector<16x128xf32> -> vector<16x128xf32>
    %c0_379 = arith.constant 0 : index
    %c0_380 = arith.constant 0 : index
    %c0_381 = arith.constant 0 : index
    %1439 = vector.load %arg9[%c0_379, %c0_380, %c0_381] : memref<2x32x128xf32, #tpu.memory_space<vmem>>, vector<1x32x128xf32>
    %1440 = vector.shape_cast %1439 : vector<1x32x128xf32> to vector<32x128xf32>
    %c0_382 = arith.constant 0 : index
    %c0_383 = arith.constant 0 : index
    %c0_384 = arith.constant 0 : index
    %1441 = vector.load %arg10[%c0_382, %c0_383, %c0_384] : memref<2x1x128xf32, #tpu.memory_space<vmem>>, vector<1x1x128xf32>
    %1442 = vector.shape_cast %1441 : vector<1x1x128xf32> to vector<1x128xf32>
    %c0_385 = arith.constant 0 : index
    %c0_386 = arith.constant 0 : index
    %c0_387 = arith.constant 0 : index
    %1443 = vector.load %arg11[%c0_385, %c0_386, %c0_387] : memref<2x32x128xf32, #tpu.memory_space<vmem>>, vector<1x32x128xf32>
    %1444 = vector.shape_cast %1443 : vector<1x32x128xf32> to vector<32x128xf32>
    %c0_388 = arith.constant 0 : index
    %c0_389 = arith.constant 0 : index
    %c0_390 = arith.constant 0 : index
    %1445 = vector.load %arg12[%c0_388, %c0_389, %c0_390] : memref<2x32x128xf32, #tpu.memory_space<vmem>>, vector<1x32x128xf32>
    %1446 = vector.shape_cast %1445 : vector<1x32x128xf32> to vector<32x128xf32>
    %c0_391 = arith.constant 0 : index
    %c0_392 = arith.constant 0 : index
    %c0_393 = arith.constant 0 : index
    %1447 = vector.load %arg13[%c0_391, %c0_392, %c0_393] : memref<2x1x128xf32, #tpu.memory_space<vmem>>, vector<1x1x128xf32>
    %1448 = vector.shape_cast %1447 : vector<1x1x128xf32> to vector<1x128xf32>
    %cst_394 = arith.constant 0.000000e+00 : f32
    %1449 = vector.broadcast %cst_394 : f32 to vector<8x32xf32>
    %cst_395 = arith.constant 0.000000e+00 : f32
    %1450 = vector.broadcast %cst_395 : f32 to vector<8x32xf32>
    %cst_396 = arith.constant 0.000000e+00 : f32
    %1451 = vector.broadcast %cst_396 : f32 to vector<8x32xf32>
    %cst_397 = arith.constant 0.000000e+00 : f32
    %1452 = vector.broadcast %cst_397 : f32 to vector<8x32xf32>
    %cst_398 = arith.constant dense<0.000000e+00> : vector<8x128xf32>
    %1453 = tpu.matmul %735, %1438, %cst_398 {dimension_numbers = #tpu.dot_dimension_numbers<[1], [0], [0], [1], [0, 0, 1, 1], [], []>} : vector<8x16xf32>, vector<16x128xf32>, vector<8x128xf32> -> vector<8x128xf32>
    %cst_399 = arith.constant dense<0.000000e+00> : vector<8x128xf32>
    %1454 = tpu.matmul %1449, %1440, %cst_399 {dimension_numbers = #tpu.dot_dimension_numbers<[1], [0], [0], [1], [0, 0, 1, 1], [], []>} : vector<8x32xf32>, vector<32x128xf32>, vector<8x128xf32> -> vector<8x128xf32>
    %1455 = arith.addf %1453, %1454 : vector<8x128xf32>
    %1456 = vector.broadcast %1442 : vector<1x128xf32> to vector<8x128xf32>
    %1457 = arith.addf %1455, %1456 : vector<8x128xf32>
    %1458 = vector.extract_strided_slice %1457 {offsets = [0, 0], sizes = [8, 32], strides = [1, 1]} : vector<8x128xf32> to vector<8x32xf32>
    %1459 = arith.negf %1458 : vector<8x32xf32>
    %1460 = math.exp %1459 : vector<8x32xf32>
    %cst_400 = arith.constant 1.000000e+00 : f32
    %1461 = vector.broadcast %cst_400 : f32 to vector<8x32xf32>
    %1462 = arith.addf %1461, %1460 : vector<8x32xf32>
    %1463 = arith.divf %1461, %1462 : vector<8x32xf32>
    %1464 = vector.extract_strided_slice %1457 {offsets = [0, 32], sizes = [8, 32], strides = [1, 1]} : vector<8x128xf32> to vector<8x32xf32>
    %1465 = arith.negf %1464 : vector<8x32xf32>
    %1466 = math.exp %1465 : vector<8x32xf32>
    %cst_401 = arith.constant 1.000000e+00 : f32
    %1467 = vector.broadcast %cst_401 : f32 to vector<8x32xf32>
    %1468 = arith.addf %1467, %1466 : vector<8x32xf32>
    %1469 = arith.divf %1467, %1468 : vector<8x32xf32>
    %1470 = vector.extract_strided_slice %1457 {offsets = [0, 64], sizes = [8, 32], strides = [1, 1]} : vector<8x128xf32> to vector<8x32xf32>
    %1471 = math.tanh %1470 : vector<8x32xf32>
    %1472 = vector.extract_strided_slice %1457 {offsets = [0, 96], sizes = [8, 32], strides = [1, 1]} : vector<8x128xf32> to vector<8x32xf32>
    %1473 = arith.negf %1472 : vector<8x32xf32>
    %1474 = math.exp %1473 : vector<8x32xf32>
    %cst_402 = arith.constant 1.000000e+00 : f32
    %1475 = vector.broadcast %cst_402 : f32 to vector<8x32xf32>
    %1476 = arith.addf %1475, %1474 : vector<8x32xf32>
    %1477 = arith.divf %1475, %1476 : vector<8x32xf32>
    %1478 = arith.mulf %1469, %1450 : vector<8x32xf32>
    %1479 = arith.mulf %1463, %1471 : vector<8x32xf32>
    %1480 = arith.addf %1478, %1479 : vector<8x32xf32>
    %1481 = math.tanh %1480 : vector<8x32xf32>
    %1482 = arith.mulf %1477, %1481 : vector<8x32xf32>
    %cst_403 = arith.constant dense<0.000000e+00> : vector<8x128xf32>
    %1483 = tpu.matmul %1482, %1444, %cst_403 {dimension_numbers = #tpu.dot_dimension_numbers<[1], [0], [0], [1], [0, 0, 1, 1], [], []>} : vector<8x32xf32>, vector<32x128xf32>, vector<8x128xf32> -> vector<8x128xf32>
    %cst_404 = arith.constant dense<0.000000e+00> : vector<8x128xf32>
    %1484 = tpu.matmul %1451, %1446, %cst_404 {dimension_numbers = #tpu.dot_dimension_numbers<[1], [0], [0], [1], [0, 0, 1, 1], [], []>} : vector<8x32xf32>, vector<32x128xf32>, vector<8x128xf32> -> vector<8x128xf32>
    %1485 = arith.addf %1483, %1484 : vector<8x128xf32>
    %1486 = vector.broadcast %1448 : vector<1x128xf32> to vector<8x128xf32>
    %1487 = arith.addf %1485, %1486 : vector<8x128xf32>
    %1488 = vector.extract_strided_slice %1487 {offsets = [0, 0], sizes = [8, 32], strides = [1, 1]} : vector<8x128xf32> to vector<8x32xf32>
    %1489 = arith.negf %1488 : vector<8x32xf32>
    %1490 = math.exp %1489 : vector<8x32xf32>
    %cst_405 = arith.constant 1.000000e+00 : f32
    %1491 = vector.broadcast %cst_405 : f32 to vector<8x32xf32>
    %1492 = arith.addf %1491, %1490 : vector<8x32xf32>
    %1493 = arith.divf %1491, %1492 : vector<8x32xf32>
    %1494 = vector.extract_strided_slice %1487 {offsets = [0, 32], sizes = [8, 32], strides = [1, 1]} : vector<8x128xf32> to vector<8x32xf32>
    %1495 = arith.negf %1494 : vector<8x32xf32>
    %1496 = math.exp %1495 : vector<8x32xf32>
    %cst_406 = arith.constant 1.000000e+00 : f32
    %1497 = vector.broadcast %cst_406 : f32 to vector<8x32xf32>
    %1498 = arith.addf %1497, %1496 : vector<8x32xf32>
    %1499 = arith.divf %1497, %1498 : vector<8x32xf32>
    %1500 = vector.extract_strided_slice %1487 {offsets = [0, 64], sizes = [8, 32], strides = [1, 1]} : vector<8x128xf32> to vector<8x32xf32>
    %1501 = math.tanh %1500 : vector<8x32xf32>
    %1502 = vector.extract_strided_slice %1487 {offsets = [0, 96], sizes = [8, 32], strides = [1, 1]} : vector<8x128xf32> to vector<8x32xf32>
    %1503 = arith.negf %1502 : vector<8x32xf32>
    %1504 = math.exp %1503 : vector<8x32xf32>
    %cst_407 = arith.constant 1.000000e+00 : f32
    %1505 = vector.broadcast %cst_407 : f32 to vector<8x32xf32>
    %1506 = arith.addf %1505, %1504 : vector<8x32xf32>
    %1507 = arith.divf %1505, %1506 : vector<8x32xf32>
    %1508 = arith.mulf %1499, %1452 : vector<8x32xf32>
    %1509 = arith.mulf %1493, %1501 : vector<8x32xf32>
    %1510 = arith.addf %1508, %1509 : vector<8x32xf32>
    %1511 = math.tanh %1510 : vector<8x32xf32>
    %1512 = arith.mulf %1507, %1511 : vector<8x32xf32>
    %cst_408 = arith.constant dense<0.000000e+00> : vector<8x128xf32>
    %1513 = tpu.matmul %831, %1438, %cst_408 {dimension_numbers = #tpu.dot_dimension_numbers<[1], [0], [0], [1], [0, 0, 1, 1], [], []>} : vector<8x16xf32>, vector<16x128xf32>, vector<8x128xf32> -> vector<8x128xf32>
    %cst_409 = arith.constant dense<0.000000e+00> : vector<8x128xf32>
    %1514 = tpu.matmul %1482, %1440, %cst_409 {dimension_numbers = #tpu.dot_dimension_numbers<[1], [0], [0], [1], [0, 0, 1, 1], [], []>} : vector<8x32xf32>, vector<32x128xf32>, vector<8x128xf32> -> vector<8x128xf32>
    %1515 = arith.addf %1513, %1514 : vector<8x128xf32>
    %1516 = vector.broadcast %1442 : vector<1x128xf32> to vector<8x128xf32>
    %1517 = arith.addf %1515, %1516 : vector<8x128xf32>
    %1518 = vector.extract_strided_slice %1517 {offsets = [0, 0], sizes = [8, 32], strides = [1, 1]} : vector<8x128xf32> to vector<8x32xf32>
    %1519 = arith.negf %1518 : vector<8x32xf32>
    %1520 = math.exp %1519 : vector<8x32xf32>
    %cst_410 = arith.constant 1.000000e+00 : f32
    %1521 = vector.broadcast %cst_410 : f32 to vector<8x32xf32>
    %1522 = arith.addf %1521, %1520 : vector<8x32xf32>
    %1523 = arith.divf %1521, %1522 : vector<8x32xf32>
    %1524 = vector.extract_strided_slice %1517 {offsets = [0, 32], sizes = [8, 32], strides = [1, 1]} : vector<8x128xf32> to vector<8x32xf32>
    %1525 = arith.negf %1524 : vector<8x32xf32>
    %1526 = math.exp %1525 : vector<8x32xf32>
    %cst_411 = arith.constant 1.000000e+00 : f32
    %1527 = vector.broadcast %cst_411 : f32 to vector<8x32xf32>
    %1528 = arith.addf %1527, %1526 : vector<8x32xf32>
    %1529 = arith.divf %1527, %1528 : vector<8x32xf32>
    %1530 = vector.extract_strided_slice %1517 {offsets = [0, 64], sizes = [8, 32], strides = [1, 1]} : vector<8x128xf32> to vector<8x32xf32>
    %1531 = math.tanh %1530 : vector<8x32xf32>
    %1532 = vector.extract_strided_slice %1517 {offsets = [0, 96], sizes = [8, 32], strides = [1, 1]} : vector<8x128xf32> to vector<8x32xf32>
    %1533 = arith.negf %1532 : vector<8x32xf32>
    %1534 = math.exp %1533 : vector<8x32xf32>
    %cst_412 = arith.constant 1.000000e+00 : f32
    %1535 = vector.broadcast %cst_412 : f32 to vector<8x32xf32>
    %1536 = arith.addf %1535, %1534 : vector<8x32xf32>
    %1537 = arith.divf %1535, %1536 : vector<8x32xf32>
    %1538 = arith.mulf %1529, %1480 : vector<8x32xf32>
    %1539 = arith.mulf %1523, %1531 : vector<8x32xf32>
    %1540 = arith.addf %1538, %1539 : vector<8x32xf32>
    %1541 = math.tanh %1540 : vector<8x32xf32>
    %1542 = arith.mulf %1537, %1541 : vector<8x32xf32>
    %cst_413 = arith.constant dense<0.000000e+00> : vector<8x128xf32>
    %1543 = tpu.matmul %1542, %1444, %cst_413 {dimension_numbers = #tpu.dot_dimension_numbers<[1], [0], [0], [1], [0, 0, 1, 1], [], []>} : vector<8x32xf32>, vector<32x128xf32>, vector<8x128xf32> -> vector<8x128xf32>
    %cst_414 = arith.constant dense<0.000000e+00> : vector<8x128xf32>
    %1544 = tpu.matmul %1512, %1446, %cst_414 {dimension_numbers = #tpu.dot_dimension_numbers<[1], [0], [0], [1], [0, 0, 1, 1], [], []>} : vector<8x32xf32>, vector<32x128xf32>, vector<8x128xf32> -> vector<8x128xf32>
    %1545 = arith.addf %1543, %1544 : vector<8x128xf32>
    %1546 = vector.broadcast %1448 : vector<1x128xf32> to vector<8x128xf32>
    %1547 = arith.addf %1545, %1546 : vector<8x128xf32>
    %1548 = vector.extract_strided_slice %1547 {offsets = [0, 0], sizes = [8, 32], strides = [1, 1]} : vector<8x128xf32> to vector<8x32xf32>
    %1549 = arith.negf %1548 : vector<8x32xf32>
    %1550 = math.exp %1549 : vector<8x32xf32>
    %cst_415 = arith.constant 1.000000e+00 : f32
    %1551 = vector.broadcast %cst_415 : f32 to vector<8x32xf32>
    %1552 = arith.addf %1551, %1550 : vector<8x32xf32>
    %1553 = arith.divf %1551, %1552 : vector<8x32xf32>
    %1554 = vector.extract_strided_slice %1547 {offsets = [0, 32], sizes = [8, 32], strides = [1, 1]} : vector<8x128xf32> to vector<8x32xf32>
    %1555 = arith.negf %1554 : vector<8x32xf32>
    %1556 = math.exp %1555 : vector<8x32xf32>
    %cst_416 = arith.constant 1.000000e+00 : f32
    %1557 = vector.broadcast %cst_416 : f32 to vector<8x32xf32>
    %1558 = arith.addf %1557, %1556 : vector<8x32xf32>
    %1559 = arith.divf %1557, %1558 : vector<8x32xf32>
    %1560 = vector.extract_strided_slice %1547 {offsets = [0, 64], sizes = [8, 32], strides = [1, 1]} : vector<8x128xf32> to vector<8x32xf32>
    %1561 = math.tanh %1560 : vector<8x32xf32>
    %1562 = vector.extract_strided_slice %1547 {offsets = [0, 96], sizes = [8, 32], strides = [1, 1]} : vector<8x128xf32> to vector<8x32xf32>
    %1563 = arith.negf %1562 : vector<8x32xf32>
    %1564 = math.exp %1563 : vector<8x32xf32>
    %cst_417 = arith.constant 1.000000e+00 : f32
    %1565 = vector.broadcast %cst_417 : f32 to vector<8x32xf32>
    %1566 = arith.addf %1565, %1564 : vector<8x32xf32>
    %1567 = arith.divf %1565, %1566 : vector<8x32xf32>
    %1568 = arith.mulf %1559, %1510 : vector<8x32xf32>
    %1569 = arith.mulf %1553, %1561 : vector<8x32xf32>
    %1570 = arith.addf %1568, %1569 : vector<8x32xf32>
    %1571 = math.tanh %1570 : vector<8x32xf32>
    %1572 = arith.mulf %1567, %1571 : vector<8x32xf32>
    %cst_418 = arith.constant dense<0.000000e+00> : vector<8x128xf32>
    %1573 = tpu.matmul %927, %1438, %cst_418 {dimension_numbers = #tpu.dot_dimension_numbers<[1], [0], [0], [1], [0, 0, 1, 1], [], []>} : vector<8x16xf32>, vector<16x128xf32>, vector<8x128xf32> -> vector<8x128xf32>
    %cst_419 = arith.constant dense<0.000000e+00> : vector<8x128xf32>
    %1574 = tpu.matmul %1542, %1440, %cst_419 {dimension_numbers = #tpu.dot_dimension_numbers<[1], [0], [0], [1], [0, 0, 1, 1], [], []>} : vector<8x32xf32>, vector<32x128xf32>, vector<8x128xf32> -> vector<8x128xf32>
    %1575 = arith.addf %1573, %1574 : vector<8x128xf32>
    %1576 = vector.broadcast %1442 : vector<1x128xf32> to vector<8x128xf32>
    %1577 = arith.addf %1575, %1576 : vector<8x128xf32>
    %1578 = vector.extract_strided_slice %1577 {offsets = [0, 0], sizes = [8, 32], strides = [1, 1]} : vector<8x128xf32> to vector<8x32xf32>
    %1579 = arith.negf %1578 : vector<8x32xf32>
    %1580 = math.exp %1579 : vector<8x32xf32>
    %cst_420 = arith.constant 1.000000e+00 : f32
    %1581 = vector.broadcast %cst_420 : f32 to vector<8x32xf32>
    %1582 = arith.addf %1581, %1580 : vector<8x32xf32>
    %1583 = arith.divf %1581, %1582 : vector<8x32xf32>
    %1584 = vector.extract_strided_slice %1577 {offsets = [0, 32], sizes = [8, 32], strides = [1, 1]} : vector<8x128xf32> to vector<8x32xf32>
    %1585 = arith.negf %1584 : vector<8x32xf32>
    %1586 = math.exp %1585 : vector<8x32xf32>
    %cst_421 = arith.constant 1.000000e+00 : f32
    %1587 = vector.broadcast %cst_421 : f32 to vector<8x32xf32>
    %1588 = arith.addf %1587, %1586 : vector<8x32xf32>
    %1589 = arith.divf %1587, %1588 : vector<8x32xf32>
    %1590 = vector.extract_strided_slice %1577 {offsets = [0, 64], sizes = [8, 32], strides = [1, 1]} : vector<8x128xf32> to vector<8x32xf32>
    %1591 = math.tanh %1590 : vector<8x32xf32>
    %1592 = vector.extract_strided_slice %1577 {offsets = [0, 96], sizes = [8, 32], strides = [1, 1]} : vector<8x128xf32> to vector<8x32xf32>
    %1593 = arith.negf %1592 : vector<8x32xf32>
    %1594 = math.exp %1593 : vector<8x32xf32>
    %cst_422 = arith.constant 1.000000e+00 : f32
    %1595 = vector.broadcast %cst_422 : f32 to vector<8x32xf32>
    %1596 = arith.addf %1595, %1594 : vector<8x32xf32>
    %1597 = arith.divf %1595, %1596 : vector<8x32xf32>
    %1598 = arith.mulf %1589, %1540 : vector<8x32xf32>
    %1599 = arith.mulf %1583, %1591 : vector<8x32xf32>
    %1600 = arith.addf %1598, %1599 : vector<8x32xf32>
    %1601 = math.tanh %1600 : vector<8x32xf32>
    %1602 = arith.mulf %1597, %1601 : vector<8x32xf32>
    %cst_423 = arith.constant dense<0.000000e+00> : vector<8x128xf32>
    %1603 = tpu.matmul %1602, %1444, %cst_423 {dimension_numbers = #tpu.dot_dimension_numbers<[1], [0], [0], [1], [0, 0, 1, 1], [], []>} : vector<8x32xf32>, vector<32x128xf32>, vector<8x128xf32> -> vector<8x128xf32>
    %cst_424 = arith.constant dense<0.000000e+00> : vector<8x128xf32>
    %1604 = tpu.matmul %1572, %1446, %cst_424 {dimension_numbers = #tpu.dot_dimension_numbers<[1], [0], [0], [1], [0, 0, 1, 1], [], []>} : vector<8x32xf32>, vector<32x128xf32>, vector<8x128xf32> -> vector<8x128xf32>
    %1605 = arith.addf %1603, %1604 : vector<8x128xf32>
    %1606 = vector.broadcast %1448 : vector<1x128xf32> to vector<8x128xf32>
    %1607 = arith.addf %1605, %1606 : vector<8x128xf32>
    %1608 = vector.extract_strided_slice %1607 {offsets = [0, 0], sizes = [8, 32], strides = [1, 1]} : vector<8x128xf32> to vector<8x32xf32>
    %1609 = arith.negf %1608 : vector<8x32xf32>
    %1610 = math.exp %1609 : vector<8x32xf32>
    %cst_425 = arith.constant 1.000000e+00 : f32
    %1611 = vector.broadcast %cst_425 : f32 to vector<8x32xf32>
    %1612 = arith.addf %1611, %1610 : vector<8x32xf32>
    %1613 = arith.divf %1611, %1612 : vector<8x32xf32>
    %1614 = vector.extract_strided_slice %1607 {offsets = [0, 32], sizes = [8, 32], strides = [1, 1]} : vector<8x128xf32> to vector<8x32xf32>
    %1615 = arith.negf %1614 : vector<8x32xf32>
    %1616 = math.exp %1615 : vector<8x32xf32>
    %cst_426 = arith.constant 1.000000e+00 : f32
    %1617 = vector.broadcast %cst_426 : f32 to vector<8x32xf32>
    %1618 = arith.addf %1617, %1616 : vector<8x32xf32>
    %1619 = arith.divf %1617, %1618 : vector<8x32xf32>
    %1620 = vector.extract_strided_slice %1607 {offsets = [0, 64], sizes = [8, 32], strides = [1, 1]} : vector<8x128xf32> to vector<8x32xf32>
    %1621 = math.tanh %1620 : vector<8x32xf32>
    %1622 = vector.extract_strided_slice %1607 {offsets = [0, 96], sizes = [8, 32], strides = [1, 1]} : vector<8x128xf32> to vector<8x32xf32>
    %1623 = arith.negf %1622 : vector<8x32xf32>
    %1624 = math.exp %1623 : vector<8x32xf32>
    %cst_427 = arith.constant 1.000000e+00 : f32
    %1625 = vector.broadcast %cst_427 : f32 to vector<8x32xf32>
    %1626 = arith.addf %1625, %1624 : vector<8x32xf32>
    %1627 = arith.divf %1625, %1626 : vector<8x32xf32>
    %1628 = arith.mulf %1619, %1570 : vector<8x32xf32>
    %1629 = arith.mulf %1613, %1621 : vector<8x32xf32>
    %1630 = arith.addf %1628, %1629 : vector<8x32xf32>
    %1631 = math.tanh %1630 : vector<8x32xf32>
    %1632 = arith.mulf %1627, %1631 : vector<8x32xf32>
    %cst_428 = arith.constant dense<0.000000e+00> : vector<8x128xf32>
    %1633 = tpu.matmul %1013, %1438, %cst_428 {dimension_numbers = #tpu.dot_dimension_numbers<[1], [0], [0], [1], [0, 0, 1, 1], [], []>} : vector<8x16xf32>, vector<16x128xf32>, vector<8x128xf32> -> vector<8x128xf32>
    %cst_429 = arith.constant dense<0.000000e+00> : vector<8x128xf32>
    %1634 = tpu.matmul %1602, %1440, %cst_429 {dimension_numbers = #tpu.dot_dimension_numbers<[1], [0], [0], [1], [0, 0, 1, 1], [], []>} : vector<8x32xf32>, vector<32x128xf32>, vector<8x128xf32> -> vector<8x128xf32>
    %1635 = arith.addf %1633, %1634 : vector<8x128xf32>
    %1636 = vector.broadcast %1442 : vector<1x128xf32> to vector<8x128xf32>
    %1637 = arith.addf %1635, %1636 : vector<8x128xf32>
    %1638 = vector.extract_strided_slice %1637 {offsets = [0, 0], sizes = [8, 32], strides = [1, 1]} : vector<8x128xf32> to vector<8x32xf32>
    %1639 = arith.negf %1638 : vector<8x32xf32>
    %1640 = math.exp %1639 : vector<8x32xf32>
    %cst_430 = arith.constant 1.000000e+00 : f32
    %1641 = vector.broadcast %cst_430 : f32 to vector<8x32xf32>
    %1642 = arith.addf %1641, %1640 : vector<8x32xf32>
    %1643 = arith.divf %1641, %1642 : vector<8x32xf32>
    %1644 = vector.extract_strided_slice %1637 {offsets = [0, 32], sizes = [8, 32], strides = [1, 1]} : vector<8x128xf32> to vector<8x32xf32>
    %1645 = arith.negf %1644 : vector<8x32xf32>
    %1646 = math.exp %1645 : vector<8x32xf32>
    %cst_431 = arith.constant 1.000000e+00 : f32
    %1647 = vector.broadcast %cst_431 : f32 to vector<8x32xf32>
    %1648 = arith.addf %1647, %1646 : vector<8x32xf32>
    %1649 = arith.divf %1647, %1648 : vector<8x32xf32>
    %1650 = vector.extract_strided_slice %1637 {offsets = [0, 64], sizes = [8, 32], strides = [1, 1]} : vector<8x128xf32> to vector<8x32xf32>
    %1651 = math.tanh %1650 : vector<8x32xf32>
    %1652 = vector.extract_strided_slice %1637 {offsets = [0, 96], sizes = [8, 32], strides = [1, 1]} : vector<8x128xf32> to vector<8x32xf32>
    %1653 = arith.negf %1652 : vector<8x32xf32>
    %1654 = math.exp %1653 : vector<8x32xf32>
    %cst_432 = arith.constant 1.000000e+00 : f32
    %1655 = vector.broadcast %cst_432 : f32 to vector<8x32xf32>
    %1656 = arith.addf %1655, %1654 : vector<8x32xf32>
    %1657 = arith.divf %1655, %1656 : vector<8x32xf32>
    %1658 = arith.mulf %1649, %1600 : vector<8x32xf32>
    %1659 = arith.mulf %1643, %1651 : vector<8x32xf32>
    %1660 = arith.addf %1658, %1659 : vector<8x32xf32>
    %1661 = math.tanh %1660 : vector<8x32xf32>
    %1662 = arith.mulf %1657, %1661 : vector<8x32xf32>
    %cst_433 = arith.constant dense<0.000000e+00> : vector<8x128xf32>
    %1663 = tpu.matmul %1662, %1444, %cst_433 {dimension_numbers = #tpu.dot_dimension_numbers<[1], [0], [0], [1], [0, 0, 1, 1], [], []>} : vector<8x32xf32>, vector<32x128xf32>, vector<8x128xf32> -> vector<8x128xf32>
    %cst_434 = arith.constant dense<0.000000e+00> : vector<8x128xf32>
    %1664 = tpu.matmul %1632, %1446, %cst_434 {dimension_numbers = #tpu.dot_dimension_numbers<[1], [0], [0], [1], [0, 0, 1, 1], [], []>} : vector<8x32xf32>, vector<32x128xf32>, vector<8x128xf32> -> vector<8x128xf32>
    %1665 = arith.addf %1663, %1664 : vector<8x128xf32>
    %1666 = vector.broadcast %1448 : vector<1x128xf32> to vector<8x128xf32>
    %1667 = arith.addf %1665, %1666 : vector<8x128xf32>
    %1668 = vector.extract_strided_slice %1667 {offsets = [0, 0], sizes = [8, 32], strides = [1, 1]} : vector<8x128xf32> to vector<8x32xf32>
    %1669 = arith.negf %1668 : vector<8x32xf32>
    %1670 = math.exp %1669 : vector<8x32xf32>
    %cst_435 = arith.constant 1.000000e+00 : f32
    %1671 = vector.broadcast %cst_435 : f32 to vector<8x32xf32>
    %1672 = arith.addf %1671, %1670 : vector<8x32xf32>
    %1673 = arith.divf %1671, %1672 : vector<8x32xf32>
    %1674 = vector.extract_strided_slice %1667 {offsets = [0, 32], sizes = [8, 32], strides = [1, 1]} : vector<8x128xf32> to vector<8x32xf32>
    %1675 = arith.negf %1674 : vector<8x32xf32>
    %1676 = math.exp %1675 : vector<8x32xf32>
    %cst_436 = arith.constant 1.000000e+00 : f32
    %1677 = vector.broadcast %cst_436 : f32 to vector<8x32xf32>
    %1678 = arith.addf %1677, %1676 : vector<8x32xf32>
    %1679 = arith.divf %1677, %1678 : vector<8x32xf32>
    %1680 = vector.extract_strided_slice %1667 {offsets = [0, 64], sizes = [8, 32], strides = [1, 1]} : vector<8x128xf32> to vector<8x32xf32>
    %1681 = math.tanh %1680 : vector<8x32xf32>
    %1682 = vector.extract_strided_slice %1667 {offsets = [0, 96], sizes = [8, 32], strides = [1, 1]} : vector<8x128xf32> to vector<8x32xf32>
    %1683 = arith.negf %1682 : vector<8x32xf32>
    %1684 = math.exp %1683 : vector<8x32xf32>
    %cst_437 = arith.constant 1.000000e+00 : f32
    %1685 = vector.broadcast %cst_437 : f32 to vector<8x32xf32>
    %1686 = arith.addf %1685, %1684 : vector<8x32xf32>
    %1687 = arith.divf %1685, %1686 : vector<8x32xf32>
    %1688 = arith.mulf %1679, %1630 : vector<8x32xf32>
    %1689 = arith.mulf %1673, %1681 : vector<8x32xf32>
    %1690 = arith.addf %1688, %1689 : vector<8x32xf32>
    %1691 = math.tanh %1690 : vector<8x32xf32>
    %1692 = arith.mulf %1687, %1691 : vector<8x32xf32>
    %1693 = tpu.concatenate %1662, %1660, %1692, %1690 in 1 : vector<8x32xf32>, vector<8x32xf32>, vector<8x32xf32>, vector<8x32xf32> -> vector<8x128xf32>
    %c0_438 = arith.constant 0 : index
    %c0_439 = arith.constant 0 : index
    %c0_440 = arith.constant 0 : index
    %1694 = vector.load %arg14[%c0_438, %c0_439, %c0_440] : memref<2x128x32xf32, #tpu.memory_space<vmem>>, vector<1x128x32xf32>
    %1695 = vector.shape_cast %1694 : vector<1x128x32xf32> to vector<128x32xf32>
    %cst_441 = arith.constant dense<0.000000e+00> : vector<8x32xf32>
    %1696 = tpu.matmul %1693, %1695, %cst_441 {dimension_numbers = #tpu.dot_dimension_numbers<[1], [0], [0], [1], [0, 0, 1, 1], [], []>} : vector<8x128xf32>, vector<128x32xf32>, vector<8x32xf32> -> vector<8x32xf32>
    %c0_442 = arith.constant 0 : index
    %c0_443 = arith.constant 0 : index
    %c0_444 = arith.constant 0 : index
    %1697 = vector.load %arg15[%c0_442, %c0_443, %c0_444] : memref<2x1x32xf32, #tpu.memory_space<vmem>>, vector<1x1x32xf32>
    %1698 = vector.shape_cast %1697 : vector<1x1x32xf32> to vector<1x32xf32>
    %1699 = vector.broadcast %1698 : vector<1x32xf32> to vector<8x32xf32>
    %1700 = arith.addf %1696, %1699 : vector<8x32xf32>
    %1701 = vector.broadcast %1018 : vector<8x1xf32> to vector<8x32xf32>
    %1702 = arith.mulf %1700, %1701 : vector<8x32xf32>
    %c1_445 = arith.constant 1 : index
    %c0_446 = arith.constant 0 : index
    %c0_447 = arith.constant 0 : index
    %1703 = vector.load %arg7[%c1_445, %c0_446, %c0_447] : memref<2x16x16xf32, #tpu.memory_space<vmem>>, vector<1x16x16xf32>
    %1704 = vector.shape_cast %1703 : vector<1x16x16xf32> to vector<16x16xf32>
    %c1_448 = arith.constant 1 : index
    %c0_449 = arith.constant 0 : index
    %c0_450 = arith.constant 0 : index
    %1705 = vector.load %arg8[%c1_448, %c0_449, %c0_450] : memref<2x16x128xf32, #tpu.memory_space<vmem>>, vector<1x16x128xf32>
    %1706 = vector.shape_cast %1705 : vector<1x16x128xf32> to vector<16x128xf32>
    %cst_451 = arith.constant dense<0.000000e+00> : vector<16x128xf32>
    %1707 = tpu.matmul %1704, %1706, %cst_451 {dimension_numbers = #tpu.dot_dimension_numbers<[1], [0], [0], [1], [0, 0, 1, 1], [], []>} : vector<16x16xf32>, vector<16x128xf32>, vector<16x128xf32> -> vector<16x128xf32>
    %c1_452 = arith.constant 1 : index
    %c0_453 = arith.constant 0 : index
    %c0_454 = arith.constant 0 : index
    %1708 = vector.load %arg9[%c1_452, %c0_453, %c0_454] : memref<2x32x128xf32, #tpu.memory_space<vmem>>, vector<1x32x128xf32>
    %1709 = vector.shape_cast %1708 : vector<1x32x128xf32> to vector<32x128xf32>
    %c1_455 = arith.constant 1 : index
    %c0_456 = arith.constant 0 : index
    %c0_457 = arith.constant 0 : index
    %1710 = vector.load %arg10[%c1_455, %c0_456, %c0_457] : memref<2x1x128xf32, #tpu.memory_space<vmem>>, vector<1x1x128xf32>
    %1711 = vector.shape_cast %1710 : vector<1x1x128xf32> to vector<1x128xf32>
    %c1_458 = arith.constant 1 : index
    %c0_459 = arith.constant 0 : index
    %c0_460 = arith.constant 0 : index
    %1712 = vector.load %arg11[%c1_458, %c0_459, %c0_460] : memref<2x32x128xf32, #tpu.memory_space<vmem>>, vector<1x32x128xf32>
    %1713 = vector.shape_cast %1712 : vector<1x32x128xf32> to vector<32x128xf32>
    %c1_461 = arith.constant 1 : index
    %c0_462 = arith.constant 0 : index
    %c0_463 = arith.constant 0 : index
    %1714 = vector.load %arg12[%c1_461, %c0_462, %c0_463] : memref<2x32x128xf32, #tpu.memory_space<vmem>>, vector<1x32x128xf32>
    %1715 = vector.shape_cast %1714 : vector<1x32x128xf32> to vector<32x128xf32>
    %c1_464 = arith.constant 1 : index
    %c0_465 = arith.constant 0 : index
    %c0_466 = arith.constant 0 : index
    %1716 = vector.load %arg13[%c1_464, %c0_465, %c0_466] : memref<2x1x128xf32, #tpu.memory_space<vmem>>, vector<1x1x128xf32>
    %1717 = vector.shape_cast %1716 : vector<1x1x128xf32> to vector<1x128xf32>
    %cst_467 = arith.constant 0.000000e+00 : f32
    %1718 = vector.broadcast %cst_467 : f32 to vector<8x32xf32>
    %cst_468 = arith.constant 0.000000e+00 : f32
    %1719 = vector.broadcast %cst_468 : f32 to vector<8x32xf32>
    %cst_469 = arith.constant 0.000000e+00 : f32
    %1720 = vector.broadcast %cst_469 : f32 to vector<8x32xf32>
    %cst_470 = arith.constant 0.000000e+00 : f32
    %1721 = vector.broadcast %cst_470 : f32 to vector<8x32xf32>
    %cst_471 = arith.constant dense<0.000000e+00> : vector<8x128xf32>
    %1722 = tpu.matmul %1144, %1707, %cst_471 {dimension_numbers = #tpu.dot_dimension_numbers<[1], [0], [0], [1], [0, 0, 1, 1], [], []>} : vector<8x16xf32>, vector<16x128xf32>, vector<8x128xf32> -> vector<8x128xf32>
    %cst_472 = arith.constant dense<0.000000e+00> : vector<8x128xf32>
    %1723 = tpu.matmul %1718, %1709, %cst_472 {dimension_numbers = #tpu.dot_dimension_numbers<[1], [0], [0], [1], [0, 0, 1, 1], [], []>} : vector<8x32xf32>, vector<32x128xf32>, vector<8x128xf32> -> vector<8x128xf32>
    %1724 = arith.addf %1722, %1723 : vector<8x128xf32>
    %1725 = vector.broadcast %1711 : vector<1x128xf32> to vector<8x128xf32>
    %1726 = arith.addf %1724, %1725 : vector<8x128xf32>
    %1727 = vector.extract_strided_slice %1726 {offsets = [0, 0], sizes = [8, 32], strides = [1, 1]} : vector<8x128xf32> to vector<8x32xf32>
    %1728 = arith.negf %1727 : vector<8x32xf32>
    %1729 = math.exp %1728 : vector<8x32xf32>
    %cst_473 = arith.constant 1.000000e+00 : f32
    %1730 = vector.broadcast %cst_473 : f32 to vector<8x32xf32>
    %1731 = arith.addf %1730, %1729 : vector<8x32xf32>
    %1732 = arith.divf %1730, %1731 : vector<8x32xf32>
    %1733 = vector.extract_strided_slice %1726 {offsets = [0, 32], sizes = [8, 32], strides = [1, 1]} : vector<8x128xf32> to vector<8x32xf32>
    %1734 = arith.negf %1733 : vector<8x32xf32>
    %1735 = math.exp %1734 : vector<8x32xf32>
    %cst_474 = arith.constant 1.000000e+00 : f32
    %1736 = vector.broadcast %cst_474 : f32 to vector<8x32xf32>
    %1737 = arith.addf %1736, %1735 : vector<8x32xf32>
    %1738 = arith.divf %1736, %1737 : vector<8x32xf32>
    %1739 = vector.extract_strided_slice %1726 {offsets = [0, 64], sizes = [8, 32], strides = [1, 1]} : vector<8x128xf32> to vector<8x32xf32>
    %1740 = math.tanh %1739 : vector<8x32xf32>
    %1741 = vector.extract_strided_slice %1726 {offsets = [0, 96], sizes = [8, 32], strides = [1, 1]} : vector<8x128xf32> to vector<8x32xf32>
    %1742 = arith.negf %1741 : vector<8x32xf32>
    %1743 = math.exp %1742 : vector<8x32xf32>
    %cst_475 = arith.constant 1.000000e+00 : f32
    %1744 = vector.broadcast %cst_475 : f32 to vector<8x32xf32>
    %1745 = arith.addf %1744, %1743 : vector<8x32xf32>
    %1746 = arith.divf %1744, %1745 : vector<8x32xf32>
    %1747 = arith.mulf %1738, %1719 : vector<8x32xf32>
    %1748 = arith.mulf %1732, %1740 : vector<8x32xf32>
    %1749 = arith.addf %1747, %1748 : vector<8x32xf32>
    %1750 = math.tanh %1749 : vector<8x32xf32>
    %1751 = arith.mulf %1746, %1750 : vector<8x32xf32>
    %cst_476 = arith.constant dense<0.000000e+00> : vector<8x128xf32>
    %1752 = tpu.matmul %1751, %1713, %cst_476 {dimension_numbers = #tpu.dot_dimension_numbers<[1], [0], [0], [1], [0, 0, 1, 1], [], []>} : vector<8x32xf32>, vector<32x128xf32>, vector<8x128xf32> -> vector<8x128xf32>
    %cst_477 = arith.constant dense<0.000000e+00> : vector<8x128xf32>
    %1753 = tpu.matmul %1720, %1715, %cst_477 {dimension_numbers = #tpu.dot_dimension_numbers<[1], [0], [0], [1], [0, 0, 1, 1], [], []>} : vector<8x32xf32>, vector<32x128xf32>, vector<8x128xf32> -> vector<8x128xf32>
    %1754 = arith.addf %1752, %1753 : vector<8x128xf32>
    %1755 = vector.broadcast %1717 : vector<1x128xf32> to vector<8x128xf32>
    %1756 = arith.addf %1754, %1755 : vector<8x128xf32>
    %1757 = vector.extract_strided_slice %1756 {offsets = [0, 0], sizes = [8, 32], strides = [1, 1]} : vector<8x128xf32> to vector<8x32xf32>
    %1758 = arith.negf %1757 : vector<8x32xf32>
    %1759 = math.exp %1758 : vector<8x32xf32>
    %cst_478 = arith.constant 1.000000e+00 : f32
    %1760 = vector.broadcast %cst_478 : f32 to vector<8x32xf32>
    %1761 = arith.addf %1760, %1759 : vector<8x32xf32>
    %1762 = arith.divf %1760, %1761 : vector<8x32xf32>
    %1763 = vector.extract_strided_slice %1756 {offsets = [0, 32], sizes = [8, 32], strides = [1, 1]} : vector<8x128xf32> to vector<8x32xf32>
    %1764 = arith.negf %1763 : vector<8x32xf32>
    %1765 = math.exp %1764 : vector<8x32xf32>
    %cst_479 = arith.constant 1.000000e+00 : f32
    %1766 = vector.broadcast %cst_479 : f32 to vector<8x32xf32>
    %1767 = arith.addf %1766, %1765 : vector<8x32xf32>
    %1768 = arith.divf %1766, %1767 : vector<8x32xf32>
    %1769 = vector.extract_strided_slice %1756 {offsets = [0, 64], sizes = [8, 32], strides = [1, 1]} : vector<8x128xf32> to vector<8x32xf32>
    %1770 = math.tanh %1769 : vector<8x32xf32>
    %1771 = vector.extract_strided_slice %1756 {offsets = [0, 96], sizes = [8, 32], strides = [1, 1]} : vector<8x128xf32> to vector<8x32xf32>
    %1772 = arith.negf %1771 : vector<8x32xf32>
    %1773 = math.exp %1772 : vector<8x32xf32>
    %cst_480 = arith.constant 1.000000e+00 : f32
    %1774 = vector.broadcast %cst_480 : f32 to vector<8x32xf32>
    %1775 = arith.addf %1774, %1773 : vector<8x32xf32>
    %1776 = arith.divf %1774, %1775 : vector<8x32xf32>
    %1777 = arith.mulf %1768, %1721 : vector<8x32xf32>
    %1778 = arith.mulf %1762, %1770 : vector<8x32xf32>
    %1779 = arith.addf %1777, %1778 : vector<8x32xf32>
    %1780 = math.tanh %1779 : vector<8x32xf32>
    %1781 = arith.mulf %1776, %1780 : vector<8x32xf32>
    %cst_481 = arith.constant dense<0.000000e+00> : vector<8x128xf32>
    %1782 = tpu.matmul %1240, %1707, %cst_481 {dimension_numbers = #tpu.dot_dimension_numbers<[1], [0], [0], [1], [0, 0, 1, 1], [], []>} : vector<8x16xf32>, vector<16x128xf32>, vector<8x128xf32> -> vector<8x128xf32>
    %cst_482 = arith.constant dense<0.000000e+00> : vector<8x128xf32>
    %1783 = tpu.matmul %1751, %1709, %cst_482 {dimension_numbers = #tpu.dot_dimension_numbers<[1], [0], [0], [1], [0, 0, 1, 1], [], []>} : vector<8x32xf32>, vector<32x128xf32>, vector<8x128xf32> -> vector<8x128xf32>
    %1784 = arith.addf %1782, %1783 : vector<8x128xf32>
    %1785 = vector.broadcast %1711 : vector<1x128xf32> to vector<8x128xf32>
    %1786 = arith.addf %1784, %1785 : vector<8x128xf32>
    %1787 = vector.extract_strided_slice %1786 {offsets = [0, 0], sizes = [8, 32], strides = [1, 1]} : vector<8x128xf32> to vector<8x32xf32>
    %1788 = arith.negf %1787 : vector<8x32xf32>
    %1789 = math.exp %1788 : vector<8x32xf32>
    %cst_483 = arith.constant 1.000000e+00 : f32
    %1790 = vector.broadcast %cst_483 : f32 to vector<8x32xf32>
    %1791 = arith.addf %1790, %1789 : vector<8x32xf32>
    %1792 = arith.divf %1790, %1791 : vector<8x32xf32>
    %1793 = vector.extract_strided_slice %1786 {offsets = [0, 32], sizes = [8, 32], strides = [1, 1]} : vector<8x128xf32> to vector<8x32xf32>
    %1794 = arith.negf %1793 : vector<8x32xf32>
    %1795 = math.exp %1794 : vector<8x32xf32>
    %cst_484 = arith.constant 1.000000e+00 : f32
    %1796 = vector.broadcast %cst_484 : f32 to vector<8x32xf32>
    %1797 = arith.addf %1796, %1795 : vector<8x32xf32>
    %1798 = arith.divf %1796, %1797 : vector<8x32xf32>
    %1799 = vector.extract_strided_slice %1786 {offsets = [0, 64], sizes = [8, 32], strides = [1, 1]} : vector<8x128xf32> to vector<8x32xf32>
    %1800 = math.tanh %1799 : vector<8x32xf32>
    %1801 = vector.extract_strided_slice %1786 {offsets = [0, 96], sizes = [8, 32], strides = [1, 1]} : vector<8x128xf32> to vector<8x32xf32>
    %1802 = arith.negf %1801 : vector<8x32xf32>
    %1803 = math.exp %1802 : vector<8x32xf32>
    %cst_485 = arith.constant 1.000000e+00 : f32
    %1804 = vector.broadcast %cst_485 : f32 to vector<8x32xf32>
    %1805 = arith.addf %1804, %1803 : vector<8x32xf32>
    %1806 = arith.divf %1804, %1805 : vector<8x32xf32>
    %1807 = arith.mulf %1798, %1749 : vector<8x32xf32>
    %1808 = arith.mulf %1792, %1800 : vector<8x32xf32>
    %1809 = arith.addf %1807, %1808 : vector<8x32xf32>
    %1810 = math.tanh %1809 : vector<8x32xf32>
    %1811 = arith.mulf %1806, %1810 : vector<8x32xf32>
    %cst_486 = arith.constant dense<0.000000e+00> : vector<8x128xf32>
    %1812 = tpu.matmul %1811, %1713, %cst_486 {dimension_numbers = #tpu.dot_dimension_numbers<[1], [0], [0], [1], [0, 0, 1, 1], [], []>} : vector<8x32xf32>, vector<32x128xf32>, vector<8x128xf32> -> vector<8x128xf32>
    %cst_487 = arith.constant dense<0.000000e+00> : vector<8x128xf32>
    %1813 = tpu.matmul %1781, %1715, %cst_487 {dimension_numbers = #tpu.dot_dimension_numbers<[1], [0], [0], [1], [0, 0, 1, 1], [], []>} : vector<8x32xf32>, vector<32x128xf32>, vector<8x128xf32> -> vector<8x128xf32>
    %1814 = arith.addf %1812, %1813 : vector<8x128xf32>
    %1815 = vector.broadcast %1717 : vector<1x128xf32> to vector<8x128xf32>
    %1816 = arith.addf %1814, %1815 : vector<8x128xf32>
    %1817 = vector.extract_strided_slice %1816 {offsets = [0, 0], sizes = [8, 32], strides = [1, 1]} : vector<8x128xf32> to vector<8x32xf32>
    %1818 = arith.negf %1817 : vector<8x32xf32>
    %1819 = math.exp %1818 : vector<8x32xf32>
    %cst_488 = arith.constant 1.000000e+00 : f32
    %1820 = vector.broadcast %cst_488 : f32 to vector<8x32xf32>
    %1821 = arith.addf %1820, %1819 : vector<8x32xf32>
    %1822 = arith.divf %1820, %1821 : vector<8x32xf32>
    %1823 = vector.extract_strided_slice %1816 {offsets = [0, 32], sizes = [8, 32], strides = [1, 1]} : vector<8x128xf32> to vector<8x32xf32>
    %1824 = arith.negf %1823 : vector<8x32xf32>
    %1825 = math.exp %1824 : vector<8x32xf32>
    %cst_489 = arith.constant 1.000000e+00 : f32
    %1826 = vector.broadcast %cst_489 : f32 to vector<8x32xf32>
    %1827 = arith.addf %1826, %1825 : vector<8x32xf32>
    %1828 = arith.divf %1826, %1827 : vector<8x32xf32>
    %1829 = vector.extract_strided_slice %1816 {offsets = [0, 64], sizes = [8, 32], strides = [1, 1]} : vector<8x128xf32> to vector<8x32xf32>
    %1830 = math.tanh %1829 : vector<8x32xf32>
    %1831 = vector.extract_strided_slice %1816 {offsets = [0, 96], sizes = [8, 32], strides = [1, 1]} : vector<8x128xf32> to vector<8x32xf32>
    %1832 = arith.negf %1831 : vector<8x32xf32>
    %1833 = math.exp %1832 : vector<8x32xf32>
    %cst_490 = arith.constant 1.000000e+00 : f32
    %1834 = vector.broadcast %cst_490 : f32 to vector<8x32xf32>
    %1835 = arith.addf %1834, %1833 : vector<8x32xf32>
    %1836 = arith.divf %1834, %1835 : vector<8x32xf32>
    %1837 = arith.mulf %1828, %1779 : vector<8x32xf32>
    %1838 = arith.mulf %1822, %1830 : vector<8x32xf32>
    %1839 = arith.addf %1837, %1838 : vector<8x32xf32>
    %1840 = math.tanh %1839 : vector<8x32xf32>
    %1841 = arith.mulf %1836, %1840 : vector<8x32xf32>
    %cst_491 = arith.constant dense<0.000000e+00> : vector<8x128xf32>
    %1842 = tpu.matmul %1336, %1707, %cst_491 {dimension_numbers = #tpu.dot_dimension_numbers<[1], [0], [0], [1], [0, 0, 1, 1], [], []>} : vector<8x16xf32>, vector<16x128xf32>, vector<8x128xf32> -> vector<8x128xf32>
    %cst_492 = arith.constant dense<0.000000e+00> : vector<8x128xf32>
    %1843 = tpu.matmul %1811, %1709, %cst_492 {dimension_numbers = #tpu.dot_dimension_numbers<[1], [0], [0], [1], [0, 0, 1, 1], [], []>} : vector<8x32xf32>, vector<32x128xf32>, vector<8x128xf32> -> vector<8x128xf32>
    %1844 = arith.addf %1842, %1843 : vector<8x128xf32>
    %1845 = vector.broadcast %1711 : vector<1x128xf32> to vector<8x128xf32>
    %1846 = arith.addf %1844, %1845 : vector<8x128xf32>
    %1847 = vector.extract_strided_slice %1846 {offsets = [0, 0], sizes = [8, 32], strides = [1, 1]} : vector<8x128xf32> to vector<8x32xf32>
    %1848 = arith.negf %1847 : vector<8x32xf32>
    %1849 = math.exp %1848 : vector<8x32xf32>
    %cst_493 = arith.constant 1.000000e+00 : f32
    %1850 = vector.broadcast %cst_493 : f32 to vector<8x32xf32>
    %1851 = arith.addf %1850, %1849 : vector<8x32xf32>
    %1852 = arith.divf %1850, %1851 : vector<8x32xf32>
    %1853 = vector.extract_strided_slice %1846 {offsets = [0, 32], sizes = [8, 32], strides = [1, 1]} : vector<8x128xf32> to vector<8x32xf32>
    %1854 = arith.negf %1853 : vector<8x32xf32>
    %1855 = math.exp %1854 : vector<8x32xf32>
    %cst_494 = arith.constant 1.000000e+00 : f32
    %1856 = vector.broadcast %cst_494 : f32 to vector<8x32xf32>
    %1857 = arith.addf %1856, %1855 : vector<8x32xf32>
    %1858 = arith.divf %1856, %1857 : vector<8x32xf32>
    %1859 = vector.extract_strided_slice %1846 {offsets = [0, 64], sizes = [8, 32], strides = [1, 1]} : vector<8x128xf32> to vector<8x32xf32>
    %1860 = math.tanh %1859 : vector<8x32xf32>
    %1861 = vector.extract_strided_slice %1846 {offsets = [0, 96], sizes = [8, 32], strides = [1, 1]} : vector<8x128xf32> to vector<8x32xf32>
    %1862 = arith.negf %1861 : vector<8x32xf32>
    %1863 = math.exp %1862 : vector<8x32xf32>
    %cst_495 = arith.constant 1.000000e+00 : f32
    %1864 = vector.broadcast %cst_495 : f32 to vector<8x32xf32>
    %1865 = arith.addf %1864, %1863 : vector<8x32xf32>
    %1866 = arith.divf %1864, %1865 : vector<8x32xf32>
    %1867 = arith.mulf %1858, %1809 : vector<8x32xf32>
    %1868 = arith.mulf %1852, %1860 : vector<8x32xf32>
    %1869 = arith.addf %1867, %1868 : vector<8x32xf32>
    %1870 = math.tanh %1869 : vector<8x32xf32>
    %1871 = arith.mulf %1866, %1870 : vector<8x32xf32>
    %cst_496 = arith.constant dense<0.000000e+00> : vector<8x128xf32>
    %1872 = tpu.matmul %1871, %1713, %cst_496 {dimension_numbers = #tpu.dot_dimension_numbers<[1], [0], [0], [1], [0, 0, 1, 1], [], []>} : vector<8x32xf32>, vector<32x128xf32>, vector<8x128xf32> -> vector<8x128xf32>
    %cst_497 = arith.constant dense<0.000000e+00> : vector<8x128xf32>
    %1873 = tpu.matmul %1841, %1715, %cst_497 {dimension_numbers = #tpu.dot_dimension_numbers<[1], [0], [0], [1], [0, 0, 1, 1], [], []>} : vector<8x32xf32>, vector<32x128xf32>, vector<8x128xf32> -> vector<8x128xf32>
    %1874 = arith.addf %1872, %1873 : vector<8x128xf32>
    %1875 = vector.broadcast %1717 : vector<1x128xf32> to vector<8x128xf32>
    %1876 = arith.addf %1874, %1875 : vector<8x128xf32>
    %1877 = vector.extract_strided_slice %1876 {offsets = [0, 0], sizes = [8, 32], strides = [1, 1]} : vector<8x128xf32> to vector<8x32xf32>
    %1878 = arith.negf %1877 : vector<8x32xf32>
    %1879 = math.exp %1878 : vector<8x32xf32>
    %cst_498 = arith.constant 1.000000e+00 : f32
    %1880 = vector.broadcast %cst_498 : f32 to vector<8x32xf32>
    %1881 = arith.addf %1880, %1879 : vector<8x32xf32>
    %1882 = arith.divf %1880, %1881 : vector<8x32xf32>
    %1883 = vector.extract_strided_slice %1876 {offsets = [0, 32], sizes = [8, 32], strides = [1, 1]} : vector<8x128xf32> to vector<8x32xf32>
    %1884 = arith.negf %1883 : vector<8x32xf32>
    %1885 = math.exp %1884 : vector<8x32xf32>
    %cst_499 = arith.constant 1.000000e+00 : f32
    %1886 = vector.broadcast %cst_499 : f32 to vector<8x32xf32>
    %1887 = arith.addf %1886, %1885 : vector<8x32xf32>
    %1888 = arith.divf %1886, %1887 : vector<8x32xf32>
    %1889 = vector.extract_strided_slice %1876 {offsets = [0, 64], sizes = [8, 32], strides = [1, 1]} : vector<8x128xf32> to vector<8x32xf32>
    %1890 = math.tanh %1889 : vector<8x32xf32>
    %1891 = vector.extract_strided_slice %1876 {offsets = [0, 96], sizes = [8, 32], strides = [1, 1]} : vector<8x128xf32> to vector<8x32xf32>
    %1892 = arith.negf %1891 : vector<8x32xf32>
    %1893 = math.exp %1892 : vector<8x32xf32>
    %cst_500 = arith.constant 1.000000e+00 : f32
    %1894 = vector.broadcast %cst_500 : f32 to vector<8x32xf32>
    %1895 = arith.addf %1894, %1893 : vector<8x32xf32>
    %1896 = arith.divf %1894, %1895 : vector<8x32xf32>
    %1897 = arith.mulf %1888, %1839 : vector<8x32xf32>
    %1898 = arith.mulf %1882, %1890 : vector<8x32xf32>
    %1899 = arith.addf %1897, %1898 : vector<8x32xf32>
    %1900 = math.tanh %1899 : vector<8x32xf32>
    %1901 = arith.mulf %1896, %1900 : vector<8x32xf32>
    %cst_501 = arith.constant dense<0.000000e+00> : vector<8x128xf32>
    %1902 = tpu.matmul %1422, %1707, %cst_501 {dimension_numbers = #tpu.dot_dimension_numbers<[1], [0], [0], [1], [0, 0, 1, 1], [], []>} : vector<8x16xf32>, vector<16x128xf32>, vector<8x128xf32> -> vector<8x128xf32>
    %cst_502 = arith.constant dense<0.000000e+00> : vector<8x128xf32>
    %1903 = tpu.matmul %1871, %1709, %cst_502 {dimension_numbers = #tpu.dot_dimension_numbers<[1], [0], [0], [1], [0, 0, 1, 1], [], []>} : vector<8x32xf32>, vector<32x128xf32>, vector<8x128xf32> -> vector<8x128xf32>
    %1904 = arith.addf %1902, %1903 : vector<8x128xf32>
    %1905 = vector.broadcast %1711 : vector<1x128xf32> to vector<8x128xf32>
    %1906 = arith.addf %1904, %1905 : vector<8x128xf32>
    %1907 = vector.extract_strided_slice %1906 {offsets = [0, 0], sizes = [8, 32], strides = [1, 1]} : vector<8x128xf32> to vector<8x32xf32>
    %1908 = arith.negf %1907 : vector<8x32xf32>
    %1909 = math.exp %1908 : vector<8x32xf32>
    %cst_503 = arith.constant 1.000000e+00 : f32
    %1910 = vector.broadcast %cst_503 : f32 to vector<8x32xf32>
    %1911 = arith.addf %1910, %1909 : vector<8x32xf32>
    %1912 = arith.divf %1910, %1911 : vector<8x32xf32>
    %1913 = vector.extract_strided_slice %1906 {offsets = [0, 32], sizes = [8, 32], strides = [1, 1]} : vector<8x128xf32> to vector<8x32xf32>
    %1914 = arith.negf %1913 : vector<8x32xf32>
    %1915 = math.exp %1914 : vector<8x32xf32>
    %cst_504 = arith.constant 1.000000e+00 : f32
    %1916 = vector.broadcast %cst_504 : f32 to vector<8x32xf32>
    %1917 = arith.addf %1916, %1915 : vector<8x32xf32>
    %1918 = arith.divf %1916, %1917 : vector<8x32xf32>
    %1919 = vector.extract_strided_slice %1906 {offsets = [0, 64], sizes = [8, 32], strides = [1, 1]} : vector<8x128xf32> to vector<8x32xf32>
    %1920 = math.tanh %1919 : vector<8x32xf32>
    %1921 = vector.extract_strided_slice %1906 {offsets = [0, 96], sizes = [8, 32], strides = [1, 1]} : vector<8x128xf32> to vector<8x32xf32>
    %1922 = arith.negf %1921 : vector<8x32xf32>
    %1923 = math.exp %1922 : vector<8x32xf32>
    %cst_505 = arith.constant 1.000000e+00 : f32
    %1924 = vector.broadcast %cst_505 : f32 to vector<8x32xf32>
    %1925 = arith.addf %1924, %1923 : vector<8x32xf32>
    %1926 = arith.divf %1924, %1925 : vector<8x32xf32>
    %1927 = arith.mulf %1918, %1869 : vector<8x32xf32>
    %1928 = arith.mulf %1912, %1920 : vector<8x32xf32>
    %1929 = arith.addf %1927, %1928 : vector<8x32xf32>
    %1930 = math.tanh %1929 : vector<8x32xf32>
    %1931 = arith.mulf %1926, %1930 : vector<8x32xf32>
    %cst_506 = arith.constant dense<0.000000e+00> : vector<8x128xf32>
    %1932 = tpu.matmul %1931, %1713, %cst_506 {dimension_numbers = #tpu.dot_dimension_numbers<[1], [0], [0], [1], [0, 0, 1, 1], [], []>} : vector<8x32xf32>, vector<32x128xf32>, vector<8x128xf32> -> vector<8x128xf32>
    %cst_507 = arith.constant dense<0.000000e+00> : vector<8x128xf32>
    %1933 = tpu.matmul %1901, %1715, %cst_507 {dimension_numbers = #tpu.dot_dimension_numbers<[1], [0], [0], [1], [0, 0, 1, 1], [], []>} : vector<8x32xf32>, vector<32x128xf32>, vector<8x128xf32> -> vector<8x128xf32>
    %1934 = arith.addf %1932, %1933 : vector<8x128xf32>
    %1935 = vector.broadcast %1717 : vector<1x128xf32> to vector<8x128xf32>
    %1936 = arith.addf %1934, %1935 : vector<8x128xf32>
    %1937 = vector.extract_strided_slice %1936 {offsets = [0, 0], sizes = [8, 32], strides = [1, 1]} : vector<8x128xf32> to vector<8x32xf32>
    %1938 = arith.negf %1937 : vector<8x32xf32>
    %1939 = math.exp %1938 : vector<8x32xf32>
    %cst_508 = arith.constant 1.000000e+00 : f32
    %1940 = vector.broadcast %cst_508 : f32 to vector<8x32xf32>
    %1941 = arith.addf %1940, %1939 : vector<8x32xf32>
    %1942 = arith.divf %1940, %1941 : vector<8x32xf32>
    %1943 = vector.extract_strided_slice %1936 {offsets = [0, 32], sizes = [8, 32], strides = [1, 1]} : vector<8x128xf32> to vector<8x32xf32>
    %1944 = arith.negf %1943 : vector<8x32xf32>
    %1945 = math.exp %1944 : vector<8x32xf32>
    %cst_509 = arith.constant 1.000000e+00 : f32
    %1946 = vector.broadcast %cst_509 : f32 to vector<8x32xf32>
    %1947 = arith.addf %1946, %1945 : vector<8x32xf32>
    %1948 = arith.divf %1946, %1947 : vector<8x32xf32>
    %1949 = vector.extract_strided_slice %1936 {offsets = [0, 64], sizes = [8, 32], strides = [1, 1]} : vector<8x128xf32> to vector<8x32xf32>
    %1950 = math.tanh %1949 : vector<8x32xf32>
    %1951 = vector.extract_strided_slice %1936 {offsets = [0, 96], sizes = [8, 32], strides = [1, 1]} : vector<8x128xf32> to vector<8x32xf32>
    %1952 = arith.negf %1951 : vector<8x32xf32>
    %1953 = math.exp %1952 : vector<8x32xf32>
    %cst_510 = arith.constant 1.000000e+00 : f32
    %1954 = vector.broadcast %cst_510 : f32 to vector<8x32xf32>
    %1955 = arith.addf %1954, %1953 : vector<8x32xf32>
    %1956 = arith.divf %1954, %1955 : vector<8x32xf32>
    %1957 = arith.mulf %1948, %1899 : vector<8x32xf32>
    %1958 = arith.mulf %1942, %1950 : vector<8x32xf32>
    %1959 = arith.addf %1957, %1958 : vector<8x32xf32>
    %1960 = math.tanh %1959 : vector<8x32xf32>
    %1961 = arith.mulf %1956, %1960 : vector<8x32xf32>
    %1962 = tpu.concatenate %1931, %1929, %1961, %1959 in 1 : vector<8x32xf32>, vector<8x32xf32>, vector<8x32xf32>, vector<8x32xf32> -> vector<8x128xf32>
    %c1_511 = arith.constant 1 : index
    %c0_512 = arith.constant 0 : index
    %c0_513 = arith.constant 0 : index
    %1963 = vector.load %arg14[%c1_511, %c0_512, %c0_513] : memref<2x128x32xf32, #tpu.memory_space<vmem>>, vector<1x128x32xf32>
    %1964 = vector.shape_cast %1963 : vector<1x128x32xf32> to vector<128x32xf32>
    %cst_514 = arith.constant dense<0.000000e+00> : vector<8x32xf32>
    %1965 = tpu.matmul %1962, %1964, %cst_514 {dimension_numbers = #tpu.dot_dimension_numbers<[1], [0], [0], [1], [0, 0, 1, 1], [], []>} : vector<8x128xf32>, vector<128x32xf32>, vector<8x32xf32> -> vector<8x32xf32>
    %c1_515 = arith.constant 1 : index
    %c0_516 = arith.constant 0 : index
    %c0_517 = arith.constant 0 : index
    %1966 = vector.load %arg15[%c1_515, %c0_516, %c0_517] : memref<2x1x32xf32, #tpu.memory_space<vmem>>, vector<1x1x32xf32>
    %1967 = vector.shape_cast %1966 : vector<1x1x32xf32> to vector<1x32xf32>
    %1968 = vector.broadcast %1967 : vector<1x32xf32> to vector<8x32xf32>
    %1969 = arith.addf %1965, %1968 : vector<8x32xf32>
    %1970 = vector.broadcast %1427 : vector<8x1xf32> to vector<8x32xf32>
    %1971 = arith.mulf %1969, %1970 : vector<8x32xf32>
    %1972 = tpu.concatenate %7, %297, %585 in 0 : vector<8x32xf32>, vector<8x32xf32>, vector<8x32xf32> -> vector<24x32xf32>
    %1973 = tpu.concatenate %1972, %1433, %1702, %1971 in 0 : vector<24x32xf32>, vector<8x32xf32>, vector<8x32xf32>, vector<8x32xf32> -> vector<48x32xf32>
    %c0_518 = arith.constant 0 : index
    %c0_519 = arith.constant 0 : index
    %1974 = vector.load %arg0[%c0_518, %c0_519] : memref<12x24xf32, #tpu.memory_space<vmem>>, vector<12x24xf32>
    %cst_520 = arith.constant dense<0.000000e+00> : vector<12x32xf32>
    %1975 = tpu.matmul %1974, %1972, %cst_520 {dimension_numbers = #tpu.dot_dimension_numbers<[1], [0], [0], [1], [0, 0, 1, 1], [], []>} : vector<12x24xf32>, vector<24x32xf32>, vector<12x32xf32> -> vector<12x32xf32>
    %c0_521 = arith.constant 0 : index
    %c0_522 = arith.constant 0 : index
    %1976 = vector.load %arg41[%c0_521, %c0_522] : memref<12x32xf32, #tpu.memory_space<vmem>>, vector<12x32xf32>
    tpu.vector_store %arg41[%c0_521, %c0_522], %1975 {strides = array<i32>} : memref<12x32xf32, #tpu.memory_space<vmem>>, vector<12x32xf32>,
    %c0_523 = arith.constant 0 : index
    %c0_524 = arith.constant 0 : index
    %1977 = vector.load %arg26[%c0_523, %c0_524] : memref<32x128xf32, #tpu.memory_space<vmem>>, vector<32x128xf32>
    %c0_525 = arith.constant 0 : index
    %c0_526 = arith.constant 0 : index
    %1978 = vector.load %arg27[%c0_525, %c0_526] : memref<32x128xf32, #tpu.memory_space<vmem>>, vector<32x128xf32>
    %c0_527 = arith.constant 0 : index
    %c0_528 = arith.constant 0 : index
    %1979 = vector.load %arg28[%c0_527, %c0_528] : memref<1x128xf32, #tpu.memory_space<vmem>>, vector<1x128xf32>
    %c0_529 = arith.constant 0 : index
    %c0_530 = arith.constant 0 : index
    %1980 = vector.load %arg29[%c0_529, %c0_530] : memref<32x128xf32, #tpu.memory_space<vmem>>, vector<32x128xf32>
    %c0_531 = arith.constant 0 : index
    %c0_532 = arith.constant 0 : index
    %1981 = vector.load %arg30[%c0_531, %c0_532] : memref<32x128xf32, #tpu.memory_space<vmem>>, vector<32x128xf32>
    %c0_533 = arith.constant 0 : index
    %c0_534 = arith.constant 0 : index
    %1982 = vector.load %arg31[%c0_533, %c0_534] : memref<1x128xf32, #tpu.memory_space<vmem>>, vector<1x128xf32>
    %c0_535 = arith.constant 0 : index
    %c0_536 = arith.constant 0 : index
    %c0_537 = arith.constant 0 : index
    %1983 = vector.load %arg4[%c0_535, %c0_536, %c0_537] : memref<2x2x32xf32, #tpu.memory_space<vmem>>, vector<1x2x32xf32>
    %1984 = vector.shape_cast %1983 : vector<1x2x32xf32> to vector<2x32xf32>
    %c0_538 = arith.constant 0 : index
    %c0_539 = arith.constant 0 : index
    %c0_540 = arith.constant 0 : index
    %1985 = vector.load %arg5[%c0_538, %c0_539, %c0_540] : memref<2x2x32xf32, #tpu.memory_space<vmem>>, vector<1x2x32xf32>
    %1986 = vector.shape_cast %1985 : vector<1x2x32xf32> to vector<2x32xf32>
    %c1_541 = arith.constant 1 : index
    %c0_542 = arith.constant 0 : index
    %c0_543 = arith.constant 0 : index
    %1987 = vector.load %arg4[%c1_541, %c0_542, %c0_543] : memref<2x2x32xf32, #tpu.memory_space<vmem>>, vector<1x2x32xf32>
    %1988 = vector.shape_cast %1987 : vector<1x2x32xf32> to vector<2x32xf32>
    %c1_544 = arith.constant 1 : index
    %c0_545 = arith.constant 0 : index
    %c0_546 = arith.constant 0 : index
    %1989 = vector.load %arg5[%c1_544, %c0_545, %c0_546] : memref<2x2x32xf32, #tpu.memory_space<vmem>>, vector<1x2x32xf32>
    %1990 = vector.shape_cast %1989 : vector<1x2x32xf32> to vector<2x32xf32>
    %c0_547 = arith.constant 0 : index
    %c0_548 = arith.constant 0 : index
    %1991 = vector.load %arg41[%c0_547, %c0_548] : memref<12x32xf32, #tpu.memory_space<vmem>>, vector<2x32xf32>
    %cst_549 = arith.constant dense<0.000000e+00> : vector<2x128xf32>
    %1992 = tpu.matmul %1991, %1977, %cst_549 {dimension_numbers = #tpu.dot_dimension_numbers<[1], [0], [0], [1], [0, 0, 1, 1], [], []>} : vector<2x32xf32>, vector<32x128xf32>, vector<2x128xf32> -> vector<2x128xf32>
    %cst_550 = arith.constant dense<0.000000e+00> : vector<2x128xf32>
    %1993 = tpu.matmul %1984, %1978, %cst_550 {dimension_numbers = #tpu.dot_dimension_numbers<[1], [0], [0], [1], [0, 0, 1, 1], [], []>} : vector<2x32xf32>, vector<32x128xf32>, vector<2x128xf32> -> vector<2x128xf32>
    %1994 = arith.addf %1992, %1993 : vector<2x128xf32>
    %1995 = vector.broadcast %1979 : vector<1x128xf32> to vector<2x128xf32>
    %1996 = arith.addf %1994, %1995 : vector<2x128xf32>
    %1997 = vector.extract_strided_slice %1996 {offsets = [0, 0], sizes = [2, 32], strides = [1, 1]} : vector<2x128xf32> to vector<2x32xf32>
    %1998 = arith.negf %1997 : vector<2x32xf32>
    %1999 = math.exp %1998 : vector<2x32xf32>
    %cst_551 = arith.constant 1.000000e+00 : f32
    %2000 = vector.broadcast %cst_551 : f32 to vector<2x32xf32>
    %2001 = arith.addf %2000, %1999 : vector<2x32xf32>
    %2002 = arith.divf %2000, %2001 : vector<2x32xf32>
    %2003 = vector.extract_strided_slice %1996 {offsets = [0, 32], sizes = [2, 32], strides = [1, 1]} : vector<2x128xf32> to vector<2x32xf32>
    %2004 = arith.negf %2003 : vector<2x32xf32>
    %2005 = math.exp %2004 : vector<2x32xf32>
    %cst_552 = arith.constant 1.000000e+00 : f32
    %2006 = vector.broadcast %cst_552 : f32 to vector<2x32xf32>
    %2007 = arith.addf %2006, %2005 : vector<2x32xf32>
    %2008 = arith.divf %2006, %2007 : vector<2x32xf32>
    %2009 = vector.extract_strided_slice %1996 {offsets = [0, 64], sizes = [2, 32], strides = [1, 1]} : vector<2x128xf32> to vector<2x32xf32>
    %2010 = math.tanh %2009 : vector<2x32xf32>
    %2011 = vector.extract_strided_slice %1996 {offsets = [0, 96], sizes = [2, 32], strides = [1, 1]} : vector<2x128xf32> to vector<2x32xf32>
    %2012 = arith.negf %2011 : vector<2x32xf32>
    %2013 = math.exp %2012 : vector<2x32xf32>
    %cst_553 = arith.constant 1.000000e+00 : f32
    %2014 = vector.broadcast %cst_553 : f32 to vector<2x32xf32>
    %2015 = arith.addf %2014, %2013 : vector<2x32xf32>
    %2016 = arith.divf %2014, %2015 : vector<2x32xf32>
    %2017 = arith.mulf %2008, %1986 : vector<2x32xf32>
    %2018 = arith.mulf %2002, %2010 : vector<2x32xf32>
    %2019 = arith.addf %2017, %2018 : vector<2x32xf32>
    %2020 = math.tanh %2019 : vector<2x32xf32>
    %2021 = arith.mulf %2016, %2020 : vector<2x32xf32>
    %cst_554 = arith.constant dense<0.000000e+00> : vector<2x128xf32>
    %2022 = tpu.matmul %2021, %1980, %cst_554 {dimension_numbers = #tpu.dot_dimension_numbers<[1], [0], [0], [1], [0, 0, 1, 1], [], []>} : vector<2x32xf32>, vector<32x128xf32>, vector<2x128xf32> -> vector<2x128xf32>
    %cst_555 = arith.constant dense<0.000000e+00> : vector<2x128xf32>
    %2023 = tpu.matmul %1988, %1981, %cst_555 {dimension_numbers = #tpu.dot_dimension_numbers<[1], [0], [0], [1], [0, 0, 1, 1], [], []>} : vector<2x32xf32>, vector<32x128xf32>, vector<2x128xf32> -> vector<2x128xf32>
    %2024 = arith.addf %2022, %2023 : vector<2x128xf32>
    %2025 = vector.broadcast %1982 : vector<1x128xf32> to vector<2x128xf32>
    %2026 = arith.addf %2024, %2025 : vector<2x128xf32>
    %2027 = vector.extract_strided_slice %2026 {offsets = [0, 0], sizes = [2, 32], strides = [1, 1]} : vector<2x128xf32> to vector<2x32xf32>
    %2028 = arith.negf %2027 : vector<2x32xf32>
    %2029 = math.exp %2028 : vector<2x32xf32>
    %cst_556 = arith.constant 1.000000e+00 : f32
    %2030 = vector.broadcast %cst_556 : f32 to vector<2x32xf32>
    %2031 = arith.addf %2030, %2029 : vector<2x32xf32>
    %2032 = arith.divf %2030, %2031 : vector<2x32xf32>
    %2033 = vector.extract_strided_slice %2026 {offsets = [0, 32], sizes = [2, 32], strides = [1, 1]} : vector<2x128xf32> to vector<2x32xf32>
    %2034 = arith.negf %2033 : vector<2x32xf32>
    %2035 = math.exp %2034 : vector<2x32xf32>
    %cst_557 = arith.constant 1.000000e+00 : f32
    %2036 = vector.broadcast %cst_557 : f32 to vector<2x32xf32>
    %2037 = arith.addf %2036, %2035 : vector<2x32xf32>
    %2038 = arith.divf %2036, %2037 : vector<2x32xf32>
    %2039 = vector.extract_strided_slice %2026 {offsets = [0, 64], sizes = [2, 32], strides = [1, 1]} : vector<2x128xf32> to vector<2x32xf32>
    %2040 = math.tanh %2039 : vector<2x32xf32>
    %2041 = vector.extract_strided_slice %2026 {offsets = [0, 96], sizes = [2, 32], strides = [1, 1]} : vector<2x128xf32> to vector<2x32xf32>
    %2042 = arith.negf %2041 : vector<2x32xf32>
    %2043 = math.exp %2042 : vector<2x32xf32>
    %cst_558 = arith.constant 1.000000e+00 : f32
    %2044 = vector.broadcast %cst_558 : f32 to vector<2x32xf32>
    %2045 = arith.addf %2044, %2043 : vector<2x32xf32>
    %2046 = arith.divf %2044, %2045 : vector<2x32xf32>
    %2047 = arith.mulf %2038, %1990 : vector<2x32xf32>
    %2048 = arith.mulf %2032, %2040 : vector<2x32xf32>
    %2049 = arith.addf %2047, %2048 : vector<2x32xf32>
    %2050 = math.tanh %2049 : vector<2x32xf32>
    %2051 = arith.mulf %2046, %2050 : vector<2x32xf32>
    %c0_559 = arith.constant 0 : index
    %c0_560 = arith.constant 0 : index
    %2052 = vector.load %arg42[%c0_559, %c0_560] : memref<12x32xf32, #tpu.memory_space<vmem>>, vector<2x32xf32>
    tpu.vector_store %arg42[%c0_559, %c0_560], %2051 {strides = array<i32>} : memref<12x32xf32, #tpu.memory_space<vmem>>, vector<2x32xf32>,
    %c2 = arith.constant 2 : index
    %c0_561 = arith.constant 0 : index
    %2053 = vector.load %arg41[%c2, %c0_561] : memref<12x32xf32, #tpu.memory_space<vmem>>, vector<2x32xf32>
    %cst_562 = arith.constant dense<0.000000e+00> : vector<2x128xf32>
    %2054 = tpu.matmul %2053, %1977, %cst_562 {dimension_numbers = #tpu.dot_dimension_numbers<[1], [0], [0], [1], [0, 0, 1, 1], [], []>} : vector<2x32xf32>, vector<32x128xf32>, vector<2x128xf32> -> vector<2x128xf32>
    %cst_563 = arith.constant dense<0.000000e+00> : vector<2x128xf32>
    %2055 = tpu.matmul %2021, %1978, %cst_563 {dimension_numbers = #tpu.dot_dimension_numbers<[1], [0], [0], [1], [0, 0, 1, 1], [], []>} : vector<2x32xf32>, vector<32x128xf32>, vector<2x128xf32> -> vector<2x128xf32>
    %2056 = arith.addf %2054, %2055 : vector<2x128xf32>
    %2057 = vector.broadcast %1979 : vector<1x128xf32> to vector<2x128xf32>
    %2058 = arith.addf %2056, %2057 : vector<2x128xf32>
    %2059 = vector.extract_strided_slice %2058 {offsets = [0, 0], sizes = [2, 32], strides = [1, 1]} : vector<2x128xf32> to vector<2x32xf32>
    %2060 = arith.negf %2059 : vector<2x32xf32>
    %2061 = math.exp %2060 : vector<2x32xf32>
    %cst_564 = arith.constant 1.000000e+00 : f32
    %2062 = vector.broadcast %cst_564 : f32 to vector<2x32xf32>
    %2063 = arith.addf %2062, %2061 : vector<2x32xf32>
    %2064 = arith.divf %2062, %2063 : vector<2x32xf32>
    %2065 = vector.extract_strided_slice %2058 {offsets = [0, 32], sizes = [2, 32], strides = [1, 1]} : vector<2x128xf32> to vector<2x32xf32>
    %2066 = arith.negf %2065 : vector<2x32xf32>
    %2067 = math.exp %2066 : vector<2x32xf32>
    %cst_565 = arith.constant 1.000000e+00 : f32
    %2068 = vector.broadcast %cst_565 : f32 to vector<2x32xf32>
    %2069 = arith.addf %2068, %2067 : vector<2x32xf32>
    %2070 = arith.divf %2068, %2069 : vector<2x32xf32>
    %2071 = vector.extract_strided_slice %2058 {offsets = [0, 64], sizes = [2, 32], strides = [1, 1]} : vector<2x128xf32> to vector<2x32xf32>
    %2072 = math.tanh %2071 : vector<2x32xf32>
    %2073 = vector.extract_strided_slice %2058 {offsets = [0, 96], sizes = [2, 32], strides = [1, 1]} : vector<2x128xf32> to vector<2x32xf32>
    %2074 = arith.negf %2073 : vector<2x32xf32>
    %2075 = math.exp %2074 : vector<2x32xf32>
    %cst_566 = arith.constant 1.000000e+00 : f32
    %2076 = vector.broadcast %cst_566 : f32 to vector<2x32xf32>
    %2077 = arith.addf %2076, %2075 : vector<2x32xf32>
    %2078 = arith.divf %2076, %2077 : vector<2x32xf32>
    %2079 = arith.mulf %2070, %2019 : vector<2x32xf32>
    %2080 = arith.mulf %2064, %2072 : vector<2x32xf32>
    %2081 = arith.addf %2079, %2080 : vector<2x32xf32>
    %2082 = math.tanh %2081 : vector<2x32xf32>
    %2083 = arith.mulf %2078, %2082 : vector<2x32xf32>
    %cst_567 = arith.constant dense<0.000000e+00> : vector<2x128xf32>
    %2084 = tpu.matmul %2083, %1980, %cst_567 {dimension_numbers = #tpu.dot_dimension_numbers<[1], [0], [0], [1], [0, 0, 1, 1], [], []>} : vector<2x32xf32>, vector<32x128xf32>, vector<2x128xf32> -> vector<2x128xf32>
    %cst_568 = arith.constant dense<0.000000e+00> : vector<2x128xf32>
    %2085 = tpu.matmul %2051, %1981, %cst_568 {dimension_numbers = #tpu.dot_dimension_numbers<[1], [0], [0], [1], [0, 0, 1, 1], [], []>} : vector<2x32xf32>, vector<32x128xf32>, vector<2x128xf32> -> vector<2x128xf32>
    %2086 = arith.addf %2084, %2085 : vector<2x128xf32>
    %2087 = vector.broadcast %1982 : vector<1x128xf32> to vector<2x128xf32>
    %2088 = arith.addf %2086, %2087 : vector<2x128xf32>
    %2089 = vector.extract_strided_slice %2088 {offsets = [0, 0], sizes = [2, 32], strides = [1, 1]} : vector<2x128xf32> to vector<2x32xf32>
    %2090 = arith.negf %2089 : vector<2x32xf32>
    %2091 = math.exp %2090 : vector<2x32xf32>
    %cst_569 = arith.constant 1.000000e+00 : f32
    %2092 = vector.broadcast %cst_569 : f32 to vector<2x32xf32>
    %2093 = arith.addf %2092, %2091 : vector<2x32xf32>
    %2094 = arith.divf %2092, %2093 : vector<2x32xf32>
    %2095 = vector.extract_strided_slice %2088 {offsets = [0, 32], sizes = [2, 32], strides = [1, 1]} : vector<2x128xf32> to vector<2x32xf32>
    %2096 = arith.negf %2095 : vector<2x32xf32>
    %2097 = math.exp %2096 : vector<2x32xf32>
    %cst_570 = arith.constant 1.000000e+00 : f32
    %2098 = vector.broadcast %cst_570 : f32 to vector<2x32xf32>
    %2099 = arith.addf %2098, %2097 : vector<2x32xf32>
    %2100 = arith.divf %2098, %2099 : vector<2x32xf32>
    %2101 = vector.extract_strided_slice %2088 {offsets = [0, 64], sizes = [2, 32], strides = [1, 1]} : vector<2x128xf32> to vector<2x32xf32>
    %2102 = math.tanh %2101 : vector<2x32xf32>
    %2103 = vector.extract_strided_slice %2088 {offsets = [0, 96], sizes = [2, 32], strides = [1, 1]} : vector<2x128xf32> to vector<2x32xf32>
    %2104 = arith.negf %2103 : vector<2x32xf32>
    %2105 = math.exp %2104 : vector<2x32xf32>
    %cst_571 = arith.constant 1.000000e+00 : f32
    %2106 = vector.broadcast %cst_571 : f32 to vector<2x32xf32>
    %2107 = arith.addf %2106, %2105 : vector<2x32xf32>
    %2108 = arith.divf %2106, %2107 : vector<2x32xf32>
    %2109 = arith.mulf %2100, %2049 : vector<2x32xf32>
    %2110 = arith.mulf %2094, %2102 : vector<2x32xf32>
    %2111 = arith.addf %2109, %2110 : vector<2x32xf32>
    %2112 = math.tanh %2111 : vector<2x32xf32>
    %2113 = arith.mulf %2108, %2112 : vector<2x32xf32>
    %c2_572 = arith.constant 2 : index
    %c0_573 = arith.constant 0 : index
    %2114 = vector.load %arg42[%c2_572, %c0_573] : memref<12x32xf32, #tpu.memory_space<vmem>>, vector<2x32xf32>
    tpu.vector_store %arg42[%c2_572, %c0_573], %2113 {strides = array<i32>} : memref<12x32xf32, #tpu.memory_space<vmem>>, vector<2x32xf32>,
    %c4 = arith.constant 4 : index
    %c0_574 = arith.constant 0 : index
    %2115 = vector.load %arg41[%c4, %c0_574] : memref<12x32xf32, #tpu.memory_space<vmem>>, vector<2x32xf32>
    %cst_575 = arith.constant dense<0.000000e+00> : vector<2x128xf32>
    %2116 = tpu.matmul %2115, %1977, %cst_575 {dimension_numbers = #tpu.dot_dimension_numbers<[1], [0], [0], [1], [0, 0, 1, 1], [], []>} : vector<2x32xf32>, vector<32x128xf32>, vector<2x128xf32> -> vector<2x128xf32>
    %cst_576 = arith.constant dense<0.000000e+00> : vector<2x128xf32>
    %2117 = tpu.matmul %2083, %1978, %cst_576 {dimension_numbers = #tpu.dot_dimension_numbers<[1], [0], [0], [1], [0, 0, 1, 1], [], []>} : vector<2x32xf32>, vector<32x128xf32>, vector<2x128xf32> -> vector<2x128xf32>
    %2118 = arith.addf %2116, %2117 : vector<2x128xf32>
    %2119 = vector.broadcast %1979 : vector<1x128xf32> to vector<2x128xf32>
    %2120 = arith.addf %2118, %2119 : vector<2x128xf32>
    %2121 = vector.extract_strided_slice %2120 {offsets = [0, 0], sizes = [2, 32], strides = [1, 1]} : vector<2x128xf32> to vector<2x32xf32>
    %2122 = arith.negf %2121 : vector<2x32xf32>
    %2123 = math.exp %2122 : vector<2x32xf32>
    %cst_577 = arith.constant 1.000000e+00 : f32
    %2124 = vector.broadcast %cst_577 : f32 to vector<2x32xf32>
    %2125 = arith.addf %2124, %2123 : vector<2x32xf32>
    %2126 = arith.divf %2124, %2125 : vector<2x32xf32>
    %2127 = vector.extract_strided_slice %2120 {offsets = [0, 32], sizes = [2, 32], strides = [1, 1]} : vector<2x128xf32> to vector<2x32xf32>
    %2128 = arith.negf %2127 : vector<2x32xf32>
    %2129 = math.exp %2128 : vector<2x32xf32>
    %cst_578 = arith.constant 1.000000e+00 : f32
    %2130 = vector.broadcast %cst_578 : f32 to vector<2x32xf32>
    %2131 = arith.addf %2130, %2129 : vector<2x32xf32>
    %2132 = arith.divf %2130, %2131 : vector<2x32xf32>
    %2133 = vector.extract_strided_slice %2120 {offsets = [0, 64], sizes = [2, 32], strides = [1, 1]} : vector<2x128xf32> to vector<2x32xf32>
    %2134 = math.tanh %2133 : vector<2x32xf32>
    %2135 = vector.extract_strided_slice %2120 {offsets = [0, 96], sizes = [2, 32], strides = [1, 1]} : vector<2x128xf32> to vector<2x32xf32>
    %2136 = arith.negf %2135 : vector<2x32xf32>
    %2137 = math.exp %2136 : vector<2x32xf32>
    %cst_579 = arith.constant 1.000000e+00 : f32
    %2138 = vector.broadcast %cst_579 : f32 to vector<2x32xf32>
    %2139 = arith.addf %2138, %2137 : vector<2x32xf32>
    %2140 = arith.divf %2138, %2139 : vector<2x32xf32>
    %2141 = arith.mulf %2132, %2081 : vector<2x32xf32>
    %2142 = arith.mulf %2126, %2134 : vector<2x32xf32>
    %2143 = arith.addf %2141, %2142 : vector<2x32xf32>
    %2144 = math.tanh %2143 : vector<2x32xf32>
    %2145 = arith.mulf %2140, %2144 : vector<2x32xf32>
    %cst_580 = arith.constant dense<0.000000e+00> : vector<2x128xf32>
    %2146 = tpu.matmul %2145, %1980, %cst_580 {dimension_numbers = #tpu.dot_dimension_numbers<[1], [0], [0], [1], [0, 0, 1, 1], [], []>} : vector<2x32xf32>, vector<32x128xf32>, vector<2x128xf32> -> vector<2x128xf32>
    %cst_581 = arith.constant dense<0.000000e+00> : vector<2x128xf32>
    %2147 = tpu.matmul %2113, %1981, %cst_581 {dimension_numbers = #tpu.dot_dimension_numbers<[1], [0], [0], [1], [0, 0, 1, 1], [], []>} : vector<2x32xf32>, vector<32x128xf32>, vector<2x128xf32> -> vector<2x128xf32>
    %2148 = arith.addf %2146, %2147 : vector<2x128xf32>
    %2149 = vector.broadcast %1982 : vector<1x128xf32> to vector<2x128xf32>
    %2150 = arith.addf %2148, %2149 : vector<2x128xf32>
    %2151 = vector.extract_strided_slice %2150 {offsets = [0, 0], sizes = [2, 32], strides = [1, 1]} : vector<2x128xf32> to vector<2x32xf32>
    %2152 = arith.negf %2151 : vector<2x32xf32>
    %2153 = math.exp %2152 : vector<2x32xf32>
    %cst_582 = arith.constant 1.000000e+00 : f32
    %2154 = vector.broadcast %cst_582 : f32 to vector<2x32xf32>
    %2155 = arith.addf %2154, %2153 : vector<2x32xf32>
    %2156 = arith.divf %2154, %2155 : vector<2x32xf32>
    %2157 = vector.extract_strided_slice %2150 {offsets = [0, 32], sizes = [2, 32], strides = [1, 1]} : vector<2x128xf32> to vector<2x32xf32>
    %2158 = arith.negf %2157 : vector<2x32xf32>
    %2159 = math.exp %2158 : vector<2x32xf32>
    %cst_583 = arith.constant 1.000000e+00 : f32
    %2160 = vector.broadcast %cst_583 : f32 to vector<2x32xf32>
    %2161 = arith.addf %2160, %2159 : vector<2x32xf32>
    %2162 = arith.divf %2160, %2161 : vector<2x32xf32>
    %2163 = vector.extract_strided_slice %2150 {offsets = [0, 64], sizes = [2, 32], strides = [1, 1]} : vector<2x128xf32> to vector<2x32xf32>
    %2164 = math.tanh %2163 : vector<2x32xf32>
    %2165 = vector.extract_strided_slice %2150 {offsets = [0, 96], sizes = [2, 32], strides = [1, 1]} : vector<2x128xf32> to vector<2x32xf32>
    %2166 = arith.negf %2165 : vector<2x32xf32>
    %2167 = math.exp %2166 : vector<2x32xf32>
    %cst_584 = arith.constant 1.000000e+00 : f32
    %2168 = vector.broadcast %cst_584 : f32 to vector<2x32xf32>
    %2169 = arith.addf %2168, %2167 : vector<2x32xf32>
    %2170 = arith.divf %2168, %2169 : vector<2x32xf32>
    %2171 = arith.mulf %2162, %2111 : vector<2x32xf32>
    %2172 = arith.mulf %2156, %2164 : vector<2x32xf32>
    %2173 = arith.addf %2171, %2172 : vector<2x32xf32>
    %2174 = math.tanh %2173 : vector<2x32xf32>
    %2175 = arith.mulf %2170, %2174 : vector<2x32xf32>
    %c4_585 = arith.constant 4 : index
    %c0_586 = arith.constant 0 : index
    %2176 = vector.load %arg42[%c4_585, %c0_586] : memref<12x32xf32, #tpu.memory_space<vmem>>, vector<2x32xf32>
    tpu.vector_store %arg42[%c4_585, %c0_586], %2175 {strides = array<i32>} : memref<12x32xf32, #tpu.memory_space<vmem>>, vector<2x32xf32>,
    %c6 = arith.constant 6 : index
    %c0_587 = arith.constant 0 : index
    %2177 = vector.load %arg41[%c6, %c0_587] : memref<12x32xf32, #tpu.memory_space<vmem>>, vector<2x32xf32>
    %cst_588 = arith.constant dense<0.000000e+00> : vector<2x128xf32>
    %2178 = tpu.matmul %2177, %1977, %cst_588 {dimension_numbers = #tpu.dot_dimension_numbers<[1], [0], [0], [1], [0, 0, 1, 1], [], []>} : vector<2x32xf32>, vector<32x128xf32>, vector<2x128xf32> -> vector<2x128xf32>
    %cst_589 = arith.constant dense<0.000000e+00> : vector<2x128xf32>
    %2179 = tpu.matmul %2145, %1978, %cst_589 {dimension_numbers = #tpu.dot_dimension_numbers<[1], [0], [0], [1], [0, 0, 1, 1], [], []>} : vector<2x32xf32>, vector<32x128xf32>, vector<2x128xf32> -> vector<2x128xf32>
    %2180 = arith.addf %2178, %2179 : vector<2x128xf32>
    %2181 = vector.broadcast %1979 : vector<1x128xf32> to vector<2x128xf32>
    %2182 = arith.addf %2180, %2181 : vector<2x128xf32>
    %2183 = vector.extract_strided_slice %2182 {offsets = [0, 0], sizes = [2, 32], strides = [1, 1]} : vector<2x128xf32> to vector<2x32xf32>
    %2184 = arith.negf %2183 : vector<2x32xf32>
    %2185 = math.exp %2184 : vector<2x32xf32>
    %cst_590 = arith.constant 1.000000e+00 : f32
    %2186 = vector.broadcast %cst_590 : f32 to vector<2x32xf32>
    %2187 = arith.addf %2186, %2185 : vector<2x32xf32>
    %2188 = arith.divf %2186, %2187 : vector<2x32xf32>
    %2189 = vector.extract_strided_slice %2182 {offsets = [0, 32], sizes = [2, 32], strides = [1, 1]} : vector<2x128xf32> to vector<2x32xf32>
    %2190 = arith.negf %2189 : vector<2x32xf32>
    %2191 = math.exp %2190 : vector<2x32xf32>
    %cst_591 = arith.constant 1.000000e+00 : f32
    %2192 = vector.broadcast %cst_591 : f32 to vector<2x32xf32>
    %2193 = arith.addf %2192, %2191 : vector<2x32xf32>
    %2194 = arith.divf %2192, %2193 : vector<2x32xf32>
    %2195 = vector.extract_strided_slice %2182 {offsets = [0, 64], sizes = [2, 32], strides = [1, 1]} : vector<2x128xf32> to vector<2x32xf32>
    %2196 = math.tanh %2195 : vector<2x32xf32>
    %2197 = vector.extract_strided_slice %2182 {offsets = [0, 96], sizes = [2, 32], strides = [1, 1]} : vector<2x128xf32> to vector<2x32xf32>
    %2198 = arith.negf %2197 : vector<2x32xf32>
    %2199 = math.exp %2198 : vector<2x32xf32>
    %cst_592 = arith.constant 1.000000e+00 : f32
    %2200 = vector.broadcast %cst_592 : f32 to vector<2x32xf32>
    %2201 = arith.addf %2200, %2199 : vector<2x32xf32>
    %2202 = arith.divf %2200, %2201 : vector<2x32xf32>
    %2203 = arith.mulf %2194, %2143 : vector<2x32xf32>
    %2204 = arith.mulf %2188, %2196 : vector<2x32xf32>
    %2205 = arith.addf %2203, %2204 : vector<2x32xf32>
    %2206 = math.tanh %2205 : vector<2x32xf32>
    %2207 = arith.mulf %2202, %2206 : vector<2x32xf32>
    %cst_593 = arith.constant dense<0.000000e+00> : vector<2x128xf32>
    %2208 = tpu.matmul %2207, %1980, %cst_593 {dimension_numbers = #tpu.dot_dimension_numbers<[1], [0], [0], [1], [0, 0, 1, 1], [], []>} : vector<2x32xf32>, vector<32x128xf32>, vector<2x128xf32> -> vector<2x128xf32>
    %cst_594 = arith.constant dense<0.000000e+00> : vector<2x128xf32>
    %2209 = tpu.matmul %2175, %1981, %cst_594 {dimension_numbers = #tpu.dot_dimension_numbers<[1], [0], [0], [1], [0, 0, 1, 1], [], []>} : vector<2x32xf32>, vector<32x128xf32>, vector<2x128xf32> -> vector<2x128xf32>
    %2210 = arith.addf %2208, %2209 : vector<2x128xf32>
    %2211 = vector.broadcast %1982 : vector<1x128xf32> to vector<2x128xf32>
    %2212 = arith.addf %2210, %2211 : vector<2x128xf32>
    %2213 = vector.extract_strided_slice %2212 {offsets = [0, 0], sizes = [2, 32], strides = [1, 1]} : vector<2x128xf32> to vector<2x32xf32>
    %2214 = arith.negf %2213 : vector<2x32xf32>
    %2215 = math.exp %2214 : vector<2x32xf32>
    %cst_595 = arith.constant 1.000000e+00 : f32
    %2216 = vector.broadcast %cst_595 : f32 to vector<2x32xf32>
    %2217 = arith.addf %2216, %2215 : vector<2x32xf32>
    %2218 = arith.divf %2216, %2217 : vector<2x32xf32>
    %2219 = vector.extract_strided_slice %2212 {offsets = [0, 32], sizes = [2, 32], strides = [1, 1]} : vector<2x128xf32> to vector<2x32xf32>
    %2220 = arith.negf %2219 : vector<2x32xf32>
    %2221 = math.exp %2220 : vector<2x32xf32>
    %cst_596 = arith.constant 1.000000e+00 : f32
    %2222 = vector.broadcast %cst_596 : f32 to vector<2x32xf32>
    %2223 = arith.addf %2222, %2221 : vector<2x32xf32>
    %2224 = arith.divf %2222, %2223 : vector<2x32xf32>
    %2225 = vector.extract_strided_slice %2212 {offsets = [0, 64], sizes = [2, 32], strides = [1, 1]} : vector<2x128xf32> to vector<2x32xf32>
    %2226 = math.tanh %2225 : vector<2x32xf32>
    %2227 = vector.extract_strided_slice %2212 {offsets = [0, 96], sizes = [2, 32], strides = [1, 1]} : vector<2x128xf32> to vector<2x32xf32>
    %2228 = arith.negf %2227 : vector<2x32xf32>
    %2229 = math.exp %2228 : vector<2x32xf32>
    %cst_597 = arith.constant 1.000000e+00 : f32
    %2230 = vector.broadcast %cst_597 : f32 to vector<2x32xf32>
    %2231 = arith.addf %2230, %2229 : vector<2x32xf32>
    %2232 = arith.divf %2230, %2231 : vector<2x32xf32>
    %2233 = arith.mulf %2224, %2173 : vector<2x32xf32>
    %2234 = arith.mulf %2218, %2226 : vector<2x32xf32>
    %2235 = arith.addf %2233, %2234 : vector<2x32xf32>
    %2236 = math.tanh %2235 : vector<2x32xf32>
    %2237 = arith.mulf %2232, %2236 : vector<2x32xf32>
    %c6_598 = arith.constant 6 : index
    %c0_599 = arith.constant 0 : index
    %2238 = vector.load %arg42[%c6_598, %c0_599] : memref<12x32xf32, #tpu.memory_space<vmem>>, vector<2x32xf32>
    tpu.vector_store %arg42[%c6_598, %c0_599], %2237 {strides = array<i32>} : memref<12x32xf32, #tpu.memory_space<vmem>>, vector<2x32xf32>,
    %c8 = arith.constant 8 : index
    %c0_600 = arith.constant 0 : index
    %2239 = vector.load %arg41[%c8, %c0_600] : memref<12x32xf32, #tpu.memory_space<vmem>>, vector<2x32xf32>
    %cst_601 = arith.constant dense<0.000000e+00> : vector<2x128xf32>
    %2240 = tpu.matmul %2239, %1977, %cst_601 {dimension_numbers = #tpu.dot_dimension_numbers<[1], [0], [0], [1], [0, 0, 1, 1], [], []>} : vector<2x32xf32>, vector<32x128xf32>, vector<2x128xf32> -> vector<2x128xf32>
    %cst_602 = arith.constant dense<0.000000e+00> : vector<2x128xf32>
    %2241 = tpu.matmul %2207, %1978, %cst_602 {dimension_numbers = #tpu.dot_dimension_numbers<[1], [0], [0], [1], [0, 0, 1, 1], [], []>} : vector<2x32xf32>, vector<32x128xf32>, vector<2x128xf32> -> vector<2x128xf32>
    %2242 = arith.addf %2240, %2241 : vector<2x128xf32>
    %2243 = vector.broadcast %1979 : vector<1x128xf32> to vector<2x128xf32>
    %2244 = arith.addf %2242, %2243 : vector<2x128xf32>
    %2245 = vector.extract_strided_slice %2244 {offsets = [0, 0], sizes = [2, 32], strides = [1, 1]} : vector<2x128xf32> to vector<2x32xf32>
    %2246 = arith.negf %2245 : vector<2x32xf32>
    %2247 = math.exp %2246 : vector<2x32xf32>
    %cst_603 = arith.constant 1.000000e+00 : f32
    %2248 = vector.broadcast %cst_603 : f32 to vector<2x32xf32>
    %2249 = arith.addf %2248, %2247 : vector<2x32xf32>
    %2250 = arith.divf %2248, %2249 : vector<2x32xf32>
    %2251 = vector.extract_strided_slice %2244 {offsets = [0, 32], sizes = [2, 32], strides = [1, 1]} : vector<2x128xf32> to vector<2x32xf32>
    %2252 = arith.negf %2251 : vector<2x32xf32>
    %2253 = math.exp %2252 : vector<2x32xf32>
    %cst_604 = arith.constant 1.000000e+00 : f32
    %2254 = vector.broadcast %cst_604 : f32 to vector<2x32xf32>
    %2255 = arith.addf %2254, %2253 : vector<2x32xf32>
    %2256 = arith.divf %2254, %2255 : vector<2x32xf32>
    %2257 = vector.extract_strided_slice %2244 {offsets = [0, 64], sizes = [2, 32], strides = [1, 1]} : vector<2x128xf32> to vector<2x32xf32>
    %2258 = math.tanh %2257 : vector<2x32xf32>
    %2259 = vector.extract_strided_slice %2244 {offsets = [0, 96], sizes = [2, 32], strides = [1, 1]} : vector<2x128xf32> to vector<2x32xf32>
    %2260 = arith.negf %2259 : vector<2x32xf32>
    %2261 = math.exp %2260 : vector<2x32xf32>
    %cst_605 = arith.constant 1.000000e+00 : f32
    %2262 = vector.broadcast %cst_605 : f32 to vector<2x32xf32>
    %2263 = arith.addf %2262, %2261 : vector<2x32xf32>
    %2264 = arith.divf %2262, %2263 : vector<2x32xf32>
    %2265 = arith.mulf %2256, %2205 : vector<2x32xf32>
    %2266 = arith.mulf %2250, %2258 : vector<2x32xf32>
    %2267 = arith.addf %2265, %2266 : vector<2x32xf32>
    %2268 = math.tanh %2267 : vector<2x32xf32>
    %2269 = arith.mulf %2264, %2268 : vector<2x32xf32>
    %cst_606 = arith.constant dense<0.000000e+00> : vector<2x128xf32>
    %2270 = tpu.matmul %2269, %1980, %cst_606 {dimension_numbers = #tpu.dot_dimension_numbers<[1], [0], [0], [1], [0, 0, 1, 1], [], []>} : vector<2x32xf32>, vector<32x128xf32>, vector<2x128xf32> -> vector<2x128xf32>
    %cst_607 = arith.constant dense<0.000000e+00> : vector<2x128xf32>
    %2271 = tpu.matmul %2237, %1981, %cst_607 {dimension_numbers = #tpu.dot_dimension_numbers<[1], [0], [0], [1], [0, 0, 1, 1], [], []>} : vector<2x32xf32>, vector<32x128xf32>, vector<2x128xf32> -> vector<2x128xf32>
    %2272 = arith.addf %2270, %2271 : vector<2x128xf32>
    %2273 = vector.broadcast %1982 : vector<1x128xf32> to vector<2x128xf32>
    %2274 = arith.addf %2272, %2273 : vector<2x128xf32>
    %2275 = vector.extract_strided_slice %2274 {offsets = [0, 0], sizes = [2, 32], strides = [1, 1]} : vector<2x128xf32> to vector<2x32xf32>
    %2276 = arith.negf %2275 : vector<2x32xf32>
    %2277 = math.exp %2276 : vector<2x32xf32>
    %cst_608 = arith.constant 1.000000e+00 : f32
    %2278 = vector.broadcast %cst_608 : f32 to vector<2x32xf32>
    %2279 = arith.addf %2278, %2277 : vector<2x32xf32>
    %2280 = arith.divf %2278, %2279 : vector<2x32xf32>
    %2281 = vector.extract_strided_slice %2274 {offsets = [0, 32], sizes = [2, 32], strides = [1, 1]} : vector<2x128xf32> to vector<2x32xf32>
    %2282 = arith.negf %2281 : vector<2x32xf32>
    %2283 = math.exp %2282 : vector<2x32xf32>
    %cst_609 = arith.constant 1.000000e+00 : f32
    %2284 = vector.broadcast %cst_609 : f32 to vector<2x32xf32>
    %2285 = arith.addf %2284, %2283 : vector<2x32xf32>
    %2286 = arith.divf %2284, %2285 : vector<2x32xf32>
    %2287 = vector.extract_strided_slice %2274 {offsets = [0, 64], sizes = [2, 32], strides = [1, 1]} : vector<2x128xf32> to vector<2x32xf32>
    %2288 = math.tanh %2287 : vector<2x32xf32>
    %2289 = vector.extract_strided_slice %2274 {offsets = [0, 96], sizes = [2, 32], strides = [1, 1]} : vector<2x128xf32> to vector<2x32xf32>
    %2290 = arith.negf %2289 : vector<2x32xf32>
    %2291 = math.exp %2290 : vector<2x32xf32>
    %cst_610 = arith.constant 1.000000e+00 : f32
    %2292 = vector.broadcast %cst_610 : f32 to vector<2x32xf32>
    %2293 = arith.addf %2292, %2291 : vector<2x32xf32>
    %2294 = arith.divf %2292, %2293 : vector<2x32xf32>
    %2295 = arith.mulf %2286, %2235 : vector<2x32xf32>
    %2296 = arith.mulf %2280, %2288 : vector<2x32xf32>
    %2297 = arith.addf %2295, %2296 : vector<2x32xf32>
    %2298 = math.tanh %2297 : vector<2x32xf32>
    %2299 = arith.mulf %2294, %2298 : vector<2x32xf32>
    %c8_611 = arith.constant 8 : index
    %c0_612 = arith.constant 0 : index
    %2300 = vector.load %arg42[%c8_611, %c0_612] : memref<12x32xf32, #tpu.memory_space<vmem>>, vector<2x32xf32>
    tpu.vector_store %arg42[%c8_611, %c0_612], %2299 {strides = array<i32>} : memref<12x32xf32, #tpu.memory_space<vmem>>, vector<2x32xf32>,
    %c10 = arith.constant 10 : index
    %c0_613 = arith.constant 0 : index
    %2301 = vector.load %arg41[%c10, %c0_613] : memref<12x32xf32, #tpu.memory_space<vmem>>, vector<2x32xf32>
    %cst_614 = arith.constant dense<0.000000e+00> : vector<2x128xf32>
    %2302 = tpu.matmul %2301, %1977, %cst_614 {dimension_numbers = #tpu.dot_dimension_numbers<[1], [0], [0], [1], [0, 0, 1, 1], [], []>} : vector<2x32xf32>, vector<32x128xf32>, vector<2x128xf32> -> vector<2x128xf32>
    %cst_615 = arith.constant dense<0.000000e+00> : vector<2x128xf32>
    %2303 = tpu.matmul %2269, %1978, %cst_615 {dimension_numbers = #tpu.dot_dimension_numbers<[1], [0], [0], [1], [0, 0, 1, 1], [], []>} : vector<2x32xf32>, vector<32x128xf32>, vector<2x128xf32> -> vector<2x128xf32>
    %2304 = arith.addf %2302, %2303 : vector<2x128xf32>
    %2305 = vector.broadcast %1979 : vector<1x128xf32> to vector<2x128xf32>
    %2306 = arith.addf %2304, %2305 : vector<2x128xf32>
    %2307 = vector.extract_strided_slice %2306 {offsets = [0, 0], sizes = [2, 32], strides = [1, 1]} : vector<2x128xf32> to vector<2x32xf32>
    %2308 = arith.negf %2307 : vector<2x32xf32>
    %2309 = math.exp %2308 : vector<2x32xf32>
    %cst_616 = arith.constant 1.000000e+00 : f32
    %2310 = vector.broadcast %cst_616 : f32 to vector<2x32xf32>
    %2311 = arith.addf %2310, %2309 : vector<2x32xf32>
    %2312 = arith.divf %2310, %2311 : vector<2x32xf32>
    %2313 = vector.extract_strided_slice %2306 {offsets = [0, 32], sizes = [2, 32], strides = [1, 1]} : vector<2x128xf32> to vector<2x32xf32>
    %2314 = arith.negf %2313 : vector<2x32xf32>
    %2315 = math.exp %2314 : vector<2x32xf32>
    %cst_617 = arith.constant 1.000000e+00 : f32
    %2316 = vector.broadcast %cst_617 : f32 to vector<2x32xf32>
    %2317 = arith.addf %2316, %2315 : vector<2x32xf32>
    %2318 = arith.divf %2316, %2317 : vector<2x32xf32>
    %2319 = vector.extract_strided_slice %2306 {offsets = [0, 64], sizes = [2, 32], strides = [1, 1]} : vector<2x128xf32> to vector<2x32xf32>
    %2320 = math.tanh %2319 : vector<2x32xf32>
    %2321 = vector.extract_strided_slice %2306 {offsets = [0, 96], sizes = [2, 32], strides = [1, 1]} : vector<2x128xf32> to vector<2x32xf32>
    %2322 = arith.negf %2321 : vector<2x32xf32>
    %2323 = math.exp %2322 : vector<2x32xf32>
    %cst_618 = arith.constant 1.000000e+00 : f32
    %2324 = vector.broadcast %cst_618 : f32 to vector<2x32xf32>
    %2325 = arith.addf %2324, %2323 : vector<2x32xf32>
    %2326 = arith.divf %2324, %2325 : vector<2x32xf32>
    %2327 = arith.mulf %2318, %2267 : vector<2x32xf32>
    %2328 = arith.mulf %2312, %2320 : vector<2x32xf32>
    %2329 = arith.addf %2327, %2328 : vector<2x32xf32>
    %2330 = math.tanh %2329 : vector<2x32xf32>
    %2331 = arith.mulf %2326, %2330 : vector<2x32xf32>
    %cst_619 = arith.constant dense<0.000000e+00> : vector<2x128xf32>
    %2332 = tpu.matmul %2331, %1980, %cst_619 {dimension_numbers = #tpu.dot_dimension_numbers<[1], [0], [0], [1], [0, 0, 1, 1], [], []>} : vector<2x32xf32>, vector<32x128xf32>, vector<2x128xf32> -> vector<2x128xf32>
    %cst_620 = arith.constant dense<0.000000e+00> : vector<2x128xf32>
    %2333 = tpu.matmul %2299, %1981, %cst_620 {dimension_numbers = #tpu.dot_dimension_numbers<[1], [0], [0], [1], [0, 0, 1, 1], [], []>} : vector<2x32xf32>, vector<32x128xf32>, vector<2x128xf32> -> vector<2x128xf32>
    %2334 = arith.addf %2332, %2333 : vector<2x128xf32>
    %2335 = vector.broadcast %1982 : vector<1x128xf32> to vector<2x128xf32>
    %2336 = arith.addf %2334, %2335 : vector<2x128xf32>
    %2337 = vector.extract_strided_slice %2336 {offsets = [0, 0], sizes = [2, 32], strides = [1, 1]} : vector<2x128xf32> to vector<2x32xf32>
    %2338 = arith.negf %2337 : vector<2x32xf32>
    %2339 = math.exp %2338 : vector<2x32xf32>
    %cst_621 = arith.constant 1.000000e+00 : f32
    %2340 = vector.broadcast %cst_621 : f32 to vector<2x32xf32>
    %2341 = arith.addf %2340, %2339 : vector<2x32xf32>
    %2342 = arith.divf %2340, %2341 : vector<2x32xf32>
    %2343 = vector.extract_strided_slice %2336 {offsets = [0, 32], sizes = [2, 32], strides = [1, 1]} : vector<2x128xf32> to vector<2x32xf32>
    %2344 = arith.negf %2343 : vector<2x32xf32>
    %2345 = math.exp %2344 : vector<2x32xf32>
    %cst_622 = arith.constant 1.000000e+00 : f32
    %2346 = vector.broadcast %cst_622 : f32 to vector<2x32xf32>
    %2347 = arith.addf %2346, %2345 : vector<2x32xf32>
    %2348 = arith.divf %2346, %2347 : vector<2x32xf32>
    %2349 = vector.extract_strided_slice %2336 {offsets = [0, 64], sizes = [2, 32], strides = [1, 1]} : vector<2x128xf32> to vector<2x32xf32>
    %2350 = math.tanh %2349 : vector<2x32xf32>
    %2351 = vector.extract_strided_slice %2336 {offsets = [0, 96], sizes = [2, 32], strides = [1, 1]} : vector<2x128xf32> to vector<2x32xf32>
    %2352 = arith.negf %2351 : vector<2x32xf32>
    %2353 = math.exp %2352 : vector<2x32xf32>
    %cst_623 = arith.constant 1.000000e+00 : f32
    %2354 = vector.broadcast %cst_623 : f32 to vector<2x32xf32>
    %2355 = arith.addf %2354, %2353 : vector<2x32xf32>
    %2356 = arith.divf %2354, %2355 : vector<2x32xf32>
    %2357 = arith.mulf %2348, %2297 : vector<2x32xf32>
    %2358 = arith.mulf %2342, %2350 : vector<2x32xf32>
    %2359 = arith.addf %2357, %2358 : vector<2x32xf32>
    %2360 = math.tanh %2359 : vector<2x32xf32>
    %2361 = arith.mulf %2356, %2360 : vector<2x32xf32>
    %c10_624 = arith.constant 10 : index
    %c0_625 = arith.constant 0 : index
    %2362 = vector.load %arg42[%c10_624, %c0_625] : memref<12x32xf32, #tpu.memory_space<vmem>>, vector<2x32xf32>
    tpu.vector_store %arg42[%c10_624, %c0_625], %2361 {strides = array<i32>} : memref<12x32xf32, #tpu.memory_space<vmem>>, vector<2x32xf32>,
    %c0_626 = arith.constant 0 : index
    %c0_627 = arith.constant 0 : index
    %c0_628 = arith.constant 0 : index
    %2363 = vector.load %arg39[%c0_626, %c0_627, %c0_628] : memref<2x2x32xf32, #tpu.memory_space<vmem>>, vector<1x2x32xf32>
    %2364 = vector.shape_cast %2363 : vector<1x2x32xf32> to vector<2x32xf32>
    %2365 = vector.shape_cast %2331 : vector<2x32xf32> to vector<1x2x32xf32>
    tpu.vector_store %arg39[%c0_626, %c0_627, %c0_628], %2365 {strides = array<i32>} : memref<2x2x32xf32, #tpu.memory_space<vmem>>, vector<1x2x32xf32>,
    %c1_629 = arith.constant 1 : index
    %c0_630 = arith.constant 0 : index
    %c0_631 = arith.constant 0 : index
    %2366 = vector.load %arg39[%c1_629, %c0_630, %c0_631] : memref<2x2x32xf32, #tpu.memory_space<vmem>>, vector<1x2x32xf32>
    %2367 = vector.shape_cast %2366 : vector<1x2x32xf32> to vector<2x32xf32>
    %2368 = vector.shape_cast %2361 : vector<2x32xf32> to vector<1x2x32xf32>
    tpu.vector_store %arg39[%c1_629, %c0_630, %c0_631], %2368 {strides = array<i32>} : memref<2x2x32xf32, #tpu.memory_space<vmem>>, vector<1x2x32xf32>,
    %c0_632 = arith.constant 0 : index
    %c0_633 = arith.constant 0 : index
    %c0_634 = arith.constant 0 : index
    %2369 = vector.load %arg40[%c0_632, %c0_633, %c0_634] : memref<2x2x32xf32, #tpu.memory_space<vmem>>, vector<1x2x32xf32>
    %2370 = vector.shape_cast %2369 : vector<1x2x32xf32> to vector<2x32xf32>
    %2371 = vector.shape_cast %2329 : vector<2x32xf32> to vector<1x2x32xf32>
    tpu.vector_store %arg40[%c0_632, %c0_633, %c0_634], %2371 {strides = array<i32>} : memref<2x2x32xf32, #tpu.memory_space<vmem>>, vector<1x2x32xf32>,
    %c1_635 = arith.constant 1 : index
    %c0_636 = arith.constant 0 : index
    %c0_637 = arith.constant 0 : index
    %2372 = vector.load %arg40[%c1_635, %c0_636, %c0_637] : memref<2x2x32xf32, #tpu.memory_space<vmem>>, vector<1x2x32xf32>
    %2373 = vector.shape_cast %2372 : vector<1x2x32xf32> to vector<2x32xf32>
    %2374 = vector.shape_cast %2359 : vector<2x32xf32> to vector<1x2x32xf32>
    tpu.vector_store %arg40[%c1_635, %c0_636, %c0_637], %2374 {strides = array<i32>} : memref<2x2x32xf32, #tpu.memory_space<vmem>>, vector<1x2x32xf32>,
    %c0_638 = arith.constant 0 : index
    %c0_639 = arith.constant 0 : index
    %2375 = vector.load %arg42[%c0_638, %c0_639] : memref<12x32xf32, #tpu.memory_space<vmem>>, vector<12x32xf32>
    %c0_640 = arith.constant 0 : index
    %c0_641 = arith.constant 0 : index
    %2376 = vector.load %arg32[%c0_640, %c0_641] : memref<32x32xf32, #tpu.memory_space<vmem>>, vector<32x32xf32>
    %cst_642 = arith.constant dense<0.000000e+00> : vector<12x32xf32>
    %2377 = tpu.matmul %2375, %2376, %cst_642 {dimension_numbers = #tpu.dot_dimension_numbers<[1], [0], [0], [1], [0, 0, 1, 1], [], []>} : vector<12x32xf32>, vector<32x32xf32>, vector<12x32xf32> -> vector<12x32xf32>
    %c0_643 = arith.constant 0 : index
    %c0_644 = arith.constant 0 : index
    %2378 = vector.load %arg33[%c0_643, %c0_644] : memref<1x32xf32, #tpu.memory_space<vmem>>, vector<1x32xf32>
    %2379 = vector.broadcast %2378 : vector<1x32xf32> to vector<12x32xf32>
    %2380 = arith.addf %2377, %2379 : vector<12x32xf32>
    %cst_645 = arith.constant dense<0.000000e+00> : vector<12x48xf32>
    %2381 = tpu.matmul %2380, %1973, %cst_645 {dimension_numbers = #tpu.dot_dimension_numbers<[1], [1], [0], [0], [0, 0, 1, 0], [], []>} : vector<12x32xf32>, vector<48x32xf32>, vector<12x48xf32> -> vector<12x48xf32>
    %c0_646 = arith.constant 0 : index
    %c0_647 = arith.constant 0 : index
    %2382 = vector.load %arg38[%c0_646, %c0_647] : memref<12x48xf32, #tpu.memory_space<vmem>>, vector<12x48xf32>
    tpu.vector_store %arg38[%c0_646, %c0_647], %2381 {strides = array<i32>} : memref<12x48xf32, #tpu.memory_space<vmem>>, vector<12x48xf32>,
    %cst_648 = arith.constant dense<0xFF800000> : vector<12xf32>
    %2383 = vector.multi_reduction <maximumf>, %2381, %cst_648 [1] : vector<12x48xf32> to vector<12xf32>
    %2384 = vector.shape_cast %2383 : vector<12xf32> to vector<12x1xf32>
    %2385 = vector.broadcast %2384 : vector<12x1xf32> to vector<12x48xf32>
    %2386 = arith.subf %2381, %2385 : vector<12x48xf32>
    %2387 = math.exp %2386 : vector<12x48xf32>
    %cst_649 = arith.constant dense<0.000000e+00> : vector<12xf32>
    %2388 = vector.multi_reduction <add>, %2387, %cst_649 [1] : vector<12x48xf32> to vector<12xf32>
    %2389 = vector.shape_cast %2388 : vector<12xf32> to vector<12x1xf32>
    %2390 = tpu.reciprocal %2389 {approx = true} : vector<12x1xf32> -> vector<12x1xf32>
    %2391 = vector.broadcast %2390 : vector<12x1xf32> to vector<12x48xf32>
    %2392 = arith.mulf %2387, %2391 : vector<12x48xf32>
    %c0_650 = arith.constant 0 : index
    %c0_651 = arith.constant 0 : index
    %2393 = vector.load %arg37[%c0_650, %c0_651] : memref<12x48xf32, #tpu.memory_space<vmem>>, vector<12x48xf32>
    tpu.vector_store %arg37[%c0_650, %c0_651], %2392 {strides = array<i32>} : memref<12x48xf32, #tpu.memory_space<vmem>>, vector<12x48xf32>,
    return
  }
}

</mosaic_0001>

<bundles_post_ra>
// kernel: model_forward.1
= control target key start
LH: loop header
LB: loop body
LE: loop exit
PB: predicated region body
PF: predicated region fallthrough
CT: control target
= control target key end

     0   :  { %s17341_s6 = smov 1   ;;  %s17342_s10 = smov 2   ;;  %s19913_s0 = inlined_call_operand.smem [shape: u32[41], index: -1, kind: input, shape index: {}] }
   0x1   :  { %s17408_s5 = sld [smem:[%s19913_s0]]   ;;  %s17343_s14 = smov 3  }
   0x2   :  { %s17413_s9 = sld [smem:[%s19913_s0 + %s17341_s6]]   ;;  %s17344_s18 = smov 4  }
   0x3   :  { %s17418_s13 = sld [smem:[%s19913_s0 + %s17342_s10]]   ;;  %s17345_s22 = smov 5  }
   0x4   :  { %s17423_s17 = sld [smem:[%s19913_s0 + %s17343_s14]]   ;;  %s17346_s26 = smov 6  }
   0x5   :  { %s17428_s21 = sld [smem:[%s19913_s0 + %s17344_s18]]   ;;  %s17347_s30 = smov 7  }
   0x6   :  { %s17433_s25 = sld [smem:[%s19913_s0 + %s17345_s22]]   ;;  %s17348_s4 = smov 8  }
   0x7   :  { %19932 = sst [smem:[#allocation11_spill]] %s17408_s5  ;;  %s17349_s10 = smov 9  }
   0x8   :  { %s17438_s29 = sld [smem:[%s19913_s0 + %s17346_s26]]   ;;  %s17350_s15 = smov 10  }
   0x9   :  { %s17443_s3 = sld [smem:[%s19913_s0 + %s17347_s30]]   ;;  %s17351_s20 = smov 11  }
   0xa   :  { %s17448_s8 = sld [smem:[%s19913_s0 + %s17348_s4]]   ;;  %s17352_s26 = smov 12  }
   0xb   :  { %19933 = sst [smem:[#allocation12_spill]] %s17428_s21  ;;  %s17353_s1 = smov 13  }
   0xc   :  { %19934 = sst [smem:[#allocation13_spill]] %s17433_s25  ;;  %s17354_s7 = smov 14  }
   0xd   :  { %s17453_s14 = sld [smem:[%s19913_s0 + %s17349_s10]]   ;;  %s17356_s22 = smov 16  }
   0xe   :  { %s17458_s19 = sld [smem:[%s19913_s0 + %s17350_s15]]   ;;  %s17355_s15 = smov 15  }
   0xf   :  { %s17463_s24 = sld [smem:[%s19913_s0 + %s17351_s20]]   ;;  %s17357_s28 = smov 17  }
  0x10   :  { %s17468_s30 = sld [smem:[%s19913_s0 + %s17352_s26]]  }
  0x11   :  { %s17473_s6 = sld [smem:[%s19913_s0 + %s17353_s1]]  }
  0x12   :  { %s17478_s12 = sld [smem:[%s19913_s0 + %s17354_s7]]   ;;  %s17358_s7 = smov 18  }
  0x13   :  { %s17483_s20 = sld [smem:[%s19913_s0 + %s17355_s15]]   ;;  %s17359_s15 = smov 19  }
  0x14   :  { %s17488_s27 = sld [smem:[%s19913_s0 + %s17356_s22]]   ;;  %s17360_s22 = smov 20  }
  0x15   :  { %s17493_s4 = sld [smem:[%s19913_s0 + %s17357_s28]]   ;;  %s17361_s28 = smov 21  }
  0x16   :  { %s17498_s25 = sld [smem:[%s19913_s0 + %s17358_s7]]   ;;  %s17362_s7 = smov 22  }
  0x17   :  { %s17503_s21 = sld [smem:[%s19913_s0 + %s17359_s15]]   ;;  %s17363_s15 = smov 23  }
  0x18   :  { %s17508_s5 = sld [smem:[%s19913_s0 + %s17360_s22]]   ;;  %s17364_s22 = smov 24  }
  0x1b   :  { %19935 = sst [smem:[#allocation14_spill]] %s17493_s4 }
  0x1c   :  { %19936 = sst [smem:[#allocation15_spill]] %s17498_s25 }
  0x1d   :  { %19937 = sst [smem:[#allocation16_spill]] %s17503_s21 }
  0x1e   :  { %19938 = sst [smem:[#allocation17_spill]] %s17508_s5 }
  0x1f   :  { %s17513_s4 = sld [smem:[%s19913_s0 + %s17361_s28]]   ;;  %s17365_s28 = smov 25  }
  0x20   :  { %s17518_s25 = sld [smem:[%s19913_s0 + %s17362_s7]]   ;;  %s17366_s7 = smov 26  }
  0x21   :  { %s17523_s21 = sld [smem:[%s19913_s0 + %s17363_s15]]   ;;  %s17367_s15 = smov 27  }
  0x22   :  { %s17528_s5 = sld [smem:[%s19913_s0 + %s17364_s22]]   ;;  %s17368_s22 = smov 28  }
  0x25   :  { %19939 = sst [smem:[#allocation18_spill]] %s17513_s4 }
  0x26   :  { %19940 = sst [smem:[#allocation19_spill]] %s17518_s25 }
  0x27   :  { %19941 = sst [smem:[#allocation20_spill]] %s17523_s21 }
  0x28   :  { %19942 = sst [smem:[#allocation21_spill]] %s17528_s5 }
  0x29   :  { %s17533_s4 = sld [smem:[%s19913_s0 + %s17365_s28]]   ;;  %s17369_s28 = smov 29  }
  0x2a   :  { %s17538_s25 = sld [smem:[%s19913_s0 + %s17366_s7]]   ;;  %s17370_s7 = smov 30  }
  0x2b   :  { %s17543_s21 = sld [smem:[%s19913_s0 + %s17367_s15]]   ;;  %s17371_s15 = smov 31  }
  0x2c   :  { %s17548_s5 = sld [smem:[%s19913_s0 + %s17368_s22]]   ;;  %s17372_s22 = smov 32  }
  0x2f   :  { %19943 = sst [smem:[#allocation22_spill]] %s17533_s4 }
  0x30   :  { %19944 = sst [smem:[#allocation23_spill]] %s17538_s25 }
  0x31   :  { %19945 = sst [smem:[#allocation24_spill]] %s17543_s21 }
  0x32   :  { %19946 = sst [smem:[#allocation25_spill]] %s17548_s5 }
  0x33   :  { %s17553_s4 = sld [smem:[%s19913_s0 + %s17369_s28]]   ;;  %s17373_s28 = smov 33  }
  0x34   :  { %s17558_s25 = sld [smem:[%s19913_s0 + %s17370_s7]]   ;;  %s17374_s7 = smov 34  }
  0x35   :  { %s17563_s21 = sld [smem:[%s19913_s0 + %s17371_s15]]   ;;  %s17375_s15 = smov 35  }
  0x36   :  { %s17568_s5 = sld [smem:[%s19913_s0 + %s17372_s22]]   ;;  %s17376_s22 = smov 36  }
  0x39   :  { %19947 = sst [smem:[#allocation26_spill]] %s17553_s4 }
  0x3a   :  { %19948 = sst [smem:[#allocation27_spill]] %s17558_s25 }
  0x3b   :  { %19949 = sst [smem:[#allocation28_spill]] %s17563_s21 }
  0x3c   :  { %19950 = sst [smem:[#allocation29_spill]] %s17568_s5 }
  0x3d   :  { %s17573_s4 = sld [smem:[%s19913_s0 + %s17373_s28]]   ;;  %s17377_s28 = smov 37  }
  0x3e   :  { %s17578_s25 = sld [smem:[%s19913_s0 + %s17374_s7]]   ;;  %s17378_s7 = smov 38  }
  0x3f   :  { %s17583_s21 = sld [smem:[%s19913_s0 + %s17375_s15]]   ;;  %s17379_s15 = smov 39  }
  0x40   :  { %s17588_s5 = sld [smem:[%s19913_s0 + %s17376_s22]]   ;;  %s17380_s22 = smov 40  }
  0x43   :  { %19951 = sst [smem:[#allocation30_spill]] %s17573_s4 }
  0x44   :  { %19952 = sst [smem:[#allocation31_spill]] %s17578_s25 }
  0x45   :  { %19953 = sst [smem:[#allocation32_spill]] %s17583_s21 }
  0x46   :  { %19954 = sst [smem:[#allocation33_spill]] %s17588_s5 }
  0x47   :  { %s17593_s4 = sld [smem:[%s19913_s0 + %s17377_s28]]  }
  0x48   :  { %s17598_s25 = sld [smem:[%s19913_s0 + %s17378_s7]]  }
  0x49   :  { %s17603_s21 = sld [smem:[%s19913_s0 + %s17379_s15]]  }
  0x4a   :  { %s17608_s5 = sld [smem:[%s19913_s0 + %s17380_s22]]  }
  0x4b   :  { %87 = vsyncpa [#allocation5], 0  ;;  %v161_v0 = vld [vmem:[%s17413_s9] sm:$0xff]  ;;  %v17381_v2 = vmov 0   ;;  %v17382_v3 = vmov 0.0|0.0   ;;  %v158_v4 = vld [vmem:[%s17438_s29 + $0x8] sm:$0xff] }
  0x4c   :  { %v157_v1 = vld [vmem:[%s17438_s29] sm:$0xff]  ;;  %16726 = vset.pattern.permute.xlu0 %v17381_v2  ;;  %15807 = vmatprep.subr.bf16.mxu0 %v17382_v3  ;;  %v271_v6 = vld [vmem:[%s17448_s8 + $0x8] sm:$0xff] }
  0x4d   :  { %v270_v5 = vld [vmem:[%s17448_s8] sm:$0xff]  ;;  %163 = vperm.xlu0 %16726, %v161_v0   ;;  %v17617_v7 = vpack.c.bf16 %v158_v4, %v157_v1  ;;  %15820 = vmatprep.subr.bf16.mxu1 %v17382_v3 }
  0x4e   :  { %v15810_v8 = vpack.c.bf16 %v271_v6, %v270_v5 }
  0x4f   :  { %88 = vsyncpa [#allocation7], 0  ;;  %v17621_v9 = vld [vmem:[%s17418_s13] sm:$0xff]  ;;  %vm17383_vm0 = vmmov 0   ;;  %v17384_v10 = vmov 0.0   ;;  %15809 = vmatpush3.bf16.msra.mxu0 %v17617_v7  ;;  %v159_v11 = vlaneseq  ;;  %vm168_vm1 = vcmask 130048  }
  0x50   :  { %14253 = vmatprep.mubr.msk.f32.mxu0 %vm17383_vm0, %v17384_v10  ;;  %14278 = vmatprep.mubr.msk.f32.mxu1 %vm17383_vm0, %v17384_v10  ;;  %v268_v14 = vld [vmem:[%s17443_s3] sm:$0xff]  ;;  %v269_v16 = vld [vmem:[%s17443_s3 + $0x8] sm:$0xff]  ;;  %v355_v20 = vld [vmem:[%s17453_s14 + $0x10] sm:$0xff]  ;;  %s17385_s0 = smov 64   ;;  %s17386_s29 = smov 32   ;;  %v17387_v44 = vmov 1  }
  0x51   :  { %15811 = vmatprep.subr.bf16.mxu0 %v15810_v8  ;;  %245 = vperm.xlu0 %16726, %v17621_v9   ;;  %v17629_v12 = vand.u32 127, %v159_v11  ;;  %v353_v17 = vld [vmem:[%s17453_s14] sm:$0xff]  ;;  %v354_v18 = vld [vmem:[%s17453_s14 + $0x8] sm:$0xff]  ;;  %v356_v21 = vld [vmem:[%s17453_s14 + $0x18] sm:$0xff]  ;;  %vm367_vm4 = vcmask 261120   ;;  %s17390_s28 = smov 96  }
  0x52   :  { %v17643_v19 = vpack.c.bf16 %v354_v18, %v353_v17  ;;  %v17649_v22 = vpack.c.bf16 %v356_v21, %v355_v20  ;;  %v17672_v32 = vld [vmem:[%s17458_s19] ss:$0 sm:$0xff]  ;;  %16727 = vset.pattern.permute.xlu1 %v17387_v44  ;;  %v363_v49 = vld [vmem:[%s17468_s30 + $0x8] sm:$0xff]  ;;  %v364_v50 = vld [vmem:[%s17468_s30 + $0x10] sm:$0xff]  ;;  %vm1760_vm9 = vcmask 523264   ;;  %vm1762_vm10 = vcmask 785408  }
  0x53   :  { %v362_v48 = vld [vmem:[%s17468_s30] sm:$0xff]  ;;  %v365_v52 = vld [vmem:[%s17468_s30 + $0x18] sm:$0xff]  ;;  %v359_v55 = vld [vmem:[%s17463_s24 + $0x8] sm:$0xff]  ;;  %s19957_s1 = sld [smem:[#allocation16_spill]]  ;;  %s19958_s2 = sld [smem:[#allocation15_spill]]  ;;  %vm3677_vm15 = vcmp.eq.s32.totalorder %v17629_v12, 0 }
  0x54   :  { %v17685_v51 = vpack.c.bf16 %v363_v49, %v362_v48  ;;  %v17689_v53 = vpack.c.bf16 %v365_v52, %v364_v50  ;;  %v358_v54 = vld [vmem:[%s17463_s24] sm:$0xff]  ;;  %v360_v57 = vld [vmem:[%s17463_s24 + $0x10] sm:$0xff]  ;;  %v361_v58 = vld [vmem:[%s17463_s24 + $0x18] sm:$0xff]  ;;  %s19959_s7 = sld [smem:[#allocation14_spill]]  ;;  %s19960_s10 = sld [smem:[#allocation17_spill]] }
  0x55   :  { %v17695_v56 = vpack.c.bf16 %v359_v55, %v358_v54  ;;  %v17703_v60 = vpack.c.bf16 %v361_v58, %v360_v57  ;;  %v17733_v6 = vld [vmem:[%s17473_s6] ss:$0 sm:$0xff]  ;;  %vm18124_vm14 = vmpackc.low %vm367_vm4, %vm367_vm4  ;;  %s19961_s11 = sld [smem:[#allocation19_spill]]  ;;  %s19962_s15 = sld [smem:[#allocation18_spill]] }
  0x56   :  { %s19963_s16 = sld [smem:[#allocation20_spill]]  ;;  %s19964_s18 = sld [smem:[#allocation21_spill]] }
  0x57   :  { %s19965_s22 = sld [smem:[#allocation22_spill]]  ;;  %s17392_s23 = smov 125  }
  0x58   :  { %s17393_s26 = smov 126  }
  0xcc   :  { %v164_v13 = vpop.permute.xlu0 %163 }
  0xcd   :  { %vm165_vm2 = vcmp.eq.s32.totalorder %v164_v13, %v17629_v12 }
  0xce   :  { %v13179_v15 = vsel %vm165_vm2, 1.0, %v17384_v10 }
  0xcf   :  { %14254 = vmatmul.mubr.msk.f32.vlgmr.msra.gmra.mrb[0].mxu0 %vm168_vm1, %v13179_v15 }
  0xd0   :  { %15813 = vmatpush3.bf16.msra.mxu0 %v15810_v8  ;;  %14260 = vmatprep.mubr.msk.f32.mxu0 %vm168_vm1, %v268_v14  ;;  %v246_v25 = vpop.permute.xlu0 %245 }
  0xd1   :  { %15814 = vmatprep.subr.bf16.mxu0 %v17382_v3  ;;  %vm247_vm3 = vcmp.eq.s32.totalorder %v246_v25, %v17629_v12 }
  0xd2   :  { %v13181_v29 = vsel %vm247_vm3, 1.0, %v17384_v10 }
  0xd3   :  { %14261 = vmatmul.mubr.msk.f32.vlgmr.msra.gmra.mrb[2].mxu0 %vm168_vm1, %v269_v16 }
  0xd4   :  { %14271 = vmatprep.mubr.msk.f32.mxu0 %vm17383_vm0, %v17384_v10  ;;  %15816 = vmatpush3.bf16.msra.mxu0 %v17643_v19 }
  0xd5   :  { %15817 = vmatprep.subr.bf16.mxu0 %v17382_v3 }
  0xd8   :  { %15819 = vmatpush3.bf16.msra.mxu0 %v17649_v22 }
  0xd9   :  { %15823 = vmatprep.subr.bf16.mxu0 %v17382_v3 }
  0xdb   :  { %14272 = vmatmul.mubr.f32.vlgmr.msra.gmra.mrb[4].mxu0 %v17384_v10 }
  0xdc   :  { %14289 = vmatprep.mubr.msk.f32.mxu0 %vm17383_vm0, %v17384_v10  ;;  %15825 = vmatpush3.bf16.msra.mxu0 %v17685_v51 }
  0xdd   :  { %15826 = vmatprep.subr.bf16.mxu0 %v17382_v3 }
  0xe0   :  { %15828 = vmatpush3.bf16.msra.mxu0 %v17689_v53 }
  0xe1   :  { %15829 = vmatprep.subr.bf16.mxu0 %v17382_v3 }
  0xe3   :  { %14290 = vmatmul.mubr.f32.vlgmr.msra.gmra.mrb[6].mxu0 %v17384_v10 }
  0xe4   :  { %15831 = vmatpush3.bf16.msra.mxu0 %v17695_v56  ;;  %14300 = vmatprep.mubr.msk.f32.mxu0 %vm17383_vm0, %v17384_v10 }
  0xe5   :  { %15832 = vmatprep.subr.bf16.mxu0 %v17382_v3 }
  0xe8   :  { %15834 = vmatpush3.bf16.msra.mxu0 %v17703_v60 }
  0xe9   :  { %15841 = vmatprep.subr.bf16.mxu0 %v17382_v3 }
 0x1a2   :  { %v17656_v23 = vpop.f32.mrb[0].mxu0 }
 0x1a3   :  { %v14255_v24 = vpop.f32.mrb[1].mxu0 }
 0x1a6   :  { %v14262_v26 = vpop.f32.mrb[2].mxu0 }
 0x1a7   :  { %v344_v27 = vpop.f32.mrb[3].mxu0 }
 0x1a8   :  { %v17658_v28 = vpack.c.bf16 %v14262_v26, %v344_v27 }
 0x1aa   :  { %15822 = vmatpush3.bf16.msra.mxu1 %v17658_v28 }
 0x1ab   :  { %15835 = vmatprep.subr.bf16.mxu1 %v17382_v3 }
 0x1ad   :  { %14279 = vmatmul.mubr.msk.f32.vlgmr.msra.gmra.mrb[0].mxu1 %vm168_vm1, %v13181_v29 }
 0x1ae   :  { %15837 = vmatpush3.bf16.msra.mxu1 %v17643_v19  ;;  %14311 = vmatprep.mubr.msk.f32.mxu1 %vm17383_vm0, %v17384_v10  ;;  %v437_v30 = vpop.f32.mrb[4].mxu0 }
 0x1af   :  { %15838 = vmatprep.subr.bf16.mxu1 %v17382_v3  ;;  %v14273_v31 = vpop.f32.mrb[5].mxu0 }
 0x1b2   :  { %15840 = vmatpush3.bf16.msra.mxu1 %v17649_v22 }
 0x1b3   :  { %15850 = vmatprep.subr.bf16.mxu1 %v17382_v3 }
 0x1b6   :  { %v611_v63 = vpop.f32.mrb[6].mxu0 }
 0x1b7   :  { %v14291_v0 = vpop.f32.mrb[7].mxu0 }
 0x280   :  { %v510_v33 = vpop.f32.mrb[0].mxu1 }
 0x281   :  { %v511_v34 = vadd.f32 %v510_v33, %v437_v30  ;;  %v14280_v35 = vpop.f32.mrb[1].mxu1 }
 0x283   :  { %v520_v36 = vadd.f32 %v17672_v32, %v511_v34 }
 0x285   :  { %16755 = vtanh.f32 %v520_v36  ;;  %v13189_v38 = vmul.f32 -1.442695, %v520_v36 }
 0x287   :  { %16757 = vpow2.f32 %v13189_v38 }
 0x28f   :  { %v16756_v37 = vpop.eup %16755 }
 0x290   :  { %530 = vrot.lane.b32.xlu1 %v16756_v37, %s17385_s0 }
 0x291   :  { %v16758_v39 = vpop.eup %16757 }
 0x292   :  { %v524_v40 = vadd.f32 1.0, %v16758_v39 }
 0x294   :  { %16759 = vrcp.f32 %v524_v40  ;;  %v17388_v40 = vmov 2  }
 0x29e   :  { %v16760_v41 = vpop.eup %16759 }
 0x29f   :  { %v528_v45 = vmul.f32 0.0, %v16760_v41 }
 0x302   :  { %v531_v42 = vpop.permute.xlu1 %530 }
 0x303   :  { %v533_v43 = vmul.f32 %v16760_v41, %v531_v42 }
 0x305   :  { %535 = vrot.lane.b32.xlu1 %v533_v43, %s17386_s29 }
 0x309   :  { %251 = vperm.xlu1 %16727, %v17621_v9  }
 0x30d   :  { %16728 = vset.pattern.permute.xlu1 %v17388_v40 }
 0x377   :  { %v536_v46 = vpop.permute.xlu1 %535 }
 0x378   :  { %v17679_v47 = vadd.f32 %v536_v46, %v528_v45 }
 0x37a   :  { %16761 = vtanh.f32 %v17679_v47 }
 0x384   :  { %v16762_v59 = vpop.eup %16761 }
 0x385   :  { %541 = vrot.lane.b32.xlu0 %v16762_v59, %s17385_s0 }
 0x388   :  { %v252_v1 = vpop.permute.xlu1 %251 }
 0x389   :  { %vm253_vm5 = vcmp.eq.s32.totalorder %v252_v1, %v17629_v12 }
 0x38a   :  { %v13182_v5 = vsel %vm253_vm5, 1.0, %v17384_v10 }
 0x3f7   :  { %v542_v61 = vpop.permute.xlu0 %541 }
 0x3f8   :  { %v544_v62 = vmul.f32 %v16760_v41, %v542_v61 }
 0x3fa   :  { %616 = vrot.lane.b32.xlu0 %v544_v62, %s17386_s29 }
 0x46c   :  { %v617_v4 = vpop.permute.xlu0 %616 }
 0x46d   :  { %14301 = vmatmul.mubr.msk.f32.vlgmr.msra.gmra.mrb[8].mxu0 %vm367_vm4, %v617_v4  ;;  %14312 = vmatmul.mubr.msk.f32.vlgmr.msra.gmra.mrb[2].mxu1 %vm367_vm4, %v617_v4 }
 0x46e   :  { %15843 = vmatpush3.bf16.msra.mxu0 %v17658_v28  ;;  %14318 = vmatprep.mubr.msk.f32.mxu0 %vm17383_vm0, %v17384_v10 }
 0x46f   :  { %15844 = vmatprep.subr.bf16.mxu0 %v17382_v3  ;;  %15852 = vmatpush3.bf16.msra.mxu1 %v17695_v56 }
 0x470   :  { %15853 = vmatprep.subr.bf16.mxu1 %v17382_v3  ;;  %14340 = vmatprep.mubr.msk.f32.mxu1 %vm17383_vm0, %v17384_v10 }
 0x471   :  { %14319 = vmatmul.mubr.msk.f32.vlgmr.msra.gmra.mrb[10].mxu0 %vm168_vm1, %v13182_v5 }
 0x472   :  { %15846 = vmatpush3.bf16.msra.mxu0 %v17685_v51  ;;  %14329 = vmatprep.mubr.msk.f32.mxu0 %vm17383_vm0, %v17384_v10 }
 0x473   :  { %15847 = vmatprep.subr.bf16.mxu0 %v17382_v3  ;;  %15855 = vmatpush3.bf16.msra.mxu1 %v17703_v60 }
 0x474   :  { %15862 = vmatprep.subr.bf16.mxu1 %v17382_v3 }
 0x476   :  { %15849 = vmatpush3.bf16.msra.mxu0 %v17689_v53 }
 0x477   :  { %15856 = vmatprep.subr.bf16.mxu0 %v17382_v3 }
 0x540   :  { %v686_v8 = vpop.f32.mrb[8].mxu0  ;;  %v787_v11 = vpop.f32.mrb[2].mxu1 }
 0x541   :  { %v687_v13 = vadd.f32 %v686_v8, %v611_v63  ;;  %v14302_v14 = vpop.f32.mrb[9].mxu0  ;;  %v14313_v15 = vpop.f32.mrb[3].mxu1 }
 0x543   :  { %v696_v16 = vadd.f32 %v17733_v6, %v687_v13 }
 0x544   :  { %v860_v17 = vpop.f32.mrb[10].mxu0 }
 0x545   :  { %16763 = vtanh.f32 %v696_v16  ;;  %v861_v18 = vadd.f32 %v860_v17, %v787_v11  ;;  %v14320_v20 = vpop.f32.mrb[11].mxu0  ;;  %v13192_v26 = vmul.f32 -1.442695, %v696_v16 }
 0x547   :  { %v864_v21 = vadd.f32 %v17672_v32, %v861_v18 }
 0x549   :  { %16765 = vtanh.f32 %v864_v21  ;;  %v13195_v27 = vmul.f32 -1.442695, %v864_v21 }
 0x54a   :  { %16767 = vpow2.f32 %v13192_v26 }
 0x54b   :  { %16769 = vpow2.f32 %v13195_v27 }
 0x54f   :  { %v16764_v24 = vpop.eup %16763 }
 0x550   :  { %706 = vrot.lane.b32.xlu1 %v16764_v24, %s17385_s0 }
 0x553   :  { %v16766_v25 = vpop.eup %16765 }
 0x554   :  { %874 = vrot.lane.b32.xlu0 %v16766_v25, %s17385_s0  ;;  %v16768_v29 = vpop.eup %16767 }
 0x555   :  { %v700_v30 = vadd.f32 1.0, %v16768_v29  ;;  %v16770_v31 = vpop.eup %16769 }
 0x556   :  { %v868_v33 = vadd.f32 1.0, %v16770_v31 }
 0x557   :  { %16771 = vrcp.f32 %v700_v30 }
 0x558   :  { %16773 = vrcp.f32 %v868_v33 }
 0x561   :  { %v16772_v34 = vpop.eup %16771 }
 0x562   :  { %v16774_v37 = vpop.eup %16773  ;;  %v704_v41 = vmul.f32 0.0, %v16772_v34 }
 0x563   :  { %v872_v45 = vmul.f32 %v16774_v37, %v17679_v47 }
 0x5c2   :  { %v707_v35 = vpop.permute.xlu1 %706 }
 0x5c3   :  { %v709_v36 = vmul.f32 %v16772_v34, %v707_v35 }
 0x5c5   :  { %711 = vrot.lane.b32.xlu1 %v709_v36, %s17386_s29  ;;  %v17389_v36 = vmov 3  }
 0x5c6   :  { %v875_v38 = vpop.permute.xlu0 %874  ;;  %16729 = vset.pattern.permute.xlu0 %v17389_v36 }
 0x5c7   :  { %v877_v39 = vmul.f32 %v16774_v37, %v875_v38 }
 0x5c9   :  { %879 = vrot.lane.b32.xlu0 %v877_v39, %s17386_s29 }
 0x637   :  { %v712_v42 = vpop.permute.xlu1 %711 }
 0x638   :  { %v17742_v43 = vadd.f32 %v712_v42, %v704_v41 }
 0x63a   :  { %16775 = vtanh.f32 %v17742_v43 }
 0x63b   :  { %v880_v46 = vpop.permute.xlu0 %879 }
 0x63c   :  { %v17746_v48 = vadd.f32 %v880_v46, %v872_v45 }
 0x63e   :  { %16777 = vtanh.f32 %v17746_v48 }
 0x644   :  { %v16776_v49 = vpop.eup %16775 }
 0x645   :  { %717 = vrot.lane.b32.xlu1 %v16776_v49, %s17385_s0 }
 0x648   :  { %v16778_v50 = vpop.eup %16777 }
 0x649   :  { %885 = vrot.lane.b32.xlu0 %v16778_v50, %s17385_s0  ;;  %257 = vperm.xlu1 %16728, %v17621_v9  }
 0x64d   :  { %16730 = vset.pattern.permute.xlu1 %v17381_v2 }
 0x6b7   :  { %v718_v52 = vpop.permute.xlu1 %717 }
 0x6b8   :  { %v720_v54 = vmul.f32 %v16772_v34, %v718_v52 }
 0x6ba   :  { %890 = vrot.lane.b32.xlu0 %v720_v54, %s17386_s29 }
 0x6bb   :  { %v886_v47 = vpop.permute.xlu0 %885 }
 0x6bc   :  { %v888_v55 = vmul.f32 %v16774_v37, %v886_v47 }
 0x6be   :  { %965 = vrot.lane.b32.xlu1 %v888_v55, %s17386_s29 }
 0x6c8   :  { %v258_v57 = vpop.permute.xlu1 %257 }
 0x6c9   :  { %vm259_vm6 = vcmp.eq.s32.totalorder %v258_v57, %v17629_v12 }
 0x6ca   :  { %v13183_v61 = vsel %vm259_vm6, 1.0, %v17384_v10 }
 0x72c   :  { %v891_v58 = vpop.permute.xlu0 %890 }
 0x72d   :  { %14330 = vmatmul.mubr.msk.f32.vlgmr.msra.gmra.mrb[12].mxu0 %vm367_vm4, %v891_v58 }
 0x72e   :  { %15858 = vmatpush3.bf16.msra.mxu0 %v17643_v19  ;;  %14351 = vmatprep.mubr.msk.f32.mxu0 %vm17383_vm0, %v17384_v10 }
 0x72f   :  { %15859 = vmatprep.subr.bf16.mxu0 %v17382_v3 }
 0x730   :  { %v966_v59 = vpop.permute.xlu1 %965 }
 0x731   :  { %14341 = vmatmul.mubr.msk.f32.vlgmr.msra.gmra.mrb[4].mxu1 %vm367_vm4, %v966_v59 }
 0x732   :  { %15861 = vmatpush3.bf16.msra.mxu0 %v17649_v22  ;;  %15864 = vmatpush3.bf16.msra.mxu1 %v17658_v28 }
 0x733   :  { %14358 = vmatprep.mubr.msk.f32.mxu1 %vm17383_vm0, %v17384_v10  ;;  %15865 = vmatprep.subr.bf16.mxu1 %v17382_v3 }
 0x734   :  { %15871 = vmatprep.subr.bf16.mxu0 %v17382_v3 }
 0x735   :  { %14352 = vmatmul.mubr.msk.f32.vlgmr.msra.gmra.mrb[14].mxu0 %vm367_vm4, %v966_v59  ;;  %14359 = vmatmul.mubr.msk.f32.vlgmr.msra.gmra.mrb[6].mxu1 %vm168_vm1, %v13183_v61 }
 0x736   :  { %15867 = vmatpush3.bf16.msra.mxu1 %v17685_v51  ;;  %15873 = vmatpush3.bf16.msra.mxu0 %v17695_v56 }
 0x737   :  { %15868 = vmatprep.subr.bf16.mxu1 %v17382_v3  ;;  %14369 = vmatprep.mubr.msk.f32.mxu1 %vm17383_vm0, %v17384_v10 }
 0x738   :  { %15874 = vmatprep.subr.bf16.mxu0 %v17382_v3  ;;  %14380 = vmatprep.mubr.msk.f32.mxu0 %vm17383_vm0, %v17384_v10 }
 0x73a   :  { %15870 = vmatpush3.bf16.msra.mxu1 %v17689_v53  ;;  %15876 = vmatpush3.bf16.msra.mxu0 %v17703_v60 }
 0x73b   :  { %15877 = vmatprep.subr.bf16.mxu1 %v17382_v3  ;;  %15883 = vmatprep.subr.bf16.mxu0 %v17382_v3 }
 0x800   :  { %v960_v62 = vpop.f32.mrb[12].mxu0 }
 0x801   :  { %v14331_v63 = vpop.f32.mrb[13].mxu0 }
 0x804   :  { %v1035_v0 = vpop.f32.mrb[4].mxu1 }
 0x805   :  { %v1036_v1 = vadd.f32 %v1035_v0, %v960_v62  ;;  %v14342_v4 = vpop.f32.mrb[5].mxu1 }
 0x807   :  { %v1039_v5 = vadd.f32 %v17733_v6, %v1036_v1 }
 0x808   :  { %v1130_v8 = vpop.f32.mrb[14].mxu0  ;;  %v1203_v11 = vpop.f32.mrb[6].mxu1 }
 0x809   :  { %16779 = vtanh.f32 %v1039_v5  ;;  %v14353_v13 = vpop.f32.mrb[15].mxu0  ;;  %v1204_v14 = vadd.f32 %v1203_v11, %v1130_v8  ;;  %v14360_v15 = vpop.f32.mrb[7].mxu1  ;;  %v13198_v20 = vmul.f32 -1.442695, %v1039_v5 }
 0x80b   :  { %v1207_v16 = vadd.f32 %v17672_v32, %v1204_v14 }
 0x80d   :  { %16781 = vtanh.f32 %v1207_v16  ;;  %v13201_v21 = vmul.f32 -1.442695, %v1207_v16 }
 0x80e   :  { %16783 = vpow2.f32 %v13198_v20  ;;  %v13219_v20 = vld [vmem:[%s17448_s8 + $0x18] sm:$0xff] }
 0x80f   :  { %16785 = vpow2.f32 %v13201_v21 }
 0x813   :  { %v16780_v17 = vpop.eup %16779 }
 0x814   :  { %1049 = vrot.lane.b32.xlu0 %v16780_v17, %s17385_s0 }
 0x817   :  { %v16782_v18 = vpop.eup %16781 }
 0x818   :  { %1217 = vrot.lane.b32.xlu1 %v16782_v18, %s17385_s0  ;;  %v16784_v24 = vpop.eup %16783  ;;  %v13218_v18 = vld [vmem:[%s17448_s8 + $0x10] sm:$0xff] }
 0x819   :  { %v1043_v25 = vadd.f32 1.0, %v16784_v24  ;;  %v16786_v26 = vpop.eup %16785  ;;  %v15922_v21 = vpack.c.bf16 %v13219_v20, %v13218_v18 }
 0x81a   :  { %v1211_v27 = vadd.f32 1.0, %v16786_v26 }
 0x81b   :  { %16787 = vrcp.f32 %v1043_v25 }
 0x81c   :  { %16789 = vrcp.f32 %v1211_v27 }
 0x825   :  { %v16788_v29 = vpop.eup %16787 }
 0x826   :  { %v16790_v33 = vpop.eup %16789  ;;  %v1047_v37 = vmul.f32 %v16788_v29, %v17742_v43 }
 0x827   :  { %v1215_v41 = vmul.f32 %v16790_v33, %v17746_v48 }
 0x886   :  { %v1050_v30 = vpop.permute.xlu0 %1049 }
 0x887   :  { %v1052_v31 = vmul.f32 %v16788_v29, %v1050_v30 }
 0x889   :  { %1054 = vrot.lane.b32.xlu0 %v1052_v31, %s17386_s29  ;;  %v17846_v31 = vld [vmem:[%s17423_s17] sm:$0xff] }
 0x88a   :  { %v1218_v34 = vpop.permute.xlu1 %1217 }
 0x88b   :  { %v1220_v35 = vmul.f32 %v16790_v33, %v1218_v34 }
 0x88d   :  { %1222 = vrot.lane.b32.xlu1 %v1220_v35, %s17386_s29  ;;  %v13217_v35 = vld [vmem:[%s17443_s3 + $0x18] sm:$0xff] }
 0x8fb   :  { %v1055_v38 = vpop.permute.xlu0 %1054 }
 0x8fc   :  { %v17791_v39 = vadd.f32 %v1055_v38, %v1047_v37 }
 0x8fe   :  { %16791 = vtanh.f32 %v17791_v39 }
 0x8ff   :  { %v1223_v42 = vpop.permute.xlu1 %1222 }
 0x900   :  { %v17795_v45 = vadd.f32 %v1223_v42, %v1215_v41 }
 0x902   :  { %16793 = vtanh.f32 %v17795_v45 }
 0x908   :  { %v16792_v46 = vpop.eup %16791 }
 0x909   :  { %1060 = vrot.lane.b32.xlu0 %v16792_v46, %s17385_s0  ;;  %v13223_v46 = vld [vmem:[%s17453_s14 + $0x28] sm:$0xff] }
 0x90c   :  { %v16794_v49 = vpop.eup %16793 }
 0x90d   :  { %1228 = vrot.lane.b32.xlu1 %v16794_v49, %s17385_s0  ;;  %263 = vperm.xlu0 %16729, %v17621_v9  }
 0x911   :  { %16731 = vset.pattern.permute.xlu0 %v17387_v44 }
 0x97b   :  { %v1061_v43 = vpop.permute.xlu0 %1060 }
 0x97c   :  { %v1063_v50 = vmul.f32 %v16788_v29, %v1061_v43  ;;  %v13225_v43 = vld [vmem:[%s17453_s14 + $0x38] sm:$0xff] }
 0x97e   :  { %1233 = vrot.lane.b32.xlu1 %v1063_v50, %s17386_s29 }
 0x97f   :  { %v1229_v48 = vpop.permute.xlu1 %1228 }
 0x980   :  { %v1231_v52 = vmul.f32 %v16790_v33, %v1229_v48  ;;  %v13216_v33 = vld [vmem:[%s17443_s3 + $0x10] sm:$0xff] }
 0x982   :  { %1308 = vrot.lane.b32.xlu1 %v1231_v52, %s17386_s29 }
 0x98c   :  { %v264_v47 = vpop.permute.xlu0 %263 }
 0x98d   :  { %vm265_vm7 = vcmp.eq.s32.totalorder %v264_v47, %v17629_v12 }
 0x98e   :  { %v13184_v44 = vsel %vm265_vm7, 1.0, %v17384_v10 }
 0x9f0   :  { %v1234_v54 = vpop.permute.xlu1 %1233 }
 0x9f1   :  { %14370 = vmatmul.mubr.msk.f32.vlgmr.msra.gmra.mrb[8].mxu1 %vm367_vm4, %v1234_v54 }
 0x9f2   :  { %15879 = vmatpush3.bf16.msra.mxu1 %v17643_v19  ;;  %14391 = vmatprep.mubr.msk.f32.mxu1 %vm17383_vm0, %v17384_v10 }
 0x9f3   :  { %15880 = vmatprep.subr.bf16.mxu1 %v17382_v3 }
 0x9f4   :  { %v1309_v9 = vpop.permute.xlu1 %1308 }
 0x9f5   :  { %14381 = vmatmul.mubr.msk.f32.vlgmr.msra.gmra.mrb[16].mxu0 %vm367_vm4, %v1309_v9 }
 0x9f6   :  { %15882 = vmatpush3.bf16.msra.mxu1 %v17649_v22  ;;  %15885 = vmatpush3.bf16.msra.mxu0 %v17658_v28 }
 0x9f7   :  { %14398 = vmatprep.mubr.msk.f32.mxu0 %vm17383_vm0, %v17384_v10  ;;  %15892 = vmatprep.subr.bf16.mxu1 %v17382_v3 }
 0x9f8   :  { %15886 = vmatprep.subr.bf16.mxu0 %v17382_v3 }
 0x9f9   :  { %14392 = vmatmul.mubr.msk.f32.vlgmr.msra.gmra.mrb[10].mxu1 %vm367_vm4, %v1309_v9  ;;  %14399 = vmatmul.mubr.msk.f32.vlgmr.msra.gmra.mrb[18].mxu0 %vm168_vm1, %v13184_v44 }
 0x9fa   :  { %15894 = vmatpush3.bf16.msra.mxu1 %v17695_v56  ;;  %14420 = vmatprep.mubr.msk.f32.mxu1 %vm17383_vm0, %v17384_v10 }
 0x9fb   :  { %15895 = vmatprep.subr.bf16.mxu1 %v17382_v3  ;;  %15888 = vmatpush3.bf16.msra.mxu0 %v17685_v51 }
 0x9fc   :  { %15889 = vmatprep.subr.bf16.mxu0 %v17382_v3  ;;  %14409 = vmatprep.mubr.msk.f32.mxu0 %vm17383_vm0, %v17384_v10 }
 0x9fe   :  { %15897 = vmatpush3.bf16.msra.mxu1 %v17703_v60 }
 0x9ff   :  { %15891 = vmatpush3.bf16.msra.mxu0 %v17689_v53  ;;  %15923 = vmatprep.subr.bf16.mxu1 %v15922_v21 }
 0xa00   :  { %15898 = vmatprep.subr.bf16.mxu0 %v17382_v3 }
 0xac4   :  { %v1303_v19 = vpop.f32.mrb[8].mxu1 }
 0xac5   :  { %v14371_v22 = vpop.f32.mrb[9].mxu1 }
 0xac8   :  { %v1378_v28 = vpop.f32.mrb[16].mxu0 }
 0xac9   :  { %v1379_v56 = vadd.f32 %v1378_v28, %v1303_v19  ;;  %v14382_v55 = vpop.f32.mrb[17].mxu0 }
 0xacb   :  { %v1382_v13 = vadd.f32 %v17733_v6, %v1379_v56 }
 0xacc   :  { %v1473_v57 = vpop.f32.mrb[10].mxu1  ;;  %v1546_v58 = vpop.f32.mrb[18].mxu0 }
 0xacd   :  { %v14393_v59 = vpop.f32.mrb[11].mxu1  ;;  %v1547_v51 = vadd.f32 %v1546_v58, %v1473_v57  ;;  %v14400_v61 = vpop.f32.mrb[19].mxu0  ;;  %v13204_v16 = vmul.f32 -1.442695, %v1382_v13  ;;  %v17894_v58 = vld [vmem:[%s17458_s19 + $0x1] ss:$0 sm:$0xff] }
 0xacf   :  { %v1550_v62 = vadd.f32 %v17672_v32, %v1547_v51 }
 0xad1   :  { %16795 = vtanh.f32 %v1550_v62  ;;  %v13207_v60 = vmul.f32 -1.442695, %v1550_v62 }
 0xad3   :  { %16797 = vpow2.f32 %v13207_v60 }
 0xadb   :  { %v16796_v63 = vpop.eup %16795 }
 0xadc   :  { %1560 = vrot.lane.b32.xlu0 %v16796_v63, %s17385_s0 }
 0xadd   :  { %v16798_v53 = vpop.eup %16797 }
 0xade   :  { %v1554_v0 = vadd.f32 1.0, %v16798_v53 }
 0xae0   :  { %16799 = vrcp.f32 %v1554_v0 }
 0xaea   :  { %v16800_v1 = vpop.eup %16799 }
 0xaeb   :  { %v1558_v8 = vmul.f32 %v16800_v1, %v17795_v45  ;;  %v13222_v45 = vld [vmem:[%s17453_s14 + $0x20] sm:$0xff] }
 0xaec   :  { %v17867_v49 = vpack.c.bf16 %v13223_v46, %v13222_v45  ;;  %v1767_v45 = vld [vmem:[%s17478_s12 + $0x18] sm:$0xff] }
 0xb4e   :  { %v1561_v4 = vpop.permute.xlu0 %1560 }
 0xb4f   :  { %v1563_v5 = vmul.f32 %v16800_v1, %v1561_v4 }
 0xb51   :  { %1565 = vrot.lane.b32.xlu1 %v1563_v5, %s17386_s29 }
 0xbc3   :  { %v1566_v11 = vpop.permute.xlu1 %1565 }
 0xbc4   :  { %v17835_v32 = vadd.f32 %v1566_v11, %v1558_v8 }
 0xbc6   :  { %16801 = vtanh.f32 %v17835_v32 }
 0xbc7   :  { %16803 = vtanh.f32 %v1382_v13 }
 0xbc8   :  { %16805 = vpow2.f32 %v13204_v16 }
 0xbd0   :  { %v16802_v14 = vpop.eup %16801 }
 0xbd1   :  { %1571 = vrot.lane.b32.xlu0 %v16802_v14, %s17385_s0  ;;  %v16804_v15 = vpop.eup %16803 }
 0xbd2   :  { %v16806_v17 = vpop.eup %16805 }
 0xbd3   :  { %v1386_v24 = vadd.f32 1.0, %v16806_v17 }
 0xbd5   :  { %1392 = vrot.lane.b32.xlu0 %v16804_v15, %s17385_s0  ;;  %16807 = vrcp.f32 %v1386_v24 }
 0xbdf   :  { %v16808_v27 = vpop.eup %16807 }
 0xbe0   :  { %v1390_v37 = vmul.f32 %v16808_v27, %v17791_v39  ;;  %v13224_v39 = vld [vmem:[%s17453_s14 + $0x30] sm:$0xff] }
 0xbe1   :  { %v17873_v50 = vpack.c.bf16 %v13225_v43, %v13224_v39  ;;  %v13232_v39 = vld [vmem:[%s17468_s30 + $0x28] sm:$0xff]  ;;  %v1768_v43 = vld [vmem:[%s17478_s12 + $0x20] sm:$0xff] }
 0xc43   :  { %v1572_v25 = vpop.permute.xlu0 %1571 }
 0xc44   :  { %v1574_v26 = vmul.f32 %v16800_v1, %v1572_v25 }
 0xc46   :  { %1651 = vrot.lane.b32.xlu1 %v1574_v26, %s17386_s29 }
 0xc47   :  { %v1393_v29 = vpop.permute.xlu0 %1392 }
 0xc48   :  { %v1395_v30 = vmul.f32 %v16808_v27, %v1393_v29 }
 0xc4a   :  { %1397 = vrot.lane.b32.xlu1 %v1395_v30, %s17386_s29 }
 0xc4e   :  { %1858 = vperm.xlu1 %16730, %v17846_v31  }
 0xcb8   :  { %v17850_v34 = vpop.permute.xlu1 %1651 }
 0xcb9   :  { %14421 = vmatmul.mubr.msk.f32.vlgmr.msra.gmra.mrb[12].mxu1 %vm367_vm4, %v17850_v34 }
 0xcba   :  { %15925 = vmatpush3.bf16.msra.mxu1 %v15922_v21  ;;  %14462 = vmatprep.mubr.msk.f32.mxu1 %vm168_vm1, %v13216_v33 }
 0xcbb   :  { %15926 = vmatprep.subr.bf16.mxu1 %v17382_v3 }
 0xcbc   :  { %v1398_v38 = vpop.permute.xlu1 %1397 }
 0xcbd   :  { %v17858_v41 = vadd.f32 %v1398_v38, %v1390_v37  ;;  %14463 = vmatmul.mubr.msk.f32.vlgmr.msra.gmra.mrb[14].mxu1 %vm168_vm1, %v13217_v35  ;;  %v1764_v35 = vld [vmem:[%s17478_s12] sm:$0xff]  ;;  %v1765_v37 = vld [vmem:[%s17478_s12 + $0x8] sm:$0xff]  ;;  %v1766_v38 = vld [vmem:[%s17478_s12 + $0x10] sm:$0xff] }
 0xcbe   :  { %14473 = vmatprep.mubr.msk.f32.mxu1 %vm17383_vm0, %v17384_v10  ;;  %15928 = vmatpush3.bf16.msra.mxu1 %v17867_v49 }
 0xcbf   :  { %16809 = vtanh.f32 %v17858_v41  ;;  %15929 = vmatprep.subr.bf16.mxu1 %v17382_v3 }
 0xcc2   :  { %15931 = vmatpush3.bf16.msra.mxu1 %v17873_v50 }
 0xcc3   :  { %15932 = vmatprep.subr.bf16.mxu1 %v17382_v3 }
 0xcc5   :  { %14474 = vmatmul.mubr.f32.vlgmr.msra.gmra.mrb[16].mxu1 %v17384_v10 }
 0xcc6   :  { %14480 = vmatprep.mubr.msk.f32.mxu1 %vm17383_vm0, %v17384_v10 }
 0xcc9   :  { %v16810_v42 = vpop.eup %16809 }
 0xcca   :  { %1403 = vrot.lane.b32.xlu0 %v16810_v42, %s17385_s0  ;;  %v15899_v42 = vpack.c.bf16 %v1765_v37, %v1764_v35 }
 0xccd   :  { %v1859_v9 = vpop.permute.xlu1 %1858 }
 0xcce   :  { %vm1860_vm8 = vcmp.eq.s32.totalorder %v1859_v9, %v17629_v12 }
 0xccf   :  { %v13212_v28 = vsel %vm1860_vm8, 1.0, %v17384_v10 }
 0xd3c   :  { %v1404_v48 = vpop.permute.xlu0 %1403 }
 0xd3d   :  { %v1406_v52 = vmul.f32 %v16808_v27, %v1404_v48  ;;  %v1769_v48 = vld [vmem:[%s17478_s12 + $0x28] sm:$0xff] }
 0xd3f   :  { %1576 = vrot.lane.b32.xlu0 %v1406_v52, %s17386_s29 }
 0xd8c   :  { %v1721_v54 = vpop.f32.mrb[12].mxu1 }
 0xd8d   :  { %v14422_v47 = vpop.f32.mrb[13].mxu1 }
 0xd8e   :  { %v13234_v47 = vld [vmem:[%s17468_s30 + $0x38] sm:$0xff] }
 0xd90   :  { %v14464_v44 = vpop.f32.mrb[14].mxu1 }
 0xd91   :  { %v1959_v19 = vpop.f32.mrb[15].mxu1 }
 0xd92   :  { %v17882_v22 = vpack.c.bf16 %v14464_v44, %v1959_v19  ;;  %v15905_v44 = vpack.c.bf16 %v1769_v48, %v1768_v43  ;;  %v1770_v19 = vld [vmem:[%s17478_s12 + $0x30] sm:$0xff] }
 0xd94   :  { %15934 = vmatpush3.bf16.msra.mxu1 %v17882_v22 }
 0xd95   :  { %15935 = vmatprep.subr.bf16.mxu1 %v17382_v3 }
 0xd97   :  { %14481 = vmatmul.mubr.msk.f32.vlgmr.msra.gmra.mrb[18].mxu1 %vm168_vm1, %v13212_v28  ;;  %v1771_v28 = vld [vmem:[%s17478_s12 + $0x38] sm:$0xff] }
 0xd98   :  { %14491 = vmatprep.mubr.msk.f32.mxu1 %vm17383_vm0, %v17384_v10  ;;  %v2053_v55 = vpop.f32.mrb[16].mxu1 }
 0xd99   :  { %v14475_v57 = vpop.f32.mrb[17].mxu1 }
 0xd9a   :  { %v1773_v57 = vld [vmem:[%s17478_s12 + $0x48] sm:$0xff] }
 0xdb1   :  { %v1577_v56 = vpop.permute.xlu0 %1576 }
 0xdb2   :  { %14410 = vmatmul.mubr.msk.f32.vlgmr.msra.gmra.mrb[20].mxu0 %vm367_vm4, %v1577_v56  ;;  %v15908_v56 = vpack.c.bf16 %v1771_v28, %v1770_v19 }
 0xdb3   :  { %14455 = vmatprep.mubr.msk.f32.mxu0 %vm17383_vm0, %v17384_v10  ;;  %15900 = vmatpush3.bf16.msra.mxu0 %v15899_v42 }
 0xdb4   :  { %15901 = vmatprep.subr.bf16.mxu0 %v17382_v3 }
 0xe6a   :  { %v2126_v59 = vpop.f32.mrb[18].mxu1 }
 0xe6b   :  { %v2127_v51 = vadd.f32 %v2126_v59, %v2053_v55  ;;  %v14482_v61 = vpop.f32.mrb[19].mxu1  ;;  %v1772_v55 = vld [vmem:[%s17478_s12 + $0x40] sm:$0xff] }
 0xe6c   :  { %v15911_v59 = vpack.c.bf16 %v1773_v57, %v1772_v55  ;;  %v1775_v61 = vld [vmem:[%s17478_s12 + $0x58] sm:$0xff] }
 0xe6d   :  { %v2136_v62 = vadd.f32 %v17894_v58, %v2127_v51  ;;  %v1774_v51 = vld [vmem:[%s17478_s12 + $0x50] sm:$0xff] }
 0xe6f   :  { %16811 = vtanh.f32 %v2136_v62  ;;  %v13238_v5 = vmul.f32 -1.442695, %v2136_v62  ;;  %v15914_v62 = vpack.c.bf16 %v1775_v61, %v1774_v51 }
 0xe79   :  { %v16812_v63 = vpop.eup %16811 }
 0xe7a   :  { %2146 = vrot.lane.b32.xlu0 %v16812_v63, %s17385_s0  ;;  %v1776_v63 = vld [vmem:[%s17478_s12 + $0x60] sm:$0xff] }
 0xe85   :  { %v1646_v60 = vpop.f32.mrb[20].mxu0 }
 0xe86   :  { %v1722_v53 = vadd.f32 %v1721_v54, %v1646_v60  ;;  %v14411_v0 = vpop.f32.mrb[21].mxu0  ;;  %v13233_v54 = vld [vmem:[%s17468_s30 + $0x30] sm:$0xff]  ;;  %v1777_v60 = vld [vmem:[%s17478_s12 + $0x68] sm:$0xff] }
 0xe87   :  { %v17935_v9 = vpack.c.bf16 %v13234_v47, %v13233_v54  ;;  %v13227_v0 = vld [vmem:[%s17463_s24 + $0x20] sm:$0xff] }
 0xe88   :  { %v1725_v1 = vadd.f32 %v17733_v6, %v1722_v53  ;;  %v15917_v53 = vpack.c.bf16 %v1777_v60, %v1776_v63 }
 0xe8a   :  { %16813 = vtanh.f32 %v1725_v1  ;;  %v13210_v13 = vmul.f32 -1.442695, %v1725_v1  ;;  %v13228_v1 = vld [vmem:[%s17463_s24 + $0x28] sm:$0xff] }
 0xe8b   :  { %16815 = vpow2.f32 %v13238_v5  ;;  %v1778_v5 = vld [vmem:[%s17478_s12 + $0x70] sm:$0xff] }
 0xe94   :  { %v16814_v4 = vpop.eup %16813 }
 0xe95   :  { %1735 = vrot.lane.b32.xlu1 %v16814_v4, %s17385_s0  ;;  %v16816_v8 = vpop.eup %16815  ;;  %v17959_v4 = vpack.c.bf16 %v13228_v1, %v13227_v0 }
 0xe96   :  { %v2140_v11 = vadd.f32 1.0, %v16816_v8  ;;  %v1779_v8 = vld [vmem:[%s17478_s12 + $0x78] sm:$0xff] }
 0xe98   :  { %16817 = vrcp.f32 %v2140_v11  ;;  %v15920_v11 = vpack.c.bf16 %v1779_v8, %v1778_v5 }
 0xe99   :  { %16819 = vpow2.f32 %v13210_v13  ;;  %v13229_v13 = vld [vmem:[%s17463_s24 + $0x30] sm:$0xff] }
 0xea2   :  { %v17900_v14 = vpop.eup %16817 }
 0xea3   :  { %v16820_v17 = vpop.eup %16819  ;;  %v2144_v24 = vmul.f32 0.0, %v17900_v14 }
 0xea4   :  { %v1729_v6 = vadd.f32 1.0, %v16820_v17 }
 0xea6   :  { %16821 = vrcp.f32 %v1729_v6 }
 0xeb0   :  { %v17904_v18 = vpop.eup %16821 }
 0xeb1   :  { %v1733_v29 = vmul.f32 %v17904_v18, %v17858_v41  ;;  %v13231_v41 = vld [vmem:[%s17468_s30 + $0x20] sm:$0xff] }
 0xeb2   :  { %v17930_v52 = vpack.c.bf16 %v13232_v39, %v13231_v41 }
 0xeb4   :  { %15937 = vmatpush3.bf16.msra.mxu1 %v17930_v52 }
 0xeb5   :  { %15938 = vmatprep.subr.bf16.mxu1 %v17382_v3 }
 0xeb8   :  { %15940 = vmatpush3.bf16.msra.mxu1 %v17935_v9 }
 0xeb9   :  { %15941 = vmatprep.subr.bf16.mxu1 %v17382_v3 }
 0xebb   :  { %14492 = vmatmul.mubr.f32.vlgmr.msra.gmra.mrb[20].mxu1 %v17384_v10 }
 0xebc   :  { %14502 = vmatprep.mubr.msk.f32.mxu1 %vm17383_vm0, %v17384_v10  ;;  %15943 = vmatpush3.bf16.msra.mxu1 %v17959_v4 }
 0xebd   :  { %15944 = vmatprep.subr.bf16.mxu1 %v17382_v3 }
 0xeec   :  { %v2147_v15 = vpop.permute.xlu0 %2146 }
 0xeed   :  { %v2149_v16 = vmul.f32 %v17900_v14, %v2147_v15  ;;  %v13230_v15 = vld [vmem:[%s17463_s24 + $0x38] sm:$0xff] }
 0xeef   :  { %2151 = vrot.lane.b32.xlu0 %v2149_v16, %s17386_s29  ;;  %v17967_v16 = vpack.c.bf16 %v13230_v15, %v13229_v13 }
 0xef1   :  { %15946 = vmatpush3.bf16.msra.mxu1 %v17967_v16 }
 0xef2   :  { %15953 = vmatprep.subr.bf16.mxu1 %v17382_v3 }
 0xf07   :  { %v1736_v20 = vpop.permute.xlu1 %1735 }
 0xf08   :  { %v1738_v21 = vmul.f32 %v17904_v18, %v1736_v20 }
 0xf0a   :  { %1740 = vrot.lane.b32.xlu1 %v1738_v21, %s17386_s29 }
 0xf61   :  { %v2152_v25 = vpop.permute.xlu0 %2151 }
 0xf62   :  { %v17909_v26 = vadd.f32 %v2152_v25, %v2144_v24 }
 0xf64   :  { %16823 = vtanh.f32 %v17909_v26 }
 0xf6e   :  { %v16824_v27 = vpop.eup %16823 }
 0xf6f   :  { %2157 = vrot.lane.b32.xlu0 %v16824_v27, %s17385_s0 }
 0xf73   :  { %1864 = vperm.xlu0 %16731, %v17846_v31  }
 0xf77   :  { %16732 = vset.pattern.permute.xlu0 %v17388_v40  ;;  %v15902_v40 = vpack.c.bf16 %v1767_v45, %v1766_v38  ;;  %v18013_v38 = vld [vmem:[%s17473_s6 + $0x1] ss:$0 sm:$0xff] }
 0xf79   :  { %15903 = vmatpush3.bf16.msra.mxu0 %v15902_v40 }
 0xf7a   :  { %15904 = vmatprep.subr.bf16.mxu0 %v17382_v3 }
 0xf7c   :  { %v1741_v30 = vpop.permute.xlu1 %1740 }
 0xf7d   :  { %v17917_v33 = vadd.f32 %v1741_v30, %v1733_v29  ;;  %15906 = vmatpush3.bf16.msra.mxu0 %v15905_v44 }
 0xf7e   :  { %15907 = vmatprep.subr.bf16.mxu0 %v17382_v3 }
 0xf7f   :  { %16825 = vtanh.f32 %v17917_v33 }
 0xf81   :  { %15909 = vmatpush3.bf16.msra.mxu0 %v15908_v56 }
 0xf82   :  { %15910 = vmatprep.subr.bf16.mxu0 %v17382_v3 }
 0xf85   :  { %15912 = vmatpush3.bf16.msra.mxu0 %v15911_v59 }
 0xf86   :  { %15913 = vmatprep.subr.bf16.mxu0 %v17382_v3 }
 0xf89   :  { %v16826_v46 = vpop.eup %16825  ;;  %15915 = vmatpush3.bf16.msra.mxu0 %v15914_v62 }
 0xf8a   :  { %1746 = vrot.lane.b32.xlu1 %v16826_v46, %s17385_s0  ;;  %15916 = vmatprep.subr.bf16.mxu0 %v17382_v3 }
 0xf8d   :  { %15918 = vmatpush3.bf16.msra.mxu0 %v15917_v53 }
 0xf8e   :  { %15919 = vmatprep.subr.bf16.mxu0 %v17382_v3  ;;  %v2227_v24 = vpop.f32.mrb[20].mxu1 }
 0xf8f   :  { %v14493_v25 = vpop.f32.mrb[21].mxu1 }
 0xf91   :  { %15921 = vmatpush3.bf16.msra.mxu0 %v15920_v11 }
 0xf92   :  { %15947 = vmatprep.subr.bf16.mxu0 %v17382_v3 }
 0xfe1   :  { %v2158_v20 = vpop.permute.xlu0 %2157 }
 0xfe2   :  { %v2160_v21 = vmul.f32 %v17900_v14, %v2158_v20 }
 0xff2   :  { %v1865_v35 = vpop.permute.xlu0 %1864 }
 0xff3   :  { %vm1866_vm11 = vcmp.eq.s32.totalorder %v1865_v35, %v17629_v12 }
 0xffc   :  { %v1747_v17 = vpop.permute.xlu1 %1746 }
 0xffd   :  { %v1749_v6 = vmul.f32 %v17904_v18, %v1747_v17  ;;  %v1759_v18 = vsel %vm367_vm4, %v17850_v34, %v17835_v32  ;;  %v13213_v32 = vsel %vm1866_vm11, 1.0, %v17384_v10 }
 0xfff   :  { %1752 = vrot.lane.b32.xlu1 %v1749_v6, %s17390_s28 }
0x1003   :  { %1756 = vrot.lane.b32.xlu1 %v17917_v33, %s17385_s0 }
0x1007   :  { %2232 = vrot.lane.b32.xlu1 %v2160_v21, %s17386_s29 }
0x1071   :  { %v1753_v27 = vpop.permute.xlu1 %1752 }
0x1072   :  { %v1761_v29 = vsel %vm1760_vm9, %v1759_v18, %v1753_v27 }
0x1075   :  { %v1757_v30 = vpop.permute.xlu1 %1756 }
0x1076   :  { %v1763_v37 = vsel %vm1762_vm10, %v1761_v29, %v1757_v30 }
0x1077   :  { %14456 = vmatmul.mubr.f32.vlgmr.msra.gmra.mrb[22].mxu0 %v1763_v37 }
0x1078   :  { %15949 = vmatpush3.bf16.msra.mxu0 %v17867_v49  ;;  %14513 = vmatprep.mubr.msk.f32.mxu0 %vm17383_vm0, %v17384_v10 }
0x1079   :  { %v2233_v14 = vpop.permute.xlu1 %2232  ;;  %15950 = vmatprep.subr.bf16.mxu0 %v17382_v3 }
0x107a   :  { %14503 = vmatmul.mubr.msk.f32.vlgmr.msra.gmra.mrb[22].mxu1 %vm367_vm4, %v2233_v14 }
0x107b   :  { %15955 = vmatpush3.bf16.msra.mxu1 %v17882_v22  ;;  %14520 = vmatprep.mubr.msk.f32.mxu1 %vm17383_vm0, %v17384_v10 }
0x107c   :  { %15952 = vmatpush3.bf16.msra.mxu0 %v17873_v50  ;;  %15956 = vmatprep.subr.bf16.mxu1 %v17382_v3 }
0x107d   :  { %15962 = vmatprep.subr.bf16.mxu0 %v17382_v3 }
0x107e   :  { %14521 = vmatmul.mubr.msk.f32.vlgmr.msra.gmra.mrb[24].mxu1 %vm168_vm1, %v13213_v32 }
0x107f   :  { %14514 = vmatmul.mubr.msk.f32.vlgmr.msra.gmra.mrb[24].mxu0 %vm367_vm4, %v2233_v14  ;;  %15958 = vmatpush3.bf16.msra.mxu1 %v17930_v52 }
0x1080   :  { %15959 = vmatprep.subr.bf16.mxu1 %v17382_v3  ;;  %15964 = vmatpush3.bf16.msra.mxu0 %v17959_v4 }
0x1081   :  { %14531 = vmatprep.mubr.msk.f32.mxu1 %vm17383_vm0, %v17384_v10  ;;  %15965 = vmatprep.subr.bf16.mxu0 %v17382_v3 }
0x1082   :  { %14542 = vmatprep.mubr.msk.f32.mxu0 %vm17383_vm0, %v17384_v10 }
0x1083   :  { %15961 = vmatpush3.bf16.msra.mxu1 %v17935_v9 }
0x1084   :  { %15968 = vmatprep.subr.bf16.mxu1 %v17382_v3  ;;  %15967 = vmatpush3.bf16.msra.mxu0 %v17967_v16 }
0x1085   :  { %15974 = vmatprep.subr.bf16.mxu0 %v17382_v3 }
0x114a   :  { %v18010_v34 = vpop.f32.mrb[22].mxu0 }
0x114b   :  { %v14457_v33 = vpop.f32.mrb[23].mxu0 }
0x114d   :  { %v2302_v42 = vpop.f32.mrb[22].mxu1 }
0x114e   :  { %v2303_v45 = vadd.f32 %v2302_v42, %v2227_v24  ;;  %v14504_v46 = vpop.f32.mrb[23].mxu1 }
0x1150   :  { %v2312_v40 = vadd.f32 %v18013_v38, %v2303_v45 }
0x1151   :  { %v2476_v41 = vpop.f32.mrb[24].mxu1 }
0x1152   :  { %16827 = vtanh.f32 %v2312_v40  ;;  %v2403_v39 = vpop.f32.mrb[24].mxu0  ;;  %v14522_v43 = vpop.f32.mrb[25].mxu1  ;;  %v13241_v28 = vmul.f32 -1.442695, %v2312_v40 }
0x1153   :  { %v2477_v48 = vadd.f32 %v2476_v41, %v2403_v39  ;;  %v14515_v54 = vpop.f32.mrb[25].mxu0 }
0x1155   :  { %v2480_v47 = vadd.f32 %v17894_v58, %v2477_v48 }
0x1157   :  { %16829 = vtanh.f32 %v2480_v47  ;;  %v13244_v56 = vmul.f32 -1.442695, %v2480_v47 }
0x1158   :  { %16831 = vpow2.f32 %v13241_v28 }
0x1159   :  { %16833 = vpow2.f32 %v13244_v56 }
0x115c   :  { %v16828_v44 = vpop.eup %16827 }
0x115d   :  { %2322 = vrot.lane.b32.xlu0 %v16828_v44, %s17385_s0 }
0x1161   :  { %v16830_v19 = vpop.eup %16829 }
0x1162   :  { %2490 = vrot.lane.b32.xlu1 %v16830_v19, %s17385_s0  ;;  %v16832_v55 = vpop.eup %16831 }
0x1163   :  { %v2316_v57 = vadd.f32 1.0, %v16832_v55  ;;  %v16834_v59 = vpop.eup %16833 }
0x1164   :  { %v2484_v51 = vadd.f32 1.0, %v16834_v59 }
0x1165   :  { %16835 = vrcp.f32 %v2316_v57 }
0x1166   :  { %16837 = vrcp.f32 %v2484_v51 }
0x116f   :  { %v16836_v61 = vpop.eup %16835 }
0x1170   :  { %v16838_v60 = vpop.eup %16837  ;;  %v2320_v1 = vmul.f32 0.0, %v16836_v61 }
0x1171   :  { %v2488_v11 = vmul.f32 %v16838_v60, %v17909_v26 }
0x11cf   :  { %v2323_v62 = vpop.permute.xlu0 %2322 }
0x11d0   :  { %v2325_v63 = vmul.f32 %v16836_v61, %v2323_v62 }
0x11d2   :  { %2327 = vrot.lane.b32.xlu0 %v2325_v63, %s17386_s29 }
0x11d4   :  { %v2491_v53 = vpop.permute.xlu1 %2490 }
0x11d5   :  { %v2493_v0 = vmul.f32 %v16838_v60, %v2491_v53 }
0x11d7   :  { %2495 = vrot.lane.b32.xlu1 %v2493_v0, %s17386_s29 }
0x1244   :  { %v2328_v5 = vpop.permute.xlu0 %2327 }
0x1245   :  { %v18021_v8 = vadd.f32 %v2328_v5, %v2320_v1 }
0x1247   :  { %16839 = vtanh.f32 %v18021_v8 }
0x1249   :  { %v2496_v13 = vpop.permute.xlu1 %2495 }
0x124a   :  { %v18025_v15 = vadd.f32 %v2496_v13, %v2488_v11 }
0x124c   :  { %16841 = vtanh.f32 %v18025_v15 }
0x1251   :  { %v16840_v17 = vpop.eup %16839 }
0x1252   :  { %2333 = vrot.lane.b32.xlu0 %v16840_v17, %s17385_s0 }
0x1256   :  { %v16842_v6 = vpop.eup %16841  ;;  %1870 = vperm.xlu0 %16732, %v17846_v31  }
0x1257   :  { %2501 = vrot.lane.b32.xlu1 %v16842_v6, %s17385_s0 }
0x125a   :  { %16733 = vset.pattern.permute.xlu0 %v17389_v36 }
0x12c4   :  { %v2334_v20 = vpop.permute.xlu0 %2333 }
0x12c5   :  { %v2336_v21 = vmul.f32 %v16836_v61, %v2334_v20 }
0x12c7   :  { %2506 = vrot.lane.b32.xlu1 %v2336_v21, %s17386_s29 }
0x12c9   :  { %v2502_v26 = vpop.permute.xlu1 %2501 }
0x12ca   :  { %v2504_v24 = vmul.f32 %v16838_v60, %v2502_v26 }
0x12cc   :  { %2581 = vrot.lane.b32.xlu1 %v2504_v24, %s17386_s29 }
0x12d5   :  { %v1871_v27 = vpop.permute.xlu0 %1870 }
0x12d6   :  { %vm1872_vm12 = vcmp.eq.s32.totalorder %v1871_v27, %v17629_v12 }
0x12d7   :  { %v13214_v18 = vsel %vm1872_vm12, 1.0, %v17384_v10 }
0x1339   :  { %v2507_v25 = vpop.permute.xlu1 %2506 }
0x133a   :  { %14532 = vmatmul.mubr.msk.f32.vlgmr.msra.gmra.mrb[26].mxu1 %vm367_vm4, %v2507_v25 }
0x133b   :  { %15970 = vmatpush3.bf16.msra.mxu1 %v17867_v49  ;;  %14553 = vmatprep.mubr.msk.f32.mxu1 %vm17383_vm0, %v17384_v10 }
0x133c   :  { %15971 = vmatprep.subr.bf16.mxu1 %v17382_v3 }
0x133e   :  { %v2582_v36 = vpop.permute.xlu1 %2581 }
0x133f   :  { %14543 = vmatmul.mubr.msk.f32.vlgmr.msra.gmra.mrb[26].mxu0 %vm367_vm4, %v2582_v36  ;;  %15973 = vmatpush3.bf16.msra.mxu1 %v17873_v50 }
0x1340   :  { %15976 = vmatpush3.bf16.msra.mxu0 %v17882_v22  ;;  %14560 = vmatprep.mubr.msk.f32.mxu0 %vm17383_vm0, %v17384_v10 }
0x1341   :  { %15977 = vmatprep.subr.bf16.mxu0 %v17382_v3  ;;  %15983 = vmatprep.subr.bf16.mxu1 %v17382_v3 }
0x1342   :  { %14554 = vmatmul.mubr.msk.f32.vlgmr.msra.gmra.mrb[28].mxu1 %vm367_vm4, %v2582_v36 }
0x1343   :  { %14561 = vmatmul.mubr.msk.f32.vlgmr.msra.gmra.mrb[28].mxu0 %vm168_vm1, %v13214_v18  ;;  %15985 = vmatpush3.bf16.msra.mxu1 %v17959_v4 }
0x1344   :  { %15979 = vmatpush3.bf16.msra.mxu0 %v17930_v52  ;;  %14571 = vmatprep.mubr.msk.f32.mxu0 %vm17383_vm0, %v17384_v10 }
0x1345   :  { %15980 = vmatprep.subr.bf16.mxu0 %v17382_v3  ;;  %15986 = vmatprep.subr.bf16.mxu1 %v17382_v3 }
0x1346   :  { %14582 = vmatprep.mubr.msk.f32.mxu1 %vm17383_vm0, %v17384_v10 }
0x1347   :  { %15988 = vmatpush3.bf16.msra.mxu1 %v17967_v16 }
0x1348   :  { %15982 = vmatpush3.bf16.msra.mxu0 %v17935_v9  ;;  %15995 = vmatprep.subr.bf16.mxu1 %v17382_v3 }
0x1349   :  { %15989 = vmatprep.subr.bf16.mxu0 %v17382_v3 }
0x140d   :  { %v2576_v29 = vpop.f32.mrb[26].mxu1 }
0x140e   :  { %v14533_v30 = vpop.f32.mrb[27].mxu1 }
0x1412   :  { %v2651_v35 = vpop.f32.mrb[26].mxu0 }
0x1413   :  { %v2652_v37 = vadd.f32 %v2651_v35, %v2576_v29  ;;  %v14544_v14 = vpop.f32.mrb[27].mxu0 }
0x1415   :  { %v2655_v32 = vadd.f32 %v18013_v38, %v2652_v37  ;;  %v2746_v33 = vpop.f32.mrb[28].mxu1 }
0x1416   :  { %v14555_v42 = vpop.f32.mrb[29].mxu1  ;;  %v2819_v45 = vpop.f32.mrb[28].mxu0 }
0x1417   :  { %16843 = vtanh.f32 %v2655_v32  ;;  %v2820_v46 = vadd.f32 %v2819_v45, %v2746_v33  ;;  %v14562_v40 = vpop.f32.mrb[29].mxu0  ;;  %v13247_v48 = vmul.f32 -1.442695, %v2655_v32 }
0x1419   :  { %v2823_v41 = vadd.f32 %v17894_v58, %v2820_v46 }
0x141b   :  { %16845 = vtanh.f32 %v2823_v41  ;;  %v13250_v54 = vmul.f32 -1.442695, %v2823_v41 }
0x141c   :  { %16847 = vpow2.f32 %v13247_v48 }
0x141d   :  { %16849 = vpow2.f32 %v13250_v54 }
0x1421   :  { %v16844_v39 = vpop.eup %16843 }
0x1422   :  { %2665 = vrot.lane.b32.xlu0 %v16844_v39, %s17385_s0 }
0x1425   :  { %v16846_v43 = vpop.eup %16845 }
0x1426   :  { %2833 = vrot.lane.b32.xlu1 %v16846_v43, %s17385_s0  ;;  %v16848_v47 = vpop.eup %16847 }
0x1427   :  { %v2659_v44 = vadd.f32 1.0, %v16848_v47  ;;  %v16850_v19 = vpop.eup %16849 }
0x1428   :  { %v2827_v28 = vadd.f32 1.0, %v16850_v19 }
0x1429   :  { %16851 = vrcp.f32 %v2659_v44 }
0x142a   :  { %16853 = vrcp.f32 %v2827_v28 }
0x1433   :  { %v16852_v56 = vpop.eup %16851 }
0x1434   :  { %v16854_v59 = vpop.eup %16853  ;;  %v2663_v62 = vmul.f32 %v16852_v56, %v18021_v8 }
0x1435   :  { %v2831_v53 = vmul.f32 %v16854_v59, %v18025_v15 }
0x1494   :  { %v2666_v55 = vpop.permute.xlu0 %2665 }
0x1495   :  { %v2668_v57 = vmul.f32 %v16852_v56, %v2666_v55  ;;  %v3573_v55 = vld [vmem:[%s17488_s27 + $0x8] sm:$0xff] }
0x1497   :  { %2670 = vrot.lane.b32.xlu0 %v2668_v57, %s17386_s29 }
0x1498   :  { %v2834_v51 = vpop.permute.xlu1 %2833 }
0x1499   :  { %v2836_v61 = vmul.f32 %v16854_v59, %v2834_v51 }
0x149b   :  { %2838 = vrot.lane.b32.xlu1 %v2836_v61, %s17386_s29  ;;  %v3574_v61 = vld [vmem:[%s17488_s27 + $0x10] sm:$0xff] }
0x1509   :  { %v2671_v63 = vpop.permute.xlu0 %2670 }
0x150a   :  { %v18069_v60 = vadd.f32 %v2671_v63, %v2663_v62  ;;  %v3575_v62 = vld [vmem:[%s17488_s27 + $0x18] sm:$0xff] }
0x150b   :  { %v16042_v63 = vpack.c.bf16 %v3575_v62, %v3574_v61 }
0x150c   :  { %16855 = vtanh.f32 %v18069_v60 }
0x150d   :  { %v2839_v0 = vpop.permute.xlu1 %2838 }
0x150e   :  { %v18073_v1 = vadd.f32 %v2839_v0, %v2831_v53 }
0x1510   :  { %16857 = vtanh.f32 %v18073_v1 }
0x1516   :  { %v16856_v5 = vpop.eup %16855 }
0x1517   :  { %2676 = vrot.lane.b32.xlu0 %v16856_v5, %s17385_s0  ;;  %v3659_v5 = vld [vmem:[%s19957_s1 + $0x8] sm:$0xff] }
0x151a   :  { %v16858_v11 = vpop.eup %16857 }
0x151b   :  { %2844 = vrot.lane.b32.xlu1 %v16858_v11, %s17385_s0  ;;  %1876 = vperm.xlu0 %16733, %v17846_v31  }
0x151f   :  { %16749 = vset.pattern.permute.xlu0 %v17381_v2 }
0x1589   :  { %v2677_v8 = vpop.permute.xlu0 %2676 }
0x158a   :  { %v2679_v13 = vmul.f32 %v16852_v56, %v2677_v8  ;;  %v3572_v56 = vld [vmem:[%s17488_s27] sm:$0xff]  ;;  %v3661_v8 = vld [vmem:[%s19957_s1 + $0x18] sm:$0xff] }
0x158b   :  { %v16039_v51 = vpack.c.bf16 %v3573_v55, %v3572_v56 }
0x158c   :  { %2849 = vrot.lane.b32.xlu1 %v2679_v13, %s17386_s29 }
0x158d   :  { %v2845_v15 = vpop.permute.xlu1 %2844 }
0x158e   :  { %v2847_v17 = vmul.f32 %v16854_v59, %v2845_v15 }
0x1590   :  { %2924 = vrot.lane.b32.xlu1 %v2847_v17, %s17386_s29 }
0x159a   :  { %v1877_v20 = vpop.permute.xlu0 %1876 }
0x159b   :  { %vm1878_vm13 = vcmp.eq.s32.totalorder %v1877_v20, %v17629_v12 }
0x159c   :  { %v13215_v31 = vsel %vm1878_vm13, 1.0, %v17384_v10 }
0x15fe   :  { %v2850_v6 = vpop.permute.xlu1 %2849 }
0x15ff   :  { %14572 = vmatmul.mubr.msk.f32.vlgmr.msra.gmra.mrb[30].mxu0 %vm367_vm4, %v2850_v6 }
0x1600   :  { %15991 = vmatpush3.bf16.msra.mxu0 %v17867_v49  ;;  %14593 = vmatprep.mubr.msk.f32.mxu0 %vm17383_vm0, %v17384_v10 }
0x1601   :  { %15992 = vmatprep.subr.bf16.mxu0 %v17382_v3 }
0x1602   :  { %v2925_v2 = vpop.permute.xlu1 %2924 }
0x1603   :  { %14583 = vmatmul.mubr.msk.f32.vlgmr.msra.gmra.mrb[30].mxu1 %vm367_vm4, %v2925_v2 }
0x1604   :  { %15994 = vmatpush3.bf16.msra.mxu0 %v17873_v50  ;;  %15997 = vmatpush3.bf16.msra.mxu1 %v17882_v22 }
0x1605   :  { %14600 = vmatprep.mubr.msk.f32.mxu1 %vm17383_vm0, %v17384_v10  ;;  %16004 = vmatprep.subr.bf16.mxu0 %v17382_v3 }
0x1606   :  { %15998 = vmatprep.subr.bf16.mxu1 %v17382_v3 }
0x1607   :  { %14594 = vmatmul.mubr.msk.f32.vlgmr.msra.gmra.mrb[32].mxu0 %vm367_vm4, %v2925_v2  ;;  %14601 = vmatmul.mubr.msk.f32.vlgmr.msra.gmra.mrb[32].mxu1 %vm168_vm1, %v13215_v31 }
0x1608   :  { %16006 = vmatpush3.bf16.msra.mxu0 %v17959_v4  ;;  %14622 = vmatprep.mubr.msk.f32.mxu0 %vm17383_vm0, %v17384_v10 }
0x1609   :  { %16007 = vmatprep.subr.bf16.mxu0 %v17382_v3  ;;  %16000 = vmatpush3.bf16.msra.mxu1 %v17930_v52 }
0x160a   :  { %16001 = vmatprep.subr.bf16.mxu1 %v17382_v3  ;;  %14611 = vmatprep.mubr.msk.f32.mxu1 %vm17383_vm0, %v17384_v10 }
0x160c   :  { %16009 = vmatpush3.bf16.msra.mxu0 %v17967_v16 }
0x160d   :  { %16034 = vmatprep.subr.bf16.mxu0 %v17382_v3  ;;  %16003 = vmatpush3.bf16.msra.mxu1 %v17935_v9 }
0x160e   :  { %16010 = vmatprep.subr.bf16.mxu1 %v17382_v3 }
0x16d2   :  { %v2919_v49 = vpop.f32.mrb[30].mxu0 }
0x16d3   :  { %v14573_v50 = vpop.f32.mrb[31].mxu0 }
0x16d4   :  { %v3657_v50 = vld [vmem:[%s19958_s2 + $0x8] sm:$0xff] }
0x16d6   :  { %v2994_v22 = vpop.f32.mrb[30].mxu1 }
0x16d7   :  { %v2995_v4 = vadd.f32 %v2994_v22, %v2919_v49  ;;  %v14584_v21 = vpop.f32.mrb[31].mxu1  ;;  %v3656_v49 = vld [vmem:[%s19958_s2] sm:$0xff] }
0x16d8   :  { %v13283_v22 = vld [vmem:[%s19959_s7] ss:$0 sm:$0xff]  ;;  %v18181_v21 = vpack.c.bf16 %v3657_v50, %v3656_v49  ;;  %v13267_v49 = vld [vmem:[%s17478_s12 + $0xb8] sm:$0xff] }
0x16da   :  { %v3089_v26 = vpop.f32.mrb[32].mxu0  ;;  %v3162_v52 = vpop.f32.mrb[32].mxu1 }
0x16db   :  { %v14595_v24 = vpop.f32.mrb[33].mxu0  ;;  %v3163_v25 = vadd.f32 %v3162_v52, %v3089_v26  ;;  %v14602_v27 = vpop.f32.mrb[33].mxu1 }
0x16dc   :  { %v18192_v24 = vsel %vm3677_vm15, 1.0, %v17384_v10 }
0x16dd   :  { %v3166_v36 = vadd.f32 %v17894_v58, %v3163_v25  ;;  %v2998_v58 = vadd.f32 %v18013_v38, %v2995_v4 }
0x16df   :  { %16859 = vtanh.f32 %v3166_v36  ;;  %v13256_v18 = vmul.f32 -1.442695, %v3166_v36  ;;  %v13253_v46 = vmul.f32 -1.442695, %v2998_v58 }
0x16e1   :  { %16861 = vpow2.f32 %v13256_v18 }
0x16e9   :  { %v16860_v16 = vpop.eup %16859 }
0x16ea   :  { %3176 = vrot.lane.b32.xlu0 %v16860_v16, %s17385_s0  ;;  %v18203_v16 = vld [vmem:[%s19960_s10] ss:$0 sm:$0xff] }
0x16eb   :  { %v16862_v9 = vpop.eup %16861 }
0x16ec   :  { %v3170_v29 = vadd.f32 1.0, %v16862_v9 }
0x16ee   :  { %16863 = vrcp.f32 %v3170_v29 }
0x16f8   :  { %v16864_v30 = vpop.eup %16863 }
0x16f9   :  { %v3174_v14 = vmul.f32 %v16864_v30, %v18073_v1  ;;  %v3658_v1 = vld [vmem:[%s19957_s1] sm:$0xff] }
0x16fa   :  { %v18163_v11 = vpack.c.bf16 %v3659_v5, %v3658_v1  ;;  %v13261_v1 = vld [vmem:[%s17478_s12 + $0x88] sm:$0xff]  ;;  %v13262_v5 = vld [vmem:[%s17478_s12 + $0x90] sm:$0xff] }
0x175c   :  { %v3177_v35 = vpop.permute.xlu0 %3176 }
0x175d   :  { %v3179_v37 = vmul.f32 %v16864_v30, %v3177_v35 }
0x175f   :  { %3181 = vrot.lane.b32.xlu1 %v3179_v37, %s17386_s29 }
0x17d1   :  { %v3182_v32 = vpop.permute.xlu1 %3181 }
0x17d2   :  { %v18114_v33 = vadd.f32 %v3182_v32, %v3174_v14 }
0x17d4   :  { %16865 = vtanh.f32 %v18114_v33 }
0x17d5   :  { %16867 = vtanh.f32 %v2998_v58 }
0x17d6   :  { %16869 = vpow2.f32 %v13253_v46 }
0x17de   :  { %v16866_v42 = vpop.eup %16865 }
0x17df   :  { %3187 = vrot.lane.b32.xlu0 %v16866_v42, %s17385_s0  ;;  %v16868_v45 = vpop.eup %16867 }
0x17e0   :  { %v16870_v40 = vpop.eup %16869 }
0x17e1   :  { %v3002_v41 = vadd.f32 1.0, %v16870_v40 }
0x17e3   :  { %3008 = vrot.lane.b32.xlu0 %v16868_v45, %s17385_s0  ;;  %16871 = vrcp.f32 %v3002_v41 }
0x17ed   :  { %v16872_v48 = vpop.eup %16871 }
0x17ee   :  { %v3006_v28 = vmul.f32 %v16872_v48, %v18069_v60  ;;  %v13211_v60 = vld [vmem:[%s17483_s20] ss:$0 sm:$0xff] }
0x17ef   :  { %v18153_v53 = vadd.f32 %v13211_v60, %v18010_v34  ;;  %v3660_v34 = vld [vmem:[%s19957_s1 + $0x10] sm:$0xff] }
0x17f0   :  { %v18169_v13 = vpack.c.bf16 %v3661_v8, %v3660_v34  ;;  %v13263_v8 = vld [vmem:[%s17478_s12 + $0x98] sm:$0xff] }
0x1851   :  { %v3188_v39 = vpop.permute.xlu0 %3187 }
0x1852   :  { %v3190_v43 = vmul.f32 %v16864_v30, %v3188_v39 }
0x1854   :  { %3267 = vrot.lane.b32.xlu1 %v3190_v43, %s17386_s29 }
0x1855   :  { %v3009_v54 = vpop.permute.xlu0 %3008 }
0x1856   :  { %v3011_v47 = vmul.f32 %v16872_v48, %v3009_v54 }
0x1858   :  { %3013 = vrot.lane.b32.xlu1 %v3011_v47, %s17386_s29 }
0x18c6   :  { %v18128_v19 = vpop.permute.xlu1 %3267 }
0x18c7   :  { %14623 = vmatmul.mubr.msk.f32.vlgmr.msra.gmra.mrb[34].mxu0 %vm367_vm4, %v18128_v19 }
0x18c8   :  { %16037 = vmatpush3.bf16.xpose.msk.msra.mxu0 %vm18124_vm14, %v17617_v7  ;;  %14664 = vmatprep.mubr.msk.f32.mxu0 %vm17383_vm0, %v17384_v10 }
0x18c9   :  { %16038 = vmatprep.subr.bf16.mxu0 %v17382_v3 }
0x18ca   :  { %v3014_v57 = vpop.permute.xlu1 %3013 }
0x18cb   :  { %v18141_v59 = vadd.f32 %v3014_v57, %v3006_v28 }
0x18cd   :  { %16873 = vtanh.f32 %v18141_v59 }
0x18cf   :  { %14665 = vmatmul.mubr.msk.f32.vlgmr.msra.gmra.mrb[36].mxu0 %vm367_vm4, %v17656_v23 }
0x18d0   :  { %16040 = vmatpush3.bf16.msra.mxu0 %v16039_v51  ;;  %14675 = vmatprep.mubr.msk.f32.mxu0 %vm17383_vm0, %v17384_v10 }
0x18d1   :  { %16041 = vmatprep.subr.bf16.mxu0 %v17382_v3 }
0x18d4   :  { %16043 = vmatpush3.bf16.msra.mxu0 %v16042_v63 }
0x18d5   :  { %16044 = vmatprep.subr.bf16.mxu0 %v17382_v3 }
0x18d7   :  { %v16874_v0 = vpop.eup %16873  ;;  %14676 = vmatmul.mubr.msk.f32.vlgmr.msra.gmra.mrb[38].mxu0 %vm367_vm4, %v18153_v53 }
0x18d8   :  { %3019 = vrot.lane.b32.xlu0 %v16874_v0, %s17385_s0  ;;  %14686 = vmatprep.mubr.msk.f32.mxu0 %vm17383_vm0, %v17384_v10  ;;  %v13260_v0 = vld [vmem:[%s17478_s12 + $0x80] sm:$0xff] }
0x18d9   :  { %16046 = vmatpush3.bf16.msra.mxu0 %v18163_v11  ;;  %v16011_v34 = vpack.c.bf16 %v13261_v1, %v13260_v0 }
0x18da   :  { %16047 = vmatprep.subr.bf16.mxu0 %v17382_v3 }
0x18dd   :  { %16049 = vmatpush3.bf16.msra.mxu0 %v18169_v13 }
0x18de   :  { %16050 = vmatprep.subr.bf16.mxu0 %v17382_v3 }
0x194a   :  { %v3020_v15 = vpop.permute.xlu0 %3019 }
0x194b   :  { %v3022_v17 = vmul.f32 %v16872_v48, %v3020_v15  ;;  %v16014_v15 = vpack.c.bf16 %v13263_v8, %v13262_v5  ;;  %v18308_v5 = vld [vmem:[%s19963_s16] ss:$0 sm:$0xff] }
0x194d   :  { %3192 = vrot.lane.b32.xlu1 %v3022_v17, %s17386_s29  ;;  %v13264_v17 = vld [vmem:[%s17478_s12 + $0xa0] sm:$0xff] }
0x199a   :  { %v3337_v6 = vpop.f32.mrb[34].mxu0 }
0x199b   :  { %v14624_v20 = vpop.f32.mrb[35].mxu0 }
0x19a2   :  { %v18174_v2 = vpop.f32.mrb[36].mxu0 }
0x19a3   :  { %3552 = vst.msk [vmem:[#allocation4] sm:$0xff] %vm168_vm1, %v18174_v2  ;;  %v14666_v31 = vpop.f32.mrb[37].mxu0 }
0x19a4   :  { %v13266_v31 = vld [vmem:[%s17478_s12 + $0xb0] sm:$0xff] }
0x19a5   :  { %v16020_v50 = vpack.c.bf16 %v13267_v49, %v13266_v31 }
0x19aa   :  { %v3652_v4 = vpop.f32.mrb[38].mxu0 }
0x19ab   :  { %v18183_v26 = vadd.f32 %v13283_v22, %v3652_v4  ;;  %v14677_v52 = vpop.f32.mrb[39].mxu0  ;;  %v13268_v22 = vld [vmem:[%s17478_s12 + $0xc0] sm:$0xff]  ;;  %v13269_v4 = vld [vmem:[%s17478_s12 + $0xc8] sm:$0xff] }
0x19ac   :  { %v13270_v52 = vld [vmem:[%s17478_s12 + $0xd0] sm:$0xff] }
0x19ad   :  { %14687 = vmatmul.mubr.msk.f32.vlgmr.msra.gmra.mrb[40].mxu0 %vm367_vm4, %v18183_v26 }
0x19ae   :  { %16052 = vmatpush3.bf16.msra.mxu0 %v18181_v21  ;;  %14693 = vmatprep.mubr.msk.f32.mxu0 %vm17383_vm0, %v17384_v10 }
0x19af   :  { %16053 = vmatprep.subr.bf16.mxu0 %v17382_v3 }
0x19b1   :  { %14694 = vmatmul.mubr.msk.f32.vlgmr.msra.gmra.mrb[42].mxu0 %vm168_vm1, %v18192_v24 }
0x19b2   :  { %14704 = vmatprep.mubr.msk.f32.mxu0 %vm17383_vm0, %v17384_v10 }
0x19bf   :  { %v3193_v25 = vpop.permute.xlu1 %3192 }
0x19c0   :  { %14612 = vmatmul.mubr.msk.f32.vlgmr.msra.gmra.mrb[34].mxu1 %vm367_vm4, %v3193_v25  ;;  %v16023_v25 = vpack.c.bf16 %v13269_v4, %v13268_v22 }
0x19c1   :  { %14657 = vmatprep.mubr.msk.f32.mxu1 %vm17383_vm0, %v17384_v10  ;;  %16012 = vmatpush3.bf16.msra.mxu1 %v16011_v34 }
0x19c2   :  { %16013 = vmatprep.subr.bf16.mxu1 %v17382_v3 }
0x19c5   :  { %16015 = vmatpush3.bf16.msra.mxu1 %v16014_v15 }
0x19c6   :  { %16016 = vmatprep.subr.bf16.mxu1 %v17382_v3 }
0x1a80   :  { %v3750_v27 = vpop.f32.mrb[40].mxu0 }
0x1a81   :  { %v14688_v36 = vpop.f32.mrb[41].mxu0 }
0x1a82   :  { %v3667_v36 = vld [vmem:[%s19961_s11] sm:$0xff] }
0x1a84   :  { %v3823_v18 = vpop.f32.mrb[42].mxu0 }
0x1a85   :  { %v3824_v9 = vadd.f32 %v3823_v18, %v3750_v27  ;;  %v14695_v29 = vpop.f32.mrb[43].mxu0  ;;  %v13271_v27 = vld [vmem:[%s17478_s12 + $0xd8] sm:$0xff]  ;;  %v3668_v18 = vld [vmem:[%s19961_s11 + $0x8] sm:$0xff] }
0x1a86   :  { %v18245_v29 = vpack.c.bf16 %v3668_v18, %v3667_v36  ;;  %v3672_v18 = vld [vmem:[%s19964_s18] sm:$0xff] }
0x1a87   :  { %v3833_v30 = vadd.f32 %v18203_v16, %v3824_v9  ;;  %v16026_v9 = vpack.c.bf16 %v13271_v27, %v13270_v52 }
0x1a88   :  { %16055 = vmatpush3.bf16.msra.mxu0 %v18245_v29 }
0x1a89   :  { %16875 = vtanh.f32 %v3833_v30  ;;  %v13289_v45 = vmul.f32 -1.442695, %v3833_v30  ;;  %v13272_v30 = vld [vmem:[%s17478_s12 + $0xe0] sm:$0xff]  ;;  %16056 = vmatprep.subr.bf16.mxu0 %v17382_v3 }
0x1a93   :  { %v16876_v35 = vpop.eup %16875  ;;  %v3262_v37 = vpop.f32.mrb[34].mxu1 }
0x1a94   :  { %v3338_v14 = vadd.f32 %v3337_v6, %v3262_v37  ;;  %3843 = vrot.lane.b32.xlu1 %v16876_v35, %s17385_s0  ;;  %v14613_v32 = vpop.f32.mrb[35].mxu1  ;;  %v13273_v35 = vld [vmem:[%s17478_s12 + $0xe8] sm:$0xff] }
0x1a95   :  { %v16029_v37 = vpack.c.bf16 %v13273_v35, %v13272_v30  ;;  %v13275_v32 = vld [vmem:[%s17478_s12 + $0xf8] sm:$0xff]  ;;  %v3674_v30 = vld [vmem:[%s19964_s18 + $0x10] sm:$0xff] }
0x1a96   :  { %v3341_v58 = vadd.f32 %v18013_v38, %v3338_v14  ;;  %v13274_v14 = vld [vmem:[%s17478_s12 + $0xf0] sm:$0xff] }
0x1a98   :  { %16877 = vtanh.f32 %v3341_v58  ;;  %v13259_v40 = vmul.f32 -1.442695, %v3341_v58 }
0x1a99   :  { %16879 = vpow2.f32 %v13289_v45 }
0x1a9a   :  { %16881 = vpow2.f32 %v13259_v40  ;;  %v3670_v40 = vld [vmem:[%s19961_s11 + $0x18] sm:$0xff] }
0x1aa2   :  { %v16878_v42 = vpop.eup %16877 }
0x1aa3   :  { %3351 = vrot.lane.b32.xlu0 %v16878_v42, %s17385_s0  ;;  %v16880_v46 = vpop.eup %16879  ;;  %v16032_v42 = vpack.c.bf16 %v13275_v32, %v13274_v14 }
0x1aa4   :  { %v3837_v41 = vadd.f32 1.0, %v16880_v46  ;;  %v16882_v39 = vpop.eup %16881  ;;  %v3669_v46 = vld [vmem:[%s19961_s11 + $0x10] sm:$0xff] }
0x1aa5   :  { %v3345_v47 = vadd.f32 1.0, %v16882_v39 }
0x1aa6   :  { %16883 = vrcp.f32 %v3837_v41  ;;  %v18260_v41 = vpack.c.bf16 %v3670_v40, %v3669_v46  ;;  %v18345_v46 = vld [vmem:[%s19965_s22] ss:$0 sm:$0xff] }
0x1aa7   :  { %16885 = vrcp.f32 %v3345_v47  ;;  %v3375_v47 = vsel %vm367_vm4, %v18128_v19, %v18114_v33 }
0x1aa8   :  { %16058 = vmatpush3.bf16.msra.mxu0 %v18260_v41 }
0x1aa9   :  { %16065 = vmatprep.subr.bf16.mxu0 %v17382_v3 }
0x1ab0   :  { %v18209_v43 = vpop.eup %16883 }
0x1ab1   :  { %v18213_v38 = vpop.eup %16885  ;;  %v3841_v55 = vmul.f32 %v18209_v43, %v18183_v26 }
0x1ab2   :  { %v3349_v62 = vmul.f32 %v18213_v38, %v18141_v59  ;;  %v13265_v59 = vld [vmem:[%s17478_s12 + $0xa8] sm:$0xff] }
0x1ab3   :  { %v16017_v20 = vpack.c.bf16 %v13265_v59, %v13264_v17 }
0x1ab5   :  { %16018 = vmatpush3.bf16.msra.mxu1 %v16017_v20 }
0x1ab6   :  { %16019 = vmatprep.subr.bf16.mxu1 %v17382_v3 }
0x1ab9   :  { %16021 = vmatpush3.bf16.msra.mxu1 %v16020_v50 }
0x1aba   :  { %16022 = vmatprep.subr.bf16.mxu1 %v17382_v3 }
0x1abd   :  { %16024 = vmatpush3.bf16.msra.mxu1 %v16023_v25 }
0x1abe   :  { %16025 = vmatprep.subr.bf16.mxu1 %v17382_v3 }
0x1ac1   :  { %16027 = vmatpush3.bf16.msra.mxu1 %v16026_v9  ;;  %v3673_v9 = vld [vmem:[%s19964_s18 + $0x8] sm:$0xff] }
0x1ac2   :  { %16028 = vmatprep.subr.bf16.mxu1 %v17382_v3  ;;  %v18321_v35 = vpack.c.bf16 %v3673_v9, %v3672_v18 }
0x1ac5   :  { %16030 = vmatpush3.bf16.msra.mxu1 %v16029_v37  ;;  %v3675_v37 = vld [vmem:[%s19964_s18 + $0x18] sm:$0xff] }
0x1ac6   :  { %16031 = vmatprep.subr.bf16.mxu1 %v17382_v3  ;;  %v18325_v14 = vpack.c.bf16 %v3675_v37, %v3674_v30 }
0x1ac9   :  { %16033 = vmatpush3.bf16.msra.mxu1 %v16032_v42 }
0x1aca   :  { %16059 = vmatprep.subr.bf16.mxu1 %v17382_v3 }
0x1b06   :  { %v3844_v48 = vpop.permute.xlu1 %3843 }
0x1b07   :  { %v3846_v54 = vmul.f32 %v18209_v43, %v3844_v48  ;;  %v3663_v48 = vld [vmem:[%s19962_s15] sm:$0xff] }
0x1b09   :  { %3848 = vrot.lane.b32.xlu1 %v3846_v54, %s17386_s29  ;;  %v3664_v54 = vld [vmem:[%s19962_s15 + $0x8] sm:$0xff] }
0x1b15   :  { %v3352_v28 = vpop.permute.xlu0 %3351 }
0x1b16   :  { %v3354_v56 = vmul.f32 %v18213_v38, %v3352_v28 }
0x1b18   :  { %3356 = vrot.lane.b32.xlu0 %v3354_v56, %s17386_s29  ;;  %v18274_v56 = vpack.c.bf16 %v3664_v54, %v3663_v48 }
0x1b7b   :  { %v3849_v57 = vpop.permute.xlu1 %3848 }
0x1b7c   :  { %v18219_v51 = vadd.f32 %v3849_v57, %v3841_v55 }
0x1b7e   :  { %16887 = vtanh.f32 %v18219_v51 }
0x1b88   :  { %v16888_v61 = vpop.eup %16887 }
0x1b89   :  { %3854 = vrot.lane.b32.xlu1 %v16888_v61, %s17385_s0  ;;  %v3665_v61 = vld [vmem:[%s19962_s15 + $0x10] sm:$0xff] }
0x1b8a   :  { %v3357_v63 = vpop.permute.xlu0 %3356 }
0x1b8b   :  { %v3359_v60 = vadd.f32 %v3357_v63, %v3349_v62  ;;  %v3666_v62 = vld [vmem:[%s19962_s15 + $0x18] sm:$0xff] }
0x1b8c   :  { %v18281_v63 = vpack.c.bf16 %v3666_v62, %v3665_v61 }
0x1b8d   :  { %16889 = vtanh.f32 %v3359_v60  ;;  %3372 = vrot.lane.b32.xlu1 %v3359_v60, %s17385_s0 }
0x1b97   :  { %v16890_v6 = vpop.eup %16889 }
0x1b98   :  { %3362 = vrot.lane.b32.xlu0 %v16890_v6, %s17385_s0 }
0x1bfb   :  { %v3855_v58 = vpop.permute.xlu1 %3854 }
0x1bfc   :  { %v3857_v45 = vmul.f32 %v18209_v43, %v3855_v58 }
0x1bfe   :  { %3933 = vrot.lane.b32.xlu1 %v3857_v45, %s17386_s29 }
0x1bff   :  { %v3373_v55 = vpop.permute.xlu1 %3372 }
0x1c0a   :  { %v3363_v39 = vpop.permute.xlu0 %3362 }
0x1c0b   :  { %v3365_v43 = vmul.f32 %v18213_v38, %v3363_v39 }
0x1c0d   :  { %3368 = vrot.lane.b32.xlu0 %v3365_v43, %s17390_s28 }
0x1c11   :  { %3858 = vrot.lane.b32.xlu0 %v18183_v26, %s17385_s0 }
0x1c70   :  { %v3934_v33 = vpop.permute.xlu1 %3933 }
0x1c7f   :  { %v3369_v28 = vpop.permute.xlu0 %3368 }
0x1c80   :  { %v3376_v57 = vsel %vm1760_vm9, %v3375_v47, %v3369_v28 }
0x1c81   :  { %v3377_v38 = vsel %vm1762_vm10, %v3376_v57, %v3373_v55 }
0x1c82   :  { %14658 = vmatmul.mubr.f32.vlgmr.msra.gmra.mrb[36].mxu1 %v3377_v38 }
0x1c83   :  { %16061 = vmatpush3.bf16.msra.mxu1 %v18274_v56  ;;  %v3859_v26 = vpop.permute.xlu0 %3858  ;;  %14715 = vmatprep.mubr.msk.f32.mxu1 %vm17383_vm0, %v17384_v10 }
0x1c84   :  { %14705 = vmatmul.mubr.msk.f32.vlgmr.msra.gmra.mrb[44].mxu0 %vm367_vm4, %v3859_v26  ;;  %16062 = vmatprep.subr.bf16.mxu1 %v17382_v3 }
0x1c85   :  { %14726 = vmatprep.mubr.msk.f32.mxu0 %vm17383_vm0, %v17384_v10  ;;  %16067 = vmatpush3.bf16.msra.mxu0 %v18321_v35 }
0x1c86   :  { %16068 = vmatprep.subr.bf16.mxu0 %v17382_v3 }
0x1c87   :  { %16064 = vmatpush3.bf16.msra.mxu1 %v18281_v63 }
0x1c88   :  { %16071 = vmatprep.subr.bf16.mxu1 %v17382_v3 }
0x1c89   :  { %16070 = vmatpush3.bf16.msra.mxu0 %v18325_v14 }
0x1c8a   :  { %14716 = vmatmul.mubr.msk.f32.vlgmr.msra.gmra.mrb[38].mxu1 %vm367_vm4, %v3934_v33  ;;  %16077 = vmatprep.subr.bf16.mxu0 %v17382_v3 }
0x1c8b   :  { %16073 = vmatpush3.bf16.msra.mxu1 %v18163_v11  ;;  %14737 = vmatprep.mubr.msk.f32.mxu1 %vm17383_vm0, %v17384_v10 }
0x1c8c   :  { %16074 = vmatprep.subr.bf16.mxu1 %v17382_v3 }
0x1c8f   :  { %16076 = vmatpush3.bf16.msra.mxu1 %v18169_v13 }
0x1c90   :  { %16080 = vmatprep.subr.bf16.mxu1 %v17382_v3 }
0x1c92   :  { %14738 = vmatmul.mubr.msk.f32.vlgmr.msra.gmra.mrb[40].mxu1 %vm367_vm4, %v3934_v33 }
0x1c93   :  { %16082 = vmatpush3.bf16.msra.mxu1 %v18245_v29  ;;  %14755 = vmatprep.mubr.msk.f32.mxu1 %vm17383_vm0, %v17384_v10 }
0x1c94   :  { %16083 = vmatprep.subr.bf16.mxu1 %v17382_v3 }
0x1c97   :  { %16085 = vmatpush3.bf16.msra.mxu1 %v18260_v41 }
0x1c98   :  { %16092 = vmatprep.subr.bf16.mxu1 %v17382_v3 }
0x1d55   :  { %v18305_v19 = vpop.f32.mrb[36].mxu1 }
0x1d56   :  { %v14659_v60 = vpop.f32.mrb[37].mxu1 }
0x1d57   :  { %v3928_v0 = vpop.f32.mrb[44].mxu0 }
0x1d58   :  { %v14706_v1 = vpop.f32.mrb[45].mxu0 }
0x1d5d   :  { %v4003_v34 = vpop.f32.mrb[38].mxu1 }
0x1d5e   :  { %v4004_v8 = vadd.f32 %v4003_v34, %v3928_v0  ;;  %v14717_v15 = vpop.f32.mrb[39].mxu1 }
0x1d60   :  { %v4013_v17 = vadd.f32 %v18308_v5, %v4004_v8 }
0x1d62   :  { %16891 = vtanh.f32 %v4013_v17  ;;  %v13293_v31 = vmul.f32 -1.442695, %v4013_v17 }
0x1d64   :  { %16893 = vpow2.f32 %v13293_v31 }
0x1d65   :  { %v18311_v59 = vpop.f32.mrb[40].mxu1 }
0x1d66   :  { %v14739_v6 = vpop.f32.mrb[41].mxu1 }
0x1d6c   :  { %v16892_v20 = vpop.eup %16891 }
0x1d6d   :  { %4024 = vrot.lane.b32.xlu0 %v16892_v20, %s17385_s0 }
0x1d6e   :  { %v16894_v49 = vpop.eup %16893 }
0x1d6f   :  { %v4017_v50 = vadd.f32 1.0, %v16894_v49 }
0x1d71   :  { %16895 = vrcp.f32 %v4017_v50 }
0x1d7b   :  { %v16896_v22 = vpop.eup %16895 }
0x1d7c   :  { %v4022_v25 = vmul.f32 %v16896_v22, %v3859_v26 }
0x1ddf   :  { %v4025_v4 = vpop.permute.xlu0 %4024 }
0x1de0   :  { %v4027_v52 = vmul.f32 %v16896_v22, %v4025_v4 }
0x1de2   :  { %4029 = vrot.lane.b32.xlu1 %v4027_v52, %s17386_s29 }
0x1e54   :  { %v4030_v27 = vpop.permute.xlu1 %4029 }
0x1e55   :  { %v18315_v36 = vadd.f32 %v4030_v27, %v4022_v25 }
0x1e57   :  { %16897 = vtanh.f32 %v18315_v36 }
0x1e61   :  { %v16898_v32 = vpop.eup %16897 }
0x1e62   :  { %4035 = vrot.lane.b32.xlu0 %v16898_v32, %s17385_s0 }
0x1ed4   :  { %v4036_v58 = vpop.permute.xlu0 %4035 }
0x1ed5   :  { %v4038_v42 = vmul.f32 %v16896_v22, %v4036_v58 }
0x1ed7   :  { %4046 = vrot.lane.b32.xlu1 %v4038_v42, %s17386_s29 }
0x1f49   :  { %v4047_v45 = vpop.permute.xlu1 %4046 }
0x1f4a   :  { %14727 = vmatmul.mubr.msk.f32.vlgmr.msra.gmra.mrb[46].mxu0 %vm367_vm4, %v4047_v45  ;;  %14756 = vmatmul.mubr.msk.f32.vlgmr.msra.gmra.mrb[42].mxu1 %vm367_vm4, %v4047_v45 }
0x1f4b   :  { %16079 = vmatpush3.bf16.msra.mxu0 %v18181_v21  ;;  %14744 = vmatprep.mubr.msk.f32.mxu0 %vm17383_vm0, %v17384_v10 }
0x1f4c   :  { %16086 = vmatprep.subr.bf16.mxu0 %v17382_v3  ;;  %16094 = vmatpush3.bf16.msra.mxu1 %v18321_v35 }
0x1f4d   :  { %16095 = vmatprep.subr.bf16.mxu1 %v17382_v3  ;;  %14777 = vmatprep.mubr.msk.f32.mxu1 %vm17383_vm0, %v17384_v10 }
0x1f50   :  { %16097 = vmatpush3.bf16.msra.mxu1 %v18325_v14 }
0x1f51   :  { %16104 = vmatprep.subr.bf16.mxu1 %v17382_v3 }
0x201d   :  { %v4116_v40 = vpop.f32.mrb[46].mxu0  ;;  %v4378_v39 = vpop.f32.mrb[42].mxu1 }
0x201e   :  { %v18348_v43 = vadd.f32 %v18345_v46, %v4116_v40  ;;  %v14728_v48 = vpop.f32.mrb[47].mxu0  ;;  %v14757_v54 = vpop.f32.mrb[43].mxu1 }
0x2020   :  { %v4120_v47 = vsel %vm168_vm1, %v18348_v43, -inf }
0x2021   :  { %4121 = vmax.xlane.f32.xlu0 %v4120_v47 }
0x20ae   :  { %v18352_v28 = vpop.xlane.xlu0 %4121 }
0x20af   :  { %v4123_v55 = vsub.f32 %v18348_v43, %v18352_v28  ;;  %vm4131_vm5 = vcmp.ge.f32.partialorder %v18348_v43, %v18352_v28 }
0x20b1   :  { %v4124_v57 = vmul.f32 1.442695, %v4123_v55 }
0x20b3   :  { %16899 = vpow2.f32 %v4124_v57 }
0x20bd   :  { %v16900_v61 = vpop.eup %16899 }
0x20be   :  { %v4126_v62 = vsel %vm168_vm1, %v16900_v61, 0.0 }
0x20bf   :  { %4127 = vadd.xlane.f32.xlu1 %v4126_v62 }
0x214c   :  { %v4128_v38 = vpop.xlane.xlu1 %4127 }
0x214d   :  { %16901 = vrcp.f32 %v4128_v38 }
0x2157   :  { %v16902_v26 = vpop.eup %16901 }
0x2158   :  { %v4130_v33 = vmul.f32 %v16902_v26, %v16900_v61 }
0x215a   :  { %14745 = vmatmul.mubr.msk.f32.vlgmr.msra.gmra.mrb[48].mxu0 %vm168_vm1, %v4130_v33 }
0x215b   :  { %16088 = vmatpush3.bf16.msra.mxu0 %v18274_v56  ;;  %14766 = vmatprep.mubr.msk.f32.mxu0 %vm17383_vm0, %v17384_v10 }
0x215c   :  { %16089 = vmatprep.subr.bf16.mxu0 %v17382_v3 }
0x215f   :  { %16091 = vmatpush3.bf16.msra.mxu0 %v18281_v63 }
0x2160   :  { %16098 = vmatprep.subr.bf16.mxu0 %v17382_v3 }
0x222d   :  { %v4283_v60 = vpop.f32.mrb[48].mxu0 }
0x222e   :  { %v4284_v0 = vadd.f32 %v4283_v60, %v18311_v59  ;;  %v14746_v1 = vpop.f32.mrb[49].mxu0 }
0x2230   :  { %v4287_v34 = vadd.f32 %v18203_v16, %v4284_v0 }
0x2232   :  { %16903 = vtanh.f32 %v4287_v34  ;;  %v13300_v15 = vmul.f32 -1.442695, %v4287_v34 }
0x2234   :  { %16905 = vpow2.f32 %v13300_v15 }
0x223c   :  { %v16904_v8 = vpop.eup %16903 }
0x223d   :  { %4297 = vrot.lane.b32.xlu0 %v16904_v8, %s17385_s0 }
0x223e   :  { %v16906_v17 = vpop.eup %16905 }
0x223f   :  { %v4291_v6 = vadd.f32 1.0, %v16906_v17 }
0x2241   :  { %16907 = vrcp.f32 %v4291_v6 }
0x224b   :  { %v16908_v20 = vpop.eup %16907 }
0x224c   :  { %v4295_v50 = vmul.f32 %v16908_v20, %v18219_v51 }
0x22af   :  { %v4298_v31 = vpop.permute.xlu0 %4297 }
0x22b0   :  { %v4300_v49 = vmul.f32 %v16908_v20, %v4298_v31 }
0x22b2   :  { %4302 = vrot.lane.b32.xlu1 %v4300_v49, %s17386_s29 }
0x2324   :  { %v4303_v59 = vpop.permute.xlu1 %4302 }
0x2325   :  { %v18369_v22 = vadd.f32 %v4303_v59, %v4295_v50 }
0x2327   :  { %16909 = vtanh.f32 %v18369_v22 }
0x2331   :  { %v16910_v4 = vpop.eup %16909 }
0x2332   :  { %4308 = vrot.lane.b32.xlu0 %v16910_v4, %s17385_s0 }
0x23a4   :  { %v4309_v52 = vpop.permute.xlu0 %4308 }
0x23a5   :  { %v4311_v25 = vmul.f32 %v16908_v20, %v4309_v52 }
0x23a7   :  { %4383 = vrot.lane.b32.xlu1 %v4311_v25, %s17386_s29 }
0x2419   :  { %v4384_v27 = vpop.permute.xlu1 %4383 }
0x241a   :  { %14767 = vmatmul.mubr.msk.f32.vlgmr.msra.gmra.mrb[50].mxu0 %vm367_vm4, %v4384_v27 }
0x241b   :  { %16100 = vmatpush3.bf16.msra.mxu0 %v18163_v11  ;;  %14788 = vmatprep.mubr.msk.f32.mxu0 %vm17383_vm0, %v17384_v10 }
0x241c   :  { %16101 = vmatprep.subr.bf16.mxu0 %v17382_v3 }
0x241f   :  { %16103 = vmatpush3.bf16.msra.mxu0 %v18169_v13 }
0x2420   :  { %16107 = vmatprep.subr.bf16.mxu0 %v17382_v3 }
0x2422   :  { %14789 = vmatmul.mubr.msk.f32.vlgmr.msra.gmra.mrb[52].mxu0 %vm367_vm4, %v4384_v27 }
0x2423   :  { %16109 = vmatpush3.bf16.msra.mxu0 %v18245_v29  ;;  %14806 = vmatprep.mubr.msk.f32.mxu0 %vm17383_vm0, %v17384_v10 }
0x2424   :  { %16110 = vmatprep.subr.bf16.mxu0 %v17382_v3 }
0x2427   :  { %16112 = vmatpush3.bf16.msra.mxu0 %v18260_v41 }
0x2428   :  { %16119 = vmatprep.subr.bf16.mxu0 %v17382_v3 }
0x24ed   :  { %v4453_v51 = vpop.f32.mrb[50].mxu0 }
0x24ee   :  { %v4454_v18 = vadd.f32 %v4453_v51, %v4378_v39  ;;  %v14768_v9 = vpop.f32.mrb[51].mxu0 }
0x24f0   :  { %v4457_v30 = vadd.f32 %v18308_v5, %v4454_v18 }
0x24f2   :  { %16911 = vtanh.f32 %v4457_v30  ;;  %v13303_v42 = vmul.f32 -1.442695, %v4457_v30 }
0x24f4   :  { %16913 = vpow2.f32 %v13303_v42 }
0x24f5   :  { %v4651_v37 = vpop.f32.mrb[52].mxu0 }
0x24f6   :  { %v14790_v32 = vpop.f32.mrb[53].mxu0 }
0x24fc   :  { %v16912_v58 = vpop.eup %16911 }
0x24fd   :  { %4467 = vrot.lane.b32.xlu0 %v16912_v58, %s17385_s0 }
0x24fe   :  { %v16914_v45 = vpop.eup %16913 }
0x24ff   :  { %v4461_v40 = vadd.f32 1.0, %v16914_v45 }
0x2501   :  { %16915 = vrcp.f32 %v4461_v40 }
0x250b   :  { %v16916_v48 = vpop.eup %16915 }
0x250c   :  { %v4465_v39 = vmul.f32 %v16916_v48, %v18315_v36 }
0x256f   :  { %v4468_v54 = vpop.permute.xlu0 %4467 }
0x2570   :  { %v4470_v47 = vmul.f32 %v16916_v48, %v4468_v54 }
0x2572   :  { %4472 = vrot.lane.b32.xlu1 %v4470_v47, %s17386_s29 }
0x25e4   :  { %v4473_v55 = vpop.permute.xlu1 %4472 }
0x25e5   :  { %v18392_v57 = vadd.f32 %v4473_v55, %v4465_v39 }
0x25e7   :  { %16917 = vtanh.f32 %v18392_v57 }
0x25f1   :  { %v16918_v61 = vpop.eup %16917 }
0x25f2   :  { %4478 = vrot.lane.b32.xlu0 %v16918_v61, %s17385_s0 }
0x2664   :  { %v4479_v62 = vpop.permute.xlu0 %4478 }
0x2665   :  { %v4481_v38 = vmul.f32 %v16916_v48, %v4479_v62 }
0x2667   :  { %4483 = vrot.lane.b32.xlu1 %v4481_v38, %s17386_s29 }
0x26d9   :  { %v4484_v26 = vpop.permute.xlu1 %4483 }
0x26da   :  { %14778 = vmatmul.mubr.msk.f32.vlgmr.msra.gmra.mrb[44].mxu1 %vm367_vm4, %v4484_v26  ;;  %14807 = vmatmul.mubr.msk.f32.vlgmr.msra.gmra.mrb[54].mxu0 %vm367_vm4, %v4484_v26 }
0x26db   :  { %16106 = vmatpush3.bf16.msra.mxu1 %v18181_v21  ;;  %14795 = vmatprep.mubr.msk.f32.mxu1 %vm17383_vm0, %v17384_v10 }
0x26dc   :  { %16113 = vmatprep.subr.bf16.mxu1 %v17382_v3  ;;  %16121 = vmatpush3.bf16.msra.mxu0 %v18321_v35 }
0x26dd   :  { %16122 = vmatprep.subr.bf16.mxu0 %v17382_v3  ;;  %14828 = vmatprep.mubr.msk.f32.mxu0 %vm17383_vm0, %v17384_v10 }
0x26e0   :  { %16124 = vmatpush3.bf16.msra.mxu0 %v18325_v14 }
0x26e1   :  { %16131 = vmatprep.subr.bf16.mxu0 %v17382_v3 }
0x27ad   :  { %v4553_v36 = vpop.f32.mrb[44].mxu1  ;;  %v4819_v33 = vpop.f32.mrb[54].mxu0 }
0x27ae   :  { %v18410_v60 = vadd.f32 %v18345_v46, %v4553_v36  ;;  %v14779_v0 = vpop.f32.mrb[45].mxu1  ;;  %v14808_v1 = vpop.f32.mrb[55].mxu0 }
0x27b0   :  { %v4557_v34 = vsel %vm168_vm1, %v18410_v60, -inf }
0x27b1   :  { %4558 = vmax.xlane.f32.xlu0 %v4557_v34 }
0x283e   :  { %v18414_v8 = vpop.xlane.xlu0 %4558 }
0x283f   :  { %v4560_v15 = vsub.f32 %v18410_v60, %v18414_v8  ;;  %vm4568_vm7 = vcmp.ge.f32.partialorder %v18410_v60, %v18414_v8 }
0x2841   :  { %v4561_v17 = vmul.f32 1.442695, %v4560_v15 }
0x2843   :  { %16919 = vpow2.f32 %v4561_v17 }
0x284d   :  { %v16920_v6 = vpop.eup %16919 }
0x284e   :  { %v4563_v20 = vsel %vm168_vm1, %v16920_v6, 0.0 }
0x284f   :  { %4564 = vadd.xlane.f32.xlu1 %v4563_v20 }
0x28dc   :  { %v4565_v31 = vpop.xlane.xlu1 %4564 }
0x28dd   :  { %16921 = vrcp.f32 %v4565_v31 }
0x28e7   :  { %v16922_v49 = vpop.eup %16921 }
0x28e8   :  { %v4567_v50 = vmul.f32 %v16922_v49, %v16920_v6 }
0x28ea   :  { %14796 = vmatmul.mubr.msk.f32.vlgmr.msra.gmra.mrb[46].mxu1 %vm168_vm1, %v4567_v50 }
0x28eb   :  { %16115 = vmatpush3.bf16.msra.mxu1 %v18274_v56  ;;  %14817 = vmatprep.mubr.msk.f32.mxu1 %vm17383_vm0, %v17384_v10 }
0x28ec   :  { %16116 = vmatprep.subr.bf16.mxu1 %v17382_v3 }
0x28ef   :  { %16118 = vmatpush3.bf16.msra.mxu1 %v18281_v63 }
0x28f0   :  { %16125 = vmatprep.subr.bf16.mxu1 %v17382_v3 }
0x29bd   :  { %v4724_v59 = vpop.f32.mrb[46].mxu1 }
0x29be   :  { %v4725_v4 = vadd.f32 %v4724_v59, %v4651_v37  ;;  %v14797_v52 = vpop.f32.mrb[47].mxu1 }
0x29c0   :  { %v4728_v25 = vadd.f32 %v18203_v16, %v4725_v4 }
0x29c2   :  { %16923 = vtanh.f32 %v4728_v25  ;;  %v13309_v51 = vmul.f32 -1.442695, %v4728_v25 }
0x29c4   :  { %16925 = vpow2.f32 %v13309_v51 }
0x29cc   :  { %v16924_v27 = vpop.eup %16923 }
0x29cd   :  { %4738 = vrot.lane.b32.xlu0 %v16924_v27, %s17385_s0 }
0x29ce   :  { %v16926_v18 = vpop.eup %16925 }
0x29cf   :  { %v4732_v9 = vadd.f32 1.0, %v16926_v18 }
0x29d1   :  { %16927 = vrcp.f32 %v4732_v9 }
0x29db   :  { %v16928_v30 = vpop.eup %16927 }
0x29dc   :  { %v4736_v42 = vmul.f32 %v16928_v30, %v18369_v22 }
0x2a3f   :  { %v4739_v32 = vpop.permute.xlu0 %4738 }
0x2a40   :  { %v4741_v58 = vmul.f32 %v16928_v30, %v4739_v32 }
0x2a42   :  { %4743 = vrot.lane.b32.xlu1 %v4741_v58, %s17386_s29 }
0x2ab4   :  { %v4744_v37 = vpop.permute.xlu1 %4743 }
0x2ab5   :  { %v18430_v45 = vadd.f32 %v4744_v37, %v4736_v42 }
0x2ab7   :  { %16929 = vtanh.f32 %v18430_v45 }
0x2ac1   :  { %v16930_v40 = vpop.eup %16929 }
0x2ac2   :  { %4749 = vrot.lane.b32.xlu0 %v16930_v40, %s17385_s0 }
0x2b34   :  { %v4750_v48 = vpop.permute.xlu0 %4749 }
0x2b35   :  { %v4752_v54 = vmul.f32 %v16928_v30, %v4750_v48 }
0x2b37   :  { %4824 = vrot.lane.b32.xlu1 %v4752_v54, %s17386_s29 }
0x2ba9   :  { %v4825_v47 = vpop.permute.xlu1 %4824 }
0x2baa   :  { %14818 = vmatmul.mubr.msk.f32.vlgmr.msra.gmra.mrb[48].mxu1 %vm367_vm4, %v4825_v47 }
0x2bab   :  { %16127 = vmatpush3.bf16.msra.mxu1 %v18163_v11  ;;  %14839 = vmatprep.mubr.msk.f32.mxu1 %vm17383_vm0, %v17384_v10 }
0x2bac   :  { %16128 = vmatprep.subr.bf16.mxu1 %v17382_v3 }
0x2baf   :  { %16130 = vmatpush3.bf16.msra.mxu1 %v18169_v13 }
0x2bb0   :  { %16134 = vmatprep.subr.bf16.mxu1 %v17382_v3 }
0x2bb2   :  { %14840 = vmatmul.mubr.msk.f32.vlgmr.msra.gmra.mrb[50].mxu1 %vm367_vm4, %v4825_v47 }
0x2bb3   :  { %16136 = vmatpush3.bf16.msra.mxu1 %v18245_v29  ;;  %14857 = vmatprep.mubr.msk.f32.mxu1 %vm17383_vm0, %v17384_v10 }
0x2bb4   :  { %16137 = vmatprep.subr.bf16.mxu1 %v17382_v3 }
0x2bb7   :  { %16139 = vmatpush3.bf16.msra.mxu1 %v18260_v41 }
0x2bb8   :  { %16146 = vmatprep.subr.bf16.mxu1 %v17382_v3 }
0x2c7d   :  { %v4894_v11 = vpop.f32.mrb[48].mxu1 }
0x2c7e   :  { %v4895_v22 = vadd.f32 %v4894_v11, %v4819_v33  ;;  %v14819_v39 = vpop.f32.mrb[49].mxu1 }
0x2c80   :  { %v4898_v13 = vadd.f32 %v18308_v5, %v4895_v22 }
0x2c82   :  { %16931 = vtanh.f32 %v4898_v13  ;;  %v13312_v29 = vmul.f32 -1.442695, %v4898_v13  ;;  %v13325_v13 = vld [vmem:[%s17488_s27 + $0x20] sm:$0xff] }
0x2c84   :  { %16933 = vpow2.f32 %v13312_v29  ;;  %v13328_v29 = vld [vmem:[%s17488_s27 + $0x38] sm:$0xff] }
0x2c85   :  { %v5092_v55 = vpop.f32.mrb[50].mxu1 }
0x2c86   :  { %v14841_v61 = vpop.f32.mrb[51].mxu1 }
0x2c8c   :  { %v16932_v62 = vpop.eup %16931 }
0x2c8d   :  { %4908 = vrot.lane.b32.xlu0 %v16932_v62, %s17385_s0  ;;  %v13327_v62 = vld [vmem:[%s17488_s27 + $0x30] sm:$0xff] }
0x2c8e   :  { %v16934_v38 = vpop.eup %16933 }
0x2c8f   :  { %v4902_v26 = vadd.f32 1.0, %v16934_v38 }
0x2c91   :  { %16935 = vrcp.f32 %v4902_v26  ;;  %v13277_v26 = vld [vmem:[%s17483_s20 + $0x1] ss:$0 sm:$0xff] }
0x2c9b   :  { %v16936_v36 = vpop.eup %16935 }
0x2c9c   :  { %v4906_v33 = vmul.f32 %v16936_v36, %v18392_v57 }
0x2cff   :  { %v4909_v41 = vpop.permute.xlu0 %4908 }
0x2d00   :  { %v4911_v0 = vmul.f32 %v16936_v36, %v4909_v41 }
0x2d02   :  { %4913 = vrot.lane.b32.xlu1 %v4911_v0, %s17386_s29 }
0x2d74   :  { %v4914_v1 = vpop.permute.xlu1 %4913 }
0x2d75   :  { %v18453_v34 = vadd.f32 %v4914_v1, %v4906_v33 }
0x2d77   :  { %16937 = vtanh.f32 %v18453_v34 }
0x2d81   :  { %v16938_v15 = vpop.eup %16937 }
0x2d82   :  { %4919 = vrot.lane.b32.xlu0 %v16938_v15, %s17385_s0 }
0x2df4   :  { %v4920_v17 = vpop.permute.xlu0 %4919 }
0x2df5   :  { %v4922_v6 = vmul.f32 %v16936_v36, %v4920_v17  ;;  %v18505_v36 = vadd.f32 %v13277_v26, %v18305_v19  ;;  %v13346_v26 = vld [vmem:[%s19961_s11 + $0x38] sm:$0xff] }
0x2df7   :  { %4924 = vrot.lane.b32.xlu1 %v4922_v6, %s17386_s29 }
0x2e69   :  { %v4925_v20 = vpop.permute.xlu1 %4924 }
0x2e6a   :  { %14829 = vmatmul.mubr.msk.f32.vlgmr.msra.gmra.mrb[56].mxu0 %vm367_vm4, %v4925_v20  ;;  %14858 = vmatmul.mubr.msk.f32.vlgmr.msra.gmra.mrb[52].mxu1 %vm367_vm4, %v4925_v20 }
0x2e6b   :  { %16133 = vmatpush3.bf16.msra.mxu0 %v18181_v21  ;;  %14846 = vmatprep.mubr.msk.f32.mxu0 %vm17383_vm0, %v17384_v10 }
0x2e6c   :  { %16140 = vmatprep.subr.bf16.mxu0 %v17382_v3  ;;  %16148 = vmatpush3.bf16.msra.mxu1 %v18321_v35 }
0x2e6d   :  { %16149 = vmatprep.subr.bf16.mxu1 %v17382_v3  ;;  %14879 = vmatprep.mubr.msk.f32.mxu1 %vm17383_vm0, %v17384_v10 }
0x2e70   :  { %16151 = vmatpush3.bf16.msra.mxu1 %v18325_v14 }
0x2e71   :  { %16158 = vmatprep.subr.bf16.mxu1 %v17382_v3 }
0x2f3d   :  { %v4994_v57 = vpop.f32.mrb[56].mxu0  ;;  %v18470_v31 = vpop.f32.mrb[52].mxu1 }
0x2f3e   :  { %v18473_v21 = vadd.f32 %v18345_v46, %v4994_v57  ;;  %v14830_v49 = vpop.f32.mrb[57].mxu0  ;;  %v14859_v50 = vpop.f32.mrb[53].mxu1 }
0x2f40   :  { %v4998_v35 = vsel %vm168_vm1, %v18473_v21, -inf }
0x2f41   :  { %4999 = vmax.xlane.f32.xlu0 %v4998_v35 }
0x2fce   :  { %v18477_v59 = vpop.xlane.xlu0 %4999 }
0x2fcf   :  { %v5001_v4 = vsub.f32 %v18473_v21, %v18477_v59  ;;  %vm5009_vm11 = vcmp.ge.f32.partialorder %v18473_v21, %v18477_v59 }
0x2fd1   :  { %v5002_v14 = vmul.f32 1.442695, %v5001_v4 }
0x2fd3   :  { %16939 = vpow2.f32 %v5002_v14 }
0x2fdd   :  { %v16940_v52 = vpop.eup %16939 }
0x2fde   :  { %v5004_v25 = vsel %vm168_vm1, %v16940_v52, 0.0 }
0x2fdf   :  { %5005 = vadd.xlane.f32.xlu1 %v5004_v25  ;;  %v13333_v25 = vld [vmem:[%s19958_s2 + $0x18] sm:$0xff] }
0x306c   :  { %v5006_v27 = vpop.xlane.xlu1 %5005 }
0x306d   :  { %16941 = vrcp.f32 %v5006_v27 }
0x3077   :  { %v16942_v46 = vpop.eup %16941 }
0x3078   :  { %v5008_v51 = vmul.f32 %v16942_v46, %v16940_v52  ;;  %v13332_v52 = vld [vmem:[%s19958_s2 + $0x10] sm:$0xff]  ;;  %s17396_s2 = smov [#allocation6]  }
0x3079   :  { %v18520_v27 = vpack.c.bf16 %v13333_v25, %v13332_v52 }
0x307a   :  { %14847 = vmatmul.mubr.msk.f32.vlgmr.msra.gmra.mrb[58].mxu0 %vm168_vm1, %v5008_v51  ;;  %v13334_v51 = vld [vmem:[%s19957_s1 + $0x20] sm:$0xff] }
0x307b   :  { %16142 = vmatpush3.bf16.msra.mxu0 %v18274_v56  ;;  %14868 = vmatprep.mubr.msk.f32.mxu0 %vm17383_vm0, %v17384_v10 }
0x307c   :  { %16143 = vmatprep.subr.bf16.mxu0 %v17382_v3 }
0x307f   :  { %16145 = vmatpush3.bf16.msra.mxu0 %v18281_v63 }
0x3080   :  { %16152 = vmatprep.subr.bf16.mxu0 %v17382_v3 }
0x314d   :  { %v5165_v18 = vpop.f32.mrb[58].mxu0 }
0x314e   :  { %v5166_v9 = vadd.f32 %v5165_v18, %v5092_v55  ;;  %v14848_v30 = vpop.f32.mrb[59].mxu0  ;;  %v13326_v55 = vld [vmem:[%s17488_s27 + $0x28] sm:$0xff]  ;;  %s17391_s27 = smov 127  }
0x314f   :  { %v16153_v61 = vpack.c.bf16 %v13326_v55, %v13325_v13  ;;  %v13335_v18 = vld [vmem:[%s19957_s1 + $0x28] sm:$0xff]  ;;  %v13336_v30 = vld [vmem:[%s19957_s1 + $0x30] sm:$0xff] }
0x3150   :  { %v5169_v32 = vadd.f32 %v18203_v16, %v5166_v9  ;;  %v18531_v9 = vpack.c.bf16 %v13335_v18, %v13334_v51  ;;  %v13344_v13 = vld [vmem:[%s19961_s11 + $0x28] sm:$0xff] }
0x3152   :  { %16943 = vtanh.f32 %v5169_v32  ;;  %v13318_v42 = vmul.f32 -1.442695, %v5169_v32  ;;  %v13337_v32 = vld [vmem:[%s19957_s1 + $0x38] sm:$0xff]  ;;  %s19978_s1 = sld [smem:[#allocation32_spill]] }
0x3154   :  { %16945 = vpow2.f32 %v13318_v42  ;;  %v13330_v42 = vld [vmem:[%s19959_s7 + $0x1] ss:$0 sm:$0xff]  ;;  %s13101_s7 = sshll.u32 %s17396_s2, 4  ;;  %s13102_s7 = int_to_ptr.vmem [resolvable:$true] %s13101_s7 }
0x3155   :  { %p17276_p1 = scmp.lt.s32.totalorder %s13102_s7, %s13102_s7 }
0x315c   :  { %v16944_v58 = vpop.eup %16943 }
0x315d   :  { %5179 = vrot.lane.b32.xlu0 %v16944_v58, %s17385_s0 }
0x315e   :  { %v16946_v56 = vpop.eup %16945 }
0x315f   :  { %v5173_v37 = vadd.f32 1.0, %v16946_v56 }
0x3161   :  { %16947 = vrcp.f32 %v5173_v37 }
0x316b   :  { %v16948_v40 = vpop.eup %16947 }
0x316c   :  { %v5177_v16 = vmul.f32 %v16948_v40, %v18430_v45  ;;  %v16156_v45 = vpack.c.bf16 %v13328_v29, %v13327_v62 }
0x31cf   :  { %v5180_v63 = vpop.permute.xlu0 %5179 }
0x31d0   :  { %v5182_v48 = vmul.f32 %v16948_v40, %v5180_v63 }
0x31d2   :  { %5184 = vrot.lane.b32.xlu1 %v5182_v48, %s17386_s29 }
0x3244   :  { %v5185_v54 = vpop.permute.xlu1 %5184 }
0x3245   :  { %v5187_v47 = vadd.f32 %v5185_v54, %v5177_v16  ;;  %v18551_v16 = vld [vmem:[%s19960_s10 + $0x1] ss:$0 sm:$0xff]  ;;  %s17271_s10 = scalar_lea.vmem %s13102_s7, 64 }
0x3246   :  { %p17272_p0 = scmp.ne.s32.totalorder %s13102_s7, %s17271_s10  ;;  %p17277_p2 = scmp.lt.s32.totalorder %s17271_s10, %s17271_s10 }
0x3247   :  { %16949 = vtanh.f32 %v5187_v47 }
0x3248   :  { %p17278_p3 = por %p17277_p2, %p17276_p1 }
0x324a   :  { %p17279_p4 = pnand %p17278_p3, %p17272_p0 }
0x3251   :  { %v16950_v11 = vpop.eup %16949 }
0x3252   :  { %5190 = vrot.lane.b32.xlu0 %v16950_v11, %s17385_s0 }
0x32c4   :  { %v5191_v22 = vpop.permute.xlu0 %5190 }
0x32c5   :  { %v5193_v39 = vmul.f32 %v16948_v40, %v5191_v22 }
0x32c7   :  { %5265 = vrot.lane.b32.xlu1 %v5193_v39, %s17386_s29  ;;  %v13343_v39 = vld [vmem:[%s19961_s11 + $0x20] sm:$0xff] }
0x32c8   :  { %v18556_v55 = vpack.c.bf16 %v13344_v13, %v13343_v39 }
0x3339   :  { %v5266_v38 = vpop.permute.xlu1 %5265 }
0x333a   :  { %14869 = vmatmul.mubr.msk.f32.vlgmr.msra.gmra.mrb[60].mxu0 %vm367_vm4, %v5266_v38 }
0x333b   :  { %16154 = vmatpush3.bf16.msra.mxu0 %v16153_v61  ;;  %14890 = vmatprep.mubr.msk.f32.mxu0 %vm17383_vm0, %v17384_v10 }
0x333c   :  { %16155 = vmatprep.subr.bf16.mxu0 %v17382_v3 }
0x333f   :  { %16157 = vmatpush3.bf16.msra.mxu0 %v16156_v45  ;;  %v13345_v45 = vld [vmem:[%s19961_s11 + $0x30] sm:$0xff] }
0x3340   :  { %16164 = vmatprep.subr.bf16.mxu0 %v17382_v3 }
0x3342   :  { %14891 = vmatmul.mubr.msk.f32.vlgmr.msra.gmra.mrb[62].mxu0 %vm367_vm4, %v18505_v36 }
0x3343   :  { %14908 = vmatprep.mubr.msk.f32.mxu0 %vm17383_vm0, %v17384_v10  ;;  %16166 = vmatpush3.bf16.msra.mxu0 %v18520_v27 }
0x3344   :  { %16167 = vmatprep.subr.bf16.mxu0 %v17382_v3 }
0x3346   :  { %14909 = vmatmul.mubr.msk.f32.vlgmr.msra.gmra.mrb[64].mxu0 %vm168_vm1, %v18192_v24  ;;  %v18537_v24 = vpack.c.bf16 %v13337_v32, %v13336_v30 }
0x3347   :  { %14919 = vmatprep.mubr.msk.f32.mxu0 %vm17383_vm0, %v17384_v10  ;;  %16169 = vmatpush3.bf16.msra.mxu0 %v18556_v55 }
0x3348   :  { %16170 = vmatprep.subr.bf16.mxu0 %v17382_v3 }
0x340d   :  { %v5335_v41 = vpop.f32.mrb[60].mxu0 }
0x340e   :  { %v5336_v0 = vadd.f32 %v5335_v41, %v18470_v31  ;;  %v14870_v33 = vpop.f32.mrb[61].mxu0  ;;  %v18563_v41 = vpack.c.bf16 %v13346_v26, %v13345_v45  ;;  %v13351_v45 = vld [vmem:[%s19964_s18 + $0x38] sm:$0xff] }
0x3410   :  { %v5339_v1 = vadd.f32 %v18308_v5, %v5336_v0  ;;  %16172 = vmatpush3.bf16.msra.mxu0 %v18563_v41 }
0x3411   :  { %16179 = vmatprep.subr.bf16.mxu0 %v17382_v3 }
0x3412   :  { %16951 = vtanh.f32 %v5339_v1  ;;  %v13321_v19 = vmul.f32 -1.442695, %v5339_v1 }
0x3414   :  { %16953 = vpow2.f32 %v13321_v19 }
0x3415   :  { %v5557_v15 = vpop.f32.mrb[62].mxu0 }
0x3416   :  { %v14892_v17 = vpop.f32.mrb[63].mxu0  ;;  %v5558_v56 = vadd.f32 %v13330_v42, %v5557_v15 }
0x3419   :  { %v5730_v37 = vpop.f32.mrb[64].mxu0 }
0x341a   :  { %v14910_v40 = vpop.f32.mrb[65].mxu0 }
0x341c   :  { %v16952_v6 = vpop.eup %16951 }
0x341d   :  { %5349 = vrot.lane.b32.xlu0 %v16952_v6, %s17385_s0 }
0x341e   :  { %v16954_v20 = vpop.eup %16953 }
0x341f   :  { %v5343_v57 = vadd.f32 1.0, %v16954_v20 }
0x3421   :  { %16955 = vrcp.f32 %v5343_v57  ;;  %v13339_v57 = vld [vmem:[%s19962_s15 + $0x20] sm:$0xff] }
0x342b   :  { %v16956_v49 = vpop.eup %16955 }
0x342c   :  { %v5347_v5 = vmul.f32 %v16956_v49, %v18453_v34 }
0x348f   :  { %v5350_v50 = vpop.permute.xlu0 %5349 }
0x3490   :  { %v5352_v35 = vmul.f32 %v16956_v49, %v5350_v50  ;;  %v13341_v50 = vld [vmem:[%s19962_s15 + $0x30] sm:$0xff] }
0x3492   :  { %5354 = vrot.lane.b32.xlu1 %v5352_v35, %s17386_s29 }
0x3504   :  { %v5355_v31 = vpop.permute.xlu1 %5354 }
0x3505   :  { %v5357_v4 = vadd.f32 %v5355_v31, %v5347_v5  ;;  %v13342_v5 = vld [vmem:[%s19962_s15 + $0x38] sm:$0xff] }
0x3506   :  { %v18583_v31 = vpack.c.bf16 %v13342_v5, %v13341_v50 }
0x3507   :  { %16957 = vtanh.f32 %v5357_v4 }
0x3511   :  { %v16958_v14 = vpop.eup %16957 }
0x3512   :  { %5360 = vrot.lane.b32.xlu0 %v16958_v14, %s17385_s0 }
0x3584   :  { %v5361_v34 = vpop.permute.xlu0 %5360 }
0x3585   :  { %v5363_v46 = vmul.f32 %v16956_v49, %v5361_v34  ;;  %v13340_v49 = vld [vmem:[%s19962_s15 + $0x28] sm:$0xff] }
0x3586   :  { %v18579_v35 = vpack.c.bf16 %v13340_v49, %v13339_v57 }
0x3587   :  { %5365 = vrot.lane.b32.xlu1 %v5363_v46, %s17386_s29  ;;  %v18604_v46 = vld [vmem:[%s19963_s16 + $0x1] ss:$0 sm:$0xff] }
0x35f9   :  { %v5366_v58 = vpop.permute.xlu1 %5365 }
0x35fa   :  { %14880 = vmatmul.mubr.msk.f32.vlgmr.msra.gmra.mrb[54].mxu1 %vm367_vm4, %v5366_v58 }
0x35fb   :  { %16160 = vmatpush3.bf16.msra.mxu1 %v18531_v9  ;;  %14901 = vmatprep.mubr.msk.f32.mxu1 %vm17383_vm0, %v17384_v10 }
0x35fc   :  { %16161 = vmatprep.subr.bf16.mxu1 %v17382_v3 }
0x35ff   :  { %16163 = vmatpush3.bf16.msra.mxu1 %v18537_v24 }
0x3600   :  { %16173 = vmatprep.subr.bf16.mxu1 %v17382_v3 }
0x3602   :  { %14902 = vmatmul.mubr.msk.f32.vlgmr.msra.gmra.mrb[56].mxu1 %vm367_vm4, %v5558_v56 }
0x3603   :  { %14930 = vmatprep.mubr.msk.f32.mxu1 %vm17383_vm0, %v17384_v10  ;;  %16175 = vmatpush3.bf16.msra.mxu1 %v18579_v35 }
0x3604   :  { %16176 = vmatprep.subr.bf16.mxu1 %v17382_v3 }
0x3607   :  { %16178 = vmatpush3.bf16.msra.mxu1 %v18583_v31 }
0x3608   :  { %16185 = vmatprep.subr.bf16.mxu1 %v17382_v3 }
0x36cd   :  { %v18548_v63 = vpop.f32.mrb[54].mxu1 }
0x36ce   :  { %v14881_v48 = vpop.f32.mrb[55].mxu1 }
0x36d5   :  { %v5660_v54 = vpop.f32.mrb[56].mxu1 }
0x36d6   :  { %v5731_v47 = vadd.f32 %v5730_v37, %v5660_v54  ;;  %v14903_v11 = vpop.f32.mrb[57].mxu1 }
0x36d8   :  { %v5740_v22 = vadd.f32 %v18551_v16, %v5731_v47 }
0x36da   :  { %16959 = vtanh.f32 %v5740_v22  ;;  %v13356_v62 = vmul.f32 -1.442695, %v5740_v22 }
0x36dc   :  { %16961 = vpow2.f32 %v13356_v62  ;;  %v13349_v62 = vld [vmem:[%s19964_s18 + $0x28] sm:$0xff] }
0x36e4   :  { %v16960_v61 = vpop.eup %16959 }
0x36e5   :  { %5750 = vrot.lane.b32.xlu0 %v16960_v61, %s17385_s0  ;;  %v13348_v61 = vld [vmem:[%s19964_s18 + $0x20] sm:$0xff] }
0x36e6   :  { %v16962_v29 = vpop.eup %16961 }
0x36e7   :  { %v5744_v38 = vadd.f32 1.0, %v16962_v29  ;;  %v13350_v29 = vld [vmem:[%s19964_s18 + $0x30] sm:$0xff] }
0x36e8   :  { %v18621_v26 = vpack.c.bf16 %v13351_v45, %v13350_v29 }
0x36e9   :  { %16963 = vrcp.f32 %v5744_v38  ;;  %v18617_v38 = vpack.c.bf16 %v13349_v62, %v13348_v61 }
0x36f3   :  { %v16964_v0 = vpop.eup %16963 }
0x36f4   :  { %v5748_v15 = vmul.f32 %v16964_v0, %v5558_v56 }
0x3757   :  { %v5751_v33 = vpop.permute.xlu0 %5750 }
0x3758   :  { %v5753_v1 = vmul.f32 %v16964_v0, %v5751_v33 }
0x375a   :  { %5755 = vrot.lane.b32.xlu1 %v5753_v1, %s17386_s29 }
0x375e   :  { %5765 = vrot.lane.b32.xlu1 %v5558_v56, %s17385_s0 }
0x37cc   :  { %v5756_v17 = vpop.permute.xlu1 %5755 }
0x37cd   :  { %v18569_v6 = vadd.f32 %v5756_v17, %v5748_v15  ;;  %v18641_v17 = vld [vmem:[%s19965_s22 + $0x1] ss:$0 sm:$0xff] }
0x37cf   :  { %16965 = vtanh.f32 %v18569_v6 }
0x37d0   :  { %v5766_v19 = vpop.permute.xlu1 %5765 }
0x37d1   :  { %14920 = vmatmul.mubr.msk.f32.vlgmr.msra.gmra.mrb[66].mxu0 %vm367_vm4, %v5766_v19 }
0x37d2   :  { %14941 = vmatprep.mubr.msk.f32.mxu0 %vm17383_vm0, %v17384_v10  ;;  %16181 = vmatpush3.bf16.msra.mxu0 %v18617_v38 }
0x37d3   :  { %16182 = vmatprep.subr.bf16.mxu0 %v17382_v3 }
0x37d6   :  { %16184 = vmatpush3.bf16.msra.mxu0 %v18621_v26 }
0x37d7   :  { %16191 = vmatprep.subr.bf16.mxu0 %v17382_v3 }
0x37d9   :  { %v16966_v20 = vpop.eup %16965 }
0x37da   :  { %5761 = vrot.lane.b32.xlu0 %v16966_v20, %s17385_s0 }
0x384c   :  { %v5762_v4 = vpop.permute.xlu0 %5761 }
0x384d   :  { %v5764_v14 = vmul.f32 %v16964_v0, %v5762_v4 }
0x384f   :  { %5840 = vrot.lane.b32.xlu0 %v5764_v14, %s17386_s29 }
0x38a4   :  { %v5835_v52 = vpop.f32.mrb[66].mxu0 }
0x38a5   :  { %v14921_v25 = vpop.f32.mrb[67].mxu0 }
0x38c1   :  { %v5841_v34 = vpop.permute.xlu0 %5840 }
0x38c2   :  { %14931 = vmatmul.mubr.msk.f32.vlgmr.msra.gmra.mrb[58].mxu1 %vm367_vm4, %v5841_v34 }
0x38c3   :  { %16187 = vmatpush3.bf16.msra.mxu1 %v18531_v9  ;;  %14952 = vmatprep.mubr.msk.f32.mxu1 %vm17383_vm0, %v17384_v10 }
0x38c4   :  { %16188 = vmatprep.subr.bf16.mxu1 %v17382_v3 }
0x38c7   :  { %16190 = vmatpush3.bf16.msra.mxu1 %v18537_v24 }
0x38c8   :  { %16194 = vmatprep.subr.bf16.mxu1 %v17382_v3 }
0x38ca   :  { %14953 = vmatmul.mubr.msk.f32.vlgmr.msra.gmra.mrb[60].mxu1 %vm367_vm4, %v5841_v34 }
0x38cb   :  { %16196 = vmatpush3.bf16.msra.mxu1 %v18556_v55  ;;  %14970 = vmatprep.mubr.msk.f32.mxu1 %vm17383_vm0, %v17384_v10 }
0x38cc   :  { %16197 = vmatprep.subr.bf16.mxu1 %v17382_v3 }
0x38cf   :  { %16199 = vmatpush3.bf16.msra.mxu1 %v18563_v41 }
0x38d0   :  { %16206 = vmatprep.subr.bf16.mxu1 %v17382_v3 }
0x3995   :  { %v5910_v51 = vpop.f32.mrb[58].mxu1 }
0x3996   :  { %v5911_v18 = vadd.f32 %v5910_v51, %v5835_v52  ;;  %v14932_v30 = vpop.f32.mrb[59].mxu1 }
0x3998   :  { %v5920_v32 = vadd.f32 %v18604_v46, %v5911_v18 }
0x399a   :  { %16967 = vtanh.f32 %v5920_v32  ;;  %v13360_v37 = vmul.f32 -1.442695, %v5920_v32 }
0x399c   :  { %16969 = vpow2.f32 %v13360_v37 }
0x399d   :  { %v18607_v58 = vpop.f32.mrb[60].mxu1 }
0x399e   :  { %v14954_v42 = vpop.f32.mrb[61].mxu1 }
0x39a4   :  { %v16968_v56 = vpop.eup %16967 }
0x39a5   :  { %5931 = vrot.lane.b32.xlu1 %v16968_v56, %s17385_s0 }
0x39a6   :  { %v16970_v40 = vpop.eup %16969 }
0x39a7   :  { %v5924_v48 = vadd.f32 1.0, %v16970_v40 }
0x39a9   :  { %16971 = vrcp.f32 %v5924_v48 }
0x39b3   :  { %v16972_v54 = vpop.eup %16971 }
0x39b4   :  { %v5929_v22 = vmul.f32 %v16972_v54, %v5766_v19 }
0x3a17   :  { %v5932_v47 = vpop.permute.xlu1 %5931 }
0x3a18   :  { %v5934_v11 = vmul.f32 %v16972_v54, %v5932_v47 }
0x3a1a   :  { %5936 = vrot.lane.b32.xlu0 %v5934_v11, %s17386_s29 }
0x3a8c   :  { %v5937_v39 = vpop.permute.xlu0 %5936 }
0x3a8d   :  { %v18611_v13 = vadd.f32 %v5937_v39, %v5929_v22 }
0x3a8f   :  { %16973 = vtanh.f32 %v18611_v13 }
0x3a99   :  { %v16974_v0 = vpop.eup %16973 }
0x3a9a   :  { %5942 = vrot.lane.b32.xlu1 %v16974_v0, %s17385_s0 }
0x3b0c   :  { %v5943_v33 = vpop.permute.xlu1 %5942 }
0x3b0d   :  { %v5945_v1 = vmul.f32 %v16972_v54, %v5943_v33 }
0x3b0f   :  { %5953 = vrot.lane.b32.xlu0 %v5945_v1, %s17386_s29 }
0x3b81   :  { %v5954_v15 = vpop.permute.xlu0 %5953 }
0x3b82   :  { %14942 = vmatmul.mubr.msk.f32.vlgmr.msra.gmra.mrb[68].mxu0 %vm367_vm4, %v5954_v15  ;;  %14971 = vmatmul.mubr.msk.f32.vlgmr.msra.gmra.mrb[62].mxu1 %vm367_vm4, %v5954_v15 }
0x3b83   :  { %16193 = vmatpush3.bf16.msra.mxu0 %v18520_v27  ;;  %14959 = vmatprep.mubr.msk.f32.mxu0 %vm17383_vm0, %v17384_v10 }
0x3b84   :  { %16200 = vmatprep.subr.bf16.mxu0 %v17382_v3  ;;  %16208 = vmatpush3.bf16.msra.mxu1 %v18617_v38 }
0x3b85   :  { %16209 = vmatprep.subr.bf16.mxu1 %v17382_v3  ;;  %14992 = vmatprep.mubr.msk.f32.mxu1 %vm17383_vm0, %v17384_v10 }
0x3b88   :  { %16211 = vmatpush3.bf16.msra.mxu1 %v18621_v26 }
0x3b89   :  { %16218 = vmatprep.subr.bf16.mxu1 %v17382_v3 }
0x3c55   :  { %v6023_v19 = vpop.f32.mrb[68].mxu0  ;;  %v6285_v20 = vpop.f32.mrb[62].mxu1 }
0x3c56   :  { %v18644_v57 = vadd.f32 %v18641_v17, %v6023_v19  ;;  %v14943_v49 = vpop.f32.mrb[69].mxu0  ;;  %v14972_v50 = vpop.f32.mrb[63].mxu1 }
0x3c58   :  { %v6027_v5 = vsel %vm168_vm1, %v18644_v57, -inf }
0x3c59   :  { %6028 = vmax.xlane.f32.xlu1 %v6027_v5 }
0x3ce6   :  { %v18648_v4 = vpop.xlane.xlu1 %6028 }
0x3ce7   :  { %v6030_v14 = vsub.f32 %v18644_v57, %v18648_v4 }
0x3ce9   :  { %v6031_v52 = vmul.f32 1.442695, %v6030_v14 }
0x3ceb   :  { %16975 = vpow2.f32 %v6031_v52 }
0x3cf5   :  { %v16976_v25 = vpop.eup %16975 }
0x3cf6   :  { %v6033_v34 = vsel %vm168_vm1, %v16976_v25, 0.0 }
0x3cf7   :  { %6034 = vadd.xlane.f32.xlu0 %v6033_v34 }
0x3d84   :  { %v6035_v51 = vpop.xlane.xlu0 %6034 }
0x3d85   :  { %16977 = vrcp.f32 %v6035_v51 }
0x3d8f   :  { %v16978_v18 = vpop.eup %16977 }
0x3d90   :  { %v6037_v30 = vmul.f32 %v16978_v18, %v16976_v25 }
0x3d92   :  { %14960 = vmatmul.mubr.msk.f32.vlgmr.msra.gmra.mrb[70].mxu0 %vm168_vm1, %v6037_v30 }
0x3d93   :  { %16202 = vmatpush3.bf16.msra.mxu0 %v18579_v35  ;;  %14981 = vmatprep.mubr.msk.f32.mxu0 %vm17383_vm0, %v17384_v10 }
0x3d94   :  { %16203 = vmatprep.subr.bf16.mxu0 %v17382_v3 }
0x3d97   :  { %16205 = vmatpush3.bf16.msra.mxu0 %v18583_v31 }
0x3d98   :  { %16212 = vmatprep.subr.bf16.mxu0 %v17382_v3 }
0x3e65   :  { %v6190_v32 = vpop.f32.mrb[70].mxu0 }
0x3e66   :  { %v6191_v42 = vadd.f32 %v6190_v32, %v18607_v58  ;;  %v14961_v56 = vpop.f32.mrb[71].mxu0 }
0x3e68   :  { %v6194_v37 = vadd.f32 %v18551_v16, %v6191_v42 }
0x3e6a   :  { %16979 = vtanh.f32 %v6194_v37  ;;  %v13367_v48 = vmul.f32 -1.442695, %v6194_v37 }
0x3e6c   :  { %16981 = vpow2.f32 %v13367_v48 }
0x3e74   :  { %v16980_v40 = vpop.eup %16979 }
0x3e75   :  { %6204 = vrot.lane.b32.xlu0 %v16980_v40, %s17385_s0 }
0x3e76   :  { %v16982_v54 = vpop.eup %16981 }
0x3e77   :  { %v6198_v47 = vadd.f32 1.0, %v16982_v54 }
0x3e79   :  { %16983 = vrcp.f32 %v6198_v47 }
0x3e83   :  { %v16984_v11 = vpop.eup %16983 }
0x3e84   :  { %v6202_v61 = vmul.f32 %v16984_v11, %v18569_v6 }
0x3ee7   :  { %v6205_v22 = vpop.permute.xlu0 %6204 }
0x3ee8   :  { %v6207_v39 = vmul.f32 %v16984_v11, %v6205_v22 }
0x3eea   :  { %6209 = vrot.lane.b32.xlu1 %v6207_v39, %s17386_s29 }
0x3f5c   :  { %v6210_v58 = vpop.permute.xlu1 %6209 }
0x3f5d   :  { %v18665_v62 = vadd.f32 %v6210_v58, %v6202_v61 }
0x3f5f   :  { %16985 = vtanh.f32 %v18665_v62 }
0x3f69   :  { %v16986_v29 = vpop.eup %16985 }
0x3f6a   :  { %6215 = vrot.lane.b32.xlu1 %v16986_v29, %s17385_s0 }
0x3fdc   :  { %v6216_v45 = vpop.permute.xlu1 %6215 }
0x3fdd   :  { %v6218_v0 = vmul.f32 %v16984_v11, %v6216_v45 }
0x3fdf   :  { %6290 = vrot.lane.b32.xlu0 %v6218_v0, %s17386_s29 }
0x4051   :  { %v6291_v33 = vpop.permute.xlu0 %6290 }
0x4052   :  { %14982 = vmatmul.mubr.msk.f32.vlgmr.msra.gmra.mrb[72].mxu0 %vm367_vm4, %v6291_v33 }
0x4053   :  { %16214 = vmatpush3.bf16.msra.mxu0 %v18531_v9  ;;  %15003 = vmatprep.mubr.msk.f32.mxu0 %vm17383_vm0, %v17384_v10 }
0x4054   :  { %16215 = vmatprep.subr.bf16.mxu0 %v17382_v3 }
0x4057   :  { %16217 = vmatpush3.bf16.msra.mxu0 %v18537_v24 }
0x4058   :  { %16221 = vmatprep.subr.bf16.mxu0 %v17382_v3 }
0x405a   :  { %15004 = vmatmul.mubr.msk.f32.vlgmr.msra.gmra.mrb[74].mxu0 %vm367_vm4, %v6291_v33 }
0x405b   :  { %16223 = vmatpush3.bf16.msra.mxu0 %v18556_v55  ;;  %15021 = vmatprep.mubr.msk.f32.mxu0 %vm17383_vm0, %v17384_v10 }
0x405c   :  { %16224 = vmatprep.subr.bf16.mxu0 %v17382_v3 }
0x405f   :  { %16226 = vmatpush3.bf16.msra.mxu0 %v18563_v41 }
0x4060   :  { %16233 = vmatprep.subr.bf16.mxu0 %v17382_v3 }
0x4125   :  { %v6360_v6 = vpop.f32.mrb[72].mxu0 }
0x4126   :  { %v6361_v1 = vadd.f32 %v6360_v6, %v6285_v20  ;;  %v14983_v15 = vpop.f32.mrb[73].mxu0 }
0x4128   :  { %v6364_v19 = vadd.f32 %v18604_v46, %v6361_v1 }
0x412a   :  { %16987 = vtanh.f32 %v6364_v19  ;;  %v13370_v14 = vmul.f32 -1.442695, %v6364_v19 }
0x412c   :  { %16989 = vpow2.f32 %v13370_v14 }
0x412d   :  { %v6558_v49 = vpop.f32.mrb[74].mxu0 }
0x412e   :  { %v15005_v50 = vpop.f32.mrb[75].mxu0 }
0x4134   :  { %v16988_v5 = vpop.eup %16987 }
0x4135   :  { %6374 = vrot.lane.b32.xlu1 %v16988_v5, %s17385_s0 }
0x4136   :  { %v16990_v52 = vpop.eup %16989 }
0x4137   :  { %v6368_v25 = vadd.f32 1.0, %v16990_v52 }
0x4139   :  { %16991 = vrcp.f32 %v6368_v25 }
0x4143   :  { %v16992_v34 = vpop.eup %16991 }
0x4144   :  { %v6372_v20 = vmul.f32 %v16992_v34, %v18611_v13 }
0x41a7   :  { %v6375_v51 = vpop.permute.xlu1 %6374 }
0x41a8   :  { %v6377_v18 = vmul.f32 %v16992_v34, %v6375_v51 }
0x41aa   :  { %6379 = vrot.lane.b32.xlu0 %v6377_v18, %s17386_s29 }
0x421c   :  { %v6380_v30 = vpop.permute.xlu0 %6379 }
0x421d   :  { %v18688_v32 = vadd.f32 %v6380_v30, %v6372_v20 }
0x421f   :  { %16993 = vtanh.f32 %v18688_v32 }
0x4229   :  { %v16994_v42 = vpop.eup %16993 }
0x422a   :  { %6385 = vrot.lane.b32.xlu1 %v16994_v42, %s17385_s0 }
0x429c   :  { %v6386_v56 = vpop.permute.xlu1 %6385 }
0x429d   :  { %v6388_v37 = vmul.f32 %v16992_v34, %v6386_v56 }
0x429f   :  { %6390 = vrot.lane.b32.xlu0 %v6388_v37, %s17386_s29 }
0x4311   :  { %v6391_v40 = vpop.permute.xlu0 %6390 }
0x4312   :  { %14993 = vmatmul.mubr.msk.f32.vlgmr.msra.gmra.mrb[64].mxu1 %vm367_vm4, %v6391_v40  ;;  %15022 = vmatmul.mubr.msk.f32.vlgmr.msra.gmra.mrb[76].mxu0 %vm367_vm4, %v6391_v40 }
0x4313   :  { %16220 = vmatpush3.bf16.msra.mxu1 %v18520_v27  ;;  %15010 = vmatprep.mubr.msk.f32.mxu1 %vm17383_vm0, %v17384_v10 }
0x4314   :  { %16227 = vmatprep.subr.bf16.mxu1 %v17382_v3  ;;  %16235 = vmatpush3.bf16.msra.mxu0 %v18617_v38 }
0x4315   :  { %16236 = vmatprep.subr.bf16.mxu0 %v17382_v3  ;;  %15043 = vmatprep.mubr.msk.f32.mxu0 %vm17383_vm0, %v17384_v10 }
0x4318   :  { %16238 = vmatpush3.bf16.msra.mxu0 %v18621_v26 }
0x4319   :  { %16245 = vmatprep.subr.bf16.mxu0 %v17382_v3 }
0x43e5   :  { %v6460_v13 = vpop.f32.mrb[64].mxu1  ;;  %v6726_v48 = vpop.f32.mrb[76].mxu0 }
0x43e6   :  { %v18706_v54 = vadd.f32 %v18641_v17, %v6460_v13  ;;  %v14994_v47 = vpop.f32.mrb[65].mxu1  ;;  %v15023_v11 = vpop.f32.mrb[77].mxu0 }
0x43e8   :  { %v6464_v22 = vsel %vm168_vm1, %v18706_v54, -inf }
0x43e9   :  { %6465 = vmax.xlane.f32.xlu1 %v6464_v22 }
0x4476   :  { %v18710_v39 = vpop.xlane.xlu1 %6465 }
0x4477   :  { %v6467_v61 = vsub.f32 %v18706_v54, %v18710_v39 }
0x4479   :  { %v6468_v58 = vmul.f32 1.442695, %v6467_v61 }
0x447b   :  { %16995 = vpow2.f32 %v6468_v58 }
0x4485   :  { %v16996_v29 = vpop.eup %16995 }
0x4486   :  { %v6470_v45 = vsel %vm168_vm1, %v16996_v29, 0.0 }
0x4487   :  { %6471 = vadd.xlane.f32.xlu0 %v6470_v45 }
0x4514   :  { %v6472_v0 = vpop.xlane.xlu0 %6471 }
0x4515   :  { %16997 = vrcp.f32 %v6472_v0 }
0x451f   :  { %v16998_v33 = vpop.eup %16997 }
0x4520   :  { %v6474_v6 = vmul.f32 %v16998_v33, %v16996_v29 }
0x4522   :  { %15011 = vmatmul.mubr.msk.f32.vlgmr.msra.gmra.mrb[66].mxu1 %vm168_vm1, %v6474_v6 }
0x4523   :  { %16229 = vmatpush3.bf16.msra.mxu1 %v18579_v35  ;;  %15032 = vmatprep.mubr.msk.f32.mxu1 %vm17383_vm0, %v17384_v10 }
0x4524   :  { %16230 = vmatprep.subr.bf16.mxu1 %v17382_v3 }
0x4527   :  { %16232 = vmatpush3.bf16.msra.mxu1 %v18583_v31 }
0x4528   :  { %16239 = vmatprep.subr.bf16.mxu1 %v17382_v3 }
0x45f5   :  { %v6631_v1 = vpop.f32.mrb[66].mxu1 }
0x45f6   :  { %v6632_v15 = vadd.f32 %v6631_v1, %v6558_v49  ;;  %v15012_v19 = vpop.f32.mrb[67].mxu1 }
0x45f8   :  { %v6635_v50 = vadd.f32 %v18551_v16, %v6632_v15 }
0x45fa   :  { %16999 = vtanh.f32 %v6635_v50  ;;  %v13376_v14 = vmul.f32 -1.442695, %v6635_v50 }
0x45fc   :  { %17001 = vpow2.f32 %v13376_v14 }
0x4604   :  { %v17000_v5 = vpop.eup %16999 }
0x4605   :  { %6645 = vrot.lane.b32.xlu0 %v17000_v5, %s17385_s0 }
0x4606   :  { %v17002_v52 = vpop.eup %17001 }
0x4607   :  { %v6639_v25 = vadd.f32 1.0, %v17002_v52 }
0x4609   :  { %17003 = vrcp.f32 %v6639_v25 }
0x4613   :  { %v17004_v34 = vpop.eup %17003 }
0x4614   :  { %v6643_v20 = vmul.f32 %v17004_v34, %v18665_v62 }
0x4677   :  { %v6646_v51 = vpop.permute.xlu0 %6645 }
0x4678   :  { %v6648_v18 = vmul.f32 %v17004_v34, %v6646_v51 }
0x467a   :  { %6650 = vrot.lane.b32.xlu1 %v6648_v18, %s17386_s29 }
0x46ec   :  { %v6651_v49 = vpop.permute.xlu1 %6650 }
0x46ed   :  { %v18726_v30 = vadd.f32 %v6651_v49, %v6643_v20 }
0x46ef   :  { %17005 = vtanh.f32 %v18726_v30 }
0x46f9   :  { %v17006_v42 = vpop.eup %17005 }
0x46fa   :  { %6656 = vrot.lane.b32.xlu1 %v17006_v42, %s17385_s0 }
0x476c   :  { %v6657_v56 = vpop.permute.xlu1 %6656 }
0x476d   :  { %v6659_v37 = vmul.f32 %v17004_v34, %v6657_v56 }
0x476f   :  { %6731 = vrot.lane.b32.xlu0 %v6659_v37, %s17386_s29 }
0x47e1   :  { %v6732_v40 = vpop.permute.xlu0 %6731 }
0x47e2   :  { %15033 = vmatmul.mubr.msk.f32.vlgmr.msra.gmra.mrb[68].mxu1 %vm367_vm4, %v6732_v40 }
0x47e3   :  { %16241 = vmatpush3.bf16.msra.mxu1 %v18531_v9  ;;  %15054 = vmatprep.mubr.msk.f32.mxu1 %vm17383_vm0, %v17384_v10 }
0x47e4   :  { %16242 = vmatprep.subr.bf16.mxu1 %v17382_v3 }
0x47e7   :  { %16244 = vmatpush3.bf16.msra.mxu1 %v18537_v24 }
0x47e8   :  { %16248 = vmatprep.subr.bf16.mxu1 %v17382_v3 }
0x47ea   :  { %15055 = vmatmul.mubr.msk.f32.vlgmr.msra.gmra.mrb[70].mxu1 %vm367_vm4, %v6732_v40 }
0x47eb   :  { %16250 = vmatpush3.bf16.msra.mxu1 %v18556_v55  ;;  %15072 = vmatprep.mubr.msk.f32.mxu1 %vm17383_vm0, %v17384_v10 }
0x47ec   :  { %16251 = vmatprep.subr.bf16.mxu1 %v17382_v3 }
0x47ef   :  { %16253 = vmatpush3.bf16.msra.mxu1 %v18563_v41 }
0x47f0   :  { %16260 = vmatprep.subr.bf16.mxu1 %v17382_v3 }
0x48b5   :  { %v6801_v9 = vpop.f32.mrb[68].mxu1 }
0x48b6   :  { %v6802_v62 = vadd.f32 %v6801_v9, %v6726_v48  ;;  %v15034_v13 = vpop.f32.mrb[69].mxu1 }
0x48b8   :  { %v6805_v24 = vadd.f32 %v18604_v46, %v6802_v62 }
0x48ba   :  { %17007 = vtanh.f32 %v6805_v24  ;;  %v13379_v55 = vmul.f32 -1.442695, %v6805_v24 }
0x48bc   :  { %17009 = vpow2.f32 %v13379_v55  ;;  %v3554_v55 = vsel %vm168_vm1, %v18174_v2, -inf }
0x48bd   :  { %v6999_v47 = vpop.f32.mrb[70].mxu1 }
0x48be   :  { %v15056_v11 = vpop.f32.mrb[71].mxu1 }
0x48c4   :  { %v17008_v22 = vpop.eup %17007 }
0x48c5   :  { %6815 = vrot.lane.b32.xlu1 %v17008_v22, %s17385_s0 }
0x48c6   :  { %v17010_v61 = vpop.eup %17009 }
0x48c7   :  { %v6809_v58 = vadd.f32 1.0, %v17010_v61 }
0x48c9   :  { %17011 = vrcp.f32 %v6809_v58 }
0x48d3   :  { %v17012_v29 = vpop.eup %17011 }
0x48d4   :  { %v6813_v48 = vmul.f32 %v17012_v29, %v18688_v32 }
0x4937   :  { %v6816_v41 = vpop.permute.xlu1 %6815 }
0x4938   :  { %v6818_v45 = vmul.f32 %v17012_v29, %v6816_v41 }
0x493a   :  { %6820 = vrot.lane.b32.xlu0 %v6818_v45, %s17386_s29 }
0x49ac   :  { %v6821_v0 = vpop.permute.xlu0 %6820 }
0x49ad   :  { %v18749_v33 = vadd.f32 %v6821_v0, %v6813_v48  ;;  %v7464_v0 = vld [vmem:[%s17448_s8] sm:$0xff] }
0x49af   :  { %17013 = vtanh.f32 %v18749_v33 }
0x49b9   :  { %v17014_v6 = vpop.eup %17013 }
0x49ba   :  { %6826 = vrot.lane.b32.xlu1 %v17014_v6, %s17385_s0  ;;  %v7465_v6 = vld [vmem:[%s17448_s8 + $0x8] sm:$0xff] }
0x4a2c   :  { %v6827_v1 = vpop.permute.xlu1 %6826 }
0x4a2d   :  { %v6829_v15 = vmul.f32 %v17012_v29, %v6827_v1  ;;  %v18794_v29 = vcvt.s32.f32 %v17629_v12  ;;  %v16269_v1 = vpack.c.bf16 %v7465_v6, %v7464_v0 }
0x4a2f   :  { %6831 = vrot.lane.b32.xlu0 %v6829_v15, %s17386_s29  ;;  %v18797_v41 = vsub.f32 16.0, %v18794_v29 }
0x4aa1   :  { %v6832_v19 = vpop.permute.xlu0 %6831 }
0x4aa2   :  { %15044 = vmatmul.mubr.msk.f32.vlgmr.msra.gmra.mrb[78].mxu0 %vm367_vm4, %v6832_v19  ;;  %15073 = vmatmul.mubr.msk.f32.vlgmr.msra.gmra.mrb[72].mxu1 %vm367_vm4, %v6832_v19  ;;  %v7462_v19 = vld [vmem:[%s17443_s3] sm:$0xff] }
0x4aa3   :  { %16247 = vmatpush3.bf16.msra.mxu0 %v18520_v27  ;;  %15061 = vmatprep.mubr.msk.f32.mxu0 %vm17383_vm0, %v17384_v10 }
0x4aa4   :  { %16254 = vmatprep.subr.bf16.mxu0 %v17382_v3  ;;  %16262 = vmatpush3.bf16.msra.mxu1 %v18617_v38 }
0x4aa5   :  { %16263 = vmatprep.subr.bf16.mxu1 %v17382_v3  ;;  %15094 = vmatprep.mubr.msk.f32.mxu1 %vm17383_vm0, %v17384_v10 }
0x4aa8   :  { %16265 = vmatpush3.bf16.msra.mxu1 %v18621_v26 }
0x4aa9   :  { %16273 = vmatprep.subr.bf16.mxu1 %v17382_v3 }
0x4b75   :  { %v6901_v32 = vpop.f32.mrb[78].mxu0  ;;  %v18766_v50 = vpop.f32.mrb[72].mxu1 }
0x4b76   :  { %v18769_v27 = vadd.f32 %v18641_v17, %v6901_v32  ;;  %v15045_v5 = vpop.f32.mrb[79].mxu0  ;;  %v15074_v14 = vpop.f32.mrb[73].mxu1 }
0x4b78   :  { %v6905_v38 = vsel %vm168_vm1, %v18769_v27, -inf }
0x4b79   :  { %6906 = vmax.xlane.f32.xlu1 %v6905_v38 }
0x4c06   :  { %v18773_v52 = vpop.xlane.xlu1 %6906 }
0x4c07   :  { %v6908_v25 = vsub.f32 %v18769_v27, %v18773_v52 }
0x4c09   :  { %v6909_v26 = vmul.f32 1.442695, %v6908_v25 }
0x4c0b   :  { %17015 = vpow2.f32 %v6909_v26 }
0x4c15   :  { %v17016_v34 = vpop.eup %17015 }
0x4c16   :  { %v6911_v51 = vsel %vm168_vm1, %v17016_v34, 0.0 }
0x4c17   :  { %6912 = vadd.xlane.f32.xlu0 %v6911_v51 }
0x4ca4   :  { %v6913_v18 = vpop.xlane.xlu0 %6912 }
0x4ca5   :  { %17017 = vrcp.f32 %v6913_v18 }
0x4caf   :  { %v17018_v17 = vpop.eup %17017 }
0x4cb0   :  { %v6915_v20 = vmul.f32 %v17018_v17, %v17016_v34  ;;  %v4132_v34 = vsel %vm4131_vm5, %v18797_v41, 0.0  ;;  %vm6475_vm5 = vcmp.ge.f32.partialorder %v18706_v54, %v18710_v39  ;;  %v8956_v39 = vld [vmem:[%s17478_s12 + $0x20] sm:$0xff] }
0x4cb1   :  { %v4133_v51 = vsel %vm168_vm1, %v4132_v34, -inf }
0x4cb2   :  { %15062 = vmatmul.mubr.msk.f32.vlgmr.msra.gmra.mrb[80].mxu0 %vm168_vm1, %v6915_v20 }
0x4cb3   :  { %16256 = vmatpush3.bf16.msra.mxu0 %v18579_v35  ;;  %15083 = vmatprep.mubr.msk.f32.mxu0 %vm17383_vm0, %v17384_v10 }
0x4cb4   :  { %16257 = vmatprep.subr.bf16.mxu0 %v17382_v3 }
0x4cb7   :  { %16259 = vmatpush3.bf16.msra.mxu0 %v18583_v31 }
0x4cb8   :  { %16266 = vmatprep.subr.bf16.mxu0 %v17382_v3 }
0x4d85   :  { %v7072_v49 = vpop.f32.mrb[80].mxu0 }
0x4d86   :  { %v7073_v42 = vadd.f32 %v7072_v49, %v6999_v47  ;;  %v15063_v56 = vpop.f32.mrb[81].mxu0 }
0x4d88   :  { %v7076_v37 = vadd.f32 %v18551_v16, %v7073_v42 }
0x4d8a   :  { %17019 = vtanh.f32 %v7076_v37  ;;  %v13385_v9 = vmul.f32 -1.442695, %v7076_v37 }
0x4d8c   :  { %17021 = vpow2.f32 %v13385_v9 }
0x4d94   :  { %v17020_v40 = vpop.eup %17019 }
0x4d95   :  { %7086 = vrot.lane.b32.xlu0 %v17020_v40, %s17385_s0 }
0x4d96   :  { %v17022_v35 = vpop.eup %17021 }
0x4d97   :  { %v7080_v62 = vadd.f32 1.0, %v17022_v35 }
0x4d99   :  { %17023 = vrcp.f32 %v7080_v62 }
0x4da3   :  { %v17024_v13 = vpop.eup %17023 }
0x4da4   :  { %v7084_v31 = vmul.f32 %v17024_v13, %v18726_v30 }
0x4e07   :  { %v7087_v24 = vpop.permute.xlu0 %7086 }
0x4e08   :  { %v7089_v11 = vmul.f32 %v17024_v13, %v7087_v24 }
0x4e0a   :  { %7091 = vrot.lane.b32.xlu1 %v7089_v11, %s17386_s29 }
0x4e7c   :  { %v7092_v47 = vpop.permute.xlu1 %7091 }
0x4e7d   :  { %v7094_v22 = vadd.f32 %v7092_v47, %v7084_v31 }
0x4e7f   :  { %17025 = vtanh.f32 %v7094_v22 }
0x4e89   :  { %v17026_v16 = vpop.eup %17025 }
0x4e8a   :  { %7097 = vrot.lane.b32.xlu1 %v17026_v16, %s17385_s0 }
0x4eae   :  { %3555 = vmax.xlane.f32.xlu1 %v3554_v55 }
0x4efc   :  { %v7098_v61 = vpop.permute.xlu1 %7097 }
0x4efd   :  { %v7100_v58 = vmul.f32 %v17024_v13, %v7098_v61  ;;  %v7547_v61 = vld [vmem:[%s17453_s14] sm:$0xff] }
0x4eff   :  { %7172 = vrot.lane.b32.xlu0 %v7100_v58, %s17386_s29  ;;  %v7548_v58 = vld [vmem:[%s17453_s14 + $0x8] sm:$0xff] }
0x4f3b   :  { %v3556_v30 = vpop.xlane.xlu1 %3555 }
0x4f3c   :  { %vm3557_vm2 = vcmp.ge.f32.partialorder %v18174_v2, %v3556_v30  ;;  %v18852_v30 = vpack.c.bf16 %v7548_v58, %v7547_v61 }
0x4f3d   :  { %v3559_v45 = vsel %vm3557_vm2, %v18797_v41, 0.0  ;;  %vm6038_vm2 = vcmp.ge.f32.partialorder %v18644_v57, %v18648_v4 }
0x4f3e   :  { %v3560_v48 = vsel %vm168_vm1, %v3559_v45, -inf  ;;  %v7549_v45 = vld [vmem:[%s17453_s14 + $0x10] sm:$0xff] }
0x4f3f   :  { %3561 = vmax.xlane.f32.xlu0 %v3560_v48  ;;  %v7550_v48 = vld [vmem:[%s17453_s14 + $0x18] sm:$0xff] }
0x4f40   :  { %v18858_v0 = vpack.c.bf16 %v7550_v48, %v7549_v45 }
0x4f71   :  { %v7173_v15 = vpop.permute.xlu0 %7172 }
0x4f72   :  { %15084 = vmatmul.mubr.msk.f32.vlgmr.msra.gmra.mrb[82].mxu0 %vm367_vm4, %v7173_v15  ;;  %v18871_v15 = vld [vmem:[%s17458_s19] ss:$0 sm:$0xff] }
0x4f73   :  { %16268 = vmatpush3.bf16.msra.mxu0 %v17617_v7  ;;  %15101 = vmatprep.mubr.msk.f32.mxu0 %vm17383_vm0, %v17384_v10  ;;  %v7463_v7 = vld [vmem:[%s17443_s3 + $0x8] sm:$0xff] }
0x4f74   :  { %16270 = vmatprep.subr.bf16.mxu0 %v16269_v1 }
0x4fcc   :  { %v18808_v12 = vpop.xlane.xlu0 %3561 }
0x4fcd   :  { %v3563_v2 = vsub.f32 16.0, %v18808_v12 }
0x4fcf   :  { %vm3564_vm3 = vcmp.eq.f32.partialorder %v18794_v29, %v3563_v2 }
0x4fd0   :  { %v13281_v32 = vsel %vm3564_vm3, 1.0, %v17384_v10 }
0x4fd1   :  { %15102 = vmatmul.mubr.msk.f32.vlgmr.msra.gmra.mrb[84].mxu0 %vm168_vm1, %v13281_v32 }
0x4fd2   :  { %16272 = vmatpush3.bf16.msra.mxu0 %v16269_v1  ;;  %15108 = vmatprep.mubr.msk.f32.mxu0 %vm168_vm1, %v7462_v19 }
0x4fd3   :  { %16279 = vmatprep.subr.bf16.mxu0 %v17382_v3 }
0x4fd5   :  { %15109 = vmatmul.mubr.msk.f32.vlgmr.msra.gmra.mrb[86].mxu0 %vm168_vm1, %v7463_v7 }
0x4fd6   :  { %15126 = vmatprep.mubr.msk.f32.mxu0 %vm17383_vm0, %v17384_v10 }
0x5045   :  { %v7242_v5 = vpop.f32.mrb[82].mxu0 }
0x5046   :  { %v7243_v14 = vadd.f32 %v7242_v5, %v18766_v50  ;;  %v15085_v38 = vpop.f32.mrb[83].mxu0 }
0x5048   :  { %v7246_v25 = vadd.f32 %v18604_v46, %v7243_v14 }
0x504a   :  { %17027 = vtanh.f32 %v7246_v25  ;;  %v13388_v20 = vmul.f32 -1.442695, %v7246_v25 }
0x504c   :  { %17029 = vpow2.f32 %v13388_v20 }
0x5054   :  { %v17028_v26 = vpop.eup %17027 }
0x5055   :  { %7256 = vrot.lane.b32.xlu0 %v17028_v26, %s17385_s0 }
0x5056   :  { %v17030_v46 = vpop.eup %17029 }
0x5057   :  { %v7250_v28 = vadd.f32 1.0, %v17030_v46 }
0x5059   :  { %17031 = vrcp.f32 %v7250_v28  ;;  %v4569_v28 = vsel %vm4568_vm7, %v18797_v41, 0.0 }
0x5063   :  { %v17032_v56 = vpop.eup %17031 }
0x5064   :  { %v7254_v13 = vmul.f32 %v17032_v56, %v18749_v33 }
0x5074   :  { %4134 = vmax.xlane.f32.xlu0 %v4133_v51 }
0x50a4   :  { %v18830_v18 = vpop.f32.mrb[84].mxu0 }
0x50a5   :  { %v15103_v17 = vpop.f32.mrb[85].mxu0 }
0x50a8   :  { %v15110_v50 = vpop.f32.mrb[86].mxu0 }
0x50a9   :  { %v7538_v49 = vpop.f32.mrb[87].mxu0 }
0x50aa   :  { %v18832_v42 = vpack.c.bf16 %v15110_v50, %v7538_v49 }
0x50ac   :  { %16281 = vmatpush3.bf16.msra.mxu0 %v18832_v42 }
0x50ad   :  { %16282 = vmatprep.subr.bf16.mxu0 %v17382_v3 }
0x50c7   :  { %v7257_v37 = vpop.permute.xlu0 %7256 }
0x50c8   :  { %v7259_v40 = vmul.f32 %v17032_v56, %v7257_v37  ;;  %v7556_v37 = vld [vmem:[%s17468_s30] sm:$0xff] }
0x50ca   :  { %7261 = vrot.lane.b32.xlu1 %v7259_v40, %s17386_s29  ;;  %v7557_v40 = vld [vmem:[%s17468_s30 + $0x8] sm:$0xff] }
0x5101   :  { %v18837_v9 = vpop.xlane.xlu0 %4134 }
0x5102   :  { %v4136_v35 = vsub.f32 16.0, %v18837_v9 }
0x5104   :  { %vm4137_vm6 = vcmp.eq.f32.partialorder %v18794_v29, %v4136_v35 }
0x5105   :  { %v13296_v62 = vsel %vm4137_vm6, 1.0, %v17384_v10 }
0x5106   :  { %15127 = vmatmul.mubr.msk.f32.vlgmr.msra.gmra.mrb[88].mxu0 %vm168_vm1, %v13296_v62  ;;  %v7558_v62 = vld [vmem:[%s17468_s30 + $0x10] sm:$0xff] }
0x5107   :  { %15137 = vmatprep.mubr.msk.f32.mxu0 %vm17383_vm0, %v17384_v10 }
0x513c   :  { %v7262_v24 = vpop.permute.xlu1 %7261 }
0x513d   :  { %v7264_v11 = vadd.f32 %v7262_v24, %v7254_v13  ;;  %v18887_v13 = vpack.c.bf16 %v7557_v40, %v7556_v37  ;;  %v7559_v24 = vld [vmem:[%s17468_s30 + $0x18] sm:$0xff] }
0x513e   :  { %v18897_v8 = vpack.c.bf16 %v7559_v24, %v7558_v62 }
0x513f   :  { %17033 = vtanh.f32 %v7264_v11  ;;  %v7552_v11 = vld [vmem:[%s17463_s24] sm:$0xff]  ;;  %16284 = vmatpush3.bf16.msra.mxu0 %v18887_v13 }
0x5140   :  { %16285 = vmatprep.subr.bf16.mxu0 %v17382_v3 }
0x5143   :  { %16287 = vmatpush3.bf16.msra.mxu0 %v18897_v8 }
0x5144   :  { %16294 = vmatprep.subr.bf16.mxu0 %v17382_v3 }
0x5146   :  { %15138 = vmatmul.mubr.f32.vlgmr.msra.gmra.mrb[90].mxu0 %v17384_v10 }
0x5147   :  { %16296 = vmatpush3.bf16.msra.mxu0 %v18852_v30  ;;  %15159 = vmatprep.mubr.msk.f32.mxu0 %vm17383_vm0, %v17384_v10 }
0x5148   :  { %16297 = vmatprep.subr.bf16.mxu0 %v17382_v3 }
0x5149   :  { %v17034_v31 = vpop.eup %17033 }
0x514a   :  { %7267 = vrot.lane.b32.xlu1 %v17034_v31, %s17385_s0  ;;  %v7553_v31 = vld [vmem:[%s17463_s24 + $0x8] sm:$0xff] }
0x514b   :  { %16299 = vmatpush3.bf16.msra.mxu0 %v18858_v0 }
0x514c   :  { %16309 = vmatprep.subr.bf16.mxu0 %v17382_v3 }
0x51bc   :  { %v7268_v47 = vpop.permute.xlu1 %7267 }
0x51bd   :  { %v7270_v22 = vmul.f32 %v17032_v56, %v7268_v47  ;;  %v4570_v56 = vsel %vm168_vm1, %v4569_v28, -inf  ;;  %v18892_v47 = vpack.c.bf16 %v7553_v31, %v7552_v11 }
0x51bf   :  { %7272 = vrot.lane.b32.xlu1 %v7270_v22, %s17386_s29  ;;  %v7554_v22 = vld [vmem:[%s17463_s24 + $0x10] sm:$0xff] }
0x51d9   :  { %v7700_v16 = vpop.f32.mrb[88].mxu0 }
0x51da   :  { %v15128_v55 = vpop.f32.mrb[89].mxu0 }
0x5231   :  { %v7273_v33 = vpop.permute.xlu1 %7272 }
0x5232   :  { %15095 = vmatmul.mubr.msk.f32.vlgmr.msra.gmra.mrb[74].mxu1 %vm367_vm4, %v7273_v33 }
0x5233   :  { %16275 = vmatpush3.bf16.msra.mxu1 %v18852_v30  ;;  %15119 = vmatprep.mubr.msk.f32.mxu1 %vm17383_vm0, %v17384_v10 }
0x5234   :  { %16276 = vmatprep.subr.bf16.mxu1 %v17382_v3 }
0x5237   :  { %16278 = vmatpush3.bf16.msra.mxu1 %v18858_v0 }
0x5238   :  { %16288 = vmatprep.subr.bf16.mxu1 %v17382_v3 }
0x523a   :  { %15120 = vmatmul.mubr.f32.vlgmr.msra.gmra.mrb[76].mxu1 %v17384_v10 }
0x523b   :  { %15148 = vmatprep.mubr.msk.f32.mxu1 %vm17383_vm0, %v17384_v10  ;;  %16290 = vmatpush3.bf16.msra.mxu1 %v18892_v47 }
0x523c   :  { %16291 = vmatprep.subr.bf16.mxu1 %v17382_v3 }
0x5305   :  { %v18868_v6 = vpop.f32.mrb[74].mxu1 }
0x5306   :  { %v15096_v1 = vpop.f32.mrb[75].mxu1 }
0x530d   :  { %v7627_v19 = vpop.f32.mrb[76].mxu1 }
0x530e   :  { %v7701_v32 = vadd.f32 %v7700_v16, %v7627_v19  ;;  %v15121_v7 = vpop.f32.mrb[77].mxu1  ;;  %v7555_v16 = vld [vmem:[%s17463_s24 + $0x18] sm:$0xff]  ;;  %v7801_v19 = vpop.f32.mrb[90].mxu0 }
0x530f   :  { %v18901_v55 = vpack.c.bf16 %v7555_v16, %v7554_v22  ;;  %v18943_v7 = vld [vmem:[%s17473_s6] ss:$0 sm:$0xff] }
0x5310   :  { %v7710_v5 = vadd.f32 %v18871_v15, %v7701_v32  ;;  %v15139_v32 = vpop.f32.mrb[91].mxu0 }
0x5311   :  { %16293 = vmatpush3.bf16.msra.mxu1 %v18901_v55 }
0x5312   :  { %17035 = vtanh.f32 %v7710_v5  ;;  %v13397_v38 = vmul.f32 -1.442695, %v7710_v5  ;;  %16300 = vmatprep.subr.bf16.mxu1 %v17382_v3 }
0x5314   :  { %17037 = vpow2.f32 %v13397_v38 }
0x531c   :  { %v17036_v14 = vpop.eup %17035 }
0x531d   :  { %7720 = vrot.lane.b32.xlu1 %v17036_v14, %s17385_s0 }
0x531e   :  { %v17038_v25 = vpop.eup %17037 }
0x531f   :  { %v7714_v26 = vadd.f32 1.0, %v17038_v25 }
0x5321   :  { %17039 = vrcp.f32 %v7714_v26 }
0x532b   :  { %v17040_v34 = vpop.eup %17039 }
0x532c   :  { %v7718_v20 = vmul.f32 0.0, %v17040_v34 }
0x538f   :  { %v7721_v51 = vpop.permute.xlu1 %7720 }
0x5390   :  { %v7723_v17 = vmul.f32 %v17040_v34, %v7721_v51 }
0x5392   :  { %7725 = vrot.lane.b32.xlu1 %v7723_v17, %s17386_s29 }
0x5404   :  { %v7726_v50 = vpop.permute.xlu1 %7725 }
0x5405   :  { %v18876_v49 = vadd.f32 %v7726_v50, %v7718_v20 }
0x5407   :  { %17041 = vtanh.f32 %v18876_v49 }
0x5411   :  { %v17042_v46 = vpop.eup %17041 }
0x5412   :  { %7731 = vrot.lane.b32.xlu1 %v17042_v46, %s17385_s0 }
0x5436   :  { %4571 = vmax.xlane.f32.xlu1 %v4570_v56  ;;  %v5010_v56 = vsel %vm5009_vm11, %v18797_v41, 0.0  ;;  %vm6916_vm11 = vcmp.ge.f32.partialorder %v18769_v27, %v18773_v52 }
0x5437   :  { %v5011_v37 = vsel %vm168_vm1, %v5010_v56, -inf }
0x5484   :  { %v7732_v61 = vpop.permute.xlu1 %7731 }
0x5485   :  { %v7734_v58 = vmul.f32 %v17040_v34, %v7732_v61 }
0x5487   :  { %7806 = vrot.lane.b32.xlu0 %v7734_v58, %s17386_s29 }
0x54c3   :  { %v18916_v45 = vpop.xlane.xlu1 %4571 }
0x54c4   :  { %v4573_v48 = vsub.f32 16.0, %v18916_v45 }
0x54c6   :  { %vm4574_vm8 = vcmp.eq.f32.partialorder %v18794_v29, %v4573_v48 }
0x54c7   :  { %v13305_v1 = vsel %vm4574_vm8, 1.0, %v17384_v10 }
0x54f9   :  { %v7807_v33 = vpop.permute.xlu0 %7806 }
0x54fa   :  { %15149 = vmatmul.mubr.msk.f32.vlgmr.msra.gmra.mrb[78].mxu1 %vm367_vm4, %v7807_v33  ;;  %15160 = vmatmul.mubr.msk.f32.vlgmr.msra.gmra.mrb[92].mxu0 %vm367_vm4, %v7807_v33 }
0x54fb   :  { %16302 = vmatpush3.bf16.msra.mxu1 %v18832_v42  ;;  %15166 = vmatprep.mubr.msk.f32.mxu1 %vm17383_vm0, %v17384_v10 }
0x54fc   :  { %16303 = vmatprep.subr.bf16.mxu1 %v17382_v3  ;;  %16311 = vmatpush3.bf16.msra.mxu0 %v18892_v47 }
0x54fd   :  { %16312 = vmatprep.subr.bf16.mxu0 %v17382_v3  ;;  %15188 = vmatprep.mubr.msk.f32.mxu0 %vm17383_vm0, %v17384_v10 }
0x54fe   :  { %15167 = vmatmul.mubr.msk.f32.vlgmr.msra.gmra.mrb[80].mxu1 %vm168_vm1, %v13305_v1 }
0x54ff   :  { %16305 = vmatpush3.bf16.msra.mxu1 %v18887_v13  ;;  %15177 = vmatprep.mubr.msk.f32.mxu1 %vm17383_vm0, %v17384_v10 }
0x5500   :  { %16306 = vmatprep.subr.bf16.mxu1 %v17382_v3  ;;  %16314 = vmatpush3.bf16.msra.mxu0 %v18901_v55 }
0x5501   :  { %16321 = vmatprep.subr.bf16.mxu0 %v17382_v3 }
0x5503   :  { %16308 = vmatpush3.bf16.msra.mxu1 %v18897_v8 }
0x5504   :  { %16315 = vmatprep.subr.bf16.mxu1 %v17382_v3 }
0x55cd   :  { %v7876_v5 = vpop.f32.mrb[78].mxu1  ;;  %v7977_v14 = vpop.f32.mrb[92].mxu0 }
0x55ce   :  { %v7877_v38 = vadd.f32 %v7876_v5, %v7801_v19  ;;  %v15150_v25 = vpop.f32.mrb[79].mxu1  ;;  %v15161_v26 = vpop.f32.mrb[93].mxu0 }
0x55d0   :  { %v7886_v34 = vadd.f32 %v18943_v7, %v7877_v38 }
0x55d1   :  { %v8050_v51 = vpop.f32.mrb[80].mxu1 }
0x55d2   :  { %17043 = vtanh.f32 %v7886_v34  ;;  %v8051_v17 = vadd.f32 %v8050_v51, %v7977_v14  ;;  %v15168_v20 = vpop.f32.mrb[81].mxu1  ;;  %v13400_v40 = vmul.f32 -1.442695, %v7886_v34 }
0x55d4   :  { %v8054_v50 = vadd.f32 %v18871_v15, %v8051_v17 }
0x55d6   :  { %17045 = vtanh.f32 %v8054_v50  ;;  %v13403_v62 = vmul.f32 -1.442695, %v8054_v50 }
0x55d7   :  { %17047 = vpow2.f32 %v13400_v40 }
0x55d8   :  { %17049 = vpow2.f32 %v13403_v62 }
0x55dc   :  { %v17044_v46 = vpop.eup %17043 }
0x55dd   :  { %7896 = vrot.lane.b32.xlu1 %v17044_v46, %s17385_s0 }
0x55e0   :  { %v17046_v28 = vpop.eup %17045 }
0x55e1   :  { %8064 = vrot.lane.b32.xlu0 %v17046_v28, %s17385_s0  ;;  %v17048_v24 = vpop.eup %17047 }
0x55e2   :  { %v7890_v11 = vadd.f32 1.0, %v17048_v24  ;;  %v17050_v31 = vpop.eup %17049 }
0x55e3   :  { %v8058_v22 = vadd.f32 1.0, %v17050_v31 }
0x55e4   :  { %17051 = vrcp.f32 %v7890_v11 }
0x55e5   :  { %17053 = vrcp.f32 %v8058_v22 }
0x55ee   :  { %v17052_v16 = vpop.eup %17051 }
0x55ef   :  { %v17054_v59 = vpop.eup %17053  ;;  %v7894_v19 = vmul.f32 0.0, %v17052_v16 }
0x55f0   :  { %v8062_v14 = vmul.f32 %v17054_v59, %v18876_v49 }
0x5601   :  { %5012 = vmax.xlane.f32.xlu1 %v5011_v37 }
0x564f   :  { %v7897_v61 = vpop.permute.xlu1 %7896 }
0x5650   :  { %v7899_v58 = vmul.f32 %v17052_v16, %v7897_v61 }
0x5652   :  { %7901 = vrot.lane.b32.xlu0 %v7899_v58, %s17386_s29 }
0x5653   :  { %v8065_v33 = vpop.permute.xlu0 %8064 }
0x5654   :  { %v8067_v1 = vmul.f32 %v17054_v59, %v8065_v33 }
0x5656   :  { %8069 = vrot.lane.b32.xlu0 %v8067_v1, %s17386_s29 }
0x568e   :  { %v18966_v49 = vpop.xlane.xlu1 %5012 }
0x568f   :  { %v5014_v28 = vsub.f32 16.0, %v18966_v49 }
0x5691   :  { %vm5015_vm12 = vcmp.eq.f32.partialorder %v18794_v29, %v5014_v28 }
0x5692   :  { %v13314_v37 = vsel %vm5015_vm12, 1.0, %v17384_v10 }
0x56c4   :  { %v7902_v32 = vpop.permute.xlu0 %7901 }
0x56c5   :  { %v18955_v5 = vadd.f32 %v7902_v32, %v7894_v19 }
0x56c7   :  { %17055 = vtanh.f32 %v18955_v5 }
0x56c8   :  { %v8070_v38 = vpop.permute.xlu0 %8069 }
0x56c9   :  { %v18959_v25 = vadd.f32 %v8070_v38, %v8062_v14 }
0x56cb   :  { %17057 = vtanh.f32 %v18959_v25 }
0x56d1   :  { %v17056_v26 = vpop.eup %17055 }
0x56d2   :  { %7907 = vrot.lane.b32.xlu0 %v17056_v26, %s17385_s0 }
0x56d5   :  { %v17058_v34 = vpop.eup %17057 }
0x56d6   :  { %8075 = vrot.lane.b32.xlu0 %v17058_v34, %s17385_s0 }
0x5744   :  { %v7908_v51 = vpop.permute.xlu0 %7907 }
0x5745   :  { %v7910_v17 = vmul.f32 %v17052_v16, %v7908_v51 }
0x5747   :  { %8080 = vrot.lane.b32.xlu0 %v7910_v17, %s17386_s29 }
0x5748   :  { %v8076_v20 = vpop.permute.xlu0 %8075 }
0x5749   :  { %v8078_v50 = vmul.f32 %v17054_v59, %v8076_v20 }
0x574b   :  { %8155 = vrot.lane.b32.xlu0 %v8078_v50, %s17386_s29 }
0x57b9   :  { %v8081_v46 = vpop.permute.xlu0 %8080 }
0x57ba   :  { %15178 = vmatmul.mubr.msk.f32.vlgmr.msra.gmra.mrb[82].mxu1 %vm367_vm4, %v8081_v46 }
0x57bb   :  { %16317 = vmatpush3.bf16.msra.mxu1 %v18852_v30  ;;  %15199 = vmatprep.mubr.msk.f32.mxu1 %vm17383_vm0, %v17384_v10 }
0x57bc   :  { %16318 = vmatprep.subr.bf16.mxu1 %v17382_v3 }
0x57bd   :  { %v8156_v56 = vpop.permute.xlu0 %8155 }
0x57be   :  { %15189 = vmatmul.mubr.msk.f32.vlgmr.msra.gmra.mrb[94].mxu0 %vm367_vm4, %v8156_v56 }
0x57bf   :  { %16320 = vmatpush3.bf16.msra.mxu1 %v18858_v0  ;;  %16323 = vmatpush3.bf16.msra.mxu0 %v18832_v42 }
0x57c0   :  { %15206 = vmatprep.mubr.msk.f32.mxu0 %vm17383_vm0, %v17384_v10  ;;  %16324 = vmatprep.subr.bf16.mxu0 %v17382_v3 }
0x57c1   :  { %16330 = vmatprep.subr.bf16.mxu1 %v17382_v3 }
0x57c2   :  { %15200 = vmatmul.mubr.msk.f32.vlgmr.msra.gmra.mrb[84].mxu1 %vm367_vm4, %v8156_v56  ;;  %15207 = vmatmul.mubr.msk.f32.vlgmr.msra.gmra.mrb[96].mxu0 %vm168_vm1, %v13314_v37 }
0x57c3   :  { %16326 = vmatpush3.bf16.msra.mxu0 %v18887_v13  ;;  %16332 = vmatpush3.bf16.msra.mxu1 %v18892_v47 }
0x57c4   :  { %16327 = vmatprep.subr.bf16.mxu0 %v17382_v3  ;;  %15217 = vmatprep.mubr.msk.f32.mxu0 %vm17383_vm0, %v17384_v10 }
0x57c5   :  { %16333 = vmatprep.subr.bf16.mxu1 %v17382_v3  ;;  %15228 = vmatprep.mubr.msk.f32.mxu1 %vm17383_vm0, %v17384_v10 }
0x57c7   :  { %16329 = vmatpush3.bf16.msra.mxu0 %v18897_v8  ;;  %16335 = vmatpush3.bf16.msra.mxu1 %v18901_v55 }
0x57c8   :  { %16336 = vmatprep.subr.bf16.mxu0 %v17382_v3  ;;  %16342 = vmatprep.subr.bf16.mxu1 %v17382_v3 }
0x588d   :  { %v8150_v40 = vpop.f32.mrb[82].mxu1 }
0x588e   :  { %v15179_v62 = vpop.f32.mrb[83].mxu1 }
0x588f   :  { %v17267_v62 = vld [vmem:[%s19965_s22] ss:$0 sm:$0xff] }
0x5891   :  { %v8225_v24 = vpop.f32.mrb[94].mxu0 }
0x5892   :  { %v8226_v11 = vadd.f32 %v8225_v24, %v8150_v40  ;;  %v15190_v31 = vpop.f32.mrb[95].mxu0  ;;  %v19007_v24 = vadd.f32 %v17267_v62, %v18548_v63 }
0x5894   :  { %v8229_v22 = vadd.f32 %v18943_v7, %v8226_v11  ;;  %v5439_v11 = vsel %vm168_vm1, %v19007_v24, -inf }
0x5895   :  { %v8320_v16 = vpop.f32.mrb[84].mxu1  ;;  %v8393_v61 = vpop.f32.mrb[96].mxu0 }
0x5896   :  { %17059 = vtanh.f32 %v8229_v22  ;;  %v15201_v58 = vpop.f32.mrb[85].mxu1  ;;  %v8394_v59 = vadd.f32 %v8393_v61, %v8320_v16  ;;  %v15208_v33 = vpop.f32.mrb[97].mxu0  ;;  %v13406_v14 = vmul.f32 -1.442695, %v8229_v22 }
0x5898   :  { %v8397_v1 = vadd.f32 %v18871_v15, %v8394_v59 }
0x589a   :  { %17061 = vtanh.f32 %v8397_v1  ;;  %v13409_v38 = vmul.f32 -1.442695, %v8397_v1 }
0x589b   :  { %17063 = vpow2.f32 %v13406_v14 }
0x589c   :  { %17065 = vpow2.f32 %v13409_v38 }
0x58a0   :  { %v17060_v19 = vpop.eup %17059 }
0x58a1   :  { %8239 = vrot.lane.b32.xlu0 %v17060_v19, %s17385_s0 }
0x58a4   :  { %v17062_v32 = vpop.eup %17061 }
0x58a5   :  { %8407 = vrot.lane.b32.xlu0 %v17062_v32, %s17385_s0  ;;  %v17064_v26 = vpop.eup %17063 }
0x58a6   :  { %v8233_v34 = vadd.f32 1.0, %v17064_v26  ;;  %v17066_v51 = vpop.eup %17065 }
0x58a7   :  { %v8401_v17 = vadd.f32 1.0, %v17066_v51 }
0x58a8   :  { %17067 = vrcp.f32 %v8233_v34 }
0x58a9   :  { %17069 = vrcp.f32 %v8401_v17 }
0x58b2   :  { %v17068_v20 = vpop.eup %17067 }
0x58b3   :  { %v17070_v56 = vpop.eup %17069  ;;  %v8237_v31 = vmul.f32 %v17068_v20, %v18955_v5 }
0x58b4   :  { %v8405_v61 = vmul.f32 %v17070_v56, %v18959_v25 }
0x5913   :  { %v8240_v50 = vpop.permute.xlu0 %8239 }
0x5914   :  { %v8242_v46 = vmul.f32 %v17068_v20, %v8240_v50 }
0x5916   :  { %8244 = vrot.lane.b32.xlu0 %v8242_v46, %s17386_s29 }
0x5917   :  { %v8408_v37 = vpop.permute.xlu0 %8407 }
0x5918   :  { %v8410_v40 = vmul.f32 %v17070_v56, %v8408_v37 }
0x591a   :  { %8412 = vrot.lane.b32.xlu0 %v8410_v40, %s17386_s29 }
0x5939   :  { %5440 = vmax.xlane.f32.xlu0 %v5439_v11 }
0x5988   :  { %v8245_v22 = vpop.permute.xlu0 %8244 }
0x5989   :  { %v19012_v16 = vadd.f32 %v8245_v22, %v8237_v31 }
0x598b   :  { %17071 = vtanh.f32 %v19012_v16 }
0x598c   :  { %v8413_v58 = vpop.permute.xlu0 %8412 }
0x598d   :  { %v19016_v59 = vadd.f32 %v8413_v58, %v8405_v61 }
0x598f   :  { %17073 = vtanh.f32 %v19016_v59 }
0x5995   :  { %v17072_v63 = vpop.eup %17071 }
0x5996   :  { %8250 = vrot.lane.b32.xlu1 %v17072_v63, %s17385_s0 }
0x5999   :  { %v17074_v33 = vpop.eup %17073 }
0x599a   :  { %8418 = vrot.lane.b32.xlu1 %v17074_v33, %s17385_s0 }
0x59c6   :  { %v5441_v1 = vpop.xlane.xlu0 %5440 }
0x59c7   :  { %vm5442_vm13 = vcmp.ge.f32.partialorder %v19007_v24, %v5441_v1 }
0x59c8   :  { %v5443_v5 = vsel %vm5442_vm13, %v18797_v41, 0.0 }
0x59c9   :  { %v5444_v19 = vsel %vm168_vm1, %v5443_v5, -inf }
0x59ca   :  { %5445 = vmax.xlane.f32.xlu1 %v5444_v19 }
0x5a08   :  { %v8251_v25 = vpop.permute.xlu1 %8250 }
0x5a09   :  { %v8253_v32 = vmul.f32 %v17068_v20, %v8251_v25 }
0x5a0b   :  { %8423 = vrot.lane.b32.xlu0 %v8253_v32, %s17386_s29 }
0x5a0c   :  { %v8419_v14 = vpop.permute.xlu1 %8418 }
0x5a0d   :  { %v8421_v38 = vmul.f32 %v17070_v56, %v8419_v14  ;;  %v13422_v14 = vld [vmem:[%s17448_s8 + $0x10] sm:$0xff] }
0x5a0f   :  { %8498 = vrot.lane.b32.xlu0 %v8421_v38, %s17386_s29 }
0x5a57   :  { %v19026_v26 = vpop.xlane.xlu1 %5445 }
0x5a58   :  { %v5447_v51 = vsub.f32 16.0, %v19026_v26 }
0x5a5a   :  { %vm5448_vm15 = vcmp.eq.f32.partialorder %v18794_v29, %v5447_v51 }
0x5a7d   :  { %v8424_v34 = vpop.permute.xlu0 %8423 }
0x5a7e   :  { %15218 = vmatmul.mubr.msk.f32.vlgmr.msra.gmra.mrb[98].mxu0 %vm367_vm4, %v8424_v34 }
0x5a7f   :  { %16338 = vmatpush3.bf16.msra.mxu0 %v18852_v30  ;;  %15239 = vmatprep.mubr.msk.f32.mxu0 %vm17383_vm0, %v17384_v10  ;;  %v13323_v30 = vsel %vm5448_vm15, 1.0, %v17384_v10 }
0x5a80   :  { %16339 = vmatprep.subr.bf16.mxu0 %v17382_v3 }
0x5a81   :  { %v8499_v17 = vpop.permute.xlu0 %8498 }
0x5a82   :  { %15229 = vmatmul.mubr.msk.f32.vlgmr.msra.gmra.mrb[86].mxu1 %vm367_vm4, %v8499_v17 }
0x5a83   :  { %16341 = vmatpush3.bf16.msra.mxu0 %v18858_v0  ;;  %16344 = vmatpush3.bf16.msra.mxu1 %v18832_v42 }
0x5a84   :  { %15246 = vmatprep.mubr.msk.f32.mxu1 %vm17383_vm0, %v17384_v10  ;;  %16351 = vmatprep.subr.bf16.mxu0 %v17382_v3 }
0x5a85   :  { %16345 = vmatprep.subr.bf16.mxu1 %v17382_v3 }
0x5a86   :  { %15240 = vmatmul.mubr.msk.f32.vlgmr.msra.gmra.mrb[100].mxu0 %vm367_vm4, %v8499_v17  ;;  %15247 = vmatmul.mubr.msk.f32.vlgmr.msra.gmra.mrb[88].mxu1 %vm168_vm1, %v13323_v30 }
0x5a87   :  { %16353 = vmatpush3.bf16.msra.mxu0 %v18892_v47  ;;  %15268 = vmatprep.mubr.msk.f32.mxu0 %vm17383_vm0, %v17384_v10 }
0x5a88   :  { %16354 = vmatprep.subr.bf16.mxu0 %v17382_v3  ;;  %16347 = vmatpush3.bf16.msra.mxu1 %v18887_v13 }
0x5a89   :  { %16348 = vmatprep.subr.bf16.mxu1 %v17382_v3  ;;  %15257 = vmatprep.mubr.msk.f32.mxu1 %vm17383_vm0, %v17384_v10 }
0x5a8b   :  { %16356 = vmatpush3.bf16.msra.mxu0 %v18901_v55 }
0x5a8c   :  { %16350 = vmatpush3.bf16.msra.mxu1 %v18897_v8 }
0x5a8d   :  { %16357 = vmatprep.subr.bf16.mxu1 %v17382_v3 }
0x5b51   :  { %v8493_v42 = vpop.f32.mrb[98].mxu0 }
0x5b52   :  { %v15219_v0 = vpop.f32.mrb[99].mxu0 }
0x5b55   :  { %v8568_v47 = vpop.f32.mrb[86].mxu1 }
0x5b56   :  { %v8569_v20 = vadd.f32 %v8568_v47, %v8493_v42  ;;  %v15230_v50 = vpop.f32.mrb[87].mxu1 }
0x5b58   :  { %v8572_v1 = vadd.f32 %v18943_v7, %v8569_v20  ;;  %v13420_v20 = vld [vmem:[%s17443_s3 + $0x10] sm:$0xff] }
0x5b59   :  { %v8663_v46 = vpop.f32.mrb[100].mxu0  ;;  %v8736_v56 = vpop.f32.mrb[88].mxu1 }
0x5b5a   :  { %v15241_v37 = vpop.f32.mrb[101].mxu0  ;;  %v8737_v13 = vadd.f32 %v8736_v56, %v8663_v46  ;;  %v15248_v40 = vpop.f32.mrb[89].mxu1  ;;  %v13412_v25 = vmul.f32 -1.442695, %v8572_v1  ;;  %v13421_v46 = vld [vmem:[%s17443_s3 + $0x18] sm:$0xff]  ;;  %s19968_s3 = sld [smem:[#allocation23_spill]] }
0x5b5c   :  { %v8740_v62 = vadd.f32 %v18871_v15, %v8737_v13 }
0x5b5e   :  { %17075 = vtanh.f32 %v8740_v62  ;;  %v13415_v55 = vmul.f32 -1.442695, %v8740_v62 }
0x5b60   :  { %17077 = vpow2.f32 %v13415_v55  ;;  %v13427_v55 = vld [vmem:[%s17453_s14 + $0x28] sm:$0xff] }
0x5b68   :  { %v17076_v11 = vpop.eup %17075 }
0x5b69   :  { %8750 = vrot.lane.b32.xlu0 %v17076_v11, %s17385_s0  ;;  %v13426_v11 = vld [vmem:[%s17453_s14 + $0x20] sm:$0xff] }
0x5b6a   :  { %v17078_v8 = vpop.eup %17077 }
0x5b6b   :  { %v8744_v31 = vadd.f32 1.0, %v17078_v8  ;;  %v19094_v8 = vpack.c.bf16 %v13427_v55, %v13426_v11 }
0x5b6d   :  { %17079 = vrcp.f32 %v8744_v31  ;;  %v13428_v31 = vld [vmem:[%s17453_s14 + $0x30] sm:$0xff] }
0x5b77   :  { %v17080_v22 = vpop.eup %17079 }
0x5b78   :  { %v8748_v63 = vmul.f32 %v17080_v22, %v19016_v59  ;;  %v13423_v59 = vld [vmem:[%s17448_s8 + $0x18] sm:$0xff]  ;;  %s19969_s8 = sld [smem:[#allocation12_spill]] }
0x5b79   :  { %v16381_v38 = vpack.c.bf16 %v13423_v59, %v13422_v14 }
0x5b7b   :  { %16382 = vmatprep.subr.bf16.mxu0 %v16381_v38 }
0x5bdb   :  { %v8751_v61 = vpop.permute.xlu0 %8750 }
0x5bdc   :  { %v8753_v58 = vmul.f32 %v17080_v22, %v8751_v61 }
0x5bde   :  { %8755 = vrot.lane.b32.xlu0 %v8753_v58, %s17386_s29 }
0x5c50   :  { %v8756_v33 = vpop.permute.xlu0 %8755 }
0x5c51   :  { %v19062_v15 = vadd.f32 %v8756_v33, %v8748_v63 }
0x5c53   :  { %17081 = vtanh.f32 %v19062_v15 }
0x5c54   :  { %17083 = vtanh.f32 %v8572_v1 }
0x5c55   :  { %17085 = vpow2.f32 %v13412_v25 }
0x5c5d   :  { %v17082_v5 = vpop.eup %17081 }
0x5c5e   :  { %8761 = vrot.lane.b32.xlu0 %v17082_v5, %s17385_s0  ;;  %v17084_v19 = vpop.eup %17083 }
0x5c5f   :  { %v17086_v32 = vpop.eup %17085 }
0x5c60   :  { %v8576_v34 = vadd.f32 1.0, %v17086_v32 }
0x5c62   :  { %8582 = vrot.lane.b32.xlu0 %v17084_v19, %s17385_s0  ;;  %17087 = vrcp.f32 %v8576_v34 }
0x5c6c   :  { %v17088_v42 = vpop.eup %17087 }
0x5c6d   :  { %v8580_v56 = vmul.f32 %v17088_v42, %v19012_v16  ;;  %v6039_v16 = vsel %vm6038_vm2, %v18797_v41, 0.0 }
0x5c6e   :  { %v6040_v62 = vsel %vm168_vm1, %v6039_v16, -inf }
0x5cd0   :  { %v8762_v17 = vpop.permute.xlu0 %8761 }
0x5cd1   :  { %v8764_v30 = vmul.f32 %v17080_v22, %v8762_v17  ;;  %v13429_v22 = vld [vmem:[%s17453_s14 + $0x38] sm:$0xff]  ;;  %s19970_s14 = sld [smem:[#allocation25_spill]] }
0x5cd2   :  { %v19100_v61 = vpack.c.bf16 %v13429_v22, %v13428_v31 }
0x5cd3   :  { %8841 = vrot.lane.b32.xlu1 %v8764_v30, %s17386_s29 }
0x5cd4   :  { %v8583_v0 = vpop.permute.xlu0 %8582 }
0x5cd5   :  { %v8585_v47 = vmul.f32 %v17088_v42, %v8583_v0 }
0x5cd7   :  { %8587 = vrot.lane.b32.xlu0 %v8585_v47, %s17386_s29 }
0x5d45   :  { %v19073_v50 = vpop.permute.xlu1 %8841 }
0x5d46   :  { %15269 = vmatmul.mubr.msk.f32.vlgmr.msra.gmra.mrb[102].mxu0 %vm367_vm4, %v19073_v50  ;;  %v8949_v45 = vsel %vm367_vm4, %v19073_v50, %v19062_v15 }
0x5d47   :  { %16384 = vmatpush3.bf16.msra.mxu0 %v16381_v38  ;;  %15310 = vmatprep.mubr.msk.f32.mxu0 %vm168_vm1, %v13420_v20 }
0x5d48   :  { %16385 = vmatprep.subr.bf16.mxu0 %v17382_v3 }
0x5d49   :  { %v8588_v37 = vpop.permute.xlu0 %8587 }
0x5d4a   :  { %v19081_v13 = vadd.f32 %v8588_v37, %v8580_v56  ;;  %15311 = vmatmul.mubr.msk.f32.vlgmr.msra.gmra.mrb[104].mxu0 %vm168_vm1, %v13421_v46  ;;  %v19126_v46 = vld [vmem:[%s17458_s19 + $0x1] ss:$0 sm:$0xff]  ;;  %s19971_s19 = sld [smem:[#allocation13_spill]] }
0x5d4b   :  { %15321 = vmatprep.mubr.msk.f32.mxu0 %vm17383_vm0, %v17384_v10  ;;  %16387 = vmatpush3.bf16.msra.mxu0 %v19094_v8 }
0x5d4c   :  { %17089 = vtanh.f32 %v19081_v13  ;;  %16388 = vmatprep.subr.bf16.mxu0 %v17382_v3 }
0x5d4f   :  { %16390 = vmatpush3.bf16.msra.mxu0 %v19100_v61 }
0x5d50   :  { %16391 = vmatprep.subr.bf16.mxu0 %v17382_v3 }
0x5d52   :  { %15322 = vmatmul.mubr.f32.vlgmr.msra.gmra.mrb[106].mxu0 %v17384_v10 }
0x5d53   :  { %15328 = vmatprep.mubr.msk.f32.mxu0 %vm17383_vm0, %v17384_v10 }
0x5d56   :  { %v17090_v40 = vpop.eup %17089 }
0x5d57   :  { %8593 = vrot.lane.b32.xlu0 %v17090_v40, %s17385_s0 }
0x5d76   :  { %6041 = vmax.xlane.f32.xlu0 %v6040_v62 }
0x5dc9   :  { %v8594_v4 = vpop.permute.xlu0 %8593 }
0x5dca   :  { %v8596_v58 = vmul.f32 %v17088_v42, %v8594_v4 }
0x5dcc   :  { %8766 = vrot.lane.b32.xlu1 %v8596_v58, %s17386_s29 }
0x5e03   :  { %v19108_v63 = vpop.xlane.xlu0 %6041 }
0x5e04   :  { %v6043_v5 = vsub.f32 16.0, %v19108_v63 }
0x5e06   :  { %vm6044_vm3 = vcmp.eq.f32.partialorder %v18794_v29, %v6043_v5 }
0x5e07   :  { %v13363_v14 = vsel %vm6044_vm3, 1.0, %v17384_v10 }
0x5e19   :  { %v8911_v33 = vpop.f32.mrb[102].mxu0 }
0x5e1a   :  { %v15270_v1 = vpop.f32.mrb[103].mxu0 }
0x5e1d   :  { %v15312_v19 = vpop.f32.mrb[104].mxu0 }
0x5e1e   :  { %v9127_v25 = vpop.f32.mrb[105].mxu0 }
0x5e1f   :  { %v19111_v32 = vpack.c.bf16 %v15312_v19, %v9127_v25 }
0x5e21   :  { %16393 = vmatpush3.bf16.msra.mxu0 %v19111_v32 }
0x5e22   :  { %16394 = vmatprep.subr.bf16.mxu0 %v17382_v3 }
0x5e24   :  { %15329 = vmatmul.mubr.msk.f32.vlgmr.msra.gmra.mrb[108].mxu0 %vm168_vm1, %v13363_v14 }
0x5e25   :  { %15339 = vmatprep.mubr.msk.f32.mxu0 %vm17383_vm0, %v17384_v10  ;;  %v9216_v38 = vpop.f32.mrb[106].mxu0 }
0x5e26   :  { %v15323_v34 = vpop.f32.mrb[107].mxu0 }
0x5e3e   :  { %v8767_v59 = vpop.permute.xlu1 %8766 }
0x5e3f   :  { %15258 = vmatmul.mubr.msk.f32.vlgmr.msra.gmra.mrb[90].mxu1 %vm367_vm4, %v8767_v59 }
0x5e40   :  { %15303 = vmatprep.mubr.msk.f32.mxu1 %vm17383_vm0, %v17384_v10 }
0x5ef7   :  { %v9289_v17 = vpop.f32.mrb[108].mxu0 }
0x5ef8   :  { %v9290_v30 = vadd.f32 %v9289_v17, %v9216_v38  ;;  %v15330_v42 = vpop.f32.mrb[109].mxu0 }
0x5efa   :  { %v9299_v37 = vadd.f32 %v19126_v46, %v9290_v30 }
0x5efc   :  { %v13442_v11 = vmul.f32 -1.442695, %v9299_v37 }
0x5f12   :  { %v8836_v0 = vpop.f32.mrb[90].mxu1 }
0x5f13   :  { %v8912_v47 = vadd.f32 %v8911_v33, %v8836_v0  ;;  %v15259_v20 = vpop.f32.mrb[91].mxu1  ;;  %v6476_v0 = vsel %vm6475_vm5, %v18797_v41, 0.0 }
0x5f14   :  { %v8952_v20 = vld [vmem:[%s17478_s12] sm:$0xff] }
0x5f15   :  { %v8915_v56 = vadd.f32 %v18943_v7, %v8912_v47  ;;  %v6477_v47 = vsel %vm168_vm1, %v6476_v0, -inf  ;;  %v8963_v0 = vld [vmem:[%s17478_s12 + $0x58] sm:$0xff] }
0x5f17   :  { %17091 = vtanh.f32 %v8915_v56  ;;  %v13418_v62 = vmul.f32 -1.442695, %v8915_v56  ;;  %v8953_v56 = vld [vmem:[%s17478_s12 + $0x8] sm:$0xff] }
0x5f18   :  { %17093 = vtanh.f32 %v9299_v37  ;;  %v8954_v37 = vld [vmem:[%s17478_s12 + $0x10] sm:$0xff] }
0x5f19   :  { %17095 = vpow2.f32 %v13418_v62 }
0x5f1a   :  { %17097 = vpow2.f32 %v13442_v11  ;;  %v13435_v11 = vld [vmem:[%s17468_s30 + $0x20] sm:$0xff] }
0x5f21   :  { %v17092_v40 = vpop.eup %17091 }
0x5f22   :  { %8925 = vrot.lane.b32.xlu1 %v17092_v40, %s17385_s0  ;;  %v17094_v16 = vpop.eup %17093  ;;  %v16358_v40 = vpack.c.bf16 %v8953_v56, %v8952_v20  ;;  %v8964_v20 = vld [vmem:[%s17478_s12 + $0x60] sm:$0xff]  ;;  %v8965_v56 = vld [vmem:[%s17478_s12 + $0x68] sm:$0xff] }
0x5f23   :  { %v17096_v55 = vpop.eup %17095 }
0x5f24   :  { %v8919_v31 = vadd.f32 1.0, %v17096_v55  ;;  %v17098_v22 = vpop.eup %17097  ;;  %16359 = vmatpush3.bf16.msra.mxu1 %v16358_v40  ;;  %v13436_v55 = vld [vmem:[%s17468_s30 + $0x28] sm:$0xff]  ;;  %v13431_v40 = vld [vmem:[%s17463_s24 + $0x20] sm:$0xff] }
0x5f25   :  { %v9303_v4 = vadd.f32 1.0, %v17098_v22  ;;  %16360 = vmatprep.subr.bf16.mxu1 %v17382_v3  ;;  %v19164_v22 = vpack.c.bf16 %v13436_v55, %v13435_v11  ;;  %v8966_v11 = vld [vmem:[%s17478_s12 + $0x70] sm:$0xff]  ;;  %v8967_v55 = vld [vmem:[%s17478_s12 + $0x78] sm:$0xff] }
0x5f26   :  { %9309 = vrot.lane.b32.xlu1 %v17094_v16, %s17385_s0  ;;  %17099 = vrcp.f32 %v8919_v31  ;;  %v8955_v16 = vld [vmem:[%s17478_s12 + $0x18] sm:$0xff]  ;;  %v8957_v31 = vld [vmem:[%s17478_s12 + $0x28] sm:$0xff] }
0x5f27   :  { %17101 = vrcp.f32 %v9303_v4  ;;  %v16361_v62 = vpack.c.bf16 %v8955_v16, %v8954_v37  ;;  %v13437_v4 = vld [vmem:[%s17468_s30 + $0x30] sm:$0xff]  ;;  %16396 = vmatpush3.bf16.msra.mxu0 %v19164_v22  ;;  %v16376_v37 = vpack.c.bf16 %v8965_v56, %v8964_v20  ;;  %v13432_v16 = vld [vmem:[%s17463_s24 + $0x28] sm:$0xff] }
0x5f28   :  { %16397 = vmatprep.subr.bf16.mxu0 %v17382_v3 }
0x5f29   :  { %16362 = vmatpush3.bf16.msra.mxu1 %v16361_v62  ;;  %v19193_v62 = vpack.c.bf16 %v13432_v16, %v13431_v40 }
0x5f2a   :  { %16363 = vmatprep.subr.bf16.mxu1 %v17382_v3 }
0x5f30   :  { %v19132_v7 = vpop.eup %17099 }
0x5f31   :  { %v19136_v1 = vpop.eup %17101  ;;  %v8923_v14 = vmul.f32 %v19132_v7, %v19081_v13 }
0x5f32   :  { %v9307_v34 = vmul.f32 0.0, %v19136_v1 }
0x5f94   :  { %v8926_v58 = vpop.permute.xlu1 %8925 }
0x5f95   :  { %v8928_v33 = vmul.f32 %v19132_v7, %v8926_v58  ;;  %v13438_v58 = vld [vmem:[%s17468_s30 + $0x38] sm:$0xff]  ;;  %s19973_s30 = sld [smem:[#allocation26_spill]] }
0x5f97   :  { %8930 = vrot.lane.b32.xlu1 %v8928_v33, %s17386_s29  ;;  %v19169_v33 = vpack.c.bf16 %v13438_v58, %v13437_v4  ;;  %v13434_v4 = vld [vmem:[%s17463_s24 + $0x38] sm:$0xff] }
0x5f98   :  { %v9310_v19 = vpop.permute.xlu1 %9309 }
0x5f99   :  { %v9312_v25 = vmul.f32 %v19136_v1, %v9310_v19  ;;  %v16364_v19 = vpack.c.bf16 %v8957_v31, %v8956_v39  ;;  %16399 = vmatpush3.bf16.msra.mxu0 %v19169_v33  ;;  %v16379_v39 = vpack.c.bf16 %v8967_v55, %v8966_v11  ;;  %v13433_v31 = vld [vmem:[%s17463_s24 + $0x30] sm:$0xff]  ;;  %s19972_s24 = sld [smem:[#allocation27_spill]] }
0x5f9a   :  { %16400 = vmatprep.subr.bf16.mxu0 %v17382_v3  ;;  %v19201_v58 = vpack.c.bf16 %v13434_v4, %v13433_v31 }
0x5f9b   :  { %9314 = vrot.lane.b32.xlu1 %v9312_v25, %s17386_s29  ;;  %v8958_v25 = vld [vmem:[%s17478_s12 + $0x30] sm:$0xff]  ;;  %16365 = vmatpush3.bf16.msra.mxu1 %v16364_v19 }
0x5f9c   :  { %16366 = vmatprep.subr.bf16.mxu1 %v17382_v3  ;;  %15340 = vmatmul.mubr.f32.vlgmr.msra.gmra.mrb[110].mxu0 %v17384_v10 }
0x5f9d   :  { %15350 = vmatprep.mubr.msk.f32.mxu0 %vm17383_vm0, %v17384_v10  ;;  %16402 = vmatpush3.bf16.msra.mxu0 %v19193_v62 }
0x5f9e   :  { %16403 = vmatprep.subr.bf16.mxu0 %v17382_v3 }
0x5fa1   :  { %16405 = vmatpush3.bf16.msra.mxu0 %v19201_v58 }
0x5fa2   :  { %16412 = vmatprep.subr.bf16.mxu0 %v17382_v3 }
0x6009   :  { %v8931_v59 = vpop.permute.xlu1 %8930 }
0x600a   :  { %v19142_v38 = vadd.f32 %v8931_v59, %v8923_v14  ;;  %v8959_v14 = vld [vmem:[%s17478_s12 + $0x38] sm:$0xff] }
0x600b   :  { %v16367_v59 = vpack.c.bf16 %v8959_v14, %v8958_v25 }
0x600c   :  { %17103 = vtanh.f32 %v19142_v38 }
0x600d   :  { %v9315_v17 = vpop.permute.xlu1 %9314  ;;  %16368 = vmatpush3.bf16.msra.mxu1 %v16367_v59 }
0x600e   :  { %v19146_v30 = vadd.f32 %v9315_v17, %v9307_v34  ;;  %v8960_v34 = vld [vmem:[%s17478_s12 + $0x40] sm:$0xff]  ;;  %v8961_v17 = vld [vmem:[%s17478_s12 + $0x48] sm:$0xff]  ;;  %16369 = vmatprep.subr.bf16.mxu1 %v17382_v3 }
0x6010   :  { %17105 = vtanh.f32 %v19146_v30 }
0x6016   :  { %v17104_v42 = vpop.eup %17103 }
0x6017   :  { %8936 = vrot.lane.b32.xlu1 %v17104_v42, %s17385_s0  ;;  %v16370_v42 = vpack.c.bf16 %v8961_v17, %v8960_v34  ;;  %v17268_v34 = vld [vmem:[%s17418_s13] sm:$0xff]  ;;  %s19966_s13 = sld [smem:[#allocation11_spill]] }
0x6018   :  { %v19213_v17 = vcvt.s32.f32 %v17268_v34 }
0x6019   :  { %16371 = vmatpush3.bf16.msra.mxu1 %v16370_v42 }
0x601a   :  { %v17106_v13 = vpop.eup %17105  ;;  %16372 = vmatprep.subr.bf16.mxu1 %v17382_v3  ;;  %vm4577_vm6 = vcmp.ne.f32.partialorder %v4573_v48, %v19213_v17  ;;  %vm5018_vm12 = vcmp.ne.f32.partialorder %v5014_v28, %v19213_v17  ;;  %vm5451_vm3 = vcmp.ne.f32.partialorder %v5447_v51, %v19213_v17 }
0x601b   :  { %9320 = vrot.lane.b32.xlu1 %v17106_v13, %s17385_s0  ;;  %v8962_v13 = vld [vmem:[%s17478_s12 + $0x50] sm:$0xff]  ;;  %v19293_v52 = vsel %vm5018_vm12, 1.0, %v17384_v10 }
0x603f   :  { %6478 = vmax.xlane.f32.xlu1 %v6477_v47  ;;  %v16373_v47 = vpack.c.bf16 %v8963_v0, %v8962_v13  ;;  %v17269_v13 = vld [vmem:[%s17423_s17] sm:$0xff]  ;;  %s19967_s17 = sld [smem:[#allocation24_spill]] }
0x6041   :  { %16374 = vmatpush3.bf16.msra.mxu1 %v16373_v47 }
0x6042   :  { %16375 = vmatprep.subr.bf16.mxu1 %v17382_v3 }
0x6045   :  { %16377 = vmatpush3.bf16.msra.mxu1 %v16376_v37 }
0x6046   :  { %16378 = vmatprep.subr.bf16.mxu1 %v17382_v3 }
0x6049   :  { %16380 = vmatpush3.bf16.msra.mxu1 %v16379_v39  ;;  %v19265_v39 = vld [vmem:[%s17473_s6 + $0x1] ss:$0 sm:$0xff]  ;;  %s19974_s6 = sld [smem:[#allocation28_spill]] }
0x604a   :  { %16406 = vmatprep.subr.bf16.mxu1 %v17382_v3 }
0x606f   :  { %v9390_v50 = vpop.f32.mrb[110].mxu0 }
0x6070   :  { %v15341_v16 = vpop.f32.mrb[111].mxu0 }
0x6089   :  { %v8937_v19 = vpop.permute.xlu1 %8936 }
0x608a   :  { %v8939_v25 = vmul.f32 %v19132_v7, %v8937_v19  ;;  %v19219_v7 = vcvt.s32.f32 %v17269_v13 }
0x608c   :  { %8942 = vrot.lane.b32.xlu0 %v8939_v25, %s17390_s28  ;;  %vm6047_vm12 = vcmp.ne.f32.partialorder %v6043_v5, %v19219_v7 }
0x608d   :  { %v9321_v14 = vpop.permute.xlu1 %9320 }
0x608e   :  { %v9323_v59 = vmul.f32 %v19136_v1, %v9321_v14 }
0x6090   :  { %8946 = vrot.lane.b32.xlu0 %v19142_v38, %s17385_s0  ;;  %v19223_v38 = vsel %vm4577_vm6, 1.0, %v17384_v10 }
0x6094   :  { %9395 = vrot.lane.b32.xlu0 %v9323_v59, %s17386_s29 }
0x60cc   :  { %v6479_v42 = vpop.xlane.xlu1 %6478 }
0x60cd   :  { %v6480_v0 = vsub.f32 16.0, %v6479_v42 }
0x60cf   :  { %vm6484_vm7 = vcmp.ne.f32.partialorder %v6480_v0, %v19219_v7  ;;  %vm6481_vm8 = vcmp.eq.f32.partialorder %v18794_v29, %v6480_v0 }
0x60d0   :  { %v19226_v1 = vsel %vm6484_vm7, 1.0, %v17384_v10  ;;  %v13372_v15 = vsel %vm6481_vm8, 1.0, %v17384_v10  ;;  %vm10642_vm7 = vcmask 195584   ;;  %vm10725_vm8 = vcmask 257024  }
0x60d1   :  { %v16734_v47 = vpack.i.bf16 %v19226_v1, %v19223_v38 }
0x60fe   :  { %v8943_v20 = vpop.permute.xlu0 %8942 }
0x60ff   :  { %v8950_v48 = vsel %vm1760_vm9, %v8949_v45, %v8943_v20 }
0x6102   :  { %v8947_v56 = vpop.permute.xlu0 %8946 }
0x6103   :  { %v8951_v37 = vsel %vm1762_vm10, %v8950_v48, %v8947_v56 }
0x6104   :  { %15304 = vmatmul.mubr.f32.vlgmr.msra.gmra.mrb[92].mxu1 %v8951_v37 }
0x6105   :  { %16408 = vmatpush3.bf16.msra.mxu1 %v19094_v8  ;;  %15361 = vmatprep.mubr.msk.f32.mxu1 %vm17383_vm0, %v17384_v10 }
0x6106   :  { %v9396_v40 = vpop.permute.xlu0 %9395  ;;  %16409 = vmatprep.subr.bf16.mxu1 %v17382_v3 }
0x6107   :  { %15351 = vmatmul.mubr.msk.f32.vlgmr.msra.gmra.mrb[112].mxu0 %vm367_vm4, %v9396_v40 }
0x6108   :  { %16414 = vmatpush3.bf16.msra.mxu0 %v19111_v32  ;;  %15368 = vmatprep.mubr.msk.f32.mxu0 %vm17383_vm0, %v17384_v10 }
0x6109   :  { %16411 = vmatpush3.bf16.msra.mxu1 %v19100_v61  ;;  %16415 = vmatprep.subr.bf16.mxu0 %v17382_v3 }
0x610a   :  { %16421 = vmatprep.subr.bf16.mxu1 %v17382_v3 }
0x610b   :  { %15369 = vmatmul.mubr.msk.f32.vlgmr.msra.gmra.mrb[114].mxu0 %vm168_vm1, %v13372_v15 }
0x610c   :  { %15362 = vmatmul.mubr.msk.f32.vlgmr.msra.gmra.mrb[94].mxu1 %vm367_vm4, %v9396_v40  ;;  %16417 = vmatpush3.bf16.msra.mxu0 %v19164_v22 }
0x610d   :  { %16418 = vmatprep.subr.bf16.mxu0 %v17382_v3  ;;  %16423 = vmatpush3.bf16.msra.mxu1 %v19193_v62 }
0x610e   :  { %15379 = vmatprep.mubr.msk.f32.mxu0 %vm17383_vm0, %v17384_v10  ;;  %16424 = vmatprep.subr.bf16.mxu1 %v17382_v3 }
0x610f   :  { %15390 = vmatprep.mubr.msk.f32.mxu1 %vm17383_vm0, %v17384_v10 }
0x6110   :  { %16420 = vmatpush3.bf16.msra.mxu0 %v19169_v33 }
0x6111   :  { %16427 = vmatprep.subr.bf16.mxu0 %v17382_v3  ;;  %16426 = vmatpush3.bf16.msra.mxu1 %v19201_v58 }
0x6112   :  { %16433 = vmatprep.subr.bf16.mxu1 %v17382_v3 }
0x61d7   :  { %v19262_v11 = vpop.f32.mrb[92].mxu1 }
0x61d8   :  { %v15305_v55 = vpop.f32.mrb[93].mxu1 }
0x61da   :  { %v9465_v31 = vpop.f32.mrb[112].mxu0 }
0x61db   :  { %v9466_v4 = vadd.f32 %v9465_v31, %v9390_v50  ;;  %v15352_v19 = vpop.f32.mrb[113].mxu0 }
0x61dd   :  { %v9475_v25 = vadd.f32 %v19265_v39, %v9466_v4 }
0x61de   :  { %v9639_v14 = vpop.f32.mrb[114].mxu0 }
0x61df   :  { %17107 = vtanh.f32 %v9475_v25  ;;  %v9566_v59 = vpop.f32.mrb[94].mxu1  ;;  %v15370_v34 = vpop.f32.mrb[115].mxu0  ;;  %v13445_v48 = vmul.f32 -1.442695, %v9475_v25 }
0x61e0   :  { %v9640_v42 = vadd.f32 %v9639_v14, %v9566_v59  ;;  %v15363_v13 = vpop.f32.mrb[95].mxu1 }
0x61e2   :  { %v9643_v0 = vadd.f32 %v19126_v46, %v9640_v42 }
0x61e4   :  { %17109 = vtanh.f32 %v9643_v0  ;;  %v13448_v56 = vmul.f32 -1.442695, %v9643_v0 }
0x61e5   :  { %17111 = vpow2.f32 %v13445_v48  ;;  %v6917_v48 = vsel %vm6916_vm11, %v18797_v41, 0.0  ;;  %vm4140_vm11 = vcmp.ne.f32.partialorder %v4136_v35, %v19213_v17 }
0x61e6   :  { %17113 = vpow2.f32 %v13448_v56  ;;  %v6918_v56 = vsel %vm168_vm1, %v6917_v48, -inf  ;;  %v13297_v12 = vsel %vm4140_vm11, 1.0, %v17384_v10 }
0x61e9   :  { %v17108_v20 = vpop.eup %17107 }
0x61ea   :  { %9485 = vrot.lane.b32.xlu0 %v17108_v20, %s17385_s0 }
0x61ee   :  { %v17110_v45 = vpop.eup %17109 }
0x61ef   :  { %9653 = vrot.lane.b32.xlu0 %v17110_v45, %s17385_s0  ;;  %v17112_v37 = vpop.eup %17111 }
0x61f0   :  { %v9479_v40 = vadd.f32 1.0, %v17112_v37  ;;  %v17114_v15 = vpop.eup %17113 }
0x61f1   :  { %v9647_v50 = vadd.f32 1.0, %v17114_v15 }
0x61f2   :  { %17115 = vrcp.f32 %v9479_v40 }
0x61f3   :  { %17117 = vrcp.f32 %v9647_v50 }
0x61fc   :  { %v17116_v16 = vpop.eup %17115 }
0x61fd   :  { %v17118_v4 = vpop.eup %17117  ;;  %v9483_v25 = vmul.f32 0.0, %v17116_v16 }
0x61fe   :  { %v9651_v42 = vmul.f32 %v17118_v4, %v19146_v30 }
0x625c   :  { %v9486_v55 = vpop.permute.xlu0 %9485 }
0x625d   :  { %v9488_v31 = vmul.f32 %v17116_v16, %v9486_v55 }
0x625f   :  { %9490 = vrot.lane.b32.xlu1 %v9488_v31, %s17386_s29 }
0x6261   :  { %v9654_v19 = vpop.permute.xlu0 %9653 }
0x6262   :  { %v9656_v14 = vmul.f32 %v17118_v4, %v9654_v19 }
0x6264   :  { %9658 = vrot.lane.b32.xlu0 %v9656_v14, %s17386_s29 }
0x62d1   :  { %v9491_v59 = vpop.permute.xlu1 %9490 }
0x62d2   :  { %v19273_v34 = vadd.f32 %v9491_v59, %v9483_v25 }
0x62d4   :  { %17119 = vtanh.f32 %v19273_v34 }
0x62d6   :  { %v9659_v13 = vpop.permute.xlu0 %9658 }
0x62d7   :  { %v19277_v0 = vadd.f32 %v9659_v13, %v9651_v42 }
0x62d9   :  { %17121 = vtanh.f32 %v19277_v0 }
0x62de   :  { %v17120_v20 = vpop.eup %17119 }
0x62df   :  { %9496 = vrot.lane.b32.xlu0 %v17120_v20, %s17385_s0 }
0x62e3   :  { %v17122_v45 = vpop.eup %17121 }
0x62e4   :  { %9664 = vrot.lane.b32.xlu0 %v17122_v45, %s17385_s0 }
0x6303   :  { %6919 = vmax.xlane.f32.xlu0 %v6918_v56 }
0x6351   :  { %v9497_v30 = vpop.permute.xlu0 %9496 }
0x6352   :  { %v9499_v37 = vmul.f32 %v17116_v16, %v9497_v30 }
0x6354   :  { %9669 = vrot.lane.b32.xlu1 %v9499_v37, %s17386_s29 }
0x6356   :  { %v9665_v40 = vpop.permute.xlu0 %9664 }
0x6357   :  { %v9667_v15 = vmul.f32 %v17118_v4, %v9665_v40 }
0x6359   :  { %9744 = vrot.lane.b32.xlu1 %v9667_v15, %s17386_s29 }
0x6390   :  { %v6920_v50 = vpop.xlane.xlu0 %6919 }
0x6391   :  { %v6921_v55 = vsub.f32 16.0, %v6920_v50 }
0x6393   :  { %vm6925_vm13 = vcmp.ne.f32.partialorder %v6921_v55, %v19219_v7  ;;  %vm6922_vm15 = vcmp.eq.f32.partialorder %v18794_v29, %v6921_v55 }
0x6394   :  { %v19296_v31 = vsel %vm6925_vm13, 1.0, %v17384_v10  ;;  %v13381_v28 = vsel %vm6922_vm15, 1.0, %v17384_v10  ;;  %vm13052_vm13 = vcmask 388096   ;;  %vm5473_vm15 = vcmask 392192  }
0x6395   :  { %v16739_v16 = vpack.i.bf16 %v19296_v31, %v19293_v52  ;;  %v4143_v31 = vmax.f32 %v13297_v12, 0.0 }
0x63c6   :  { %v9670_v4 = vpop.permute.xlu1 %9669 }
0x63c7   :  { %15380 = vmatmul.mubr.msk.f32.vlgmr.msra.gmra.mrb[116].mxu0 %vm367_vm4, %v9670_v4 }
0x63c8   :  { %16429 = vmatpush3.bf16.msra.mxu0 %v19094_v8  ;;  %15401 = vmatprep.mubr.msk.f32.mxu0 %vm17383_vm0, %v17384_v10 }
0x63c9   :  { %16430 = vmatprep.subr.bf16.mxu0 %v17382_v3 }
0x63cb   :  { %v9745_v49 = vpop.permute.xlu1 %9744 }
0x63cc   :  { %15391 = vmatmul.mubr.msk.f32.vlgmr.msra.gmra.mrb[96].mxu1 %vm367_vm4, %v9745_v49  ;;  %16432 = vmatpush3.bf16.msra.mxu0 %v19100_v61 }
0x63cd   :  { %16435 = vmatpush3.bf16.msra.mxu1 %v19111_v32  ;;  %15408 = vmatprep.mubr.msk.f32.mxu1 %vm17383_vm0, %v17384_v10 }
0x63ce   :  { %16436 = vmatprep.subr.bf16.mxu1 %v17382_v3  ;;  %16442 = vmatprep.subr.bf16.mxu0 %v17382_v3 }
0x63cf   :  { %15402 = vmatmul.mubr.msk.f32.vlgmr.msra.gmra.mrb[118].mxu0 %vm367_vm4, %v9745_v49 }
0x63d0   :  { %15409 = vmatmul.mubr.msk.f32.vlgmr.msra.gmra.mrb[98].mxu1 %vm168_vm1, %v13381_v28  ;;  %16444 = vmatpush3.bf16.msra.mxu0 %v19193_v62 }
0x63d1   :  { %16438 = vmatpush3.bf16.msra.mxu1 %v19164_v22  ;;  %15419 = vmatprep.mubr.msk.f32.mxu1 %vm17383_vm0, %v17384_v10 }
0x63d2   :  { %16439 = vmatprep.subr.bf16.mxu1 %v17382_v3  ;;  %16445 = vmatprep.subr.bf16.mxu0 %v17382_v3 }
0x63d3   :  { %15430 = vmatprep.mubr.msk.f32.mxu0 %vm17383_vm0, %v17384_v10 }
0x63d4   :  { %16447 = vmatpush3.bf16.msra.mxu0 %v19201_v58 }
0x63d5   :  { %16441 = vmatpush3.bf16.msra.mxu1 %v19169_v33  ;;  %16454 = vmatprep.subr.bf16.mxu0 %v17382_v3 }
0x63d6   :  { %16448 = vmatprep.subr.bf16.mxu1 %v17382_v3 }
0x649a   :  { %v9739_v19 = vpop.f32.mrb[116].mxu0 }
0x649b   :  { %v15381_v14 = vpop.f32.mrb[117].mxu0 }
0x649f   :  { %v9814_v25 = vpop.f32.mrb[96].mxu1 }
0x64a0   :  { %v9815_v59 = vadd.f32 %v9814_v25, %v9739_v19  ;;  %v15392_v42 = vpop.f32.mrb[97].mxu1 }
0x64a2   :  { %v9818_v13 = vadd.f32 %v19265_v39, %v9815_v59  ;;  %v9909_v20 = vpop.f32.mrb[118].mxu0 }
0x64a3   :  { %v15403_v45 = vpop.f32.mrb[119].mxu0  ;;  %v9982_v48 = vpop.f32.mrb[98].mxu1 }
0x64a4   :  { %17123 = vtanh.f32 %v9818_v13  ;;  %v9983_v56 = vadd.f32 %v9982_v48, %v9909_v20  ;;  %v15410_v30 = vpop.f32.mrb[99].mxu1  ;;  %v13451_v50 = vmul.f32 -1.442695, %v9818_v13  ;;  %v17270_v13 = vld [vmem:[%s19965_s22 + $0x1] ss:$0 sm:$0xff] }
0x64a5   :  { %v19336_v48 = vadd.f32 %v17270_v13, %v18868_v6 }
0x64a6   :  { %v9986_v37 = vadd.f32 %v19126_v46, %v9983_v56 }
0x64a7   :  { %v7346_v56 = vsel %vm168_vm1, %v19336_v48, -inf }
0x64a8   :  { %17125 = vtanh.f32 %v9986_v37  ;;  %v13454_v55 = vmul.f32 -1.442695, %v9986_v37 }
0x64a9   :  { %17127 = vpow2.f32 %v13451_v50 }
0x64aa   :  { %17129 = vpow2.f32 %v13454_v55 }
0x64ae   :  { %v17124_v40 = vpop.eup %17123 }
0x64af   :  { %9828 = vrot.lane.b32.xlu1 %v17124_v40, %s17385_s0 }
0x64b2   :  { %v17126_v15 = vpop.eup %17125 }
0x64b3   :  { %9996 = vrot.lane.b32.xlu1 %v17126_v15, %s17385_s0  ;;  %v17128_v4 = vpop.eup %17127 }
0x64b4   :  { %v9822_v49 = vadd.f32 1.0, %v17128_v4  ;;  %v17130_v28 = vpop.eup %17129 }
0x64b5   :  { %v9990_v19 = vadd.f32 1.0, %v17130_v28 }
0x64b6   :  { %17131 = vrcp.f32 %v9822_v49 }
0x64b7   :  { %17133 = vrcp.f32 %v9990_v19 }
0x64c0   :  { %v17132_v14 = vpop.eup %17131 }
0x64c1   :  { %v17134_v42 = vpop.eup %17133  ;;  %v9826_v30 = vmul.f32 %v17132_v14, %v19273_v34 }
0x64c2   :  { %v9994_v15 = vmul.f32 %v17134_v42, %v19277_v0 }
0x6521   :  { %v9829_v25 = vpop.permute.xlu1 %9828 }
0x6522   :  { %v9831_v59 = vmul.f32 %v17132_v14, %v9829_v25 }
0x6524   :  { %9833 = vrot.lane.b32.xlu1 %v9831_v59, %s17386_s29 }
0x6525   :  { %v9997_v20 = vpop.permute.xlu1 %9996 }
0x6526   :  { %v9999_v45 = vmul.f32 %v17134_v42, %v9997_v20 }
0x6528   :  { %10001 = vrot.lane.b32.xlu1 %v9999_v45, %s17386_s29 }
0x654c   :  { %7347 = vmax.xlane.f32.xlu1 %v7346_v56 }
0x6596   :  { %v9834_v37 = vpop.permute.xlu1 %9833 }
0x6597   :  { %v19341_v40 = vadd.f32 %v9834_v37, %v9826_v30 }
0x6599   :  { %17135 = vtanh.f32 %v19341_v40 }
0x659a   :  { %v10002_v50 = vpop.permute.xlu1 %10001 }
0x659b   :  { %v19345_v55 = vadd.f32 %v10002_v50, %v9994_v15 }
0x659d   :  { %17137 = vtanh.f32 %v19345_v55 }
0x65a3   :  { %v17136_v6 = vpop.eup %17135 }
0x65a4   :  { %9839 = vrot.lane.b32.xlu0 %v17136_v6, %s17385_s0 }
0x65a7   :  { %v17138_v4 = vpop.eup %17137 }
0x65a8   :  { %10007 = vrot.lane.b32.xlu0 %v17138_v4, %s17385_s0 }
0x65d9   :  { %v7348_v49 = vpop.xlane.xlu1 %7347 }
0x65da   :  { %vm7349_vm2 = vcmp.ge.f32.partialorder %v19336_v48, %v7348_v49 }
0x65db   :  { %v7350_v34 = vsel %vm7349_vm2, %v18797_v41, 0.0  ;;  %v19360_v41 = vsel %vm5451_vm3, 1.0, %v17384_v10 }
0x65dc   :  { %v7351_v28 = vsel %vm168_vm1, %v7350_v34, -inf }
0x65dd   :  { %7352 = vmax.xlane.f32.xlu0 %v7351_v28 }
0x6616   :  { %v9840_v0 = vpop.permute.xlu0 %9839 }
0x6617   :  { %v9842_v19 = vmul.f32 %v17132_v14, %v9840_v0 }
0x6619   :  { %10012 = vrot.lane.b32.xlu1 %v9842_v19, %s17386_s29 }
0x661a   :  { %v10008_v25 = vpop.permute.xlu0 %10007 }
0x661b   :  { %v10010_v59 = vmul.f32 %v17134_v42, %v10008_v25 }
0x661d   :  { %10087 = vrot.lane.b32.xlu1 %v10010_v59, %s17386_s29 }
0x666a   :  { %v7353_v20 = vpop.xlane.xlu0 %7352 }
0x666b   :  { %v7354_v45 = vsub.f32 16.0, %v7353_v20 }
0x666d   :  { %vm7358_vm5 = vcmp.ne.f32.partialorder %v7354_v45, %v19219_v7  ;;  %vm7355_vm6 = vcmp.eq.f32.partialorder %v18794_v29, %v7354_v45  ;;  %v19393_v29 = vpack.c.bf16 %v18153_v53, %v17656_v23 }
0x666e   :  { %v19363_v13 = vsel %vm7358_vm5, 1.0, %v17384_v10  ;;  %v13390_v51 = vsel %vm7355_vm6, 1.0, %v17384_v10 }
0x666f   :  { %v16744_v14 = vpack.i.bf16 %v19363_v13, %v19360_v41 }
0x668b   :  { %v10013_v42 = vpop.permute.xlu1 %10012 }
0x668c   :  { %15420 = vmatmul.mubr.msk.f32.vlgmr.msra.gmra.mrb[100].mxu1 %vm367_vm4, %v10013_v42 }
0x668d   :  { %16450 = vmatpush3.bf16.msra.mxu1 %v19094_v8  ;;  %15441 = vmatprep.mubr.msk.f32.mxu1 %vm17383_vm0, %v17384_v10 }
0x668e   :  { %16451 = vmatprep.subr.bf16.mxu1 %v17382_v3 }
0x668f   :  { %v10088_v26 = vpop.permute.xlu1 %10087 }
0x6690   :  { %15431 = vmatmul.mubr.msk.f32.vlgmr.msra.gmra.mrb[120].mxu0 %vm367_vm4, %v10088_v26 }
0x6691   :  { %16453 = vmatpush3.bf16.msra.mxu1 %v19100_v61  ;;  %16456 = vmatpush3.bf16.msra.mxu0 %v19111_v32 }
0x6692   :  { %15448 = vmatprep.mubr.msk.f32.mxu0 %vm17383_vm0, %v17384_v10  ;;  %16463 = vmatprep.subr.bf16.mxu1 %v17382_v3 }
0x6693   :  { %16457 = vmatprep.subr.bf16.mxu0 %v17382_v3 }
0x6694   :  { %15442 = vmatmul.mubr.msk.f32.vlgmr.msra.gmra.mrb[102].mxu1 %vm367_vm4, %v10088_v26  ;;  %15449 = vmatmul.mubr.msk.f32.vlgmr.msra.gmra.mrb[122].mxu0 %vm168_vm1, %v13390_v51  ;;  %v10640_v51 = vld [vmem:[%s19966_s13] sm:$0xff] }
0x6695   :  { %16465 = vmatpush3.bf16.msra.mxu1 %v19193_v62  ;;  %15470 = vmatprep.mubr.msk.f32.mxu1 %vm17383_vm0, %v17384_v10 }
0x6696   :  { %16466 = vmatprep.subr.bf16.mxu1 %v17382_v3  ;;  %16459 = vmatpush3.bf16.msra.mxu0 %v19164_v22 }
0x6697   :  { %16460 = vmatprep.subr.bf16.mxu0 %v17382_v3  ;;  %15459 = vmatprep.mubr.msk.f32.mxu0 %vm17383_vm0, %v17384_v10 }
0x6699   :  { %16468 = vmatpush3.bf16.msra.mxu1 %v19201_v58 }
0x669a   :  { %16494 = vmatprep.subr.bf16.mxu1 %v19393_v29  ;;  %16462 = vmatpush3.bf16.msra.mxu0 %v19169_v33 }
0x669b   :  { %16469 = vmatprep.subr.bf16.mxu0 %v17382_v3 }
0x675f   :  { %v10082_v8 = vpop.f32.mrb[100].mxu1 }
0x6760   :  { %v15421_v61 = vpop.f32.mrb[101].mxu1 }
0x6763   :  { %v10157_v32 = vpop.f32.mrb[120].mxu0 }
0x6764   :  { %v10158_v22 = vadd.f32 %v10157_v32, %v10082_v8  ;;  %v15432_v62 = vpop.f32.mrb[121].mxu0 }
0x6766   :  { %v10161_v25 = vadd.f32 %v19265_v39, %v10158_v22  ;;  %v10641_v22 = vld [vmem:[%s19966_s13 + $0x8] sm:$0xf] }
0x6767   :  { %v10252_v56 = vpop.f32.mrb[102].mxu1  ;;  %v10325_v30 = vpop.f32.mrb[122].mxu0 }
0x6768   :  { %v15443_v37 = vpop.f32.mrb[103].mxu1  ;;  %v10326_v15 = vadd.f32 %v10325_v30, %v10252_v56  ;;  %v15450_v50 = vpop.f32.mrb[123].mxu0  ;;  %v10731_v56 = vld [vmem:[%s19967_s17] sm:$0xff]  ;;  %v10732_v30 = vld [vmem:[%s19967_s17 + $0x8] sm:$0xff] }
0x6769   :  { %v10733_v37 = vld [vmem:[%s19967_s17 + $0x10] sm:$0xff]  ;;  %v10734_v50 = vld [vmem:[%s19967_s17 + $0x18] sm:$0xff] }
0x676a   :  { %v10329_v23 = vadd.f32 %v19126_v46, %v10326_v15  ;;  %v19426_v15 = vpack.c.bf16 %v10732_v30, %v10731_v56 }
0x676c   :  { %17139 = vtanh.f32 %v10329_v23  ;;  %v13460_v58 = vmul.f32 -1.442695, %v10329_v23  ;;  %v19430_v23 = vpack.c.bf16 %v10734_v50, %v10733_v37 }
0x676e   :  { %17141 = vpow2.f32 %v13460_v58 }
0x6776   :  { %v17140_v53 = vpop.eup %17139 }
0x6777   :  { %10339 = vrot.lane.b32.xlu1 %v17140_v53, %s17385_s0 }
0x6778   :  { %v17142_v33 = vpop.eup %17141 }
0x6779   :  { %v10333_v6 = vadd.f32 1.0, %v17142_v33 }
0x677b   :  { %17143 = vrcp.f32 %v10333_v6  ;;  %v10727_v6 = vld [vmem:[%s19968_s3] sm:$0xff] }
0x6785   :  { %v17144_v4 = vpop.eup %17143 }
0x6786   :  { %v10337_v28 = vmul.f32 %v17144_v4, %v19345_v55  ;;  %v13457_v55 = vmul.f32 -1.442695, %v10161_v25 }
0x67e9   :  { %v10340_v49 = vpop.permute.xlu1 %10339 }
0x67ea   :  { %v10342_v34 = vmul.f32 %v17144_v4, %v10340_v49  ;;  %v10745_v49 = vld [vmem:[%s19969_s8] sm:$0x3] }
0x67ec   :  { %10344 = vrot.lane.b32.xlu1 %v10342_v34, %s17386_s29 }
0x685e   :  { %v10345_v0 = vpop.permute.xlu1 %10344 }
0x685f   :  { %v19403_v19 = vadd.f32 %v10345_v0, %v10337_v28  ;;  %v10729_v28 = vld [vmem:[%s19968_s3 + $0x10] sm:$0xff]  ;;  %v10730_v0 = vld [vmem:[%s19968_s3 + $0x18] sm:$0xff] }
0x6861   :  { %17145 = vtanh.f32 %v19403_v19 }
0x6862   :  { %17147 = vtanh.f32 %v10161_v25 }
0x6863   :  { %17149 = vpow2.f32 %v13457_v55 }
0x686b   :  { %v17146_v46 = vpop.eup %17145 }
0x686c   :  { %10350 = vrot.lane.b32.xlu0 %v17146_v46, %s17385_s0  ;;  %v17148_v45 = vpop.eup %17147  ;;  %v19448_v46 = vpack.c.bf16 %v10730_v0, %v10729_v28 }
0x686d   :  { %v17150_v42 = vpop.eup %17149 }
0x686e   :  { %v10165_v26 = vadd.f32 1.0, %v17150_v42 }
0x6870   :  { %17151 = vrcp.f32 %v10165_v26 }
0x687a   :  { %v17152_v61 = vpop.eup %17151 }
0x687b   :  { %v10169_v53 = vmul.f32 %v17152_v61, %v19341_v40 }
0x68de   :  { %v10351_v59 = vpop.permute.xlu0 %10350 }
0x68df   :  { %v10353_v20 = vmul.f32 %v17144_v4, %v10351_v59  ;;  %v10728_v4 = vld [vmem:[%s19968_s3 + $0x8] sm:$0xff] }
0x68e0   :  { %v19442_v34 = vpack.c.bf16 %v10728_v4, %v10727_v6 }
0x68e1   :  { %10430 = vrot.lane.b32.xlu1 %v10353_v20, %s17386_s29 }
0x68e5   :  { %10171 = vrot.lane.b32.xlu1 %v17148_v45, %s17385_s0 }
0x6953   :  { %v19411_v8 = vpop.permute.xlu1 %10430 }
0x6954   :  { %15471 = vmatmul.mubr.msk.f32.vlgmr.msra.gmra.mrb[104].mxu1 %vm367_vm4, %v19411_v8 }
0x6955   :  { %16496 = vmatpush3.bf16.msra.mxu1 %v19393_v29  ;;  %15514 = vmatprep.mubr.msk.f32.mxu1 %vm10642_vm7, %v10640_v51 }
0x6956   :  { %15512 = vmatprep.subr.mxu1 %v18505_v36 }
0x6957   :  { %v10172_v32 = vpop.permute.xlu1 %10171 }
0x6958   :  { %v10174_v62 = vmul.f32 %v17152_v61, %v10172_v32 }
0x6959   :  { %15513 = vmatpush3.msra.mxu1 %v18505_v36 }
0x695a   :  { %10176 = vrot.lane.b32.xlu1 %v10174_v62, %s17386_s29  ;;  %15515 = vmatmul.mubr.msk.f32.vlgmr.msra.gmra.mrb[106].mxu1 %vm10642_vm7, %v10641_v22  ;;  %v19465_v62 = vld [vmem:[%s19970_s14] ss:$0 sm:$0xff] }
0x695b   :  { %16497 = vmatprep.subr.bf16.mxu1 %v17382_v3  ;;  %15525 = vmatprep.mubr.msk.f32.mxu1 %vm17383_vm0, %v17384_v10 }
0x695c   :  { %16499 = vmatpush3.bf16.msra.mxu1 %v19426_v15 }
0x695d   :  { %16500 = vmatprep.subr.bf16.mxu1 %v17382_v3 }
0x6960   :  { %16502 = vmatpush3.bf16.msra.mxu1 %v19430_v23 }
0x6961   :  { %16503 = vmatprep.subr.bf16.mxu1 %v17382_v3 }
0x6963   :  { %15526 = vmatmul.mubr.msk.f32.vlgmr.msra.gmra.mrb[108].mxu1 %vm367_vm4, %v10745_v49 }
0x6964   :  { %16505 = vmatpush3.bf16.msra.mxu1 %v19442_v34  ;;  %15536 = vmatprep.mubr.msk.f32.mxu1 %vm17383_vm0, %v17384_v10 }
0x6965   :  { %16506 = vmatprep.subr.bf16.mxu1 %v17382_v3 }
0x6968   :  { %16508 = vmatpush3.bf16.msra.mxu1 %v19448_v46 }
0x6969   :  { %16509 = vmatprep.subr.bf16.mxu1 %v17382_v3 }
0x69cc   :  { %v10177_v58 = vpop.permute.xlu1 %10176 }
0x69cd   :  { %v19436_v33 = vadd.f32 %v10177_v58, %v10169_v53 }
0x69cf   :  { %17153 = vtanh.f32 %v19436_v33 }
0x69d9   :  { %v17154_v40 = vpop.eup %17153 }
0x69da   :  { %10182 = vrot.lane.b32.xlu1 %v17154_v40, %s17385_s0 }
0x6a27   :  { %v10500_v25 = vpop.f32.mrb[104].mxu1 }
0x6a28   :  { %v15472_v59 = vpop.f32.mrb[105].mxu1 }
0x6a2d   :  { %v15516_v20 = vpop.f32.mrb[106].mxu1 }
0x6a2e   :  { %10726 = vst.msk [vmem:[#allocation2 + $0x8] sm:$0xf] %vm10725_vm8, %v15516_v20  ;;  %v10715_v45 = vpop.f32.mrb[107].mxu1 }
0x6a2f   :  { %10724 = vst.msk [vmem:[#allocation2] sm:$0xff] %vm367_vm4, %v10715_v45 }
0x6a36   :  { %v10751_v55 = vld [vmem:[#allocation2] sm:$0x3]  ;;  %v10821_v51 = vpop.f32.mrb[108].mxu1 }
0x6a37   :  { %15537 = vmatmul.mubr.msk.f32.vlgmr.msra.gmra.mrb[110].mxu1 %vm367_vm4, %v10751_v55  ;;  %v15527_v32 = vpop.f32.mrb[109].mxu1 }
0x6a38   :  { %15547 = vmatprep.mubr.msk.f32.mxu1 %vm17383_vm0, %v17384_v10 }
0x6a4c   :  { %v10183_v42 = vpop.permute.xlu1 %10182 }
0x6a4d   :  { %v10185_v26 = vmul.f32 %v17152_v61, %v10183_v42  ;;  %v10746_v61 = vld [vmem:[%s19971_s19] sm:$0x3] }
0x6a4f   :  { %10355 = vrot.lane.b32.xlu1 %v10185_v26, %s17386_s29 }
0x6ac1   :  { %v10356_v22 = vpop.permute.xlu1 %10355 }
0x6ac2   :  { %15460 = vmatmul.mubr.msk.f32.vlgmr.msra.gmra.mrb[124].mxu0 %vm367_vm4, %v10356_v22 }
0x6ac3   :  { %15505 = vmatprep.mubr.msk.f32.mxu0 %vm17383_vm0, %v17384_v10 }
0x6b0a   :  { %v10894_v56 = vpop.f32.mrb[110].mxu1 }
0x6b0b   :  { %v10895_v30 = vadd.f32 %v10894_v56, %v10821_v51  ;;  %v15538_v37 = vpop.f32.mrb[111].mxu1 }
0x6b0d   :  { %v10904_v50 = vadd.f32 %v19465_v62, %v10895_v30 }
0x6b0f   :  { %17155 = vtanh.f32 %v10904_v50  ;;  %v13489_v40 = vmul.f32 -1.442695, %v10904_v50 }
0x6b19   :  { %v17156_v53 = vpop.eup %17155 }
0x6b1a   :  { %10918 = vrot.lane.b32.xlu1 %v17156_v53, %s17385_s0 }
0x6b1e   :  { %10913 = vrot.lane.b32.xlu1 %v10746_v61, %s17386_s29 }
0x6b8c   :  { %v10919_v51 = vpop.permute.xlu1 %10918 }
0x6b90   :  { %v10914_v56 = vpop.permute.xlu1 %10913 }
0x6b95   :  { %v10425_v58 = vpop.f32.mrb[124].mxu0 }
0x6b96   :  { %v10501_v6 = vadd.f32 %v10500_v25, %v10425_v58  ;;  %v15461_v4 = vpop.f32.mrb[125].mxu0  ;;  %v13464_v58 = vld [vmem:[%s17478_s12 + $0x80] sm:$0xff] }
0x6b98   :  { %v10504_v49 = vadd.f32 %v19265_v39, %v10501_v6  ;;  %v13465_v6 = vld [vmem:[%s17478_s12 + $0x88] sm:$0xff] }
0x6b99   :  { %v16470_v4 = vpack.c.bf16 %v13465_v6, %v13464_v58  ;;  %v13484_v58 = vld [vmem:[%s19969_s8 + $0x2] sm:$0x3] }
0x6b9a   :  { %17157 = vtanh.f32 %v10504_v49  ;;  %v13463_v0 = vmul.f32 -1.442695, %v10504_v49  ;;  %v13467_v49 = vld [vmem:[%s17478_s12 + $0x98] sm:$0xff] }
0x6b9b   :  { %16471 = vmatpush3.bf16.msra.mxu0 %v16470_v4  ;;  %v13472_v4 = vld [vmem:[%s17478_s12 + $0xc0] sm:$0xff] }
0x6b9c   :  { %17159 = vpow2.f32 %v13463_v0  ;;  %v10740_v0 = vld [vmem:[%s19972_s24] sm:$0xff]  ;;  %16472 = vmatprep.subr.bf16.mxu0 %v17382_v3 }
0x6b9d   :  { %17161 = vpow2.f32 %v13489_v40  ;;  %v10741_v40 = vld [vmem:[%s19972_s24 + $0x8] sm:$0xff] }
0x6ba4   :  { %v17158_v28 = vpop.eup %17157 }
0x6ba5   :  { %10514 = vrot.lane.b32.xlu0 %v17158_v28, %s17385_s0 }
0x6ba6   :  { %v17160_v59 = vpop.eup %17159 }
0x6ba7   :  { %v17162_v20 = vpop.eup %17161  ;;  %v10508_v45 = vadd.f32 1.0, %v17160_v59  ;;  %v13468_v59 = vld [vmem:[%s17478_s12 + $0xa0] sm:$0xff] }
0x6ba8   :  { %v10908_v55 = vadd.f32 1.0, %v17162_v20  ;;  %v13469_v20 = vld [vmem:[%s17478_s12 + $0xa8] sm:$0xff] }
0x6ba9   :  { %17163 = vrcp.f32 %v10508_v45  ;;  %v19496_v45 = vpack.c.bf16 %v10741_v40, %v10740_v0  ;;  %v13474_v0 = vld [vmem:[%s17478_s12 + $0xd0] sm:$0xff]  ;;  %v13475_v40 = vld [vmem:[%s17478_s12 + $0xd8] sm:$0xff] }
0x6baa   :  { %17165 = vrcp.f32 %v10908_v55  ;;  %v10742_v55 = vld [vmem:[%s19972_s24 + $0x10] sm:$0xff] }
0x6bab   :  { %16511 = vmatpush3.bf16.msra.mxu1 %v19496_v45 }
0x6bac   :  { %16512 = vmatprep.subr.bf16.mxu1 %v17382_v3 }
0x6bb3   :  { %v19473_v42 = vpop.eup %17163 }
0x6bb4   :  { %v19476_v26 = vpop.eup %17165  ;;  %v10512_v22 = vmul.f32 %v19473_v42, %v19436_v33  ;;  %v13466_v33 = vld [vmem:[%s17478_s12 + $0x90] sm:$0xff] }
0x6bb5   :  { %v10921_v32 = vmul.f32 %v19476_v26, %v10919_v51  ;;  %v10916_v50 = vmul.f32 %v19476_v26, %v10914_v56  ;;  %v16473_v28 = vpack.c.bf16 %v13467_v49, %v13466_v33  ;;  %v10737_v56 = vld [vmem:[%s19973_s30 + $0x8] sm:$0xff] }
0x6bb6   :  { %v13473_v49 = vld [vmem:[%s17478_s12 + $0xc8] sm:$0xff] }
0x6bb7   :  { %16474 = vmatpush3.bf16.msra.mxu0 %v16473_v28  ;;  %v16482_v28 = vpack.c.bf16 %v13473_v49, %v13472_v4 }
0x6bb8   :  { %16475 = vmatprep.subr.bf16.mxu0 %v17382_v3 }
0x6c17   :  { %v10515_v25 = vpop.permute.xlu0 %10514 }
0x6c18   :  { %v10517_v39 = vmul.f32 %v19473_v42, %v10515_v25 }
0x6c1a   :  { %10519 = vrot.lane.b32.xlu0 %v10517_v39, %s17386_s29  ;;  %v10743_v39 = vld [vmem:[%s19972_s24 + $0x18] sm:$0xff] }
0x6c1b   :  { %v19502_v51 = vpack.c.bf16 %v10743_v39, %v10742_v55  ;;  %v13479_v39 = vld [vmem:[%s17478_s12 + $0xf8] sm:$0xff] }
0x6c1d   :  { %16514 = vmatpush3.bf16.msra.mxu1 %v19502_v51 }
0x6c1e   :  { %10923 = vrot.lane.b32.xlu0 %v10921_v32, %s17386_s29  ;;  %v16476_v32 = vpack.c.bf16 %v13469_v20, %v13468_v59  ;;  %16515 = vmatprep.subr.bf16.mxu1 %v17382_v3  ;;  %v16485_v59 = vpack.c.bf16 %v13475_v40, %v13474_v0  ;;  %v13477_v20 = vld [vmem:[%s17478_s12 + $0xe8] sm:$0xff] }
0x6c20   :  { %16477 = vmatpush3.bf16.msra.mxu0 %v16476_v32  ;;  %15548 = vmatmul.mubr.msk.f32.vlgmr.msra.gmra.mrb[112].mxu1 %vm367_vm4, %v13484_v58 }
0x6c21   :  { %16478 = vmatprep.subr.bf16.mxu0 %v17382_v3  ;;  %15558 = vmatprep.mubr.msk.f32.mxu1 %vm17383_vm0, %v17384_v10 }
0x6c8c   :  { %v10520_v30 = vpop.permute.xlu0 %10519 }
0x6c8d   :  { %v10522_v37 = vadd.f32 %v10520_v30, %v10512_v22  ;;  %v10736_v22 = vld [vmem:[%s19973_s30] sm:$0xff]  ;;  %v13470_v30 = vld [vmem:[%s17478_s12 + $0xb0] sm:$0xff] }
0x6c8e   :  { %v19513_v6 = vpack.c.bf16 %v10737_v56, %v10736_v22  ;;  %v10738_v22 = vld [vmem:[%s19973_s30 + $0x10] sm:$0xff]  ;;  %v10739_v56 = vld [vmem:[%s19973_s30 + $0x18] sm:$0xff] }
0x6c8f   :  { %17167 = vtanh.f32 %v10522_v37 }
0x6c90   :  { %v10924_v53 = vpop.permute.xlu0 %10923  ;;  %16517 = vmatpush3.bf16.msra.mxu1 %v19513_v6 }
0x6c91   :  { %v19484_v61 = vadd.f32 %v10924_v53, %v10916_v50  ;;  %v13471_v50 = vld [vmem:[%s17478_s12 + $0xb8] sm:$0xff]  ;;  %16518 = vmatprep.subr.bf16.mxu1 %v17382_v3 }
0x6c92   :  { %v16479_v33 = vpack.c.bf16 %v13471_v50, %v13470_v30  ;;  %v19538_v30 = vpack.c.bf16 %v10739_v56, %v10738_v22 }
0x6c93   :  { %17169 = vtanh.f32 %v19484_v61 }
0x6c94   :  { %16480 = vmatpush3.bf16.msra.mxu0 %v16479_v33  ;;  %16520 = vmatpush3.bf16.msra.mxu1 %v19538_v30 }
0x6c95   :  { %16481 = vmatprep.subr.bf16.mxu0 %v17382_v3  ;;  %16527 = vmatprep.subr.bf16.mxu1 %v17382_v3 }
0x6c98   :  { %16483 = vmatpush3.bf16.msra.mxu0 %v16482_v28  ;;  %v10538_v28 = vsel %vm367_vm4, %v19411_v8, %v19403_v19  ;;  %v11122_v19 = vld [vmem:[#allocation2 + $0x2] sm:$0x3] }
0x6c99   :  { %v17168_v25 = vpop.eup %17167  ;;  %16484 = vmatprep.subr.bf16.mxu0 %v17382_v3 }
0x6c9a   :  { %10525 = vrot.lane.b32.xlu1 %v17168_v25, %s17385_s0  ;;  %v13478_v25 = vld [vmem:[%s17478_s12 + $0xf0] sm:$0xff] }
0x6c9b   :  { %v16491_v32 = vpack.c.bf16 %v13479_v39, %v13478_v25 }
0x6c9c   :  { %16486 = vmatpush3.bf16.msra.mxu0 %v16485_v59 }
0x6c9d   :  { %v17170_v53 = vpop.eup %17169  ;;  %16487 = vmatprep.subr.bf16.mxu0 %v17382_v3 }
0x6c9e   :  { %10929 = vrot.lane.b32.xlu0 %v17170_v53, %s17385_s0 }
0x6ca2   :  { %10535 = vrot.lane.b32.xlu0 %v10522_v37, %s17385_s0  ;;  %v13476_v37 = vld [vmem:[%s17478_s12 + $0xe0] sm:$0xff]  ;;  %s19975_s12 = sld [smem:[#allocation29_spill]] }
0x6ca3   :  { %v16488_v55 = vpack.c.bf16 %v13477_v20, %v13476_v37  ;;  %v19581_v20 = vld [vmem:[%s19974_s6] ss:$0 sm:$0xff] }
0x6ca5   :  { %16489 = vmatpush3.bf16.msra.mxu0 %v16488_v55 }
0x6ca6   :  { %16490 = vmatprep.subr.bf16.mxu0 %v17382_v3 }
0x6ca9   :  { %16492 = vmatpush3.bf16.msra.mxu0 %v16491_v32 }
0x6caa   :  { %16521 = vmatprep.subr.bf16.mxu0 %v17382_v3 }
0x6cf3   :  { %v11002_v4 = vpop.f32.mrb[112].mxu1 }
0x6cf4   :  { %v15549_v49 = vpop.f32.mrb[113].mxu1 }
0x6d0c   :  { %v10526_v50 = vpop.permute.xlu1 %10525 }
0x6d0d   :  { %v10528_v53 = vmul.f32 %v19473_v42, %v10526_v50 }
0x6d0f   :  { %10531 = vrot.lane.b32.xlu1 %v10528_v53, %s17390_s28 }
0x6d10   :  { %v10930_v58 = vpop.permute.xlu0 %10929 }
0x6d11   :  { %v10932_v33 = vmul.f32 %v19476_v26, %v10930_v58 }
0x6d13   :  { %11007 = vrot.lane.b32.xlu1 %v10932_v33, %s17386_s29 }
0x6d14   :  { %v10536_v40 = vpop.permute.xlu0 %10535 }
0x6d81   :  { %v10532_v0 = vpop.permute.xlu1 %10531 }
0x6d82   :  { %v10539_v59 = vsel %vm1760_vm9, %v10538_v28, %v10532_v0  ;;  %v13485_v28 = vld [vmem:[%s19971_s19 + $0x2] sm:$0x3] }
0x6d83   :  { %v10540_v37 = vsel %vm1762_vm10, %v10539_v59, %v10536_v40  ;;  %vm11120_vm10 = vcmask 254976  }
0x6d84   :  { %15506 = vmatmul.mubr.f32.vlgmr.msra.gmra.mrb[126].mxu0 %v10540_v37 }
0x6d85   :  { %16523 = vmatpush3.bf16.msra.mxu0 %v19426_v15  ;;  %v11008_v42 = vpop.permute.xlu1 %11007  ;;  %15569 = vmatprep.mubr.msk.f32.mxu0 %vm17383_vm0, %v17384_v10 }
0x6d86   :  { %15559 = vmatmul.mubr.msk.f32.vlgmr.msra.gmra.mrb[114].mxu1 %vm367_vm4, %v11008_v42  ;;  %16524 = vmatprep.subr.bf16.mxu0 %v17382_v3 }
0x6d87   :  { %16529 = vmatpush3.bf16.msra.mxu1 %v19442_v34  ;;  %15580 = vmatprep.mubr.msk.f32.mxu1 %vm17383_vm0, %v17384_v10 }
0x6d88   :  { %16530 = vmatprep.subr.bf16.mxu1 %v17382_v3 }
0x6d89   :  { %16526 = vmatpush3.bf16.msra.mxu0 %v19430_v23 }
0x6d8a   :  { %16533 = vmatprep.subr.bf16.mxu0 %v17382_v3 }
0x6d8b   :  { %16532 = vmatpush3.bf16.msra.mxu1 %v19448_v46 }
0x6d8c   :  { %15570 = vmatmul.mubr.msk.f32.vlgmr.msra.gmra.mrb[128].mxu0 %vm367_vm4, %v11008_v42  ;;  %16539 = vmatprep.subr.bf16.mxu1 %v17382_v3 }
0x6d8d   :  { %16535 = vmatpush3.bf16.msra.mxu0 %v19496_v45  ;;  %15591 = vmatprep.mubr.msk.f32.mxu0 %vm17383_vm0, %v17384_v10 }
0x6d8e   :  { %15581 = vmatmul.mubr.msk.f32.vlgmr.msra.gmra.mrb[116].mxu1 %vm367_vm4, %v11122_v19  ;;  %16536 = vmatprep.subr.bf16.mxu0 %v17382_v3 }
0x6d8f   :  { %16541 = vmatpush3.bf16.msra.mxu1 %v19513_v6  ;;  %15602 = vmatprep.mubr.msk.f32.mxu1 %vm17383_vm0, %v17384_v10 }
0x6d90   :  { %16542 = vmatprep.subr.bf16.mxu1 %v17382_v3 }
0x6d91   :  { %16538 = vmatpush3.bf16.msra.mxu0 %v19502_v51 }
0x6d92   :  { %16545 = vmatprep.subr.bf16.mxu0 %v17382_v3 }
0x6d93   :  { %16544 = vmatpush3.bf16.msra.mxu1 %v19538_v30 }
0x6d94   :  { %16551 = vmatprep.subr.bf16.mxu1 %v17382_v3 }
0x6e57   :  { %v19578_v8 = vpop.f32.mrb[126].mxu0 }
0x6e58   :  { %v15507_v26 = vpop.f32.mrb[127].mxu0 }
0x6e59   :  { %v11077_v55 = vpop.f32.mrb[114].mxu1 }
0x6e5a   :  { %v11078_v25 = vadd.f32 %v11077_v55, %v11002_v4  ;;  %v15560_v39 = vpop.f32.mrb[115].mxu1 }
0x6e5c   :  { %v11087_v32 = vadd.f32 %v19581_v20, %v11078_v25 }
0x6e5e   :  { %17171 = vtanh.f32 %v11087_v32  ;;  %v13493_v4 = vmul.f32 -1.442695, %v11087_v32 }
0x6e5f   :  { %v11189_v22 = vpop.f32.mrb[128].mxu0 }
0x6e60   :  { %v15571_v56 = vpop.f32.mrb[129].mxu0 }
0x6e61   :  { %v11262_v50 = vpop.f32.mrb[116].mxu1 }
0x6e62   :  { %v11263_v53 = vadd.f32 %v11262_v50, %v11189_v22  ;;  %v15582_v58 = vpop.f32.mrb[117].mxu1 }
0x6e64   :  { %v11266_v33 = vadd.f32 %v19465_v62, %v11263_v53 }
0x6e66   :  { %17173 = vtanh.f32 %v11266_v33  ;;  %v13496_v40 = vmul.f32 -1.442695, %v11266_v33 }
0x6e67   :  { %17175 = vpow2.f32 %v13493_v4 }
0x6e68   :  { %v17172_v49 = vpop.eup %17171  ;;  %17177 = vpow2.f32 %v13496_v40 }
0x6e69   :  { %11101 = vrot.lane.b32.xlu0 %v17172_v49, %s17385_s0 }
0x6e6d   :  { %11096 = vrot.lane.b32.xlu0 %v13485_v28, %s17386_s29 }
0x6e70   :  { %v17174_v0 = vpop.eup %17173 }
0x6e71   :  { %11276 = vrot.lane.b32.xlu1 %v17174_v0, %s17385_s0  ;;  %v17176_v59 = vpop.eup %17175 }
0x6e72   :  { %v11091_v37 = vadd.f32 1.0, %v17176_v59  ;;  %v17178_v42 = vpop.eup %17177 }
0x6e73   :  { %v11270_v19 = vadd.f32 1.0, %v17178_v42 }
0x6e74   :  { %17179 = vrcp.f32 %v11091_v37 }
0x6e75   :  { %17181 = vrcp.f32 %v11270_v19 }
0x6e7e   :  { %v17180_v26 = vpop.eup %17179 }
0x6e7f   :  { %v17182_v39 = vpop.eup %17181 }
0x6e80   :  { %v11274_v33 = vmul.f32 %v17182_v39, %v19484_v61 }
0x6edb   :  { %v11102_v55 = vpop.permute.xlu0 %11101 }
0x6edc   :  { %v11104_v25 = vmul.f32 %v17180_v26, %v11102_v55 }
0x6ede   :  { %11106 = vrot.lane.b32.xlu1 %v11104_v25, %s17386_s29 }
0x6edf   :  { %v11097_v32 = vpop.permute.xlu0 %11096 }
0x6ee0   :  { %v11099_v50 = vmul.f32 %v17180_v26, %v11097_v32 }
0x6ee3   :  { %v11277_v22 = vpop.permute.xlu1 %11276 }
0x6ee4   :  { %v11279_v56 = vmul.f32 %v17182_v39, %v11277_v22 }
0x6ee6   :  { %11281 = vrot.lane.b32.xlu0 %v11279_v56, %s17386_s29 }
0x6f50   :  { %v11107_v53 = vpop.permute.xlu1 %11106 }
0x6f51   :  { %v19591_v58 = vadd.f32 %v11107_v53, %v11099_v50 }
0x6f53   :  { %17183 = vtanh.f32 %v19591_v58 }
0x6f58   :  { %v11282_v49 = vpop.permute.xlu0 %11281 }
0x6f59   :  { %v19595_v28 = vadd.f32 %v11282_v49, %v11274_v33 }
0x6f5b   :  { %17185 = vtanh.f32 %v19595_v28 }
0x6f5d   :  { %v17184_v0 = vpop.eup %17183 }
0x6f5e   :  { %11112 = vrot.lane.b32.xlu1 %v17184_v0, %s17385_s0 }
0x6f65   :  { %v17186_v4 = vpop.eup %17185 }
0x6f66   :  { %11287 = vrot.lane.b32.xlu0 %v17186_v4, %s17385_s0 }
0x6fd0   :  { %v11113_v40 = vpop.permute.xlu1 %11112 }
0x6fd1   :  { %v11115_v59 = vmul.f32 %v17180_v26, %v11113_v40  ;;  %v11468_v26 = vld [vmem:[#allocation2 + $0x4] sm:$0x3] }
0x6fd3   :  { %11117 = vrot.lane.b32.xlu1 %v11115_v59, %s17386_s29 }
0x6fd8   :  { %v11288_v37 = vpop.permute.xlu0 %11287 }
0x6fd9   :  { %v11290_v42 = vmul.f32 %v17182_v39, %v11288_v37 }
0x6fdb   :  { %11364 = vrot.lane.b32.xlu0 %v11290_v42, %s17386_s29 }
0x7045   :  { %v11118_v61 = vpop.permute.xlu1 %11117 }
0x7046   :  { %11121 = vst.msk [vmem:[#allocation3] sm:$0x3] %vm11120_vm10, %v11118_v61  ;;  %15592 = vmatmul.mubr.msk.f32.vlgmr.msra.gmra.mrb[130].mxu0 %vm367_vm4, %v11118_v61 }
0x7047   :  { %16547 = vmatpush3.bf16.msra.mxu0 %v19426_v15  ;;  %15613 = vmatprep.mubr.msk.f32.mxu0 %vm17383_vm0, %v17384_v10 }
0x7048   :  { %16548 = vmatprep.subr.bf16.mxu0 %v17382_v3 }
0x704b   :  { %16550 = vmatpush3.bf16.msra.mxu0 %v19430_v23 }
0x704c   :  { %16557 = vmatprep.subr.bf16.mxu0 %v17382_v3 }
0x704d   :  { %v11365_v19 = vpop.permute.xlu0 %11364 }
0x704e   :  { %15603 = vmatmul.mubr.msk.f32.vlgmr.msra.gmra.mrb[118].mxu1 %vm367_vm4, %v11365_v19  ;;  %15614 = vmatmul.mubr.msk.f32.vlgmr.msra.gmra.mrb[132].mxu0 %vm367_vm4, %v11365_v19 }
0x704f   :  { %16553 = vmatpush3.bf16.msra.mxu1 %v19442_v34  ;;  %15624 = vmatprep.mubr.msk.f32.mxu1 %vm17383_vm0, %v17384_v10 }
0x7050   :  { %16554 = vmatprep.subr.bf16.mxu1 %v17382_v3  ;;  %16559 = vmatpush3.bf16.msra.mxu0 %v19496_v45 }
0x7051   :  { %16560 = vmatprep.subr.bf16.mxu0 %v17382_v3  ;;  %15635 = vmatprep.mubr.msk.f32.mxu0 %vm17383_vm0, %v17384_v10 }
0x7053   :  { %16556 = vmatpush3.bf16.msra.mxu1 %v19448_v46 }
0x7054   :  { %16562 = vmatpush3.bf16.msra.mxu0 %v19502_v51  ;;  %16563 = vmatprep.subr.bf16.mxu1 %v17382_v3 }
0x7055   :  { %16569 = vmatprep.subr.bf16.mxu0 %v17382_v3 }
0x7056   :  { %15625 = vmatmul.mubr.msk.f32.vlgmr.msra.gmra.mrb[120].mxu1 %vm367_vm4, %v11468_v26 }
0x7057   :  { %16565 = vmatpush3.bf16.msra.mxu1 %v19513_v6  ;;  %15646 = vmatprep.mubr.msk.f32.mxu1 %vm17383_vm0, %v17384_v10 }
0x7058   :  { %16566 = vmatprep.subr.bf16.mxu1 %v17382_v3 }
0x705b   :  { %16568 = vmatpush3.bf16.msra.mxu1 %v19538_v30 }
0x705c   :  { %16575 = vmatprep.subr.bf16.mxu1 %v17382_v3 }
0x7119   :  { %v11359_v55 = vpop.f32.mrb[130].mxu0 }
0x711a   :  { %v15593_v25 = vpop.f32.mrb[131].mxu0 }
0x7121   :  { %v11434_v39 = vpop.f32.mrb[118].mxu1  ;;  %v11535_v22 = vpop.f32.mrb[132].mxu0 }
0x7122   :  { %v11435_v56 = vadd.f32 %v11434_v39, %v11359_v55  ;;  %v15604_v32 = vpop.f32.mrb[119].mxu1  ;;  %v15615_v50 = vpop.f32.mrb[133].mxu0 }
0x7124   :  { %v11438_v53 = vadd.f32 %v19581_v20, %v11435_v56 }
0x7126   :  { %17187 = vtanh.f32 %v11438_v53  ;;  %v13499_v37 = vmul.f32 -1.442695, %v11438_v53 }
0x7129   :  { %v11608_v33 = vpop.f32.mrb[120].mxu1 }
0x712a   :  { %v11609_v49 = vadd.f32 %v11608_v33, %v11535_v22  ;;  %v15626_v0 = vpop.f32.mrb[121].mxu1 }
0x712c   :  { %v11612_v4 = vadd.f32 %v19465_v62, %v11609_v49 }
0x712e   :  { %17189 = vtanh.f32 %v11612_v4  ;;  %v13502_v42 = vmul.f32 -1.442695, %v11612_v4 }
0x712f   :  { %17191 = vpow2.f32 %v13499_v37 }
0x7130   :  { %v17188_v40 = vpop.eup %17187  ;;  %17193 = vpow2.f32 %v13502_v42 }
0x7131   :  { %11448 = vrot.lane.b32.xlu1 %v17188_v40, %s17385_s0 }
0x7138   :  { %v17190_v59 = vpop.eup %17189 }
0x7139   :  { %11622 = vrot.lane.b32.xlu0 %v17190_v59, %s17385_s0  ;;  %v17192_v61 = vpop.eup %17191 }
0x713a   :  { %v11442_v19 = vadd.f32 1.0, %v17192_v61  ;;  %v17194_v26 = vpop.eup %17193 }
0x713b   :  { %v11616_v55 = vadd.f32 1.0, %v17194_v26 }
0x713c   :  { %17195 = vrcp.f32 %v11442_v19 }
0x713d   :  { %17197 = vrcp.f32 %v11616_v55  ;;  %v11814_v55 = vld [vmem:[#allocation2 + $0x6] sm:$0x3] }
0x7146   :  { %v17196_v25 = vpop.eup %17195 }
0x7147   :  { %v17198_v56 = vpop.eup %17197  ;;  %v11446_v53 = vmul.f32 %v17196_v25, %v19591_v58 }
0x7148   :  { %v11620_v0 = vmul.f32 %v17198_v56, %v19595_v28 }
0x71a3   :  { %v11449_v39 = vpop.permute.xlu1 %11448 }
0x71a4   :  { %v11451_v22 = vmul.f32 %v17196_v25, %v11449_v39 }
0x71a6   :  { %11453 = vrot.lane.b32.xlu1 %v11451_v22, %s17386_s29 }
0x71ab   :  { %v11623_v32 = vpop.permute.xlu0 %11622 }
0x71ac   :  { %v11625_v50 = vmul.f32 %v17198_v56, %v11623_v32 }
0x71ae   :  { %11627 = vrot.lane.b32.xlu0 %v11625_v50, %s17386_s29 }
0x7218   :  { %v11454_v33 = vpop.permute.xlu1 %11453 }
0x7219   :  { %v19638_v49 = vadd.f32 %v11454_v33, %v11446_v53 }
0x721b   :  { %17199 = vtanh.f32 %v19638_v49 }
0x7220   :  { %v11628_v4 = vpop.permute.xlu0 %11627 }
0x7221   :  { %v19642_v40 = vadd.f32 %v11628_v4, %v11620_v0 }
0x7223   :  { %17201 = vtanh.f32 %v19642_v40 }
0x7225   :  { %v17200_v59 = vpop.eup %17199 }
0x7226   :  { %11459 = vrot.lane.b32.xlu1 %v17200_v59, %s17385_s0 }
0x722d   :  { %v17202_v37 = vpop.eup %17201 }
0x722e   :  { %11633 = vrot.lane.b32.xlu0 %v17202_v37, %s17385_s0 }
0x7298   :  { %v11460_v42 = vpop.permute.xlu1 %11459 }
0x7299   :  { %v11462_v58 = vmul.f32 %v17196_v25, %v11460_v42 }
0x729b   :  { %11464 = vrot.lane.b32.xlu1 %v11462_v58, %s17386_s29 }
0x72a0   :  { %v11634_v61 = vpop.permute.xlu0 %11633 }
0x72a1   :  { %v11636_v19 = vmul.f32 %v17198_v56, %v11634_v61 }
0x72a3   :  { %11710 = vrot.lane.b32.xlu0 %v11636_v19, %s17386_s29 }
0x730d   :  { %v11465_v28 = vpop.permute.xlu1 %11464 }
0x730e   :  { %11467 = vst.msk [vmem:[#allocation3 + $0x2] sm:$0x3] %vm11120_vm10, %v11465_v28  ;;  %15636 = vmatmul.mubr.msk.f32.vlgmr.msra.gmra.mrb[134].mxu0 %vm367_vm4, %v11465_v28 }
0x730f   :  { %16571 = vmatpush3.bf16.msra.mxu0 %v19426_v15  ;;  %15657 = vmatprep.mubr.msk.f32.mxu0 %vm17383_vm0, %v17384_v10 }
0x7310   :  { %16572 = vmatprep.subr.bf16.mxu0 %v17382_v3 }
0x7313   :  { %16574 = vmatpush3.bf16.msra.mxu0 %v19430_v23 }
0x7314   :  { %16581 = vmatprep.subr.bf16.mxu0 %v17382_v3 }
0x7315   :  { %v11711_v26 = vpop.permute.xlu0 %11710 }
0x7316   :  { %15647 = vmatmul.mubr.msk.f32.vlgmr.msra.gmra.mrb[122].mxu1 %vm367_vm4, %v11711_v26  ;;  %15658 = vmatmul.mubr.msk.f32.vlgmr.msra.gmra.mrb[136].mxu0 %vm367_vm4, %v11711_v26 }
0x7317   :  { %16577 = vmatpush3.bf16.msra.mxu1 %v19442_v34  ;;  %15668 = vmatprep.mubr.msk.f32.mxu1 %vm17383_vm0, %v17384_v10 }
0x7318   :  { %16578 = vmatprep.subr.bf16.mxu1 %v17382_v3  ;;  %16583 = vmatpush3.bf16.msra.mxu0 %v19496_v45 }
0x7319   :  { %16584 = vmatprep.subr.bf16.mxu0 %v17382_v3  ;;  %15679 = vmatprep.mubr.msk.f32.mxu0 %vm17383_vm0, %v17384_v10 }
0x731b   :  { %16580 = vmatpush3.bf16.msra.mxu1 %v19448_v46 }
0x731c   :  { %16586 = vmatpush3.bf16.msra.mxu0 %v19502_v51  ;;  %16587 = vmatprep.subr.bf16.mxu1 %v17382_v3 }
0x731d   :  { %16593 = vmatprep.subr.bf16.mxu0 %v17382_v3 }
0x731e   :  { %15669 = vmatmul.mubr.msk.f32.vlgmr.msra.gmra.mrb[124].mxu1 %vm367_vm4, %v11814_v55 }
0x731f   :  { %16589 = vmatpush3.bf16.msra.mxu1 %v19513_v6  ;;  %15690 = vmatprep.mubr.msk.f32.mxu1 %vm17383_vm0, %v17384_v10 }
0x7320   :  { %16590 = vmatprep.subr.bf16.mxu1 %v17382_v3 }
0x7323   :  { %16592 = vmatpush3.bf16.msra.mxu1 %v19538_v30 }
0x7324   :  { %16599 = vmatprep.subr.bf16.mxu1 %v17382_v3 }
0x73e1   :  { %v11705_v25 = vpop.f32.mrb[134].mxu0 }
0x73e2   :  { %v15637_v39 = vpop.f32.mrb[135].mxu0 }
0x73e9   :  { %v11780_v22 = vpop.f32.mrb[122].mxu1  ;;  %v11881_v56 = vpop.f32.mrb[136].mxu0 }
0x73ea   :  { %v11781_v32 = vadd.f32 %v11780_v22, %v11705_v25  ;;  %v15648_v50 = vpop.f32.mrb[123].mxu1  ;;  %v15659_v53 = vpop.f32.mrb[137].mxu0 }
0x73ec   :  { %v11784_v33 = vadd.f32 %v19581_v20, %v11781_v32 }
0x73ee   :  { %17203 = vtanh.f32 %v11784_v33  ;;  %v13505_v61 = vmul.f32 -1.442695, %v11784_v33 }
0x73f1   :  { %v11954_v0 = vpop.f32.mrb[124].mxu1 }
0x73f2   :  { %v11955_v4 = vadd.f32 %v11954_v0, %v11881_v56  ;;  %v15670_v59 = vpop.f32.mrb[125].mxu1 }
0x73f4   :  { %v11958_v37 = vadd.f32 %v19465_v62, %v11955_v4 }
0x73f6   :  { %17205 = vtanh.f32 %v11958_v37  ;;  %v13508_v19 = vmul.f32 -1.442695, %v11958_v37 }
0x73f7   :  { %17207 = vpow2.f32 %v13505_v61 }
0x73f8   :  { %v17204_v42 = vpop.eup %17203  ;;  %17209 = vpow2.f32 %v13508_v19 }
0x73f9   :  { %11794 = vrot.lane.b32.xlu1 %v17204_v42, %s17385_s0 }
0x7400   :  { %v17206_v58 = vpop.eup %17205 }
0x7401   :  { %11968 = vrot.lane.b32.xlu0 %v17206_v58, %s17385_s0  ;;  %v17208_v28 = vpop.eup %17207 }
0x7402   :  { %v11788_v26 = vadd.f32 1.0, %v17208_v28  ;;  %v17210_v55 = vpop.eup %17209 }
0x7403   :  { %v11962_v25 = vadd.f32 1.0, %v17210_v55 }
0x7404   :  { %17211 = vrcp.f32 %v11788_v26 }
0x7405   :  { %17213 = vrcp.f32 %v11962_v25  ;;  %v12160_v25 = vld [vmem:[#allocation2 + $0x8] sm:$0x3] }
0x740e   :  { %v17212_v39 = vpop.eup %17211 }
0x740f   :  { %v17214_v32 = vpop.eup %17213  ;;  %v11792_v33 = vmul.f32 %v17212_v39, %v19638_v49 }
0x7410   :  { %v11966_v59 = vmul.f32 %v17214_v32, %v19642_v40 }
0x746b   :  { %v11795_v22 = vpop.permute.xlu1 %11794 }
0x746c   :  { %v11797_v56 = vmul.f32 %v17212_v39, %v11795_v22 }
0x746e   :  { %11799 = vrot.lane.b32.xlu1 %v11797_v56, %s17386_s29 }
0x7473   :  { %v11969_v50 = vpop.permute.xlu0 %11968 }
0x7474   :  { %v11971_v53 = vmul.f32 %v17214_v32, %v11969_v50 }
0x7476   :  { %11973 = vrot.lane.b32.xlu0 %v11971_v53, %s17386_s29 }
0x74e0   :  { %v11800_v0 = vpop.permute.xlu1 %11799 }
0x74e1   :  { %v19685_v4 = vadd.f32 %v11800_v0, %v11792_v33 }
0x74e3   :  { %17215 = vtanh.f32 %v19685_v4 }
0x74e8   :  { %v11974_v37 = vpop.permute.xlu0 %11973 }
0x74e9   :  { %v19689_v42 = vadd.f32 %v11974_v37, %v11966_v59 }
0x74eb   :  { %17217 = vtanh.f32 %v19689_v42 }
0x74ed   :  { %v17216_v58 = vpop.eup %17215 }
0x74ee   :  { %11805 = vrot.lane.b32.xlu1 %v17216_v58, %s17385_s0 }
0x74f5   :  { %v17218_v61 = vpop.eup %17217 }
0x74f6   :  { %11979 = vrot.lane.b32.xlu0 %v17218_v61, %s17385_s0 }
0x7560   :  { %v11806_v19 = vpop.permute.xlu1 %11805 }
0x7561   :  { %v11808_v49 = vmul.f32 %v17212_v39, %v11806_v19 }
0x7563   :  { %11810 = vrot.lane.b32.xlu1 %v11808_v49, %s17386_s29 }
0x7568   :  { %v11980_v28 = vpop.permute.xlu0 %11979 }
0x7569   :  { %v11982_v26 = vmul.f32 %v17214_v32, %v11980_v28 }
0x756b   :  { %12056 = vrot.lane.b32.xlu0 %v11982_v26, %s17386_s29 }
0x75d5   :  { %v11811_v40 = vpop.permute.xlu1 %11810 }
0x75d6   :  { %11813 = vst.msk [vmem:[#allocation3 + $0x4] sm:$0x3] %vm11120_vm10, %v11811_v40  ;;  %15680 = vmatmul.mubr.msk.f32.vlgmr.msra.gmra.mrb[138].mxu0 %vm367_vm4, %v11811_v40 }
0x75d7   :  { %16595 = vmatpush3.bf16.msra.mxu0 %v19426_v15  ;;  %15701 = vmatprep.mubr.msk.f32.mxu0 %vm17383_vm0, %v17384_v10 }
0x75d8   :  { %16596 = vmatprep.subr.bf16.mxu0 %v17382_v3 }
0x75db   :  { %16598 = vmatpush3.bf16.msra.mxu0 %v19430_v23 }
0x75dc   :  { %16605 = vmatprep.subr.bf16.mxu0 %v17382_v3 }
0x75dd   :  { %v12057_v55 = vpop.permute.xlu0 %12056 }
0x75de   :  { %15691 = vmatmul.mubr.msk.f32.vlgmr.msra.gmra.mrb[126].mxu1 %vm367_vm4, %v12057_v55  ;;  %15702 = vmatmul.mubr.msk.f32.vlgmr.msra.gmra.mrb[140].mxu0 %vm367_vm4, %v12057_v55 }
0x75df   :  { %16601 = vmatpush3.bf16.msra.mxu1 %v19442_v34  ;;  %15712 = vmatprep.mubr.msk.f32.mxu1 %vm17383_vm0, %v17384_v10 }
0x75e0   :  { %16602 = vmatprep.subr.bf16.mxu1 %v17382_v3  ;;  %16607 = vmatpush3.bf16.msra.mxu0 %v19496_v45 }
0x75e1   :  { %16608 = vmatprep.subr.bf16.mxu0 %v17382_v3  ;;  %15723 = vmatprep.mubr.msk.f32.mxu0 %vm17383_vm0, %v17384_v10 }
0x75e3   :  { %16604 = vmatpush3.bf16.msra.mxu1 %v19448_v46 }
0x75e4   :  { %16610 = vmatpush3.bf16.msra.mxu0 %v19502_v51  ;;  %16611 = vmatprep.subr.bf16.mxu1 %v17382_v3 }
0x75e5   :  { %16617 = vmatprep.subr.bf16.mxu0 %v17382_v3 }
0x75e6   :  { %15713 = vmatmul.mubr.msk.f32.vlgmr.msra.gmra.mrb[128].mxu1 %vm367_vm4, %v12160_v25 }
0x75e7   :  { %16613 = vmatpush3.bf16.msra.mxu1 %v19513_v6  ;;  %15734 = vmatprep.mubr.msk.f32.mxu1 %vm17383_vm0, %v17384_v10 }
0x75e8   :  { %16614 = vmatprep.subr.bf16.mxu1 %v17382_v3 }
0x75eb   :  { %16616 = vmatpush3.bf16.msra.mxu1 %v19538_v30 }
0x75ec   :  { %16623 = vmatprep.subr.bf16.mxu1 %v17382_v3 }
0x76a9   :  { %v12051_v39 = vpop.f32.mrb[138].mxu0 }
0x76aa   :  { %v15681_v22 = vpop.f32.mrb[139].mxu0 }
0x76b1   :  { %v12126_v56 = vpop.f32.mrb[126].mxu1  ;;  %v12227_v32 = vpop.f32.mrb[140].mxu0 }
0x76b2   :  { %v12127_v50 = vadd.f32 %v12126_v56, %v12051_v39  ;;  %v15692_v53 = vpop.f32.mrb[127].mxu1  ;;  %v15703_v33 = vpop.f32.mrb[141].mxu0 }
0x76b4   :  { %v12130_v0 = vadd.f32 %v19581_v20, %v12127_v50 }
0x76b6   :  { %17219 = vtanh.f32 %v12130_v0  ;;  %v13511_v28 = vmul.f32 -1.442695, %v12130_v0 }
0x76b9   :  { %v12300_v59 = vpop.f32.mrb[128].mxu1 }
0x76ba   :  { %v12301_v37 = vadd.f32 %v12300_v59, %v12227_v32  ;;  %v15714_v58 = vpop.f32.mrb[129].mxu1 }
0x76bc   :  { %v12304_v61 = vadd.f32 %v19465_v62, %v12301_v37 }
0x76be   :  { %17221 = vtanh.f32 %v12304_v61  ;;  %v13514_v26 = vmul.f32 -1.442695, %v12304_v61 }
0x76bf   :  { %17223 = vpow2.f32 %v13511_v28 }
0x76c0   :  { %v17220_v19 = vpop.eup %17219  ;;  %17225 = vpow2.f32 %v13514_v26 }
0x76c1   :  { %12140 = vrot.lane.b32.xlu1 %v17220_v19, %s17385_s0 }
0x76c8   :  { %v17222_v49 = vpop.eup %17221 }
0x76c9   :  { %12314 = vrot.lane.b32.xlu0 %v17222_v49, %s17385_s0  ;;  %v17224_v40 = vpop.eup %17223 }
0x76ca   :  { %v12134_v55 = vadd.f32 1.0, %v17224_v40  ;;  %v17226_v25 = vpop.eup %17225 }
0x76cb   :  { %v12308_v39 = vadd.f32 1.0, %v17226_v25 }
0x76cc   :  { %17227 = vrcp.f32 %v12134_v55 }
0x76cd   :  { %17229 = vrcp.f32 %v12308_v39 }
0x76d6   :  { %v17228_v22 = vpop.eup %17227 }
0x76d7   :  { %v17230_v50 = vpop.eup %17229  ;;  %v12138_v0 = vmul.f32 %v17228_v22, %v19685_v4 }
0x76d8   :  { %v12312_v58 = vmul.f32 %v17230_v50, %v19689_v42 }
0x7733   :  { %v12141_v56 = vpop.permute.xlu1 %12140 }
0x7734   :  { %v12143_v32 = vmul.f32 %v17228_v22, %v12141_v56 }
0x7736   :  { %12145 = vrot.lane.b32.xlu1 %v12143_v32, %s17386_s29 }
0x773b   :  { %v12315_v53 = vpop.permute.xlu0 %12314 }
0x773c   :  { %v12317_v33 = vmul.f32 %v17230_v50, %v12315_v53 }
0x773e   :  { %12319 = vrot.lane.b32.xlu0 %v12317_v33, %s17386_s29 }
0x77a8   :  { %v12146_v59 = vpop.permute.xlu1 %12145 }
0x77a9   :  { %v19732_v37 = vadd.f32 %v12146_v59, %v12138_v0 }
0x77ab   :  { %17231 = vtanh.f32 %v19732_v37 }
0x77b0   :  { %v12320_v61 = vpop.permute.xlu0 %12319 }
0x77b1   :  { %v19736_v19 = vadd.f32 %v12320_v61, %v12312_v58 }
0x77b3   :  { %17233 = vtanh.f32 %v19736_v19 }
0x77b5   :  { %v17232_v49 = vpop.eup %17231 }
0x77b6   :  { %12151 = vrot.lane.b32.xlu1 %v17232_v49, %s17385_s0 }
0x77bd   :  { %v17234_v28 = vpop.eup %17233 }
0x77be   :  { %12325 = vrot.lane.b32.xlu0 %v17234_v28, %s17385_s0 }
0x7828   :  { %v12152_v26 = vpop.permute.xlu1 %12151 }
0x7829   :  { %v12154_v4 = vmul.f32 %v17228_v22, %v12152_v26 }
0x782b   :  { %12156 = vrot.lane.b32.xlu1 %v12154_v4, %s17386_s29 }
0x7830   :  { %v12326_v40 = vpop.permute.xlu0 %12325 }
0x7831   :  { %v12328_v55 = vmul.f32 %v17230_v50, %v12326_v40 }
0x7833   :  { %12402 = vrot.lane.b32.xlu0 %v12328_v55, %s17386_s29 }
0x789d   :  { %v12157_v42 = vpop.permute.xlu1 %12156 }
0x789e   :  { %12159 = vst.msk [vmem:[#allocation3 + $0x6] sm:$0x3] %vm11120_vm10, %v12157_v42  ;;  %15724 = vmatmul.mubr.msk.f32.vlgmr.msra.gmra.mrb[142].mxu0 %vm367_vm4, %v12157_v42 }
0x789f   :  { %16619 = vmatpush3.bf16.msra.mxu0 %v19426_v15  ;;  %15745 = vmatprep.mubr.msk.f32.mxu0 %vm17383_vm0, %v17384_v10  ;;  %v12506_v15 = vld [vmem:[#allocation2 + $0xa] sm:$0x3] }
0x78a0   :  { %16620 = vmatprep.subr.bf16.mxu0 %v17382_v3 }
0x78a3   :  { %16622 = vmatpush3.bf16.msra.mxu0 %v19430_v23 }
0x78a4   :  { %16629 = vmatprep.subr.bf16.mxu0 %v17382_v3 }
0x78a5   :  { %v12403_v25 = vpop.permute.xlu0 %12402 }
0x78a6   :  { %15735 = vmatmul.mubr.msk.f32.vlgmr.msra.gmra.mrb[130].mxu1 %vm367_vm4, %v12403_v25  ;;  %15746 = vmatmul.mubr.msk.f32.vlgmr.msra.gmra.mrb[144].mxu0 %vm367_vm4, %v12403_v25 }
0x78a7   :  { %16625 = vmatpush3.bf16.msra.mxu1 %v19442_v34  ;;  %15756 = vmatprep.mubr.msk.f32.mxu1 %vm17383_vm0, %v17384_v10 }
0x78a8   :  { %16626 = vmatprep.subr.bf16.mxu1 %v17382_v3  ;;  %16631 = vmatpush3.bf16.msra.mxu0 %v19496_v45 }
0x78a9   :  { %16632 = vmatprep.subr.bf16.mxu0 %v17382_v3  ;;  %15767 = vmatprep.mubr.msk.f32.mxu0 %vm17383_vm0, %v17384_v10 }
0x78ab   :  { %16628 = vmatpush3.bf16.msra.mxu1 %v19448_v46 }
0x78ac   :  { %16635 = vmatprep.subr.bf16.mxu1 %v17382_v3  ;;  %16634 = vmatpush3.bf16.msra.mxu0 %v19502_v51 }
0x78ae   :  { %15757 = vmatmul.mubr.msk.f32.vlgmr.msra.gmra.mrb[132].mxu1 %vm367_vm4, %v12506_v15 }
0x78af   :  { %16637 = vmatpush3.bf16.msra.mxu1 %v19513_v6  ;;  %15778 = vmatprep.mubr.msk.f32.mxu1 %vm17383_vm0, %v17384_v10 }
0x78b0   :  { %16638 = vmatprep.subr.bf16.mxu1 %v17382_v3 }
0x78b3   :  { %16640 = vmatpush3.bf16.msra.mxu1 %v19538_v30 }
0x78b4   :  { %16651 = vmatprep.subr.msk.bf16.mxu1 %vm18124_vm14, %v19393_v29 }
0x7971   :  { %v12397_v23 = vpop.f32.mrb[142].mxu0 }
0x7972   :  { %v15725_v34 = vpop.f32.mrb[143].mxu0 }
0x7979   :  { %v12472_v46 = vpop.f32.mrb[130].mxu1  ;;  %v12573_v45 = vpop.f32.mrb[144].mxu0 }
0x797a   :  { %v12473_v51 = vadd.f32 %v12472_v46, %v12397_v23  ;;  %v15736_v39 = vpop.f32.mrb[131].mxu1  ;;  %v15747_v22 = vpop.f32.mrb[145].mxu0 }
0x797c   :  { %v12476_v6 = vadd.f32 %v19581_v20, %v12473_v51 }
0x797e   :  { %17235 = vtanh.f32 %v12476_v6  ;;  %v13517_v33 = vmul.f32 -1.442695, %v12476_v6 }
0x7981   :  { %v12646_v56 = vpop.f32.mrb[132].mxu1 }
0x7982   :  { %v12647_v32 = vadd.f32 %v12646_v56, %v12573_v45  ;;  %v15758_v50 = vpop.f32.mrb[133].mxu1  ;;  %v12867_v56 = vld [vmem:[#allocation3] sm:$0xff] }
0x7984   :  { %v12650_v3 = vadd.f32 %v19465_v62, %v12647_v32 }
0x7986   :  { %17237 = vtanh.f32 %v12650_v3  ;;  %v13520_v0 = vmul.f32 -1.442695, %v12650_v3 }
0x7987   :  { %17239 = vpow2.f32 %v13517_v33 }
0x7988   :  { %v17236_v30 = vpop.eup %17235  ;;  %17241 = vpow2.f32 %v13520_v0 }
0x7989   :  { %12486 = vrot.lane.b32.xlu1 %v17236_v30, %s17385_s0 }
0x7990   :  { %v17238_v53 = vpop.eup %17237 }
0x7991   :  { %12660 = vrot.lane.b32.xlu0 %v17238_v53, %s17385_s0  ;;  %v17240_v59 = vpop.eup %17239 }
0x7992   :  { %v12480_v58 = vadd.f32 1.0, %v17240_v59  ;;  %v17242_v61 = vpop.eup %17241 }
0x7993   :  { %v12654_v49 = vadd.f32 1.0, %v17242_v61 }
0x7994   :  { %17243 = vrcp.f32 %v12480_v58 }
0x7995   :  { %17245 = vrcp.f32 %v12654_v49 }
0x799e   :  { %v17244_v28 = vpop.eup %17243 }
0x799f   :  { %v17246_v4 = vpop.eup %17245  ;;  %v12484_v42 = vmul.f32 %v17244_v28, %v19732_v37 }
0x79a0   :  { %v12658_v23 = vmul.f32 %v17246_v4, %v19736_v19 }
0x79fb   :  { %v12487_v26 = vpop.permute.xlu1 %12486 }
0x79fc   :  { %v12489_v62 = vmul.f32 %v17244_v28, %v12487_v26 }
0x79fe   :  { %12491 = vrot.lane.b32.xlu1 %v12489_v62, %s17386_s29 }
0x7a03   :  { %v12661_v40 = vpop.permute.xlu0 %12660 }
0x7a04   :  { %v12663_v55 = vmul.f32 %v17246_v4, %v12661_v40 }
0x7a06   :  { %12665 = vrot.lane.b32.xlu0 %v12663_v55, %s17386_s29  ;;  %v12869_v55 = vld [vmem:[%s19975_s12] sm:$0xff] }
0x7a70   :  { %v12492_v25 = vpop.permute.xlu1 %12491 }
0x7a71   :  { %v12494_v15 = vadd.f32 %v12492_v25, %v12484_v42  ;;  %v12870_v42 = vld [vmem:[%s19975_s12 + $0x8] sm:$0xff] }
0x7a72   :  { %v16641_v25 = vpack.c.bf16 %v12870_v42, %v12869_v55 }
0x7a73   :  { %17247 = vtanh.f32 %v12494_v15 }
0x7a74   :  { %16642 = vmatprep.subr.bf16.mxu0 %v16641_v25 }
0x7a78   :  { %v12666_v34 = vpop.permute.xlu0 %12665 }
0x7a79   :  { %v19781_v46 = vadd.f32 %v12666_v34, %v12658_v23  ;;  %v12872_v23 = vld [vmem:[%s19975_s12 + $0x18] sm:$0xff] }
0x7a7b   :  { %17249 = vtanh.f32 %v19781_v46 }
0x7a7d   :  { %v17248_v45 = vpop.eup %17247 }
0x7a7e   :  { %12497 = vrot.lane.b32.xlu1 %v17248_v45, %s17385_s0  ;;  %v3567_v45 = vld [vmem:[%s17413_s9] sm:$0xff]  ;;  %s19976_s9 = sld [smem:[#allocation30_spill]] }
0x7a7f   :  { %v3568_v38 = vcvt.s32.f32 %v3567_v45 }
0x7a81   :  { %vm3569_vm0 = vcmp.ne.f32.partialorder %v3563_v2, %v3568_v38  ;;  %v13364_v2 = vsel %vm6047_vm12, 1.0, %v17384_v10 }
0x7a82   :  { %v13282_v1 = vsel %vm3569_vm0, 1.0, %v17384_v10 }
0x7a85   :  { %v17250_v51 = vpop.eup %17249 }
0x7a86   :  { %12671 = vrot.lane.b32.xlu0 %v17250_v51, %s17385_s0 }
0x7af0   :  { %v12498_v39 = vpop.permute.xlu1 %12497 }
0x7af1   :  { %v12500_v22 = vmul.f32 %v17244_v28, %v12498_v39 }
0x7af3   :  { %12502 = vrot.lane.b32.xlu1 %v12500_v22, %s17386_s29 }
0x7af8   :  { %v12672_v37 = vpop.permute.xlu0 %12671 }
0x7af9   :  { %v12674_v6 = vmul.f32 %v17246_v4, %v12672_v37 }
0x7afb   :  { %12748 = vrot.lane.b32.xlu0 %v12674_v6, %s17386_s29 }
0x7b65   :  { %v12503_v19 = vpop.permute.xlu1 %12502 }
0x7b66   :  { %12505 = vst.msk [vmem:[#allocation3 + $0x8] sm:$0x3] %vm11120_vm10, %v12503_v19  ;;  %15768 = vmatmul.mubr.msk.f32.vlgmr.msra.gmra.mrb[146].mxu0 %vm367_vm4, %v12503_v19 }
0x7b67   :  { %15789 = vmatprep.mubr.msk.f32.mxu0 %vm367_vm4, %v12867_v56  ;;  %16644 = vmatpush3.bf16.msra.mxu0 %v16641_v25 }
0x7b6d   :  { %v12749_v32 = vpop.permute.xlu0 %12748 }
0x7b6e   :  { %12853 = vst.msk [vmem:[#allocation6] sm:$0x3] %vm11120_vm10, %v12749_v32  ;;  %15779 = vmatmul.mubr.msk.f32.vlgmr.msra.gmra.mrb[134].mxu1 %vm367_vm4, %v12749_v32 }
0x7b6f   :  { %16654 = vmatpush3.bf16.xpose.msk.msra.mxu1 %vm18124_vm14, %v19393_v29 }
0x7c39   :  { %v12743_v50 = vpop.f32.mrb[146].mxu0 }
0x7c3a   :  { %v15769_v3 = vpop.f32.mrb[147].mxu0 }
0x7c41   :  { %v12818_v30 = vpop.f32.mrb[134].mxu1 }
0x7c42   :  { %v12819_v53 = vadd.f32 %v12818_v30, %v12743_v50  ;;  %v15780_v33 = vpop.f32.mrb[135].mxu1 }
0x7c43   :  { %v13481_v33 = vld [vmem:[%s17483_s20 + $0x1] ss:$0 sm:$0xff] }
0x7c44   :  { %v12822_v0 = vadd.f32 %v19581_v20, %v12819_v53  ;;  %v13419_v53 = vld [vmem:[%s17483_s20] ss:$0 sm:$0xff]  ;;  %s17394_s20 = smov 16  }
0x7c46   :  { %17251 = vtanh.f32 %v12822_v0  ;;  %v13523_v58 = vmul.f32 -1.442695, %v12822_v0 }
0x7c48   :  { %17253 = vpow2.f32 %v13523_v58  ;;  %v10631_v58 = vadd.f32 %v13481_v33, %v19578_v8 }
0x7c50   :  { %v17252_v59 = vpop.eup %17251 }
0x7c51   :  { %12832 = vrot.lane.b32.xlu1 %v17252_v59, %s17385_s0  ;;  %v9042_v59 = vadd.f32 %v13419_v53, %v19262_v11 }
0x7c52   :  { %v17254_v61 = vpop.eup %17253 }
0x7c53   :  { %v12826_v49 = vadd.f32 1.0, %v17254_v61 }
0x7c55   :  { %17255 = vrcp.f32 %v12826_v49 }
0x7c5f   :  { %v17256_v28 = vpop.eup %17255 }
0x7c60   :  { %v12830_v62 = vmul.f32 %v17256_v28, %v12494_v15  ;;  %v12871_v15 = vld [vmem:[%s19975_s12 + $0x10] sm:$0xff] }
0x7c61   :  { %v16645_v34 = vpack.c.bf16 %v12872_v23, %v12871_v15 }
0x7c63   :  { %16646 = vmatprep.subr.bf16.mxu0 %v16645_v34 }
0x7c64   :  { %16648 = vmatpush3.bf16.msra.mxu0 %v16645_v34 }
0x7cc3   :  { %v12833_v29 = vpop.permute.xlu1 %12832 }
0x7cc4   :  { %v12835_v26 = vmul.f32 %v17256_v28, %v12833_v29 }
0x7cc6   :  { %12837 = vrot.lane.b32.xlu0 %v12835_v26, %s17386_s29 }
0x7d38   :  { %v12838_v20 = vpop.permute.xlu0 %12837 }
0x7d39   :  { %v19799_v4 = vadd.f32 %v12838_v20, %v12830_v62 }
0x7d3b   :  { %17257 = vtanh.f32 %v19799_v4 }
0x7d45   :  { %v17258_v40 = vpop.eup %17257 }
0x7d46   :  { %12843 = vrot.lane.b32.xlu1 %v17258_v40, %s17385_s0  ;;  %s17395_s0 = smov 48  }
0x7d4a   :  { %16735 = vrot.lane.b32.xlu1 %v16734_v47, %s17391_s27 }
0x7d4e   :  { %16745 = vrot.lane.b32.xlu1 %v16744_v14, %s17392_s23 }
0x7db8   :  { %v12844_v51 = vpop.permute.xlu1 %12843 }
0x7db9   :  { %v12846_v39 = vmul.f32 %v17256_v28, %v12844_v51 }
0x7dbb   :  { %12848 = vrot.lane.b32.xlu0 %v12846_v39, %s17386_s29 }
0x7dbc   :  { %v16736_v47 = vpop.permute.xlu1 %16735 }
0x7dbd   :  { %v16738_v13 = vunpack.i.h.bf16 %v16736_v47  ;;  %v16737_v52 = vunpack.i.l.bf16 %v16736_v47 }
0x7dbf   :  { %16740 = vrot.lane.b32.xlu0 %v16739_v16, %s17393_s26  ;;  %v6050_v16 = vmax.f32 %v13364_v2, 0.0  ;;  %v4584_v14 = vmax.f32 %v4143_v31, %v16737_v52 }
0x7dc0   :  { %v16746_v9 = vpop.permute.xlu1 %16745 }
0x7dc1   :  { %v6491_v17 = vmax.f32 %v6050_v16, %v16738_v13  ;;  %v16748_v7 = vunpack.i.h.bf16 %v16746_v9  ;;  %v16747_v22 = vunpack.i.l.bf16 %v16746_v9 }
0x7dc3   :  { %7458 = vperm.xlu0 %16749, %v13282_v1  }
0x7e2d   :  { %v12849_v41 = vpop.permute.xlu0 %12848 }
0x7e2e   :  { %12851 = vst.msk [vmem:[#allocation3 + $0xa] sm:$0x3] %vm11120_vm10, %v12849_v41  ;;  %12855 = vst.msk [vmem:[#allocation6 + $0x2] sm:$0x3] %vm11120_vm10, %v12849_v41 }
0x7e31   :  { %v16741_v35 = vpop.permute.xlu0 %16740 }
0x7e32   :  { %v16743_v63 = vunpack.i.h.bf16 %v16741_v35  ;;  %v16742_v5 = vunpack.i.l.bf16 %v16741_v35 }
0x7e34   :  { %v5025_v10 = vmax.f32 %v4584_v14, %v16742_v5  ;;  %v6932_v37 = vmax.f32 %v6491_v17, %v16743_v63 }
0x7e35   :  { %v12868_v6 = vld [vmem:[#allocation3 + $0x8] sm:$0xf] }
0x7e36   :  { %v5458_v19 = vmax.f32 %v5025_v10, %v16747_v22  ;;  %v7365_v56 = vmax.f32 %v6932_v37, %v16748_v7  ;;  %15790 = vmatmul.mubr.msk.f32.vlgmr.msra.gmra.mrb[148].mxu0 %vm367_vm4, %v12868_v6 }
0x7e38   :  { %v16750_v32 = vpack.i.bf16 %v7365_v56, %v5458_v19 }
0x7e3a   :  { %16751 = vperm.xlu1 %16730, %v16750_v32  }
0x7e42   :  { %v7459_v50 = vpop.permute.xlu0 %7458 }
0x7e43   :  { %v7461_v3 = vmul.f32 %v7459_v50, %v18830_v18 }
0x7e45   :  { %v16655_v30 = vpack.c.bf16 %v7461_v3, %v18505_v36  ;;  %v13524_v36 = vld [vmem:[%s19976_s9] ss:$0 sm:$0xff] }
0x7e47   :  { %16657 = vmatprep.subr.msk.bf16.mxu1 %vm18124_vm14, %v16655_v30 }
0x7e48   :  { %16660 = vmatpush3.bf16.xpose.msk.msra.mxu1 %vm18124_vm14, %v16655_v30 }
0x7eb9   :  { %v16752_v0 = vpop.permute.xlu1 %16751 }
0x7eba   :  { %v16754_v61 = vunpack.i.h.bf16 %v16752_v0  ;;  %v16753_v49 = vunpack.i.l.bf16 %v16752_v0 }
0x7ebc   :  { %v10639_v18 = vmul.f32 %v16754_v61, %v10631_v58  ;;  %v9050_v28 = vmul.f32 %v16753_v49, %v9042_v59 }
0x7ebe   :  { %v16661_v29 = vpack.c.bf16 %v10639_v18, %v9050_v28 }
0x7ec0   :  { %16663 = vmatprep.subr.msk.bf16.mxu1 %vm18124_vm14, %v16661_v29 }
0x7ec1   :  { %16666 = vmatpush3.bf16.xpose.msk.msra.mxu1 %vm18124_vm14, %v16661_v29 }
0x7f09   :  { %v15791_v26 = vpop.f32.mrb[148].mxu0 }
0x7f0a   :  { %v12952_v62 = vpop.f32.mrb[149].mxu0  ;;  %v12958_v11 = vadd.f32 %v15791_v26, %v13524_v36 }
0x7f0b   :  { %v12953_v20 = vadd.f32 %v13524_v36, %v12952_v62 }
0x7f0d   :  { %15804 = vmatprep.mubr.msk.f32.mxu1 %vm367_vm4, %v12953_v20 }
0x7f0e   :  { %15805 = vmatmul.mubr.msk.f32.vlgmr.msra.gmra.mrb[136].mxu1 %vm367_vm4, %v12958_v11 }
0x7fe1   :  { %v15806_v8 = vpop.f32.mrb[136].mxu1 }
0x7fe2   :  { %13053 = vst.msk [vmem:[%s17598_s25 + $0x8] sm:$0xf] %vm13052_vm13, %v15806_v8  ;;  %v13042_v40 = vpop.f32.mrb[137].mxu1  ;;  %v13057_v55 = vsel %vm13052_vm13, %v15806_v8, -inf }
0x7fe3   :  { %13051 = vst.msk [vmem:[%s17598_s25] sm:$0xff] %vm5473_vm15, %v13042_v40  ;;  %13058 = vmax.xlane.f32.xlu0 %v13057_v55  ;;  %v13054_v44 = vsel %vm5473_vm15, %v13042_v40, -inf  ;;  %s19977_s25 = sld [smem:[#allocation33_spill]] }
0x7fe4   :  { %13055 = vmax.xlane.f32.xlu1 %v13054_v44 }
0x7ff5   :  { %7367 = vrot.lane.b32.xlu1 %v18706_v54, %s17394_s20 }
0x7ff9   :  { %5460 = vrot.lane.b32.xlu0 %v18410_v60, %s17394_s20  ;;  %5464 = vrot.lane.b32.xlu1 %v18473_v21, %s17386_s29 }
0x7ffd   :  { %7371 = vrot.lane.b32.xlu0 %v18769_v27, %s17386_s29  ;;  %5468 = vrot.lane.b32.xlu1 %v19007_v24, %s17395_s0 }
0x8001   :  { %7375 = vrot.lane.b32.xlu0 %v19336_v48, %s17395_s0 }
0x8070   :  { %v13059_v42 = vpop.xlane.xlu0 %13058 }
0x8071   :  { %v13061_v25 = vsub.f32 %v15806_v8, %v13059_v42  ;;  %v13056_v15 = vpop.xlane.xlu1 %13055 }
0x8072   :  { %v13060_v23 = vsub.f32 %v13042_v40, %v13056_v15 }
0x8073   :  { %v13064_v34 = vmul.f32 1.442695, %v13061_v25 }
0x8074   :  { %v13062_v54 = vmul.f32 1.442695, %v13060_v23  ;;  %v5461_v45 = vpop.permute.xlu0 %5460 }
0x8075   :  { %17259 = vpow2.f32 %v13064_v34  ;;  %v7368_v60 = vpop.permute.xlu1 %7367  ;;  %v5471_v24 = vsel %vm168_vm1, %v18348_v43, %v5461_v45 }
0x8076   :  { %17261 = vpow2.f32 %v13062_v54  ;;  %v7378_v27 = vsel %vm168_vm1, %v18644_v57, %v7368_v60 }
0x8078   :  { %v7372_v21 = vpop.permute.xlu0 %7371 }
0x8079   :  { %v5465_v51 = vpop.permute.xlu1 %5464  ;;  %v7379_v48 = vsel %vm367_vm4, %v7378_v27, %v7372_v21 }
0x807a   :  { %v5472_v38 = vsel %vm367_vm4, %v5471_v24, %v5465_v51 }
0x807c   :  { %v7376_v39 = vpop.permute.xlu0 %7375 }
0x807d   :  { %v7380_v1 = vsel %vm5473_vm15, %v7379_v48, %v7376_v39  ;;  %v5469_v47 = vpop.permute.xlu1 %5468 }
0x807e   :  { %7382 = vst.msk [vmem:[%s19977_s25] sm:$0xff] %vm1760_vm9, %v7380_v1  ;;  %v5474_v12 = vsel %vm5473_vm15, %v5472_v38, %v5469_v47 }
0x807f   :  { %v19873_v2 = vpop.eup %17259  ;;  %7381 = vst.msk [vmem:[%s19978_s1] sm:$0xff] %vm1760_vm9, %v5474_v12 }
0x8080   :  { %v19877_v57 = vpop.eup %17261  ;;  %v13069_v43 = vsel %vm13052_vm13, %v19873_v2, 0.0 }
0x8081   :  { %13070 = vadd.xlane.f32.xlu1 %v13069_v43  ;;  %v13066_v41 = vsel %vm5473_vm15, %v19877_v57, 0.0 }
0x8082   :  { %13067 = vadd.xlane.f32.xlu0 %v13066_v41 }
0x8092   :  { %12857 = vrot.lane.b32.xlu1 %v19781_v46, %s17390_s28 }
0x8098   :  { %12862 = vrot.lane.b32.xlu0 %v19799_v4, %s17390_s28 }
0x8099   :  { %17282 = shalt.err (!%p17279_p4)
}
0x809a   :  { %s17283_s11 = scalar_lea.hbm %s17603_s21, 64 }
0x809b   :  { %p17284_p5 = scmp.ne.s32.totalorder %s17603_s21, %s17283_s11  ;;  %p17287_p6 = scmp.lt.u32.totalorder %s17283_s11, %s17603_s21 }
0x809d   :  { %p17289_p7 = pnand %p17287_p6, %p17284_p5 }
0x809f   :  { %17292 = shalt.err (!%p17289_p7)
}
0x80a0   :  { %s17397_s15 = smov 2   ;;  %s17398_s28 = smov [#allocation4]  }
0x80a1   :  { %13107 = dma.vmem_to_hbm [thread:$0]  %s13102_s7, 64, %s17603_s21, [#allocation7], %s17386_s29, %s17386_s29, %s17397_s15  }
0x80a2   :  { %s13084_s16 = sshll.u32 %s17398_s28, 4  ;;  %s13085_s16 = int_to_ptr.vmem [resolvable:$true] %s13084_s16 }
0x80a3   :  { %s17293_s18 = scalar_lea.vmem %s13085_s16, 128  ;;  %p17298_p9 = scmp.lt.s32.totalorder %s13085_s16, %s13085_s16 }
0x80a4   :  { %p17294_p8 = scmp.ne.s32.totalorder %s13085_s16, %s17293_s18  ;;  %p17299_p10 = scmp.lt.s32.totalorder %s17293_s18, %s17293_s18 }
0x80a6   :  { %p17300_p11 = por %p17299_p10, %p17298_p9 }
0x80a8   :  { %p17301_p12 = pnand %p17300_p11, %p17294_p8 }
0x80aa   :  { %17304 = shalt.err (!%p17301_p12)
}
0x80ab   :  { %s19979_s22 = sld [smem:[#allocation31_spill]] }
0x80b1   :  { %s17305_s13 = scalar_lea.hbm %s19979_s22, 128 }
0x80b2   :  { %p17306_p13 = scmp.ne.s32.totalorder %s19979_s22, %s17305_s13  ;;  %p17309_p0 = scmp.lt.u32.totalorder %s17305_s13, %s19979_s22 }
0x80b4   :  { %p17311_p1 = pnand %p17309_p0, %p17306_p13 }
0x80b6   :  { %17314 = shalt.err (!%p17311_p1)
}
0x80b7   :  { %13087 = dma.vmem_to_hbm [thread:$0]  %s13085_s16, 128, %s19979_s22, [#allocation5]  }
0x80b8   :  { %s17399_s21 = smov [#allocation8]  }
0x80b9   :  { %s13113_s17 = sshll.u32 %s17399_s21, 4  ;;  %s13114_s17 = int_to_ptr.vmem [resolvable:$true] %s13113_s17 }
0x80ba   :  { %s17315_s3 = scalar_lea.vmem %s13114_s17, 64  ;;  %p17320_p3 = scmp.lt.s32.totalorder %s13114_s17, %s13114_s17 }
0x80bb   :  { %p17316_p2 = scmp.ne.s32.totalorder %s13114_s17, %s17315_s3  ;;  %p17321_p4 = scmp.lt.s32.totalorder %s17315_s3, %s17315_s3 }
0x80bd   :  { %p17322_p5 = por %p17321_p4, %p17320_p3 }
0x80bf   :  { %p17323_p6 = pnand %p17322_p5, %p17316_p2 }
0x810e   :  { %v13071_v46 = vpop.xlane.xlu1 %13070 }
0x810f   :  { %17263 = vrcp.f32 %v13071_v46  ;;  %v13068_v4 = vpop.xlane.xlu0 %13067 }
0x8110   :  { %17265 = vrcp.f32 %v13068_v4 }
0x8112   :  { %v12858_v13 = vpop.permute.xlu1 %12857 }
0x8113   :  { %12860 = vst.msk [vmem:[#allocation8] sm:$0x3] %vm11120_vm10, %v12858_v13  ;;  %v12863_v52 = vpop.permute.xlu0 %12862 }
0x8114   :  { %12866 = vst.msk [vmem:[#allocation8 + $0x2] sm:$0x3] %vm11120_vm10, %v12863_v52 }
0x8115   :  { %17326 = shalt.err (!%p17323_p6)
}
0x8116   :  { %s17327_s8 = scalar_lea.hbm %s17608_s5, 64 }
0x8117   :  { %p17328_p7 = scmp.ne.s32.totalorder %s17608_s5, %s17327_s8  ;;  %p17331_p8 = scmp.lt.u32.totalorder %s17327_s8, %s17608_s5 }
0x8119   :  { %p17333_p9 = pnand %p17331_p8, %p17328_p7 }
0x811b   :  { %17336 = shalt.err (!%p17333_p9)
}
0x811c   :  { %13119 = dma.vmem_to_hbm [thread:$0]  %s13114_s17, 64, %s17608_s5, [#allocation7], %s17386_s29, %s17386_s29, %s17397_s15   ;;  %v17264_v31 = vpop.eup %17263 }
0x811d   :  { %v17266_v16 = vpop.eup %17265  ;;  %v13075_v9 = vmul.f32 %v17264_v31, %v19873_v2 }
0x811e   :  { %v13074_v35 = vmul.f32 %v17266_v16, %v19877_v57 }
0x811f   :  { %13077 = vst.msk [vmem:[%s17593_s4 + $0x8] sm:$0xf] %vm13052_vm13, %v13075_v9 }
0x8120   :  { %13076 = vst.msk [vmem:[%s17593_s4] sm:$0xff] %vm5473_vm15, %v13074_v35 }
0x8121   :  { %17337 = dma.done.wait [#allocation5], 128  }
0x8122   :  { %17338 = vsyncadd [#allocation5], 4294967168 }
0x8123   :  { %17339 = dma.done.wait [#allocation7], 128  }
0x8124   :  { %17340 = vsyncadd [#allocation7], 4294967168 }
0x8125   :  { %13137 = vsyncpa [#allocation5], 1 }
0x8126   :  { %13138 = vsyncpa [#allocation7], 1 }

</bundles_post_ra>
